<compile_context>
chip_gen: v7x
topology: tpu7x:2x2x1
jax: 0.10.0
libtpu: 0.0.40
codegen_flags: <defaults>
</compile_context>

<pallas_src>
import functools

import jax
import jax.numpy as jnp
from jax import lax
from jax.experimental import pallas as pl
from jax.experimental.pallas import tpu as pltpu

_LANE = 128   # channel dims padded to a multiple of the TPU lane width
_WPAD = 16    # left spatial pad in scratch: bf16 sublane-tile (16 rows) aligned


def _round_up(x, m):
    return (x + m - 1) // m * m


def _const_spec(shape, index_map):
    """BlockSpec for a grid-invariant operand: single VMEM buffer (the block
    index never changes, so double-buffering only wastes VMEM)."""
    try:
        return pl.BlockSpec(shape, index_map, pipeline_mode=pl.Buffered(1))
    except (TypeError, AttributeError):   # jax without pipeline_mode support
        return pl.BlockSpec(shape, index_map)


# ----------------------------------------------------------------------------
# Fused Pallas kernel
# ----------------------------------------------------------------------------
def _conv3x3_im2col(xref, w_ref, Ho, Wo, stride):
    """3x3 'same' convolution read from a zero-haloed bf16 scratch ref.

    xref : (Hp, Wp, C) bf16 ref; conventional padded row p lives at scratch
           row p, conventional padded column p at scratch column p + _WPAD - 1
           (so the interior starts 16-aligned on the sublane axis).
    w_ref: (3, 3*C, Cout) bf16 ref packed as [kh, kw*C + ci, co].

    The kw taps are folded into the contraction (K = 3*C) with a W-axis
    im2col, so each kh is a single wide MXU matmul; accumulation is f32.
    """
    C = xref.shape[-1]
    Cout = w_ref.shape[-1]
    col0 = _WPAD - 1
    acc = jnp.zeros((Ho * Wo, Cout), jnp.float32)
    for kh in range(3):
        taps = []
        for kw in range(3):
            if stride == 1:
                taps.append(xref[kh:kh + Ho, col0 + kw:col0 + kw + Wo, :])
            else:
                # Subsample at the load: only the Wo columns that are actually
                # consumed are materialized (no post-hoc ::stride relayout).
                taps.append(xref[pl.ds(kh, Ho, stride),
                                 pl.ds(col0 + kw, Wo, stride), :])
        rows = jnp.concatenate(taps, axis=-1)                  # (Ho, Wo, 3*C)
        acc += jnp.dot(rows.reshape(Ho * Wo, 3 * C), w_ref[kh],
                       preferred_element_type=jnp.float32)
    return acc.reshape(Ho, Wo, Cout)


def _masked_block_kernel(*refs, stride, has_proj):
    if has_proj:
        (x_ref, w1_ref, s1_ref, b1_ref, w2_ref, s2_ref, b2_ref,
         ws_ref, ss_ref, bs_ref, out_ref, xpad_ref, mid_ref) = refs
    else:
        (x_ref, w1_ref, s1_ref, b1_ref, w2_ref, s2_ref, b2_ref,
         out_ref, xpad_ref, mid_ref) = refs
        ws_ref = ss_ref = bs_ref = None

    H, W, cin_p = x_ref.shape[1], x_ref.shape[2], x_ref.shape[3]
    _, Ho, Wo, cp = out_ref.shape

    # --- conv1 input: stage x into the zero-haloed bf16 scratch --------------
    # Only the halo is (re)zeroed each step; the interior is fully overwritten
    # and its store starts at sublane offset _WPAD (tile aligned for bf16), so
    # it lowers to plain unmasked stores instead of a relayout + vst.msk pass.
    Hp, Wp = xpad_ref.shape[0], xpad_ref.shape[1]
    zrow = jnp.zeros((Wp, cin_p), xpad_ref.dtype)
    zcol = jnp.zeros((Hp, 8, cin_p), xpad_ref.dtype)
    xpad_ref[0] = zrow                                   # top halo row
    xpad_ref[H + 1] = zrow                               # bottom halo row
    xpad_ref[:, _WPAD - 8:_WPAD, :] = zcol               # left halo column(s)
    xpad_ref[:, _WPAD + W:, :] = zcol                    # right halo column(s)
    xpad_ref[1:H + 1, _WPAD:_WPAD + W, :] = x_ref[0]

    # --- conv1 (3x3, stride) + BN1 + ReLU -> interior of `mid` (bf16) --------
    y1 = _conv3x3_im2col(xpad_ref, w1_ref, Ho, Wo, stride)
    y1 = jnp.maximum(y1 * s1_ref[0] + b1_ref[0], 0.0)

    Hmp, Wmp = mid_ref.shape[0], mid_ref.shape[1]
    zrow_m = jnp.zeros((Wmp, cp), mid_ref.dtype)
    zcol_m = jnp.zeros((Hmp, 8, cp), mid_ref.dtype)
    mid_ref[0] = zrow_m
    mid_ref[Ho + 1] = zrow_m
    mid_ref[:, _WPAD - 8:_WPAD, :] = zcol_m
    mid_ref[:, _WPAD + Wo:, :] = zcol_m
    mid_ref[1:Ho + 1, _WPAD:_WPAD + Wo, :] = y1.astype(mid_ref.dtype)

    # --- conv2 (3x3, stride 1) + BN2 -----------------------------------------
    y2 = _conv3x3_im2col(mid_ref, w2_ref, Ho, Wo, 1)
    y2 = y2 * s2_ref[0] + b2_ref[0]

    # --- shortcut (1x1 conv + BN projection, or identity) --------------------
    if has_proj:
        if stride == 1:
            xs = x_ref[0]                                # (Ho, Wo, cin_p) bf16
        else:
            xs = x_ref[0, pl.ds(0, Ho, stride), pl.ds(0, Wo, stride), :]
        sc = jnp.dot(xs.reshape(Ho * Wo, cin_p), ws_ref[...],
                     preferred_element_type=jnp.float32)
        sc = (sc * ss_ref[0] + bs_ref[0]).reshape(Ho, Wo, cp)
    else:
        # TODO(synk): identity skip uses the bf16 inter-block activation; carry
        # a separate f32 copy of x if bit-closeness of the skip path matters.
        sc = x_ref[0].astype(jnp.float32)

    # --- residual add + ReLU (f32 epilogue), lane-dense bf16 store -----------
    out_ref[0] = jnp.maximum(y2 + sc, 0.0).astype(out_ref.dtype)


# ----------------------------------------------------------------------------
# One-time parameter preparation (mask fold, BN fold, packing, padding)
# ----------------------------------------------------------------------------
def _fold_bn(gamma, beta, mean, var, eps=1e-5):
    scale = gamma * lax.rsqrt(var + eps)
    return scale, beta - mean * scale


def prepare_block_params(params):
    """Fold pruning masks + BatchNorm (eval mode) and pack/pad weights ONCE.

    Returns a dict of arrays only (jit-friendly):
      w1 : (3, 3*cin_p, cp) bf16, packed as [kh, kw*cin_p + ci, co]
      w2 : (3, 3*cp,    cp) bf16
      s1, b1, s2, b2 : (1, cp) f32 folded BN scale / bias
      ws : (cin_p, cp) bf16 and ss, bs : (1, cp) f32  (projection shortcut only)
    """
    planes, in_planes = params["w1"].shape[0], params["w1"].shape[1]
    cin_p = _round_up(in_planes, _LANE)
    cp = _round_up(planes, _LANE)

    def pack3x3(w, m, ci_p, co_p):
        w = jnp.transpose(w * m, (2, 3, 1, 0))                  # OIHW -> HWIO
        ci, co = w.shape[2], w.shape[3]
        w = jnp.pad(w, ((0, 0), (0, 0), (0, ci_p - ci), (0, co_p - co)))
        return w.reshape(3, 3 * ci_p, co_p).astype(jnp.bfloat16)

    def fold(bn, co_p):
        s, b = _fold_bn(**bn)
        s = jnp.pad(s, (0, co_p - s.shape[0])).reshape(1, co_p).astype(jnp.float32)
        b = jnp.pad(b, (0, co_p - b.shape[0])).reshape(1, co_p).astype(jnp.float32)
        return s, b

    s1, b1 = fold(params["bn1"], cp)
    s2, b2 = fold(params["bn2"], cp)
    prep = dict(w1=pack3x3(params["w1"], params["m1"], cin_p, cp), s1=s1, b1=b1,
                w2=pack3x3(params["w2"], params["m2"], cp, cp), s2=s2, b2=b2)
    if "ws" in params:
        ws = jnp.transpose(params["ws"] * params["ms"], (2, 3, 1, 0))[0, 0]
        ws = jnp.pad(ws, ((0, cin_p - in_planes), (0, cp - planes)))
        ss, bs = fold(params["bns"], cp)
        prep.update(ws=ws.astype(jnp.bfloat16), ss=ss, bs=bs)
    return prep


# ----------------------------------------------------------------------------
# Forward wrappers
# ----------------------------------------------------------------------------
def masked_basic_block_apply(x, prep, *, stride):
    """Fused block on the inter-block activation format.

    x : (N, H, W, cin_p) bf16, NHWC with channels zero-padded to a multiple of
        128.  Returns (N, Ho, Wo, cp) bf16 in the same format, so consecutive
        blocks chain with zero extra HBM passes (convert only at boundaries).
    """
    N, H, W, cin_p = x.shape
    assert cin_p == prep["w1"].shape[1] // 3, (cin_p, prep["w1"].shape)
    cp = prep["w1"].shape[2]
    Ho = (H - 1) // stride + 1
    Wo = (W - 1) // stride + 1
    has_proj = "ws" in prep

    args = [x, prep["w1"], prep["s1"], prep["b1"],
            prep["w2"], prep["s2"], prep["b2"]]
    in_specs = [
        pl.BlockSpec((1, H, W, cin_p), lambda n: (n, 0, 0, 0)),
        _const_spec((3, 3 * cin_p, cp), lambda n: (0, 0, 0)),
        _const_spec((1, cp), lambda n: (0, 0)),
        _const_spec((1, cp), lambda n: (0, 0)),
        _const_spec((3, 3 * cp, cp), lambda n: (0, 0, 0)),
        _const_spec((1, cp), lambda n: (0, 0)),
        _const_spec((1, cp), lambda n: (0, 0)),
    ]
    if has_proj:
        args += [prep["ws"], prep["ss"], prep["bs"]]
        in_specs += [
            _const_spec((cin_p, cp), lambda n: (0, 0)),
            _const_spec((1, cp), lambda n: (0, 0)),
            _const_spec((1, cp), lambda n: (0, 0)),
        ]

    # --- VMEM budget: real requirement, capped at 85% of physical VMEM -------
    w_bytes = sum(int(a.size) * a.dtype.itemsize for a in args[1:])
    blk_bytes = (H * W * cin_p + Ho * Wo * cp) * 2              # bf16 in + out
    scratch_bytes = ((H + 2) * (W + _WPAD + 8) * cin_p
                     + (Ho + 2) * (Wo + _WPAD + 8) * cp) * 2    # bf16 scratch
    tmp_bytes = Ho * Wo * (3 * max(cin_p, cp) * 2 + cp * 4)     # im2col + acc
    need = 2 * blk_bytes + w_bytes + scratch_bytes + 2 * tmp_bytes + (4 << 20)
    try:
        cap = int(getattr(pltpu.get_tpu_info(), "vmem_capacity_bytes", 64 << 20))
    except Exception:
        cap = 64 << 20                                          # v7x per-TC VMEM
    vmem_limit = min(int(0.85 * cap), max(int(need), 32 << 20))

    flops = 2 * N * Ho * Wo * (9 * cin_p * cp + 9 * cp * cp
                               + (cin_p * cp if has_proj else 0))
    bytes_accessed = N * H * W * cin_p * 2 + N * Ho * Wo * cp * 2 + w_bytes

    return pl.pallas_call(
        functools.partial(_masked_block_kernel, stride=stride, has_proj=has_proj),
        out_shape=jax.ShapeDtypeStruct((N, Ho, Wo, cp), jnp.bfloat16),
        grid=(N,),
        in_specs=in_specs,
        out_specs=pl.BlockSpec((1, Ho, Wo, cp), lambda n: (n, 0, 0, 0)),
        scratch_shapes=[
            pltpu.VMEM((H + 2, W + _WPAD + 8, cin_p), jnp.bfloat16),   # conv1 in
            pltpu.VMEM((Ho + 2, Wo + _WPAD + 8, cp), jnp.bfloat16),    # conv1 out
        ],
        compiler_params=pltpu.CompilerParams(
            dimension_semantics=("parallel",),           # v7x: 2 TCs split N
            vmem_limit_bytes=int(vmem_limit)),
        cost_estimate=pl.CostEstimate(flops=int(flops), transcendentals=0,
                                      bytes_accessed=int(bytes_accessed)),
    )(*args)


def nchw_to_block_layout(x_nchw, cin_p):
    """NCHW f32 -> lane-padded NHWC bf16 (network-boundary conversion)."""
    x = jnp.transpose(x_nchw, (0, 2, 3, 1))
    cin = x.shape[-1]
    if cin_p != cin:
        x = jnp.pad(x, ((0, 0), (0, 0), (0, 0), (0, cin_p - cin)))
    return x.astype(jnp.bfloat16)


def block_layout_to_nchw(x_nhwc, planes, dtype=jnp.float32):
    """Lane-padded NHWC bf16 -> NCHW (network-boundary conversion)."""
    return jnp.transpose(x_nhwc[..., :planes].astype(dtype), (0, 3, 1, 2))


def masked_basic_block_forward(x_nchw, prep, *, stride, planes):
    """NCHW-in / NCHW-out convenience wrapper (PyTorch layout).  Inside a
    network, chain masked_basic_block_apply on the NHWC bf16 activations and
    convert only at the boundaries."""
    cin_p = prep["w1"].shape[1] // 3
    xb = nchw_to_block_layout(x_nchw, cin_p)
    out = masked_basic_block_apply(xb, prep, stride=stride)
    return block_layout_to_nchw(out, planes)


# ----------------------------------------------------------------------------
# Test-harness parameters + pure-JAX reference
# ----------------------------------------------------------------------------
def init_params(key, in_planes, planes, stride):
    """Deterministic, non-trivial parameters matching the PyTorch __init__."""
    ks = jax.random.split(key, 9)

    def conv_w(k, cout, cin, kh, kw):
        fan_in = cin * kh * kw
        return jax.random.normal(k, (cout, cin, kh, kw), jnp.float32) * (2.0 / fan_in) ** 0.5

    def conv_mask(k, shape):
        return jax.random.bernoulli(k, 0.8, shape).astype(jnp.float32)

    def bn(k, c):
        k1, k2, k3, k4 = jax.random.split(k, 4)
        return dict(gamma=jax.random.uniform(k1, (c,), jnp.float32, 0.5, 1.5),
                    beta=0.1 * jax.random.normal(k2, (c,), jnp.float32),
                    mean=0.1 * jax.random.normal(k3, (c,), jnp.float32),
                    var=jax.random.uniform(k4, (c,), jnp.float32, 0.5, 1.5))

    p = dict(
        w1=conv_w(ks[0], planes, in_planes, 3, 3),
        m1=conv_mask(ks[1], (planes, in_planes, 3, 3)),
        bn1=bn(ks[2], planes),
        w2=conv_w(ks[3], planes, planes, 3, 3),
        m2=conv_mask(ks[4], (planes, planes, 3, 3)),
        bn2=bn(ks[5], planes),
    )
    if stride != 1 or in_planes != planes:
        p["ws"] = conv_w(ks[6], planes, in_planes, 1, 1)
        p["ms"] = conv_mask(ks[7], (planes, in_planes, 1, 1))
        p["bns"] = bn(ks[8], planes)
    return p


def _ref_conv(x, w, stride, pad):
    return lax.conv_general_dilated(
        x, w, window_strides=(stride, stride),
        padding=((pad, pad), (pad, pad)),
        dimension_numbers=("NHWC", "HWIO", "NHWC"),
        preferred_element_type=jnp.float32)


def reference_forward(x_nchw, params, *, stride, compute_dtype=jnp.float32):
    """Pure-JAX reference; compute_dtype=bfloat16 mirrors the kernel's bf16
    matmul inputs (f32 accumulation, f32 BN/add/ReLU epilogue)."""
    cd = compute_dtype
    x = jnp.transpose(x_nchw, (0, 2, 3, 1)).astype(cd)
    in_planes = x.shape[-1]
    planes = params["w1"].shape[0]
    w1 = jnp.transpose(params["w1"] * params["m1"], (2, 3, 1, 0)).astype(cd)
    w2 = jnp.transpose(params["w2"] * params["m2"], (2, 3, 1, 0)).astype(cd)
    s1, b1 = _fold_bn(**params["bn1"])
    s2, b2 = _fold_bn(**params["bn2"])
    out1 = jax.nn.relu(_ref_conv(x, w1, stride, 1) * s1 + b1)
    out2 = _ref_conv(out1.astype(cd), w2, 1, 1) * s2 + b2
    if stride != 1 or in_planes != planes:
        ws = jnp.transpose(params["ws"] * params["ms"], (2, 3, 1, 0)).astype(cd)
        ss, bs = _fold_bn(**params["bns"])
        sc = _ref_conv(x, ws, stride, 0) * ss + bs
    else:
        sc = x.astype(jnp.float32)
    return jnp.transpose(jax.nn.relu(out2 + sc), (0, 3, 1, 2))


# ----------------------------------------------------------------------------
if __name__ == "__main__":
    key = jax.random.PRNGKey(0)
    kx, kp = jax.random.split(key)

    N, in_planes, planes, H, W = 2, 4, 8, 16, 16
    stride = 1  # in_planes != planes -> exercises the fused 1x1 projection shortcut

    x = jax.random.normal(kx, (N, in_planes, H, W), jnp.float32)   # NCHW
    params = init_params(kp, in_planes, planes, stride)

    prep = prepare_block_params(params)      # fold masks + BN once, not per call
    fwd = jax.jit(functools.partial(masked_basic_block_forward,
                                    stride=stride, planes=planes))
    out = jax.block_until_ready(fwd(x, prep))

    Ho = (H - 1) // stride + 1
    Wo = (W - 1) // stride + 1
    assert out.shape == (N, planes, Ho, Wo), out.shape

    # tight check against a reference with the same bf16 matmul-input
    # quantization (kernel output is additionally rounded to bf16)
    ref16 = jax.block_until_ready(
        reference_forward(x, params, stride=stride, compute_dtype=jnp.bfloat16))
    assert jnp.allclose(out, ref16, rtol=2e-2, atol=2e-2), \
        float(jnp.max(jnp.abs(out - ref16)))

    # loose sanity check against the pure-f32 (PyTorch-equivalent) reference
    ref32 = jax.block_until_ready(
        reference_forward(x, params, stride=stride, compute_dtype=jnp.float32))
    assert jnp.allclose(out, ref32, rtol=1e-1, atol=1e-1), \
        float(jnp.max(jnp.abs(out - ref32)))

    print("KERNEL_OK")
</pallas_src>

<mosaic_0001>
module attributes {stable_mosaic.version = 11 : i64} {
  func.func @_masked_block_kernel(%arg0: i32, %arg1: memref<1x16x16x128xbf16, #tpu.memory_space<vmem>>, %arg2: memref<3x384x128xbf16, #tpu.memory_space<vmem>>, %arg3: memref<1x128xf32, #tpu.memory_space<vmem>>, %arg4: memref<1x128xf32, #tpu.memory_space<vmem>>, %arg5: memref<3x384x128xbf16, #tpu.memory_space<vmem>>, %arg6: memref<1x128xf32, #tpu.memory_space<vmem>>, %arg7: memref<1x128xf32, #tpu.memory_space<vmem>>, %arg8: memref<128x128xbf16, #tpu.memory_space<vmem>>, %arg9: memref<1x128xf32, #tpu.memory_space<vmem>>, %arg10: memref<1x128xf32, #tpu.memory_space<vmem>>, %arg11: memref<1x16x16x128xbf16, #tpu.memory_space<vmem>>, %arg12: memref<18x40x128xbf16, #tpu.memory_space<vmem>>, %arg13: memref<18x40x128xbf16, #tpu.memory_space<vmem>>) attributes {dimension_semantics = [#tpu.dimension_semantics<parallel>], iteration_bounds = array<i64: 2>, scalar_prefetch = 0 : i64, scratch_operands = 2 : i64, tpu.core_type = #tpu.core_type<tc>, window_params = [{transform_indices = @transform_0, window_bounds = array<i64: 1, 16, 16, 128>}, {pipeline_mode = #tpu.pipeline_mode<synchronous>, transform_indices = @transform_1, window_bounds = array<i64: 3, 384, 128>}, {pipeline_mode = #tpu.pipeline_mode<synchronous>, transform_indices = @transform_2, window_bounds = array<i64: 1, 128>}, {pipeline_mode = #tpu.pipeline_mode<synchronous>, transform_indices = @transform_3, window_bounds = array<i64: 1, 128>}, {pipeline_mode = #tpu.pipeline_mode<synchronous>, transform_indices = @transform_4, window_bounds = array<i64: 3, 384, 128>}, {pipeline_mode = #tpu.pipeline_mode<synchronous>, transform_indices = @transform_5, window_bounds = array<i64: 1, 128>}, {pipeline_mode = #tpu.pipeline_mode<synchronous>, transform_indices = @transform_6, window_bounds = array<i64: 1, 128>}, {pipeline_mode = #tpu.pipeline_mode<synchronous>, transform_indices = @transform_7, window_bounds = array<i64: 128, 128>}, {pipeline_mode = #tpu.pipeline_mode<synchronous>, transform_indices = @transform_8, window_bounds = array<i64: 1, 128>}, {pipeline_mode = #tpu.pipeline_mode<synchronous>, transform_indices = @transform_9, window_bounds = array<i64: 1, 128>}, {transform_indices = @transform_10, window_bounds = array<i64: 1, 16, 16, 128>}]} {
    %cst = arith.constant 0.000000e+00 : bf16
    %0 = vector.broadcast %cst : bf16 to vector<40x128xbf16>
    %cst_0 = arith.constant 0.000000e+00 : bf16
    %1 = vector.broadcast %cst_0 : bf16 to vector<18x8x128xbf16>
    %c0 = arith.constant 0 : index
    %c0_1 = arith.constant 0 : index
    %c0_2 = arith.constant 0 : index
    %2 = vector.load %arg12[%c0, %c0_1, %c0_2] : memref<18x40x128xbf16, #tpu.memory_space<vmem>>, vector<1x40x128xbf16>
    %3 = vector.shape_cast %2 : vector<1x40x128xbf16> to vector<40x128xbf16>
    %4 = vector.shape_cast %0 : vector<40x128xbf16> to vector<1x40x128xbf16>
    tpu.vector_store %arg12[%c0, %c0_1, %c0_2], %4 {strides = array<i32>} : memref<18x40x128xbf16, #tpu.memory_space<vmem>>, vector<1x40x128xbf16>,
    %c17 = arith.constant 17 : index
    %c0_3 = arith.constant 0 : index
    %c0_4 = arith.constant 0 : index
    %5 = vector.load %arg12[%c17, %c0_3, %c0_4] : memref<18x40x128xbf16, #tpu.memory_space<vmem>>, vector<1x40x128xbf16>
    %6 = vector.shape_cast %5 : vector<1x40x128xbf16> to vector<40x128xbf16>
    %7 = vector.shape_cast %0 : vector<40x128xbf16> to vector<1x40x128xbf16>
    tpu.vector_store %arg12[%c17, %c0_3, %c0_4], %7 {strides = array<i32>} : memref<18x40x128xbf16, #tpu.memory_space<vmem>>, vector<1x40x128xbf16>,
    %c0_5 = arith.constant 0 : index
    %c8 = arith.constant 8 : index
    %c0_6 = arith.constant 0 : index
    %8 = vector.load %arg12[%c0_5, %c8, %c0_6] : memref<18x40x128xbf16, #tpu.memory_space<vmem>>, vector<18x8x128xbf16>
    tpu.vector_store %arg12[%c0_5, %c8, %c0_6], %1 {strides = array<i32>} : memref<18x40x128xbf16, #tpu.memory_space<vmem>>, vector<18x8x128xbf16>,
    %c0_7 = arith.constant 0 : index
    %c32 = arith.constant 32 : index
    %c0_8 = arith.constant 0 : index
    %9 = vector.load %arg12[%c0_7, %c32, %c0_8] : memref<18x40x128xbf16, #tpu.memory_space<vmem>>, vector<18x8x128xbf16>
    tpu.vector_store %arg12[%c0_7, %c32, %c0_8], %1 {strides = array<i32>} : memref<18x40x128xbf16, #tpu.memory_space<vmem>>, vector<18x8x128xbf16>,
    %c0_9 = arith.constant 0 : index
    %c0_10 = arith.constant 0 : index
    %c0_11 = arith.constant 0 : index
    %c0_12 = arith.constant 0 : index
    %10 = vector.load %arg1[%c0_9, %c0_10, %c0_11, %c0_12] : memref<1x16x16x128xbf16, #tpu.memory_space<vmem>>, vector<1x16x16x128xbf16>
    %11 = vector.shape_cast %10 : vector<1x16x16x128xbf16> to vector<16x16x128xbf16>
    %c1 = arith.constant 1 : index
    %c16 = arith.constant 16 : index
    %c0_13 = arith.constant 0 : index
    %12 = vector.load %arg12[%c1, %c16, %c0_13] : memref<18x40x128xbf16, #tpu.memory_space<vmem>>, vector<16x16x128xbf16>
    tpu.vector_store %arg12[%c1, %c16, %c0_13], %11 {strides = array<i32>} : memref<18x40x128xbf16, #tpu.memory_space<vmem>>, vector<16x16x128xbf16>,
    %cst_14 = arith.constant 0.000000e+00 : f32
    %13 = vector.broadcast %cst_14 : f32 to vector<256x128xf32>
    %c0_15 = arith.constant 0 : index
    %c15 = arith.constant 15 : index
    %c0_16 = arith.constant 0 : index
    %14 = vector.load %arg12[%c0_15, %c15, %c0_16] : memref<18x40x128xbf16, #tpu.memory_space<vmem>>, vector<16x16x128xbf16>
    %c0_17 = arith.constant 0 : index
    %c16_18 = arith.constant 16 : index
    %c0_19 = arith.constant 0 : index
    %15 = vector.load %arg12[%c0_17, %c16_18, %c0_19] : memref<18x40x128xbf16, #tpu.memory_space<vmem>>, vector<16x16x128xbf16>
    %c0_20 = arith.constant 0 : index
    %c17_21 = arith.constant 17 : index
    %c0_22 = arith.constant 0 : index
    %16 = vector.load %arg12[%c0_20, %c17_21, %c0_22] : memref<18x40x128xbf16, #tpu.memory_space<vmem>>, vector<16x16x128xbf16>
    %17 = tpu.concatenate %14, %15, %16 in 2 : vector<16x16x128xbf16>, vector<16x16x128xbf16>, vector<16x16x128xbf16> -> vector<16x16x384xbf16>
    %18 = vector.shape_cast %17 : vector<16x16x384xbf16> to vector<256x384xbf16>
    %c0_23 = arith.constant 0 : index
    %c0_24 = arith.constant 0 : index
    %c0_25 = arith.constant 0 : index
    %19 = vector.load %arg2[%c0_23, %c0_24, %c0_25] : memref<3x384x128xbf16, #tpu.memory_space<vmem>>, vector<1x384x128xbf16>
    %20 = vector.shape_cast %19 : vector<1x384x128xbf16> to vector<384x128xbf16>
    %cst_26 = arith.constant dense<0.000000e+00> : vector<256x128xf32>
    %21 = tpu.matmul %18, %20, %cst_26 {dimension_numbers = #tpu.dot_dimension_numbers<[1], [0], [0], [1], [0, 0, 1, 1], [], []>} : vector<256x384xbf16>, vector<384x128xbf16>, vector<256x128xf32> -> vector<256x128xf32>
    %22 = arith.addf %13, %21 : vector<256x128xf32>
    %c1_27 = arith.constant 1 : index
    %c15_28 = arith.constant 15 : index
    %c0_29 = arith.constant 0 : index
    %23 = vector.load %arg12[%c1_27, %c15_28, %c0_29] : memref<18x40x128xbf16, #tpu.memory_space<vmem>>, vector<16x16x128xbf16>
    %c1_30 = arith.constant 1 : index
    %c16_31 = arith.constant 16 : index
    %c0_32 = arith.constant 0 : index
    %24 = vector.load %arg12[%c1_30, %c16_31, %c0_32] : memref<18x40x128xbf16, #tpu.memory_space<vmem>>, vector<16x16x128xbf16>
    %c1_33 = arith.constant 1 : index
    %c17_34 = arith.constant 17 : index
    %c0_35 = arith.constant 0 : index
    %25 = vector.load %arg12[%c1_33, %c17_34, %c0_35] : memref<18x40x128xbf16, #tpu.memory_space<vmem>>, vector<16x16x128xbf16>
    %26 = tpu.concatenate %23, %24, %25 in 2 : vector<16x16x128xbf16>, vector<16x16x128xbf16>, vector<16x16x128xbf16> -> vector<16x16x384xbf16>
    %27 = vector.shape_cast %26 : vector<16x16x384xbf16> to vector<256x384xbf16>
    %c1_36 = arith.constant 1 : index
    %c0_37 = arith.constant 0 : index
    %c0_38 = arith.constant 0 : index
    %28 = vector.load %arg2[%c1_36, %c0_37, %c0_38] : memref<3x384x128xbf16, #tpu.memory_space<vmem>>, vector<1x384x128xbf16>
    %29 = vector.shape_cast %28 : vector<1x384x128xbf16> to vector<384x128xbf16>
    %cst_39 = arith.constant dense<0.000000e+00> : vector<256x128xf32>
    %30 = tpu.matmul %27, %29, %cst_39 {dimension_numbers = #tpu.dot_dimension_numbers<[1], [0], [0], [1], [0, 0, 1, 1], [], []>} : vector<256x384xbf16>, vector<384x128xbf16>, vector<256x128xf32> -> vector<256x128xf32>
    %31 = arith.addf %22, %30 : vector<256x128xf32>
    %c2 = arith.constant 2 : index
    %c15_40 = arith.constant 15 : index
    %c0_41 = arith.constant 0 : index
    %32 = vector.load %arg12[%c2, %c15_40, %c0_41] : memref<18x40x128xbf16, #tpu.memory_space<vmem>>, vector<16x16x128xbf16>
    %c2_42 = arith.constant 2 : index
    %c16_43 = arith.constant 16 : index
    %c0_44 = arith.constant 0 : index
    %33 = vector.load %arg12[%c2_42, %c16_43, %c0_44] : memref<18x40x128xbf16, #tpu.memory_space<vmem>>, vector<16x16x128xbf16>
    %c2_45 = arith.constant 2 : index
    %c17_46 = arith.constant 17 : index
    %c0_47 = arith.constant 0 : index
    %34 = vector.load %arg12[%c2_45, %c17_46, %c0_47] : memref<18x40x128xbf16, #tpu.memory_space<vmem>>, vector<16x16x128xbf16>
    %35 = tpu.concatenate %32, %33, %34 in 2 : vector<16x16x128xbf16>, vector<16x16x128xbf16>, vector<16x16x128xbf16> -> vector<16x16x384xbf16>
    %36 = vector.shape_cast %35 : vector<16x16x384xbf16> to vector<256x384xbf16>
    %c2_48 = arith.constant 2 : index
    %c0_49 = arith.constant 0 : index
    %c0_50 = arith.constant 0 : index
    %37 = vector.load %arg2[%c2_48, %c0_49, %c0_50] : memref<3x384x128xbf16, #tpu.memory_space<vmem>>, vector<1x384x128xbf16>
    %38 = vector.shape_cast %37 : vector<1x384x128xbf16> to vector<384x128xbf16>
    %cst_51 = arith.constant dense<0.000000e+00> : vector<256x128xf32>
    %39 = tpu.matmul %36, %38, %cst_51 {dimension_numbers = #tpu.dot_dimension_numbers<[1], [0], [0], [1], [0, 0, 1, 1], [], []>} : vector<256x384xbf16>, vector<384x128xbf16>, vector<256x128xf32> -> vector<256x128xf32>
    %40 = arith.addf %31, %39 : vector<256x128xf32>
    %41 = vector.shape_cast %40 : vector<256x128xf32> to vector<16x16x128xf32>
    %c0_52 = arith.constant 0 : index
    %c0_53 = arith.constant 0 : index
    %42 = vector.load %arg3[%c0_52, %c0_53] : memref<1x128xf32, #tpu.memory_space<vmem>>, vector<1x128xf32>
    %43 = vector.shape_cast %42 : vector<1x128xf32> to vector<128xf32>
    %44 = vector.shape_cast %43 : vector<128xf32> to vector<1x1x128xf32>
    %45 = vector.broadcast %44 : vector<1x1x128xf32> to vector<16x16x128xf32>
    %46 = arith.mulf %41, %45 : vector<16x16x128xf32>
    %c0_54 = arith.constant 0 : index
    %c0_55 = arith.constant 0 : index
    %47 = vector.load %arg4[%c0_54, %c0_55] : memref<1x128xf32, #tpu.memory_space<vmem>>, vector<1x128xf32>
    %48 = vector.shape_cast %47 : vector<1x128xf32> to vector<128xf32>
    %49 = vector.shape_cast %48 : vector<128xf32> to vector<1x1x128xf32>
    %50 = vector.broadcast %49 : vector<1x1x128xf32> to vector<16x16x128xf32>
    %51 = arith.addf %46, %50 : vector<16x16x128xf32>
    %cst_56 = arith.constant 0.000000e+00 : f32
    %52 = vector.broadcast %cst_56 : f32 to vector<16x16x128xf32>
    %53 = arith.maximumf %51, %52 : vector<16x16x128xf32>
    %cst_57 = arith.constant 0.000000e+00 : bf16
    %54 = vector.broadcast %cst_57 : bf16 to vector<40x128xbf16>
    %cst_58 = arith.constant 0.000000e+00 : bf16
    %55 = vector.broadcast %cst_58 : bf16 to vector<18x8x128xbf16>
    %c0_59 = arith.constant 0 : index
    %c0_60 = arith.constant 0 : index
    %c0_61 = arith.constant 0 : index
    %56 = vector.load %arg13[%c0_59, %c0_60, %c0_61] : memref<18x40x128xbf16, #tpu.memory_space<vmem>>, vector<1x40x128xbf16>
    %57 = vector.shape_cast %56 : vector<1x40x128xbf16> to vector<40x128xbf16>
    %58 = vector.shape_cast %54 : vector<40x128xbf16> to vector<1x40x128xbf16>
    tpu.vector_store %arg13[%c0_59, %c0_60, %c0_61], %58 {strides = array<i32>} : memref<18x40x128xbf16, #tpu.memory_space<vmem>>, vector<1x40x128xbf16>,
    %c17_62 = arith.constant 17 : index
    %c0_63 = arith.constant 0 : index
    %c0_64 = arith.constant 0 : index
    %59 = vector.load %arg13[%c17_62, %c0_63, %c0_64] : memref<18x40x128xbf16, #tpu.memory_space<vmem>>, vector<1x40x128xbf16>
    %60 = vector.shape_cast %59 : vector<1x40x128xbf16> to vector<40x128xbf16>
    %61 = vector.shape_cast %54 : vector<40x128xbf16> to vector<1x40x128xbf16>
    tpu.vector_store %arg13[%c17_62, %c0_63, %c0_64], %61 {strides = array<i32>} : memref<18x40x128xbf16, #tpu.memory_space<vmem>>, vector<1x40x128xbf16>,
    %c0_65 = arith.constant 0 : index
    %c8_66 = arith.constant 8 : index
    %c0_67 = arith.constant 0 : index
    %62 = vector.load %arg13[%c0_65, %c8_66, %c0_67] : memref<18x40x128xbf16, #tpu.memory_space<vmem>>, vector<18x8x128xbf16>
    tpu.vector_store %arg13[%c0_65, %c8_66, %c0_67], %55 {strides = array<i32>} : memref<18x40x128xbf16, #tpu.memory_space<vmem>>, vector<18x8x128xbf16>,
    %c0_68 = arith.constant 0 : index
    %c32_69 = arith.constant 32 : index
    %c0_70 = arith.constant 0 : index
    %63 = vector.load %arg13[%c0_68, %c32_69, %c0_70] : memref<18x40x128xbf16, #tpu.memory_space<vmem>>, vector<18x8x128xbf16>
    tpu.vector_store %arg13[%c0_68, %c32_69, %c0_70], %55 {strides = array<i32>} : memref<18x40x128xbf16, #tpu.memory_space<vmem>>, vector<18x8x128xbf16>,
    %64 = arith.truncf %53 : vector<16x16x128xf32> to vector<16x16x128xbf16>
    %c1_71 = arith.constant 1 : index
    %c16_72 = arith.constant 16 : index
    %c0_73 = arith.constant 0 : index
    %65 = vector.load %arg13[%c1_71, %c16_72, %c0_73] : memref<18x40x128xbf16, #tpu.memory_space<vmem>>, vector<16x16x128xbf16>
    tpu.vector_store %arg13[%c1_71, %c16_72, %c0_73], %64 {strides = array<i32>} : memref<18x40x128xbf16, #tpu.memory_space<vmem>>, vector<16x16x128xbf16>,
    %cst_74 = arith.constant 0.000000e+00 : f32
    %66 = vector.broadcast %cst_74 : f32 to vector<256x128xf32>
    %c0_75 = arith.constant 0 : index
    %c15_76 = arith.constant 15 : index
    %c0_77 = arith.constant 0 : index
    %67 = vector.load %arg13[%c0_75, %c15_76, %c0_77] : memref<18x40x128xbf16, #tpu.memory_space<vmem>>, vector<16x16x128xbf16>
    %c0_78 = arith.constant 0 : index
    %c16_79 = arith.constant 16 : index
    %c0_80 = arith.constant 0 : index
    %68 = vector.load %arg13[%c0_78, %c16_79, %c0_80] : memref<18x40x128xbf16, #tpu.memory_space<vmem>>, vector<16x16x128xbf16>
    %c0_81 = arith.constant 0 : index
    %c17_82 = arith.constant 17 : index
    %c0_83 = arith.constant 0 : index
    %69 = vector.load %arg13[%c0_81, %c17_82, %c0_83] : memref<18x40x128xbf16, #tpu.memory_space<vmem>>, vector<16x16x128xbf16>
    %70 = tpu.concatenate %67, %68, %69 in 2 : vector<16x16x128xbf16>, vector<16x16x128xbf16>, vector<16x16x128xbf16> -> vector<16x16x384xbf16>
    %71 = vector.shape_cast %70 : vector<16x16x384xbf16> to vector<256x384xbf16>
    %c0_84 = arith.constant 0 : index
    %c0_85 = arith.constant 0 : index
    %c0_86 = arith.constant 0 : index
    %72 = vector.load %arg5[%c0_84, %c0_85, %c0_86] : memref<3x384x128xbf16, #tpu.memory_space<vmem>>, vector<1x384x128xbf16>
    %73 = vector.shape_cast %72 : vector<1x384x128xbf16> to vector<384x128xbf16>
    %cst_87 = arith.constant dense<0.000000e+00> : vector<256x128xf32>
    %74 = tpu.matmul %71, %73, %cst_87 {dimension_numbers = #tpu.dot_dimension_numbers<[1], [0], [0], [1], [0, 0, 1, 1], [], []>} : vector<256x384xbf16>, vector<384x128xbf16>, vector<256x128xf32> -> vector<256x128xf32>
    %75 = arith.addf %66, %74 : vector<256x128xf32>
    %c1_88 = arith.constant 1 : index
    %c15_89 = arith.constant 15 : index
    %c0_90 = arith.constant 0 : index
    %76 = vector.load %arg13[%c1_88, %c15_89, %c0_90] : memref<18x40x128xbf16, #tpu.memory_space<vmem>>, vector<16x16x128xbf16>
    %c1_91 = arith.constant 1 : index
    %c16_92 = arith.constant 16 : index
    %c0_93 = arith.constant 0 : index
    %77 = vector.load %arg13[%c1_91, %c16_92, %c0_93] : memref<18x40x128xbf16, #tpu.memory_space<vmem>>, vector<16x16x128xbf16>
    %c1_94 = arith.constant 1 : index
    %c17_95 = arith.constant 17 : index
    %c0_96 = arith.constant 0 : index
    %78 = vector.load %arg13[%c1_94, %c17_95, %c0_96] : memref<18x40x128xbf16, #tpu.memory_space<vmem>>, vector<16x16x128xbf16>
    %79 = tpu.concatenate %76, %77, %78 in 2 : vector<16x16x128xbf16>, vector<16x16x128xbf16>, vector<16x16x128xbf16> -> vector<16x16x384xbf16>
    %80 = vector.shape_cast %79 : vector<16x16x384xbf16> to vector<256x384xbf16>
    %c1_97 = arith.constant 1 : index
    %c0_98 = arith.constant 0 : index
    %c0_99 = arith.constant 0 : index
    %81 = vector.load %arg5[%c1_97, %c0_98, %c0_99] : memref<3x384x128xbf16, #tpu.memory_space<vmem>>, vector<1x384x128xbf16>
    %82 = vector.shape_cast %81 : vector<1x384x128xbf16> to vector<384x128xbf16>
    %cst_100 = arith.constant dense<0.000000e+00> : vector<256x128xf32>
    %83 = tpu.matmul %80, %82, %cst_100 {dimension_numbers = #tpu.dot_dimension_numbers<[1], [0], [0], [1], [0, 0, 1, 1], [], []>} : vector<256x384xbf16>, vector<384x128xbf16>, vector<256x128xf32> -> vector<256x128xf32>
    %84 = arith.addf %75, %83 : vector<256x128xf32>
    %c2_101 = arith.constant 2 : index
    %c15_102 = arith.constant 15 : index
    %c0_103 = arith.constant 0 : index
    %85 = vector.load %arg13[%c2_101, %c15_102, %c0_103] : memref<18x40x128xbf16, #tpu.memory_space<vmem>>, vector<16x16x128xbf16>
    %c2_104 = arith.constant 2 : index
    %c16_105 = arith.constant 16 : index
    %c0_106 = arith.constant 0 : index
    %86 = vector.load %arg13[%c2_104, %c16_105, %c0_106] : memref<18x40x128xbf16, #tpu.memory_space<vmem>>, vector<16x16x128xbf16>
    %c2_107 = arith.constant 2 : index
    %c17_108 = arith.constant 17 : index
    %c0_109 = arith.constant 0 : index
    %87 = vector.load %arg13[%c2_107, %c17_108, %c0_109] : memref<18x40x128xbf16, #tpu.memory_space<vmem>>, vector<16x16x128xbf16>
    %88 = tpu.concatenate %85, %86, %87 in 2 : vector<16x16x128xbf16>, vector<16x16x128xbf16>, vector<16x16x128xbf16> -> vector<16x16x384xbf16>
    %89 = vector.shape_cast %88 : vector<16x16x384xbf16> to vector<256x384xbf16>
    %c2_110 = arith.constant 2 : index
    %c0_111 = arith.constant 0 : index
    %c0_112 = arith.constant 0 : index
    %90 = vector.load %arg5[%c2_110, %c0_111, %c0_112] : memref<3x384x128xbf16, #tpu.memory_space<vmem>>, vector<1x384x128xbf16>
    %91 = vector.shape_cast %90 : vector<1x384x128xbf16> to vector<384x128xbf16>
    %cst_113 = arith.constant dense<0.000000e+00> : vector<256x128xf32>
    %92 = tpu.matmul %89, %91, %cst_113 {dimension_numbers = #tpu.dot_dimension_numbers<[1], [0], [0], [1], [0, 0, 1, 1], [], []>} : vector<256x384xbf16>, vector<384x128xbf16>, vector<256x128xf32> -> vector<256x128xf32>
    %93 = arith.addf %84, %92 : vector<256x128xf32>
    %94 = vector.shape_cast %93 : vector<256x128xf32> to vector<16x16x128xf32>
    %c0_114 = arith.constant 0 : index
    %c0_115 = arith.constant 0 : index
    %95 = vector.load %arg6[%c0_114, %c0_115] : memref<1x128xf32, #tpu.memory_space<vmem>>, vector<1x128xf32>
    %96 = vector.shape_cast %95 : vector<1x128xf32> to vector<128xf32>
    %97 = vector.shape_cast %96 : vector<128xf32> to vector<1x1x128xf32>
    %98 = vector.broadcast %97 : vector<1x1x128xf32> to vector<16x16x128xf32>
    %99 = arith.mulf %94, %98 : vector<16x16x128xf32>
    %c0_116 = arith.constant 0 : index
    %c0_117 = arith.constant 0 : index
    %100 = vector.load %arg7[%c0_116, %c0_117] : memref<1x128xf32, #tpu.memory_space<vmem>>, vector<1x128xf32>
    %101 = vector.shape_cast %100 : vector<1x128xf32> to vector<128xf32>
    %102 = vector.shape_cast %101 : vector<128xf32> to vector<1x1x128xf32>
    %103 = vector.broadcast %102 : vector<1x1x128xf32> to vector<16x16x128xf32>
    %104 = arith.addf %99, %103 : vector<16x16x128xf32>
    %c0_118 = arith.constant 0 : index
    %c0_119 = arith.constant 0 : index
    %c0_120 = arith.constant 0 : index
    %c0_121 = arith.constant 0 : index
    %105 = vector.load %arg1[%c0_118, %c0_119, %c0_120, %c0_121] : memref<1x16x16x128xbf16, #tpu.memory_space<vmem>>, vector<1x16x16x128xbf16>
    %106 = vector.shape_cast %105 : vector<1x16x16x128xbf16> to vector<16x16x128xbf16>
    %107 = vector.shape_cast %106 : vector<16x16x128xbf16> to vector<256x128xbf16>
    %c0_122 = arith.constant 0 : index
    %c0_123 = arith.constant 0 : index
    %108 = vector.load %arg8[%c0_122, %c0_123] : memref<128x128xbf16, #tpu.memory_space<vmem>>, vector<128x128xbf16>
    %cst_124 = arith.constant dense<0.000000e+00> : vector<256x128xf32>
    %109 = tpu.matmul %107, %108, %cst_124 {dimension_numbers = #tpu.dot_dimension_numbers<[1], [0], [0], [1], [0, 0, 1, 1], [], []>} : vector<256x128xbf16>, vector<128x128xbf16>, vector<256x128xf32> -> vector<256x128xf32>
    %c0_125 = arith.constant 0 : index
    %c0_126 = arith.constant 0 : index
    %110 = vector.load %arg9[%c0_125, %c0_126] : memref<1x128xf32, #tpu.memory_space<vmem>>, vector<1x128xf32>
    %111 = vector.shape_cast %110 : vector<1x128xf32> to vector<128xf32>
    %112 = vector.shape_cast %111 : vector<128xf32> to vector<1x128xf32>
    %113 = vector.broadcast %112 : vector<1x128xf32> to vector<256x128xf32>
    %114 = arith.mulf %109, %113 : vector<256x128xf32>
    %c0_127 = arith.constant 0 : index
    %c0_128 = arith.constant 0 : index
    %115 = vector.load %arg10[%c0_127, %c0_128] : memref<1x128xf32, #tpu.memory_space<vmem>>, vector<1x128xf32>
    %116 = vector.shape_cast %115 : vector<1x128xf32> to vector<128xf32>
    %117 = vector.shape_cast %116 : vector<128xf32> to vector<1x128xf32>
    %118 = vector.broadcast %117 : vector<1x128xf32> to vector<256x128xf32>
    %119 = arith.addf %114, %118 : vector<256x128xf32>
    %120 = vector.shape_cast %119 : vector<256x128xf32> to vector<16x16x128xf32>
    %121 = arith.addf %104, %120 : vector<16x16x128xf32>
    %cst_129 = arith.constant 0.000000e+00 : f32
    %122 = vector.broadcast %cst_129 : f32 to vector<16x16x128xf32>
    %123 = arith.maximumf %121, %122 : vector<16x16x128xf32>
    %124 = arith.truncf %123 : vector<16x16x128xf32> to vector<16x16x128xbf16>
    %c0_130 = arith.constant 0 : index
    %c0_131 = arith.constant 0 : index
    %c0_132 = arith.constant 0 : index
    %c0_133 = arith.constant 0 : index
    %125 = vector.load %arg11[%c0_130, %c0_131, %c0_132, %c0_133] : memref<1x16x16x128xbf16, #tpu.memory_space<vmem>>, vector<1x16x16x128xbf16>
    %126 = vector.shape_cast %125 : vector<1x16x16x128xbf16> to vector<16x16x128xbf16>
    %127 = vector.shape_cast %124 : vector<16x16x128xbf16> to vector<1x16x16x128xbf16>
    tpu.vector_store %arg11[%c0_130, %c0_131, %c0_132, %c0_133], %127 {strides = array<i32>} : memref<1x16x16x128xbf16, #tpu.memory_space<vmem>>, vector<1x16x16x128xbf16>,
    return
  }
  func.func @transform_0(%arg0: i32) -> (i32, i32, i32, i32) {
    %c0_i32 = arith.constant 0 : i32
    %c0_i32_0 = arith.constant 0 : i32
    %c0_i32_1 = arith.constant 0 : i32
    %c0_i32_2 = arith.constant 0 : i32
    return %arg0, %c0_i32, %c0_i32_0, %c0_i32_1 : i32, i32, i32, i32
  }
  func.func @transform_1(%arg0: i32) -> (i32, i32, i32) {
    %c0_i32 = arith.constant 0 : i32
    %c0_i32_0 = arith.constant 0 : i32
    %c0_i32_1 = arith.constant 0 : i32
    %c0_i32_2 = arith.constant 0 : i32
    return %c0_i32, %c0_i32_0, %c0_i32_1 : i32, i32, i32
  }
  func.func @transform_2(%arg0: i32) -> (i32, i32) {
    %c0_i32 = arith.constant 0 : i32
    %c0_i32_0 = arith.constant 0 : i32
    %c0_i32_1 = arith.constant 0 : i32
    return %c0_i32, %c0_i32_0 : i32, i32
  }
  func.func @transform_3(%arg0: i32) -> (i32, i32) {
    %c0_i32 = arith.constant 0 : i32
    %c0_i32_0 = arith.constant 0 : i32
    %c0_i32_1 = arith.constant 0 : i32
    return %c0_i32, %c0_i32_0 : i32, i32
  }
  func.func @transform_4(%arg0: i32) -> (i32, i32, i32) {
    %c0_i32 = arith.constant 0 : i32
    %c0_i32_0 = arith.constant 0 : i32
    %c0_i32_1 = arith.constant 0 : i32
    %c0_i32_2 = arith.constant 0 : i32
    return %c0_i32, %c0_i32_0, %c0_i32_1 : i32, i32, i32
  }
  func.func @transform_5(%arg0: i32) -> (i32, i32) {
    %c0_i32 = arith.constant 0 : i32
    %c0_i32_0 = arith.constant 0 : i32
    %c0_i32_1 = arith.constant 0 : i32
    return %c0_i32, %c0_i32_0 : i32, i32
  }
  func.func @transform_6(%arg0: i32) -> (i32, i32) {
    %c0_i32 = arith.constant 0 : i32
    %c0_i32_0 = arith.constant 0 : i32
    %c0_i32_1 = arith.constant 0 : i32
    return %c0_i32, %c0_i32_0 : i32, i32
  }
  func.func @transform_7(%arg0: i32) -> (i32, i32) {
    %c0_i32 = arith.constant 0 : i32
    %c0_i32_0 = arith.constant 0 : i32
    %c0_i32_1 = arith.constant 0 : i32
    return %c0_i32, %c0_i32_0 : i32, i32
  }
  func.func @transform_8(%arg0: i32) -> (i32, i32) {
    %c0_i32 = arith.constant 0 : i32
    %c0_i32_0 = arith.constant 0 : i32
    %c0_i32_1 = arith.constant 0 : i32
    return %c0_i32, %c0_i32_0 : i32, i32
  }
  func.func @transform_9(%arg0: i32) -> (i32, i32) {
    %c0_i32 = arith.constant 0 : i32
    %c0_i32_0 = arith.constant 0 : i32
    %c0_i32_1 = arith.constant 0 : i32
    return %c0_i32, %c0_i32_0 : i32, i32
  }
  func.func @transform_10(%arg0: i32) -> (i32, i32, i32, i32) {
    %c0_i32 = arith.constant 0 : i32
    %c0_i32_0 = arith.constant 0 : i32
    %c0_i32_1 = arith.constant 0 : i32
    %c0_i32_2 = arith.constant 0 : i32
    return %arg0, %c0_i32, %c0_i32_0, %c0_i32_1 : i32, i32, i32, i32
  }
}

</mosaic_0001>

<bundles_post_ra>
// kernel: masked_basic_block_forward.1
= control target key start
LH: loop header
LB: loop body
LE: loop exit
PB: predicated region body
PF: predicated region fallthrough
CT: control target
= control target key end

     0   :  { %15 = vsyncpa [#allocation5], 0  ;;  %s14940_s13 = smov 0   ;;  %s17965_s0 = inlined_call_operand.vmem [shape: bf16[2,16,16,128], index: 0, kind: input, shape index: {}]   ;;  %s17966_s1 = inlined_call_operand.vmem [shape: bf16[3,384,128], index: 1, kind: input, shape index: {}]   ;;  %s17967_s2 = inlined_call_operand.vmem [shape: f32[1,128], index: 2, kind: input, shape index: {}]   ;;  %s17968_s3 = inlined_call_operand.vmem [shape: f32[1,128], index: 3, kind: input, shape index: {}]   ;;  %s17969_s4 = inlined_call_operand.hbm [shape: bf16[3,384,128], index: 4, kind: input, shape index: {}]   ;;  %s17970_s5 = inlined_call_operand.vmem [shape: f32[1,128], index: 5, kind: input, shape index: {}]   ;;  %s17971_s6 = inlined_call_operand.vmem [shape: f32[1,128], index: 6, kind: input, shape index: {}]   ;;  %s17972_s7 = inlined_call_operand.vmem [shape: bf16[128,128], index: 7, kind: input, shape index: {}]   ;;  %s17973_s8 = inlined_call_operand.vmem [shape: f32[1,128], index: 8, kind: input, shape index: {}]   ;;  %s17974_s9 = inlined_call_operand.vmem [shape: f32[1,128], index: 9, kind: input, shape index: {}]   ;;  %s17975_s10 = inlined_call_operand.vmem [shape: bf16[2,16,16,128], index: 10, kind: output, shape index: {}]  }
   0x1 LB: > { %s14946_s14 = sadd.s32 4294967295, %s14879_s13   ;;  %p11772_p0 = scmp.ge.s32.totalorder %s14879_s13, 1  ;;  %s14879_s13 = sphi %s14940_s13, %s21_s13  }
   0x2   : > { %p267_p1 = scmp.lt.s32.totalorder %s14879_s13, 3  ;;  %s14881_s15 = smov [#allocation4]  }
   0x3   : > { %s288_s16 = sshll.u32 %s14881_s15, 4  ;;  %p17976_p3 = scmp.eq.s32.totalorder %s14946_s14, 0  ;;  %s289_s16 = int_to_ptr.vmem [resolvable:$true] %s288_s16 }
   0x4   : > { %p14950_p2 = pnand %p11772_p0, %p267_p1  ;;  %s14841_s21 = scalar_lea.hbm %s17969_s4, 9216 }
   0x5   : > { %p14842_p6 = scmp.ne.s32.totalorder %s17969_s4, %s14841_s21  ;;  %p14848_p10 = scmp.lt.u32.totalorder %s14841_s21, %s17969_s4 }
   0x6   : > { %s17997_s17 = scalar_select %p14950_p2, 1, 0 }
   0x7   : > { %p14226_p4 = pneg %p14950_p2 }
   0x9   : > { %p14959_p5 = pnand %p17976_p3, %p14226_p4 }
   0xb   : > { %p14843_p7 = pneg %p14959_p5 }
   0xd   : > { %p14844_p8 = pnand %p14843_p7, %p14842_p6 }
   0xf   : > { %p14845_p9 = pneg %p14844_p8 }
  0x11   : > { %p14850_p11 = pnand %p14848_p10, %p14845_p9 }
  0x13   : > { %14853 = shalt.err (!%p14850_p11)
}
  0x14   : > { %s14854_s26 = scalar_lea.vmem %s289_s16, 9216  ;;  %p14862_p1 = scmp.lt.s32.totalorder %s289_s16, %s289_s16 }
  0x15   : > { %p14855_p12 = scmp.ne.s32.totalorder %s289_s16, %s14854_s26  ;;  %p14863_p4 = scmp.lt.s32.totalorder %s14854_s26, %s14854_s26 }
  0x17   : > { %p14857_p13 = pnand %p14855_p12, %p14843_p7  ;;  %p14864_p3 = por %p14863_p4, %p14862_p1 }
  0x19   : > { %p14858_p0 = pneg %p14857_p13 }
  0x1b   : > { %p14865_p2 = pnand %p14864_p3, %p14858_p0 }
  0x1d   : > { %14868 = shalt.err (!%p14865_p2)
}
  0x1e   : > { %s14882_s27 = smov 64   ;;  %s14883_s28 = smov 4  }
  0x1f   : > { %14229 = dma.hbm_to_vmem [thread:$0]  (!%p14959_p5), %s17969_s4, 9216, %s289_s16, [#allocation5], %s14882_s27, %s14882_s27, %s14883_s28  }
  0x20   : > { %p17999_p6 = scmp.ne.s32.totalorder %s17997_s17, 0 }
  0x22   : > { %327 = sbr.rel (%p17999_p6) target bundleno = 1436 (0x59c), region = 60 }
  0x29   : > { %p18000_p8 = scmp.eq.s32.totalorder %s14946_s14, 0 }
  0x2b   : > { %14874 = dma.done.wait (%p18000_p8), [#allocation5], 9216   ;;  %p18001_p7 = pmov %p18000_p8 }
  0x2c   : > { %v14884_v0 = vmov 0   ;;  %v14244_v1 = vld [vmem:[%s17966_s1 + $0x100] sm:$0xff]   ;;  %v14247_v4 = vld [vmem:[%s17966_s1 + $0x108] sm:$0xff]   ;;  %v14250_v7 = vld [vmem:[%s17966_s1 + $0x110] sm:$0xff]   ;;  %p365_p2 = scmp.lt.s32.totalorder %s14946_s14, 1  ;;  %vm872_vm0 = vcmask 1042432  }
  0x2d   : > { %14876 = vsyncadd (%p18001_p7), [#allocation5], 4294958080  ;;  %377 = vst [vmem:[#allocation2 + $0x4] sm:$0xf] %v14884_v0  ;;  %v15079_v2 = vld [vmem:[%s17966_s1 + $0x140] sm:$0xff]   ;;  %12710 = vmatprep.subr.bf16.mxu0 %v14244_v1  ;;  %v15092_v5 = vld [vmem:[%s17966_s1 + $0x148] sm:$0xff]  }
  0x2e   : > { %378 = vst [vmem:[#allocation2 + $0x8] sm:$0xf] %v14884_v0  ;;  %379 = vst [vmem:[#allocation2 + $0xc] sm:$0xf] %v14884_v0  ;;  %v14246_v3 = vld [vmem:[%s17966_s1 + $0xc0] sm:$0xff]   ;;  %13886 = vmatprep.subr.bf16.mxu1 %v15079_v2  ;;  %v14249_v6 = vld [vmem:[%s17966_s1 + $0xc8] sm:$0xff]  }
  0x2f   : > { %380 = vst [vmem:[#allocation2 + $0x10] sm:$0xf] %v14884_v0  ;;  %383 = vst [vmem:[#allocation2 + $0x158] sm:$0xf] %v14884_v0  ;;  %12711 = vmatpush3.bf16.msra.mxu0 %v14246_v3  ;;  %13894 = vmatpush3.bf16.msra.mxu1 %v15079_v2  ;;  %v15104_v8 = vld [vmem:[%s17966_s1 + $0x150] sm:$0xff]   ;;  %v14253_v10 = vld [vmem:[%s17966_s1 + $0x118] sm:$0xff]  }
  0x30   : > { %384 = vst [vmem:[#allocation2 + $0x15c] sm:$0xf] %v14884_v0  ;;  %385 = vst [vmem:[#allocation2 + $0x160] sm:$0xf] %v14884_v0  ;;  %12712 = vmatprep.subr.bf16.mxu0 %v14247_v4  ;;  %13887 = vmatprep.subr.bf16.mxu1 %v15092_v5  ;;  %v14252_v9 = vld [vmem:[%s17966_s1 + $0xd0] sm:$0xff]   ;;  %v15117_v11 = vld [vmem:[%s17966_s1 + $0x158] sm:$0xff]  }
  0x31   : > { %386 = vst [vmem:[#allocation2 + $0x164] sm:$0xf] %v14884_v0  ;;  %388 = vst [vmem:[#allocation2 + $0x18] sm:$0xf] %v14884_v0  ;;  %v14255_v12 = vld [vmem:[%s17966_s1 + $0xd8] sm:$0xff]   ;;  %v14256_v13 = vld [vmem:[%s17966_s1 + $0x120] sm:$0xff]  }
  0x32   : > { %389 = vst [vmem:[#allocation2 + $0x2c] sm:$0xf] %v14884_v0  ;;  %390 = vst [vmem:[#allocation2 + $0x40] sm:$0xf] %v14884_v0  ;;  %v15131_v14 = vld [vmem:[%s17966_s1 + $0x160] sm:$0xff]   ;;  %s18292_s14 = smov (!%p365_p2, %s14946_s14), 1 }
  0x33   : > { %391 = vst [vmem:[#allocation2 + $0x54] sm:$0xf] %v14884_v0  ;;  %392 = vst [vmem:[#allocation2 + $0x68] sm:$0xf] %v14884_v0  ;;  %12713 = vmatpush3.bf16.msra.mxu0 %v14249_v6  ;;  %13895 = vmatpush3.bf16.msra.mxu1 %v15092_v5  ;;  %v14258_v15 = vld [vmem:[%s17966_s1 + $0xe0] sm:$0xff]   ;;  %v14259_v16 = vld [vmem:[%s17966_s1 + $0x128] sm:$0xff]  }
  0x34   : > { %393 = vst [vmem:[#allocation2 + $0x7c] sm:$0xf] %v14884_v0  ;;  %394 = vst [vmem:[#allocation2 + $0x90] sm:$0xf] %v14884_v0  ;;  %12714 = vmatprep.subr.bf16.mxu0 %v14250_v7  ;;  %13888 = vmatprep.subr.bf16.mxu1 %v15104_v8  ;;  %v15147_v17 = vld [vmem:[%s17966_s1 + $0x168] sm:$0xff]   ;;  %s12501_s29 = sshll.u32 %s18292_s14, 7 }
  0x35   : > { %395 = vst [vmem:[#allocation2 + $0xa4] sm:$0xf] %v14884_v0  ;;  %396 = vst [vmem:[#allocation2 + $0xb8] sm:$0xf] %v14884_v0  ;;  %v14261_v18 = vld [vmem:[%s17966_s1 + $0xe8] sm:$0xff]   ;;  %v14262_v19 = vld [vmem:[%s17966_s1 + $0x130] sm:$0xff]   ;;  %s15168_s20 = scalar_lea.vmem %s17965_s0, %s12501_s29  ;;  %s17815_s17 = scalar_lea.vmem %s17975_s10, %s12501_s29 }
  0x36   : > { %397 = vst [vmem:[#allocation2 + $0xcc] sm:$0xf] %v14884_v0  ;;  %398 = vst [vmem:[#allocation2 + $0xe0] sm:$0xf] %v14884_v0  ;;  %v15161_v20 = vld [vmem:[%s17966_s1 + $0x170] sm:$0xff]   ;;  %v14265_v22 = vld [vmem:[%s17966_s1 + $0x138] sm:$0xff]  }
  0x37   : > { %399 = vst [vmem:[#allocation2 + $0xf4] sm:$0xf] %v14884_v0  ;;  %400 = vst [vmem:[#allocation2 + $0x108] sm:$0xf] %v14884_v0  ;;  %12715 = vmatpush3.bf16.msra.mxu0 %v14252_v9  ;;  %13896 = vmatpush3.bf16.msra.mxu1 %v15104_v8  ;;  %v14264_v21 = vld [vmem:[%s17966_s1 + $0xf0] sm:$0xff]   ;;  %v423_v23 = vld [vmem:[%s15168_s20] sm:$0xff]  }
  0x38   : > { %401 = vst [vmem:[#allocation2 + $0x11c] sm:$0xf] %v14884_v0  ;;  %402 = vst [vmem:[#allocation2 + $0x130] sm:$0xf] %v14884_v0  ;;  %12716 = vmatprep.subr.bf16.mxu0 %v14253_v10  ;;  %13889 = vmatprep.subr.bf16.mxu1 %v15117_v11  ;;  %v439_v24 = vld [vmem:[%s15168_s20 + $0x40] sm:$0xff]   ;;  %v15183_v25 = vld [vmem:[%s17966_s1 + $0x178] sm:$0xff]  }
  0x39   : > { %403 = vst [vmem:[#allocation2 + $0x144] sm:$0xf] %v14884_v0  ;;  %406 = vst [vmem:[#allocation2 + $0x24] sm:$0xf] %v14884_v0  ;;  %v441_v27 = vld [vmem:[%s15168_s20 + $0x48] sm:$0xff]   ;;  %v14267_v29 = vld [vmem:[%s17966_s1 + $0xf8] sm:$0xff]  }
  0x3a   : > { %407 = vst [vmem:[#allocation2 + $0x38] sm:$0xf] %v14884_v0  ;;  %408 = vst [vmem:[#allocation2 + $0x4c] sm:$0xf] %v14884_v0  ;;  %v1706_v30 = vld [vmem:[#allocation2 + $0x18] sm:$0x8] }
  0x3b   : > { %409 = vst [vmem:[#allocation2 + $0x60] sm:$0xf] %v14884_v0  ;;  %410 = vst [vmem:[#allocation2 + $0x74] sm:$0xf] %v14884_v0  ;;  %12717 = vmatpush3.bf16.msra.mxu0 %v14255_v12  ;;  %13897 = vmatpush3.bf16.msra.mxu1 %v15117_v11  ;;  %v14275_v31 = vld [vmem:[%s17966_s1 + $0x40] sm:$0xff]   ;;  %v425_v34 = vld [vmem:[%s15168_s20 + $0x8] sm:$0xff]  }
  0x3c   : > { %411 = vst [vmem:[#allocation2 + $0x88] sm:$0xf] %v14884_v0  ;;  %412 = vst [vmem:[#allocation2 + $0x9c] sm:$0xf] %v14884_v0  ;;  %12718 = vmatprep.subr.bf16.mxu0 %v14256_v13  ;;  %13890 = vmatprep.subr.bf16.mxu1 %v15131_v14  ;;  %v443_v35 = vld [vmem:[%s15168_s20 + $0x50] sm:$0xff]   ;;  %v445_v49 = vld [vmem:[%s15168_s20 + $0x58] sm:$0xff]  }
  0x3d   : > { %413 = vst [vmem:[#allocation2 + $0xb0] sm:$0xf] %v14884_v0  ;;  %414 = vst [vmem:[#allocation2 + $0xc4] sm:$0xf] %v14884_v0  ;;  %vm921_vm1 = vsmask.f32 4352 }
  0x3e   : > { %415 = vst [vmem:[#allocation2 + $0xd8] sm:$0xf] %v14884_v0  ;;  %416 = vst [vmem:[#allocation2 + $0xec] sm:$0xf] %v14884_v0 }
  0x3f   : > { %417 = vst [vmem:[#allocation2 + $0x100] sm:$0xf] %v14884_v0  ;;  %418 = vst [vmem:[#allocation2 + $0x114] sm:$0xf] %v14884_v0  ;;  %12719 = vmatpush3.bf16.msra.mxu0 %v14258_v15  ;;  %13898 = vmatpush3.bf16.msra.mxu1 %v15131_v14 }
  0x40   : > { %419 = vst [vmem:[#allocation2 + $0x128] sm:$0xf] %v14884_v0  ;;  %420 = vst [vmem:[#allocation2 + $0x13c] sm:$0xf] %v14884_v0  ;;  %12720 = vmatprep.subr.bf16.mxu0 %v14259_v16  ;;  %13891 = vmatprep.subr.bf16.mxu1 %v15147_v17 }
  0x41   : > { %421 = vst [vmem:[#allocation2 + $0x150] sm:$0xf] %v14884_v0  ;;  %5682 = vst [vmem:[#allocation3 + $0x4] sm:$0xf] %v14884_v0 }
  0x42   : > { %5683 = vst [vmem:[#allocation3 + $0x8] sm:$0xf] %v14884_v0  ;;  %5684 = vst [vmem:[#allocation3 + $0xc] sm:$0xf] %v14884_v0 }
  0x43   : > { %5685 = vst [vmem:[#allocation3 + $0x10] sm:$0xf] %v14884_v0  ;;  %5688 = vst [vmem:[#allocation3 + $0x158] sm:$0xf] %v14884_v0  ;;  %12721 = vmatpush3.bf16.msra.mxu0 %v14261_v18  ;;  %13899 = vmatpush3.bf16.msra.mxu1 %v15147_v17 }
  0x44   : > { %5689 = vst [vmem:[#allocation3 + $0x15c] sm:$0xf] %v14884_v0  ;;  %5690 = vst [vmem:[#allocation3 + $0x160] sm:$0xf] %v14884_v0  ;;  %12722 = vmatprep.subr.bf16.mxu0 %v14262_v19  ;;  %13892 = vmatprep.subr.bf16.mxu1 %v15161_v20 }
  0x45   : > { %5691 = vst [vmem:[#allocation3 + $0x164] sm:$0xf] %v14884_v0  ;;  %5693 = vst [vmem:[#allocation3 + $0x18] sm:$0xf] %v14884_v0 }
  0x46   : > { %5694 = vst [vmem:[#allocation3 + $0x2c] sm:$0xf] %v14884_v0  ;;  %5695 = vst [vmem:[#allocation3 + $0x40] sm:$0xf] %v14884_v0 }
  0x47   : > { %5696 = vst [vmem:[#allocation3 + $0x54] sm:$0xf] %v14884_v0  ;;  %5697 = vst [vmem:[#allocation3 + $0x68] sm:$0xf] %v14884_v0  ;;  %12723 = vmatpush3.bf16.msra.mxu0 %v14264_v21  ;;  %13900 = vmatpush3.bf16.msra.mxu1 %v15161_v20 }
  0x48   : > { %5698 = vst [vmem:[#allocation3 + $0x7c] sm:$0xf] %v14884_v0  ;;  %5699 = vst [vmem:[#allocation3 + $0x90] sm:$0xf] %v14884_v0  ;;  %12724 = vmatprep.subr.bf16.mxu0 %v14265_v22  ;;  %13893 = vmatprep.subr.bf16.mxu1 %v15183_v25 }
  0x49   : > { %5700 = vst [vmem:[#allocation3 + $0xa4] sm:$0xf] %v14884_v0  ;;  %5701 = vst [vmem:[#allocation3 + $0xb8] sm:$0xf] %v14884_v0 }
  0x4a   : > { %5702 = vst [vmem:[#allocation3 + $0xcc] sm:$0xf] %v14884_v0  ;;  %5703 = vst [vmem:[#allocation3 + $0xe0] sm:$0xf] %v14884_v0 }
  0x4b   : > { %5704 = vst [vmem:[#allocation3 + $0xf4] sm:$0xf] %v14884_v0  ;;  %5705 = vst [vmem:[#allocation3 + $0x108] sm:$0xf] %v14884_v0  ;;  %12725 = vmatpush3.bf16.msra.mxu0 %v14267_v29  ;;  %13901 = vmatpush3.bf16.msra.mxu1 %v15183_v25 }
  0x4c   : > { %5706 = vst [vmem:[#allocation3 + $0x11c] sm:$0xf] %v14884_v0  ;;  %5707 = vst [vmem:[#allocation3 + $0x130] sm:$0xf] %v14884_v0  ;;  %13550 = vmatprep.subr.bf16.mxu0 %v15079_v2  ;;  %12846 = vmatprep.subr.bf16.mxu1 %v14275_v31 }
  0x4d   : > { %5708 = vst [vmem:[#allocation3 + $0x144] sm:$0xf] %v14884_v0  ;;  %5711 = vst [vmem:[#allocation3 + $0x24] sm:$0xf] %v14884_v0 }
  0x4e   : > { %5712 = vst [vmem:[#allocation3 + $0x38] sm:$0xf] %v14884_v0  ;;  %5713 = vst [vmem:[#allocation3 + $0x4c] sm:$0xf] %v14884_v0 }
  0x4f   : > { %5714 = vst [vmem:[#allocation3 + $0x60] sm:$0xf] %v14884_v0  ;;  %5715 = vst [vmem:[#allocation3 + $0x74] sm:$0xf] %v14884_v0 }
  0x50   : > { %5716 = vst [vmem:[#allocation3 + $0x88] sm:$0xf] %v14884_v0  ;;  %5717 = vst [vmem:[#allocation3 + $0x9c] sm:$0xf] %v14884_v0 }
  0x51   : > { %5718 = vst [vmem:[#allocation3 + $0xb0] sm:$0xf] %v14884_v0  ;;  %5719 = vst [vmem:[#allocation3 + $0xc4] sm:$0xf] %v14884_v0 }
  0x52   : > { %5720 = vst [vmem:[#allocation3 + $0xd8] sm:$0xf] %v14884_v0  ;;  %5721 = vst [vmem:[#allocation3 + $0xec] sm:$0xf] %v14884_v0 }
  0x53   : > { %5722 = vst [vmem:[#allocation3 + $0x100] sm:$0xf] %v14884_v0  ;;  %5723 = vst [vmem:[#allocation3 + $0x114] sm:$0xf] %v14884_v0 }
  0x54   : > { %5724 = vst [vmem:[#allocation3 + $0x128] sm:$0xf] %v14884_v0  ;;  %5725 = vst [vmem:[#allocation3 + $0x13c] sm:$0xf] %v14884_v0 }
  0x55   : > { %5726 = vst [vmem:[#allocation3 + $0x150] sm:$0xf] %v14884_v0  ;;  %387 = vst [vmem:[#allocation2 + $0x4] sm:$0xf] %v14884_v0 }
  0x56   : > { %404 = vst [vmem:[#allocation2 + $0x158] sm:$0xf] %v14884_v0  ;;  %405 = vst [vmem:[#allocation2 + $0x10] sm:$0xf] %v14884_v0 }
  0x57   : > { %422 = vst [vmem:[#allocation2 + $0x164] sm:$0xf] %v14884_v0  ;;  %5692 = vst [vmem:[#allocation3 + $0x4] sm:$0xf] %v14884_v0 }
  0x58   : > { %5709 = vst [vmem:[#allocation3 + $0x158] sm:$0xf] %v14884_v0  ;;  %5710 = vst [vmem:[#allocation3 + $0x10] sm:$0xf] %v14884_v0 }
  0x59   : > { %5727 = vst [vmem:[#allocation3 + $0x164] sm:$0xf] %v14884_v0  ;;  %456 = vst [vmem:[#allocation2 + $0x1c] sm:$0xff] %v423_v23   ;;  %v14270_v26 = vld [vmem:[#allocation2 + $0xc4] ss:$0 sps:$4 sm:$0x11]  }
  0x5a   : > { %472 = vst [vmem:[#allocation2 + $0xbc] sm:$0xff] %v439_v24   ;;  %474 = vst [vmem:[#allocation2 + $0xd0] sm:$0xff] %v441_v27   ;;  %v14274_v28 = vld [vmem:[#allocation2 + $0xd8] ss:$0 sps:$4 sm:$0x11]   ;;  %v2115_v32 = vrot.slane %v14270_v26, 5 }
  0x5b   : > { %v2118_v33 = vrot.slane %v14274_v28, 5  ;;  %458 = vst [vmem:[#allocation2 + $0x30] sm:$0xff] %v425_v34   ;;  %v15196_v36 = vld [vmem:[#allocation2 + $0xec] ss:$0 sps:$4 sm:$0x11]   ;;  %476 = vst [vmem:[#allocation2 + $0xe4] sm:$0xff] %v443_v35  }
  0x5c   : > { %v2121_v48 = vrot.slane %v15196_v36, 5  ;;  %478 = vst [vmem:[#allocation2 + $0xf8] sm:$0xff] %v445_v49   ;;  %v1709_v26 = vld [vmem:[#allocation2 + $0x2c] sm:$0x8] }
  0x60   : > { %v1707_v37 = vld [vmem:[#allocation2 + $0x1c] sm:$0xf]  ;;  %v1708_v38 = vld [vmem:[#allocation2 + $0x20] sm:$0xf] }
  0x61   : > { %v1731_v39 = vld [vmem:[#allocation2 + $0xbc] sm:$0xf]  ;;  %v15199_v40 = vcombine.low %v1707_v37, %v1708_v38  ;;  %v1732_v41 = vld [vmem:[#allocation2 + $0xc0] sm:$0xf]  ;;  %v11845_v42 = vcombine.low %v1706_v30, %v1707_v37  ;;  %v11846_v43 = vcombine.low %v1708_v38, %v1708_v38  ;;  %v1734_v44 = vld [vmem:[#allocation2 + $0xd0] sm:$0xf] }
  0x62   : > { %v1735_v45 = vld [vmem:[#allocation2 + $0xd4] sm:$0xf]  ;;  %v15202_v46 = vcombine.low %v1731_v39, %v1732_v41  ;;  %v15208_v50 = vcombine.low %v1732_v41, %v1732_v41  ;;  %v1710_v16 = vld [vmem:[#allocation2 + $0x30] sm:$0xf]  ;;  %v1737_v24 = vld [vmem:[#allocation2 + $0xe4] sm:$0xf] }
  0x63   : > { %v15204_v47 = vcombine.low %v1734_v44, %v1735_v45  ;;  %v1915_v51 = vshrl.u32 %v15199_v40, 16  ;;  %v1918_v52 = vshll.u32 %v15199_v40, 16  ;;  %v2139_v53 = vshrl.u32 %v11845_v42, 16  ;;  %v1711_v18 = vld [vmem:[#allocation2 + $0x34] sm:$0xf] }
  0x64   : > { %v2142_v54 = vshll.u32 %v11845_v42, 16  ;;  %v2114_v55 = vrot.slane %v15202_v46, 5  ;;  %v2147_v56 = vshrl.u32 %v11846_v43, 16  ;;  %v2150_v57 = vshll.u32 %v11846_v43, 16  ;;  %v1738_v31 = vld [vmem:[#allocation2 + $0xe8] sm:$0xf] }
  0x65   : > { %v2117_v58 = vrot.slane %v15204_v47, 5  ;;  %v1917_v59 = vrot.slane %v1915_v51, 4  ;;  %v1920_v60 = vrot.slane %v1918_v52, 5  ;;  %v2141_v61 = vrot.slane %v2139_v53, 3  ;;  %v1741_v38 = vld [vmem:[#allocation2 + $0xfc] sm:$0xf] }
  0x66   : > { %v2144_v62 = vrot.slane %v2142_v54, 4  ;;  %v2116_v63 = vsel %vm872_vm0, %v2114_v55, %v2115_v32  ;;  %v2509_v0 = vshrl.u32 %v2114_v55, 16  ;;  %v2512_v1 = vshll.u32 %v2114_v55, 16  ;;  %v1740_v32 = vld [vmem:[#allocation2 + $0xf8] sm:$0xf]  ;;  %v427_v44 = vld [vmem:[%s15168_s20 + $0x10] sm:$0xff]  }
  0x67   : > { %v2149_v3 = vrot.slane %v2147_v56, 3  ;;  %v1921_v4 = vor.u32 %v1920_v60, %v1917_v59  ;;  %v2517_v6 = vshrl.u32 %v2116_v63, 16  ;;  %v2520_v7 = vshll.u32 %v2116_v63, 16  ;;  %460 = vst [vmem:[#allocation2 + $0x44] sm:$0xff] %v427_v44   ;;  %v447_v53 = vld [vmem:[%s15168_s20 + $0x60] sm:$0xff]  }
  0x68   : > { %v2145_v9 = vor.u32 %v2144_v62, %v2141_v61  ;;  %v2511_v10 = vrot.slane %v2509_v0, 3  ;;  %v2514_v12 = vrot.slane %v2512_v1, 4  ;;  %v2152_v13 = vrot.slane %v2150_v57, 4  ;;  %480 = vst [vmem:[#allocation2 + $0x10c] sm:$0xff] %v447_v53   ;;  %v14276_v0 = vld [vmem:[%s17966_s1] sm:$0xff]   ;;  %v14277_v1 = vld [vmem:[%s17966_s1 + $0x48] sm:$0xff]  }
  0x69   : > { %v2119_v15 = vsel %vm872_vm0, %v2117_v58, %v2118_v33  ;;  %v2156_v19 = vshrl.u32 %v1921_v4, 16  ;;  %v2159_v21 = vshll.u32 %v1921_v4, 16  ;;  %v2519_v22 = vrot.slane %v2517_v6, 3  ;;  %v14292_v53 = vld [vmem:[#allocation2 + $0x114] ss:$0 sps:$4 sm:$0x11]  }
  0x6a   : > { %v2522_v23 = vrot.slane %v2520_v7, 4  ;;  %v2515_v27 = vor.u32 %v2514_v12, %v2511_v10  ;;  %v2153_v28 = vor.u32 %v2152_v13, %v2149_v3  ;;  %v2552_v29 = vshrl.u32 %v2117_v58, 16 }
  0x6b   : > { %v2555_v30 = vshll.u32 %v2117_v58, 16  ;;  %v2158_v34 = vrot.slane %v2156_v19, 3  ;;  %v2161_v35 = vrot.slane %v2159_v21, 4  ;;  %v2560_v33 = vshrl.u32 %v2119_v15, 16  ;;  %v449_v58 = vld [vmem:[%s15168_s20 + $0x68] sm:$0xff]  }
  0x6c   : > { %v2523_v37 = vor.u32 %v2522_v23, %v2519_v22  ;;  %v2154_v39 = vsel %vm921_vm1, %v2145_v9, %v2153_v28  ;;  %v2554_v41 = vrot.slane %v2552_v29, 3  ;;  %v2563_v43 = vshll.u32 %v2119_v15, 16  ;;  %482 = vst [vmem:[#allocation2 + $0x120] sm:$0xff] %v449_v58   ;;  %v14278_v15 = vld [vmem:[%s17966_s1 + $0x8] sm:$0xff]  }
  0x6d   : > { %v2557_v42 = vrot.slane %v2555_v30, 4  ;;  %v2162_v45 = vor.u32 %v2161_v35, %v2158_v34  ;;  %v2562_v51 = vrot.slane %v2560_v33, 3  ;;  %v15219_v52 = vcombine.low %v1710_v16, %v1711_v18  ;;  %v14285_v21 = vld [vmem:[#allocation2 + $0x100] ss:$0 sps:$4 sm:$0x11]  }
  0x6e   : > { %v2524_v49 = vsel %vm921_vm1, %v2515_v27, %v2523_v37  ;;  %v2565_v55 = vrot.slane %v2563_v43, 4  ;;  %v15222_v56 = vcombine.low %v1737_v24, %v1738_v31  ;;  %v11847_v57 = vcombine.low %v1709_v26, %v1710_v16  ;;  %v14286_v26 = vld [vmem:[%s17966_s1 + $0x50] sm:$0xff]   ;;  %v1714_v35 = vld [vmem:[#allocation2 + $0x48] sm:$0xf] }
  0x6f   : > { %13582 = vmatprep.mubr.bf16.mxu1 %v2524_v49  ;;  %v2558_v54 = vor.u32 %v2557_v42, %v2554_v41  ;;  %3099 = vmatprep.mubr.bf16.mxu0 %v2162_v45  ;;  %v1923_v59 = vshrl.u32 %v15219_v52, 16  ;;  %v1926_v60 = vshll.u32 %v15219_v52, 16  ;;  %v11848_v61 = vcombine.low %v1711_v18, %v1711_v18  ;;  %v14287_v41 = vld [vmem:[%s17966_s1 + $0x10] sm:$0xff]   ;;  %v1743_v42 = vld [vmem:[#allocation2 + $0x10c] sm:$0xf] }
  0x70   : > { %v15227_v62 = vcombine.low %v1740_v32, %v1741_v38  ;;  %3100 = vmatmul.mubr.bf16.vlgmr.msra.gmra.mrb[0].mxu0 %v2154_v39  ;;  %v2566_v63 = vor.u32 %v2565_v55, %v2562_v51  ;;  %v2120_v3 = vrot.slane %v15222_v56, 5  ;;  %v2182_v4 = vshrl.u32 %v11847_v57, 16  ;;  %v1744_v43 = vld [vmem:[#allocation2 + $0x110] sm:$0xf] }
  0x71   : > { %v2185_v6 = vshll.u32 %v11847_v57, 16  ;;  %13551 = vmatpush3.bf16.msra.mxu0 %v15079_v2  ;;  %v1925_v7 = vrot.slane %v1923_v59, 4  ;;  %v1928_v9 = vrot.slane %v1926_v60, 5  ;;  %v2190_v10 = vshrl.u32 %v11848_v61, 16  ;;  %v1712_v59 = vld [vmem:[#allocation2 + $0x40] sm:$0x8] }
  0x72   : > { %v2193_v12 = vshll.u32 %v11848_v61, 16  ;;  %v2567_v13 = vsel %vm921_vm1, %v2558_v54, %v2566_v63  ;;  %v2122_v16 = vsel %vm872_vm0, %v2120_v3, %v2121_v48  ;;  %v2595_v18 = vshrl.u32 %v2120_v3, 16  ;;  %13552 = vmatprep.subr.bf16.mxu0 %v15092_v5  ;;  %v1713_v48 = vld [vmem:[#allocation2 + $0x44] sm:$0xf] }
  0x73   : > { %v2598_v19 = vshll.u32 %v2120_v3, 16  ;;  %13583 = vmatmul.mubr.bf16.vlgmr.msra.gmra.mrb[0].mxu1 %v2567_v13  ;;  %v1929_v2 = vor.u32 %v1928_v9, %v1925_v7  ;;  %v2603_v22 = vshrl.u32 %v2122_v16, 16  ;;  %v2606_v23 = vshll.u32 %v2122_v16, 16  ;;  %v14289_v7 = vld [vmem:[%s17966_s1 + $0x18] sm:$0xff]  }
  0x74   : > { %v2184_v24 = vrot.slane %v2182_v4, 3  ;;  %12847 = vmatpush3.bf16.msra.mxu1 %v14276_v0  ;;  %v2597_v27 = vrot.slane %v2595_v18, 3  ;;  %v2187_v36 = vrot.slane %v2185_v6, 4  ;;  %v2192_v29 = vrot.slane %v2190_v10, 3 }
  0x75   : > { %v2600_v28 = vrot.slane %v2598_v19, 4  ;;  %12848 = vmatprep.subr.bf16.mxu1 %v14277_v1  ;;  %v2199_v30 = vshrl.u32 %v1929_v2, 16  ;;  %v2202_v31 = vshll.u32 %v1929_v2, 16  ;;  %v2605_v32 = vrot.slane %v2603_v22, 3  ;;  %13553 = vmatpush3.bf16.msra.mxu0 %v15092_v5  ;;  %v14288_v5 = vld [vmem:[%s17966_s1 + $0x58] sm:$0xff]   ;;  %v451_v2 = vld [vmem:[%s15168_s20 + $0x70] sm:$0xff]  }
  0x76   : > { %v2608_v34 = vrot.slane %v2606_v23, 4  ;;  %v2188_v33 = vor.u32 %v2187_v36, %v2184_v24  ;;  %v2195_v38 = vrot.slane %v2193_v12, 4  ;;  %v2123_v39 = vrot.slane %v15227_v62, 5  ;;  %13554 = vmatprep.subr.bf16.mxu0 %v15104_v8  ;;  %484 = vst [vmem:[#allocation2 + $0x134] sm:$0xff] %v451_v2  }
  0x77   : > { %v2601_v37 = vor.u32 %v2600_v28, %v2597_v27  ;;  %v2201_v44 = vrot.slane %v2199_v30, 3  ;;  %v2204_v45 = vrot.slane %v2202_v31, 4  ;;  %v2124_v51 = vrot.slane %v14285_v21, 5  ;;  %v429_v21 = vld [vmem:[%s15168_s20 + $0x18] sm:$0xff]   ;;  %v1746_v30 = vld [vmem:[#allocation2 + $0x120] sm:$0xf] }
  0x78   : > { %v2609_v49 = vor.u32 %v2608_v34, %v2605_v32  ;;  %12849 = vmatpush3.bf16.msra.mxu1 %v14278_v15  ;;  %v2196_v54 = vor.u32 %v2195_v38, %v2192_v29  ;;  %v2638_v55 = vshrl.u32 %v2123_v39, 16  ;;  %v2641_v57 = vshll.u32 %v2123_v39, 16  ;;  %v14297_v15 = vld [vmem:[%s17966_s1 + $0x60] sm:$0xff]   ;;  %462 = vst [vmem:[#allocation2 + $0x58] sm:$0xff] %v429_v21   ;;  %v453_v32 = vld [vmem:[%s15168_s20 + $0x78] sm:$0xff]  }
  0x79   : > { %v15257_v58 = vcombine.low %v1713_v48, %v1714_v35  ;;  %v2205_v60 = vor.u32 %v2204_v45, %v2201_v44  ;;  %v2125_v63 = vsel %vm872_vm0, %v2123_v39, %v2124_v51  ;;  %12850 = vmatprep.subr.bf16.mxu1 %v14286_v26  ;;  %v15261_v0 = vcombine.low %v1743_v42, %v1744_v43  ;;  %v14296_v31 = vld [vmem:[#allocation2 + $0x128] ss:$0 sps:$4 sm:$0x11]   ;;  %v1747_v39 = vld [vmem:[#allocation2 + $0x124] sm:$0xf] }
  0x7a   : > { %v2610_v61 = vsel %vm921_vm1, %v2601_v37, %v2609_v49  ;;  %v2197_v1 = vsel %vm921_vm1, %v2188_v33, %v2196_v54  ;;  %v2640_v3 = vrot.slane %v2638_v55, 3  ;;  %v2643_v4 = vrot.slane %v2641_v57, 4  ;;  %13555 = vmatpush3.bf16.msra.mxu0 %v15104_v8  ;;  %486 = vst [vmem:[#allocation2 + $0x148] sm:$0xff] %v453_v32   ;;  %v15284_v44 = vld [vmem:[#allocation2 + $0x13c] ss:$0 sps:$4 sm:$0x11]  }
  0x7b   : > { %13586 = vmatprep.mubr.bf16.mxu1 %v2610_v61  ;;  %v2646_v6 = vshrl.u32 %v2125_v63, 16  ;;  %3107 = vmatprep.mubr.bf16.mxu0 %v2205_v60  ;;  %v2649_v9 = vshll.u32 %v2125_v63, 16  ;;  %v1931_v10 = vshrl.u32 %v15257_v58, 16  ;;  %v1934_v12 = vshll.u32 %v15257_v58, 16  ;;  %v14300_v60 = vld [vmem:[%s17966_s1 + $0x28] sm:$0xff]  }
  0x7c   : > { %v2126_v13 = vrot.slane %v15261_v0, 5  ;;  %13556 = vmatprep.subr.bf16.mxu0 %v15117_v11  ;;  %3108 = vmatmul.mubr.bf16.gmra.mrb[4].mxu0 %v2197_v1  ;;  %v2644_v16 = vor.u32 %v2643_v4, %v2640_v3  ;;  %v2127_v19 = vrot.slane %v14292_v53, 5  ;;  %v11849_v8 = vcombine.low %v1712_v59, %v1713_v48  ;;  %v14298_v48 = vld [vmem:[%s17966_s1 + $0x20] sm:$0xff]   ;;  %v1715_v53 = vld [vmem:[#allocation2 + $0x54] sm:$0x8] }
  0x7d   : > { %v2648_v18 = vrot.slane %v2646_v6, 3  ;;  %12851 = vmatpush3.bf16.msra.mxu1 %v14287_v41  ;;  %v2651_v22 = vrot.slane %v2649_v9, 4  ;;  %v1933_v23 = vrot.slane %v1931_v10, 4  ;;  %v1936_v24 = vrot.slane %v1934_v12, 5  ;;  %v14308_v4 = vld [vmem:[%s17966_s1 + $0x70] sm:$0xff]  }
  0x7e   : > { %12852 = vmatprep.subr.bf16.mxu1 %v14288_v5  ;;  %v2681_v26 = vshrl.u32 %v2126_v13, 16  ;;  %v2128_v27 = vsel %vm872_vm0, %v2126_v13, %v2127_v19  ;;  %v2684_v28 = vshll.u32 %v2126_v13, 16  ;;  %v11850_v36 = vcombine.low %v1714_v35, %v1714_v35  ;;  %13557 = vmatpush3.bf16.msra.mxu0 %v15117_v11  ;;  %v14299_v5 = vld [vmem:[%s17966_s1 + $0x68] sm:$0xff]   ;;  %v1749_v19 = vld [vmem:[#allocation2 + $0x134] sm:$0xf] }
  0x7f   : > { %v2225_v29 = vshrl.u32 %v11849_v8, 16  ;;  %v2652_v34 = vor.u32 %v2651_v22, %v2648_v18  ;;  %v1937_v37 = vor.u32 %v1936_v24, %v1933_v23  ;;  %v2689_v38 = vshrl.u32 %v2128_v27, 16  ;;  %13558 = vmatprep.subr.bf16.mxu0 %v15131_v14  ;;  %v1716_v12 = vld [vmem:[#allocation2 + $0x58] sm:$0xf]  ;;  %v1717_v13 = vld [vmem:[#allocation2 + $0x5c] sm:$0xf] }
  0x80   : > { %v2683_v33 = vrot.slane %v2681_v26, 3  ;;  %v2686_v35 = vrot.slane %v2684_v28, 4  ;;  %v2692_v41 = vshll.u32 %v2128_v27, 16  ;;  %v2228_v43 = vshll.u32 %v11849_v8, 16  ;;  %v1750_v8 = vld [vmem:[#allocation2 + $0x138] sm:$0xf] }
  0x81   : > { %12853 = vmatpush3.bf16.msra.mxu1 %v14289_v7  ;;  %v2227_v42 = vrot.slane %v2225_v29, 3  ;;  %v2653_v45 = vsel %vm921_vm1, %v2644_v16, %v2652_v34  ;;  %v2242_v49 = vshrl.u32 %v1937_v37, 16  ;;  %v2245_v51 = vshll.u32 %v1937_v37, 16  ;;  %v14309_v24 = vld [vmem:[%s17966_s1 + $0x30] sm:$0xff]  }
  0x82   : > { %v2691_v11 = vrot.slane %v2689_v38, 3  ;;  %12854 = vmatprep.subr.bf16.mxu1 %v14297_v15  ;;  %13587 = vmatmul.mubr.bf16.gmra.mrb[4].mxu1 %v2653_v45  ;;  %v2687_v54 = vor.u32 %v2686_v35, %v2683_v33  ;;  %v2694_v55 = vrot.slane %v2692_v41, 4  ;;  %v2230_v57 = vrot.slane %v2228_v43, 4  ;;  %v14310_v33 = vld [vmem:[%s17966_s1 + $0x78] sm:$0xff]  }
  0x83   : > { %v2233_v59 = vshrl.u32 %v11850_v36, 16  ;;  %13559 = vmatpush3.bf16.msra.mxu0 %v15131_v14  ;;  %v2244_v61 = vrot.slane %v2242_v49, 3  ;;  %v2247_v63 = vrot.slane %v2245_v51, 4  ;;  %v2236_v1 = vshll.u32 %v11850_v36, 16  ;;  %v431_v51 = vld [vmem:[%s15168_s20 + $0x20] sm:$0xff]  }
  0x84   : > { %v15294_v3 = vcombine.low %v1746_v30, %v1747_v39  ;;  %13560 = vmatprep.subr.bf16.mxu0 %v15147_v17  ;;  %v2695_v6 = vor.u32 %v2694_v55, %v2691_v11  ;;  %v2231_v7 = vor.u32 %v2230_v57, %v2227_v42  ;;  %v2130_v10 = vrot.slane %v14296_v31, 5  ;;  %v15323_v49 = vld [vmem:[#allocation2 + $0x150] ss:$0 sps:$4 sm:$0x11]   ;;  %v1752_v55 = vld [vmem:[#allocation2 + $0x148] sm:$0xf] }
  0x85   : > { %v2235_v9 = vrot.slane %v2233_v59, 3  ;;  %12855 = vmatpush3.bf16.msra.mxu1 %v14298_v48  ;;  %v2248_v15 = vor.u32 %v2247_v63, %v2244_v61  ;;  %v2238_v14 = vrot.slane %v2236_v1, 4  ;;  %v15301_v18 = vcombine.low %v1716_v12, %v1717_v13  ;;  %v1753_v57 = vld [vmem:[#allocation2 + $0x14c] sm:$0xf]  ;;  %v14311_v59 = vld [vmem:[%s17966_s1 + $0x38] sm:$0xff]   ;;  %464 = vst [vmem:[#allocation2 + $0x6c] sm:$0xff] %v431_v51  }
  0x86   : > { %v2129_v16 = vrot.slane %v15294_v3, 5  ;;  %12856 = vmatprep.subr.bf16.mxu1 %v14299_v5  ;;  %v2696_v21 = vsel %vm921_vm1, %v2687_v54, %v2695_v6  ;;  %v15304_v2 = vcombine.low %v1749_v19, %v1750_v8  ;;  %v2133_v22 = vrot.slane %v15284_v44, 5  ;;  %v15337_v6 = vld [vmem:[#allocation2 + $0xc] sm:$0xf] }
  0x87   : > { %v15307_v23 = vcombine.low %v1715_v53, %v1716_v12  ;;  %13561 = vmatpush3.bf16.msra.mxu0 %v15147_v17  ;;  %3115 = vmatprep.mubr.bf16.mxu0 %v2248_v15  ;;  %v2239_v26 = vor.u32 %v2238_v14, %v2235_v9  ;;  %v1939_v31 = vshrl.u32 %v15301_v18, 16  ;;  %v1942_v48 = vshll.u32 %v15301_v18, 16  ;;  %v435_v14 = vld [vmem:[%s15168_s20 + $0x30] sm:$0xff]  }
  0x88   : > { %13590 = vmatprep.mubr.bf16.mxu1 %v2696_v21  ;;  %v2131_v27 = vsel %vm872_vm0, %v2129_v16, %v2130_v10  ;;  %v2724_v28 = vshrl.u32 %v2129_v16, 16  ;;  %v2727_v36 = vshll.u32 %v2129_v16, 16  ;;  %13562 = vmatprep.subr.bf16.mxu0 %v15161_v20  ;;  %v2132_v37 = vrot.slane %v15304_v2, 5  ;;  %468 = vst [vmem:[#allocation2 + $0x94] sm:$0xff] %v435_v14  }
  0x89   : > { %v2732_v29 = vshrl.u32 %v2131_v27, 16  ;;  %v2735_v30 = vshll.u32 %v2131_v27, 16  ;;  %12857 = vmatpush3.bf16.msra.mxu1 %v14300_v60  ;;  %v2240_v32 = vsel %vm921_vm1, %v2231_v7, %v2239_v26  ;;  %v1941_v35 = vrot.slane %v1939_v31, 4  ;;  %v15333_v60 = vld [vmem:[%s17966_s1 + $0x80] sm:$0xff]   ;;  %v433_v7 = vld [vmem:[%s15168_s20 + $0x28] sm:$0xff]  }
  0x8a   : > { %v2726_v17 = vrot.slane %v2724_v28, 3  ;;  %v2729_v34 = vrot.slane %v2727_v36, 4  ;;  %12858 = vmatprep.subr.bf16.mxu1 %v14308_v4  ;;  %3116 = vmatmul.mubr.bf16.gmra.mrb[8].mxu0 %v2240_v32  ;;  %v1944_v41 = vrot.slane %v1942_v48, 5  ;;  %v2134_v43 = vsel %vm872_vm0, %v2132_v37, %v2133_v22  ;;  %v489_v4 = vld [vmem:[#allocation2 + $0x8] sm:$0xf]  ;;  %466 = vst [vmem:[#allocation2 + $0x80] sm:$0xff] %v433_v7  }
  0x8b   : > { %v2734_v38 = vrot.slane %v2732_v29, 3  ;;  %v2737_v39 = vrot.slane %v2735_v30, 4  ;;  %v2767_v44 = vshrl.u32 %v2132_v37, 16  ;;  %v2770_v45 = vshll.u32 %v2132_v37, 16  ;;  %13563 = vmatpush3.bf16.msra.mxu0 %v15161_v20  ;;  %v488_v27 = vld [vmem:[#allocation2 + $0x4] sm:$0x8] }
  0x8c   : > { %v2730_v42 = vor.u32 %v2729_v34, %v2726_v17  ;;  %v1945_v5 = vor.u32 %v1944_v41, %v1941_v35  ;;  %v2775_v53 = vshrl.u32 %v2134_v43, 16  ;;  %v2778_v54 = vshll.u32 %v2134_v43, 16  ;;  %13564 = vmatprep.subr.bf16.mxu0 %v15183_v25  ;;  %v1718_v32 = vld [vmem:[#allocation2 + $0x68] sm:$0x8]  ;;  %v437_v35 = vld [vmem:[%s15168_s20 + $0x38] sm:$0xff]  }
  0x8d   : > { %v2738_v11 = vor.u32 %v2737_v39, %v2734_v38  ;;  %12859 = vmatpush3.bf16.msra.mxu1 %v14309_v24  ;;  %v2769_v20 = vrot.slane %v2767_v44, 3  ;;  %v2772_v61 = vrot.slane %v2770_v45, 4  ;;  %v11852_v63 = vcombine.low %v1717_v13, %v1717_v13  ;;  %v1720_v38 = vld [vmem:[#allocation2 + $0x70] sm:$0xf]  ;;  %470 = vst [vmem:[#allocation2 + $0xa8] sm:$0xff] %v437_v35  }
  0x8e   : > { %v2268_v1 = vshrl.u32 %v15307_v23, 16  ;;  %12860 = vmatprep.subr.bf16.mxu1 %v14310_v33  ;;  %v2285_v10 = vshrl.u32 %v1945_v5, 16  ;;  %v2288_v12 = vshll.u32 %v1945_v5, 16  ;;  %v2777_v15 = vrot.slane %v2775_v53, 3  ;;  %v1719_v33 = vld [vmem:[#allocation2 + $0x6c] sm:$0xf] }
  0x8f   : > { %v2739_v9 = vsel %vm921_vm1, %v2730_v42, %v2738_v11  ;;  %v2773_v16 = vor.u32 %v2772_v61, %v2769_v20  ;;  %v2780_v19 = vrot.slane %v2778_v54, 4  ;;  %v2271_v13 = vshll.u32 %v15307_v23, 16  ;;  %13565 = vmatpush3.bf16.msra.mxu0 %v15183_v25 }
  0x90   : > { %13591 = vmatmul.mubr.bf16.gmra.mrb[8].mxu1 %v2739_v9  ;;  %v2270_v8 = vrot.slane %v2268_v1, 3  ;;  %v2287_v21 = vrot.slane %v2285_v10, 3  ;;  %v2290_v22 = vrot.slane %v2288_v12, 4  ;;  %v2276_v24 = vshrl.u32 %v11852_v63, 16 }
  0x91   : > { %v2279_v26 = vshll.u32 %v11852_v63, 16  ;;  %12861 = vmatpush3.bf16.msra.mxu1 %v14311_v59  ;;  %v2781_v28 = vor.u32 %v2780_v19, %v2777_v15  ;;  %v2273_v36 = vrot.slane %v2271_v13, 4  ;;  %v15344_v29 = vcombine.low %v1752_v55, %v1753_v57  ;;  %v1723_v35 = vld [vmem:[#allocation2 + $0x84] sm:$0xf] }
  0x92   : > { %v2136_v30 = vrot.slane %v15323_v49, 5  ;;  %13598 = vmatprep.subr.bf16.mxu1 %v15333_v60  ;;  %v2291_v31 = vor.u32 %v2290_v22, %v2287_v21  ;;  %v2278_v23 = vrot.slane %v2276_v24, 3  ;;  %v15349_v25 = vcombine.low %v489_v4, %v15337_v6 }
  0x93   : > { %v2281_v48 = vrot.slane %v2279_v26, 4  ;;  %v2782_v17 = vsel %vm921_vm1, %v2773_v16, %v2781_v28  ;;  %v2274_v34 = vor.u32 %v2273_v36, %v2270_v8  ;;  %v2135_v37 = vrot.slane %v15344_v29, 5 }
  0x94   : > { %v15353_v39 = vcombine.low %v488_v27, %v489_v4  ;;  %3123 = vmatprep.mubr.bf16.mxu0 %v2291_v31  ;;  %13594 = vmatprep.mubr.bf16.mxu1 %v2782_v17  ;;  %v15356_v42 = vcombine.low %v1719_v33, %v1720_v38  ;;  %v697_v43 = vshrl.u32 %v15349_v25, 16  ;;  %v700_v44 = vshll.u32 %v15349_v25, 16  ;;  %v492_v17 = vld [vmem:[#allocation2 + $0x1c] sm:$0xf] }
  0x95   : > { %v2282_v41 = vor.u32 %v2281_v48, %v2278_v23  ;;  %v2137_v45 = vsel %vm872_vm0, %v2135_v37, %v2136_v30  ;;  %v2810_v49 = vshrl.u32 %v2135_v37, 16  ;;  %v2813_v51 = vshll.u32 %v2135_v37, 16 }
  0x96   : > { %v11853_v11 = vcombine.low %v1718_v32, %v1719_v33  ;;  %v2818_v53 = vshrl.u32 %v2137_v45, 16  ;;  %v2821_v54 = vshll.u32 %v2137_v45, 16  ;;  %v1947_v55 = vshrl.u32 %v15356_v42, 16  ;;  %v1722_v32 = vld [vmem:[#allocation2 + $0x80] sm:$0xf] }
  0x97   : > { %v2283_v5 = vsel %vm921_vm1, %v2274_v34, %v2282_v41  ;;  %v2812_v57 = vrot.slane %v2810_v49, 3  ;;  %v2815_v59 = vrot.slane %v2813_v51, 4  ;;  %v1950_v20 = vshll.u32 %v15356_v42, 16  ;;  %v493_v34 = vld [vmem:[#allocation2 + $0x20] sm:$0xf] }
  0x98   : > { %3124 = vmatmul.mubr.bf16.gmra.mrb[12].mxu0 %v2283_v5  ;;  %v699_v61 = vrot.slane %v697_v43, 4  ;;  %v2820_v63 = vrot.slane %v2818_v53, 3  ;;  %v2823_v1 = vrot.slane %v2821_v54, 4  ;;  %v1949_v4 = vrot.slane %v1947_v55, 4  ;;  %v1721_v49 = vld [vmem:[#allocation2 + $0x7c] sm:$0x8] }
  0x99   : > { %v702_v7 = vrot.slane %v700_v44, 5  ;;  %v2816_v9 = vor.u32 %v2815_v59, %v2812_v57  ;;  %v1952_v10 = vrot.slane %v1950_v20, 5  ;;  %v11854_v12 = vcombine.low %v1720_v38, %v1720_v38 }
  0x9a   : > { %v2311_v15 = vshrl.u32 %v11853_v11, 16  ;;  %v2824_v14 = vor.u32 %v2823_v1, %v2820_v63  ;;  %v2314_v19 = vshll.u32 %v11853_v11, 16  ;;  %v11782_v8 = vcombine.low %v15337_v6, %v15337_v6 }
  0x9b   : > { %v703_v16 = vor.u32 %v702_v7, %v699_v61  ;;  %v1953_v13 = vor.u32 %v1952_v10, %v1949_v4  ;;  %v2319_v22 = vshrl.u32 %v11854_v12, 16  ;;  %v2322_v24 = vshll.u32 %v11854_v12, 16  ;;  %v491_v10 = vld [vmem:[#allocation2 + $0x18] sm:$0x8] }
  0x9c   : > { %v2313_v21 = vrot.slane %v2311_v15, 3  ;;  %v2825_v26 = vsel %vm921_vm1, %v2816_v9, %v2824_v14  ;;  %v2316_v36 = vrot.slane %v2314_v19, 4  ;;  %v923_v38 = vshrl.u32 %v15353_v39, 16  ;;  %v1725_v19 = vld [vmem:[#allocation2 + $0x94] sm:$0xf] }
  0x9d   : > { %v940_v27 = vshrl.u32 %v703_v16, 16  ;;  %v943_v28 = vshll.u32 %v703_v16, 16  ;;  %13595 = vmatmul.mubr.bf16.gmra.mrb[12].mxu1 %v2825_v26  ;;  %v2328_v30 = vshrl.u32 %v1953_v13, 16  ;;  %v2331_v31 = vshll.u32 %v1953_v13, 16  ;;  %v1726_v26 = vld [vmem:[#allocation2 + $0x98] sm:$0xf] }
  0x9e   : > { %v2321_v23 = vrot.slane %v2319_v22, 3  ;;  %v2324_v48 = vrot.slane %v2322_v24, 4  ;;  %v2317_v6 = vor.u32 %v2316_v36, %v2313_v21  ;;  %v926_v45 = vshll.u32 %v15353_v39, 16 }
  0x9f   : > { %v942_v37 = vrot.slane %v940_v27, 3  ;;  %v945_v33 = vrot.slane %v943_v28, 4  ;;  %v2330_v41 = vrot.slane %v2328_v30, 3  ;;  %v2333_v43 = vrot.slane %v2331_v31, 4 }
  0xa0   : > { %v2325_v44 = vor.u32 %v2324_v48, %v2321_v23  ;;  %v925_v11 = vrot.slane %v923_v38, 3  ;;  %v931_v5 = vshrl.u32 %v11782_v8, 16  ;;  %v934_v53 = vshll.u32 %v11782_v8, 16  ;;  %v14331_v8 = vld [vmem:[%s17966_s1 + $0x88] sm:$0xff]  }
  0xa1   : > { %v946_v51 = vor.u32 %v945_v33, %v942_v37  ;;  %v2334_v54 = vor.u32 %v2333_v43, %v2330_v41  ;;  %v928_v57 = vrot.slane %v926_v45, 4  ;;  %v15370_v59 = vcombine.low %v1722_v32, %v1723_v35  ;;  %v14343_v45 = vld [vmem:[%s17966_s1 + $0x90] sm:$0xff]  }
  0xa2   : > { %v2326_v55 = vsel %vm921_vm1, %v2317_v6, %v2325_v44  ;;  %v933_v20 = vrot.slane %v931_v5, 3  ;;  %v936_v61 = vrot.slane %v934_v53, 4  ;;  %v15372_v63 = vcombine.low %v492_v17, %v493_v34  ;;  %v495_v53 = vld [vmem:[#allocation2 + $0x30] sm:$0xf] }
  0xa3   : > { %3565 = vmatprep.mubr.bf16.mxu1 %v946_v51  ;;  %v11855_v1 = vcombine.low %v1721_v49, %v1722_v32  ;;  %3131 = vmatprep.mubr.bf16.mxu0 %v2334_v54  ;;  %v929_v4 = vor.u32 %v928_v57, %v925_v11  ;;  %v1955_v39 = vshrl.u32 %v15370_v59, 16  ;;  %v1958_v7 = vshll.u32 %v15370_v59, 16 }
  0xa4   : > { %v11856_v9 = vcombine.low %v1723_v35, %v1723_v35  ;;  %3132 = vmatmul.mubr.bf16.gmra.mrb[16].mxu0 %v2326_v55  ;;  %v937_v12 = vor.u32 %v936_v61, %v933_v20  ;;  %v705_v15 = vshrl.u32 %v15372_v63, 16  ;;  %v708_v14 = vshll.u32 %v15372_v63, 16  ;;  %v496_v55 = vld [vmem:[#allocation2 + $0x34] sm:$0xf] }
  0xa5   : > { %v2354_v16 = vshrl.u32 %v11855_v1, 16  ;;  %v1957_v13 = vrot.slane %v1955_v39, 4  ;;  %v1960_v21 = vrot.slane %v1958_v7, 5  ;;  %v2357_v22 = vshll.u32 %v11855_v1, 16 }
  0xa6   : > { %v2362_v24 = vshrl.u32 %v11856_v9, 16  ;;  %v938_v27 = vsel %vm921_vm1, %v929_v4, %v937_v12  ;;  %v707_v28 = vrot.slane %v705_v15, 4  ;;  %v710_v36 = vrot.slane %v708_v14, 5  ;;  %v1724_v4 = vld [vmem:[#allocation2 + $0x90] sm:$0x8] }
  0xa7   : > { %v2356_v30 = vrot.slane %v2354_v16, 3  ;;  %3566 = vmatmul.mubr.bf16.vlgmr.msra.gmra.mrb[16].mxu1 %v938_v27  ;;  %v1961_v31 = vor.u32 %v1960_v21, %v1957_v13  ;;  %v2359_v23 = vrot.slane %v2357_v22, 4  ;;  %v2365_v32 = vshll.u32 %v11856_v9, 16  ;;  %v494_v12 = vld [vmem:[#allocation2 + $0x2c] sm:$0x8]  ;;  %v14354_v21 = vld [vmem:[%s17966_s1 + $0x98] sm:$0xff]  }
  0xa8   : > { %v2364_v48 = vrot.slane %v2362_v24, 3  ;;  %13599 = vmatpush3.bf16.msra.mxu1 %v15333_v60  ;;  %v711_v37 = vor.u32 %v710_v36, %v707_v28  ;;  %v11783_v33 = vcombine.low %v491_v10, %v492_v17  ;;  %v11784_v6 = vcombine.low %v493_v34, %v493_v34 }
  0xa9   : > { %v15383_v38 = vcombine.low %v1725_v19, %v1726_v26  ;;  %v2371_v35 = vshrl.u32 %v1961_v31, 16  ;;  %v2374_v41 = vshll.u32 %v1961_v31, 16  ;;  %v2360_v43 = vor.u32 %v2359_v23, %v2356_v30  ;;  %13600 = vmatprep.subr.bf16.mxu1 %v14331_v8 }
  0xaa   : > { %v2367_v44 = vrot.slane %v2365_v32, 4  ;;  %v983_v49 = vshrl.u32 %v711_v37, 16  ;;  %v986_v51 = vshll.u32 %v711_v37, 16  ;;  %v966_v11 = vshrl.u32 %v11783_v33, 16 }
  0xab   : > { %v969_v5 = vshll.u32 %v11783_v33, 16  ;;  %v2373_v60 = vrot.slane %v2371_v35, 3  ;;  %v2376_v54 = vrot.slane %v2374_v41, 4  ;;  %v974_v34 = vshrl.u32 %v11784_v6, 16 }
  0xac   : > { %v2368_v17 = vor.u32 %v2367_v44, %v2364_v48  ;;  %v985_v57 = vrot.slane %v983_v49, 3  ;;  %v988_v20 = vrot.slane %v986_v51, 4  ;;  %v968_v61 = vrot.slane %v966_v11, 3  ;;  %13601 = vmatpush3.bf16.msra.mxu1 %v14331_v8 }
  0xad   : > { %v971_v1 = vrot.slane %v969_v5, 4  ;;  %v2377_v39 = vor.u32 %v2376_v54, %v2373_v60  ;;  %v976_v9 = vrot.slane %v974_v34, 3  ;;  %v977_v10 = vshll.u32 %v11784_v6, 16  ;;  %13602 = vmatprep.subr.bf16.mxu1 %v14343_v45  ;;  %v1728_v34 = vld [vmem:[#allocation2 + $0xa8] sm:$0xf] }
  0xae   : > { %v2369_v7 = vsel %vm921_vm1, %v2360_v43, %v2368_v17  ;;  %v989_v15 = vor.u32 %v988_v20, %v985_v57  ;;  %v1963_v16 = vshrl.u32 %v15383_v38, 16  ;;  %v1966_v13 = vshll.u32 %v15383_v38, 16  ;;  %v499_v57 = vld [vmem:[#allocation2 + $0x48] sm:$0xf]  ;;  %v14387_v20 = vld [vmem:[%s17966_s1 + $0x1c0] sm:$0xff]  }
  0xaf   : > { %v972_v14 = vor.u32 %v971_v1, %v968_v61  ;;  %3139 = vmatprep.mubr.bf16.mxu0 %v2377_v39  ;;  %v979_v22 = vrot.slane %v977_v10, 4  ;;  %v15394_v8 = vcombine.low %v495_v53, %v496_v55  ;;  %v11857_v24 = vcombine.low %v1724_v4, %v1725_v19  ;;  %v14365_v19 = vld [vmem:[%s17966_s1 + $0xa0] sm:$0xff]   ;;  %12982 = vmatprep.subr.bf16.mxu0 %v14387_v20 }
  0xb0   : > { %v11858_v27 = vcombine.low %v1726_v26, %v1726_v26  ;;  %3573 = vmatprep.mubr.bf16.mxu1 %v989_v15  ;;  %3140 = vmatmul.mubr.bf16.gmra.mrb[20].mxu0 %v2369_v7  ;;  %v1965_v28 = vrot.slane %v1963_v16, 4  ;;  %v1968_v36 = vrot.slane %v1966_v13, 5  ;;  %v11785_v30 = vcombine.low %v494_v12, %v495_v53  ;;  %v1729_v7 = vld [vmem:[#allocation2 + $0xac] sm:$0xf]  ;;  %v1727_v16 = vld [vmem:[#allocation2 + $0xa4] sm:$0x8] }
  0xb1   : > { %v11786_v31 = vcombine.low %v496_v55, %v496_v55  ;;  %v980_v23 = vor.u32 %v979_v22, %v976_v9  ;;  %v713_v48 = vshrl.u32 %v15394_v8, 16  ;;  %v716_v32 = vshll.u32 %v15394_v8, 16  ;;  %13603 = vmatpush3.bf16.msra.mxu1 %v14343_v45  ;;  %v498_v55 = vld [vmem:[#allocation2 + $0x44] sm:$0xf]  ;;  %v14376_v9 = vld [vmem:[%s17966_s1 + $0xa8] sm:$0xff]  }
  0xb2   : > { %v2397_v37 = vshrl.u32 %v11857_v24, 16  ;;  %v1969_v33 = vor.u32 %v1968_v36, %v1965_v28  ;;  %v2400_v6 = vshll.u32 %v11857_v24, 16  ;;  %v2405_v35 = vshrl.u32 %v11858_v27, 16  ;;  %13604 = vmatprep.subr.bf16.mxu1 %v14354_v21 }
  0xb3   : > { %v2408_v41 = vshll.u32 %v11858_v27, 16  ;;  %v981_v26 = vsel %vm921_vm1, %v972_v14, %v980_v23  ;;  %v715_v43 = vrot.slane %v713_v48, 4  ;;  %v718_v44 = vrot.slane %v716_v32, 5 }
  0xb4   : > { %v2399_v49 = vrot.slane %v2397_v37, 3  ;;  %3574 = vmatmul.mubr.bf16.gmra.mrb[20].mxu1 %v981_v26  ;;  %v2414_v51 = vshrl.u32 %v1969_v33, 16  ;;  %v2417_v11 = vshll.u32 %v1969_v33, 16  ;;  %v2402_v5 = vrot.slane %v2400_v6, 4  ;;  %v14389_v33 = vld [vmem:[%s17966_s1 + $0xb0] sm:$0xff]  }
  0xb5   : > { %v2407_v53 = vrot.slane %v2405_v35, 3  ;;  %v719_v45 = vor.u32 %v718_v44, %v715_v43  ;;  %v2410_v60 = vrot.slane %v2408_v41, 4  ;;  %v1009_v54 = vshrl.u32 %v11785_v30, 16  ;;  %13605 = vmatpush3.bf16.msra.mxu1 %v14354_v21 }
  0xb6   : > { %v1012_v17 = vshll.u32 %v11785_v30, 16  ;;  %v2416_v61 = vrot.slane %v2414_v51, 3  ;;  %v2419_v1 = vrot.slane %v2417_v11, 4  ;;  %v2403_v4 = vor.u32 %v2402_v5, %v2399_v49  ;;  %13606 = vmatprep.subr.bf16.mxu1 %v14365_v19 }
  0xb7   : > { %v1017_v39 = vshrl.u32 %v11786_v31, 16  ;;  %v1026_v10 = vshrl.u32 %v719_v45, 16  ;;  %v1029_v12 = vshll.u32 %v719_v45, 16  ;;  %v2411_v15 = vor.u32 %v2410_v60, %v2407_v53  ;;  %v497_v53 = vld [vmem:[#allocation2 + $0x40] sm:$0x8] }
  0xb8   : > { %v1011_v14 = vrot.slane %v1009_v54, 3  ;;  %v2420_v13 = vor.u32 %v2419_v1, %v2416_v61  ;;  %v1014_v21 = vrot.slane %v1012_v17, 4  ;;  %v1020_v24 = vshll.u32 %v11786_v31, 16 }
  0xb9   : > { %v1019_v22 = vrot.slane %v1017_v39, 3  ;;  %v1028_v27 = vrot.slane %v1026_v10, 3  ;;  %v1031_v28 = vrot.slane %v1029_v12, 4  ;;  %v2412_v36 = vsel %vm921_vm1, %v2403_v4, %v2411_v15  ;;  %13607 = vmatpush3.bf16.msra.mxu1 %v14365_v19 }
  0xba   : > { %v15409_v30 = vcombine.low %v1728_v34, %v1729_v7  ;;  %3147 = vmatprep.mubr.bf16.mxu0 %v2420_v13  ;;  %v1015_v23 = vor.u32 %v1014_v21, %v1011_v14  ;;  %v1022_v48 = vrot.slane %v1020_v24, 4  ;;  %v15411_v32 = vcombine.low %v498_v55, %v499_v57  ;;  %13608 = vmatprep.subr.bf16.mxu1 %v14376_v9  ;;  %v501_v24 = vld [vmem:[#allocation2 + $0x58] sm:$0xf] }
  0xbb   : > { %v11859_v37 = vcombine.low %v1727_v16, %v1728_v34  ;;  %v1032_v6 = vor.u32 %v1031_v28, %v1028_v27  ;;  %3148 = vmatmul.mubr.bf16.gmra.mrb[24].mxu0 %v2412_v36  ;;  %v11860_v41 = vcombine.low %v1729_v7, %v1729_v7  ;;  %v11787_v39 = vcombine.low %v497_v53, %v498_v55  ;;  %v502_v27 = vld [vmem:[#allocation2 + $0x5c] sm:$0xf]  ;;  %v1730_v28 = vld [vmem:[#allocation2 + $0xb8] sm:$0x8]  ;;  %v500_v55 = vld [vmem:[#allocation2 + $0x54] sm:$0x8] }
  0xbc   : > { %v1971_v31 = vshrl.u32 %v15409_v30, 16  ;;  %v1974_v35 = vshll.u32 %v15409_v30, 16  ;;  %v1023_v26 = vor.u32 %v1022_v48, %v1019_v22  ;;  %v721_v19 = vshrl.u32 %v15411_v32, 16  ;;  %v14796_v53 = vld [vmem:[#allocation2 + $0xbc] sm:$0xf] }
  0xbd   : > { %v724_v43 = vshll.u32 %v15411_v32, 16  ;;  %v2440_v44 = vshrl.u32 %v11859_v37, 16  ;;  %3581 = vmatprep.mubr.bf16.mxu1 %v1032_v6  ;;  %v2443_v11 = vshll.u32 %v11859_v37, 16  ;;  %v2448_v5 = vshrl.u32 %v11860_v41, 16  ;;  %13609 = vmatpush3.bf16.msra.mxu1 %v14376_v9 }
  0xbe   : > { %v1973_v49 = vrot.slane %v1971_v31, 4  ;;  %v1976_v51 = vrot.slane %v1974_v35, 5  ;;  %v1024_v45 = vsel %vm921_vm1, %v1015_v23, %v1023_v26  ;;  %v723_v60 = vrot.slane %v721_v19, 4  ;;  %13610 = vmatprep.subr.bf16.mxu1 %v14389_v33 }
  0xbf   : > { %v726_v54 = vrot.slane %v724_v43, 5  ;;  %v2442_v17 = vrot.slane %v2440_v44, 3  ;;  %3582 = vmatmul.mubr.bf16.gmra.mrb[24].mxu1 %v1024_v45  ;;  %v2445_v20 = vrot.slane %v2443_v11, 4  ;;  %v2450_v61 = vrot.slane %v2448_v5, 3 }
  0xc0   : > { %v1977_v34 = vor.u32 %v1976_v51, %v1973_v49  ;;  %v2451_v1 = vshll.u32 %v11860_v41, 16  ;;  %v11788_v7 = vcombine.low %v499_v57, %v499_v57  ;;  %v1979_v10 = vshrl.u32 %v15202_v46, 16 }
  0xc1   : > { %v727_v4 = vor.u32 %v726_v54, %v723_v60  ;;  %v2446_v14 = vor.u32 %v2445_v20, %v2442_v17  ;;  %13611 = vmatpush3.bf16.msra.mxu1 %v14389_v33  ;;  %v1052_v21 = vshrl.u32 %v11787_v39, 16  ;;  %v1055_v22 = vshll.u32 %v11787_v39, 16 }
  0xc2   : > { %v2457_v12 = vshrl.u32 %v1977_v34, 16  ;;  %v2460_v15 = vshll.u32 %v1977_v34, 16  ;;  %v2453_v9 = vrot.slane %v2451_v1, 4  ;;  %v1060_v37 = vshrl.u32 %v11788_v7, 16 }
  0xc3   : > { %v1069_v16 = vshrl.u32 %v727_v4, 16  ;;  %v1072_v13 = vshll.u32 %v727_v4, 16  ;;  %v1054_v31 = vrot.slane %v1052_v21, 3  ;;  %v1057_v35 = vrot.slane %v1055_v22, 4 }
  0xc4   : > { %v2459_v36 = vrot.slane %v2457_v12, 3  ;;  %v2462_v23 = vrot.slane %v2460_v15, 4  ;;  %v2454_v48 = vor.u32 %v2453_v9, %v2450_v61  ;;  %v1062_v33 = vrot.slane %v1060_v37, 3  ;;  %v1733_v37 = vld [vmem:[#allocation2 + $0xcc] sm:$0x8] }
  0xc5   : > { %v1071_v57 = vrot.slane %v1069_v16, 3  ;;  %v1074_v6 = vrot.slane %v1072_v13, 4  ;;  %v1063_v19 = vshll.u32 %v11788_v7, 16  ;;  %v1058_v44 = vor.u32 %v1057_v35, %v1054_v31  ;;  %v503_v35 = vld [vmem:[#allocation2 + $0x68] sm:$0x8] }
  0xc6   : > { %v2463_v41 = vor.u32 %v2462_v23, %v2459_v36  ;;  %v2455_v26 = vsel %vm921_vm1, %v2446_v14, %v2454_v48  ;;  %v1981_v49 = vrot.slane %v1979_v10, 4  ;;  %v1982_v51 = vshll.u32 %v15202_v46, 16  ;;  %v504_v23 = vld [vmem:[#allocation2 + $0x6c] sm:$0xf]  ;;  %v505_v48 = vld [vmem:[#allocation2 + $0x70] sm:$0xf] }
  0xc7   : > { %v1075_v43 = vor.u32 %v1074_v6, %v1071_v57  ;;  %v1065_v11 = vrot.slane %v1063_v19, 4  ;;  %v15424_v5 = vcombine.low %v501_v24, %v502_v27  ;;  %v11861_v45 = vcombine.low %v1730_v28, %v14796_v53 }
  0xc8   : > { %3155 = vmatprep.mubr.bf16.mxu0 %v2463_v41  ;;  %v2491_v60 = vshrl.u32 %v15208_v50, 16  ;;  %v1984_v54 = vrot.slane %v1982_v51, 5  ;;  %v2494_v17 = vshll.u32 %v15208_v50, 16  ;;  %v11789_v34 = vcombine.low %v500_v55, %v501_v24 }
  0xc9   : > { %3589 = vmatprep.mubr.bf16.mxu1 %v1075_v43  ;;  %3156 = vmatmul.mubr.bf16.gmra.mrb[28].mxu0 %v2455_v26  ;;  %v11790_v20 = vcombine.low %v502_v27, %v502_v27  ;;  %v1066_v61 = vor.u32 %v1065_v11, %v1062_v33  ;;  %v729_v1 = vshrl.u32 %v15424_v5, 16  ;;  %v732_v46 = vshll.u32 %v15424_v5, 16 }
  0xca   : > { %v2483_v4 = vshrl.u32 %v11861_v45, 16  ;;  %v1985_v39 = vor.u32 %v1984_v54, %v1981_v49  ;;  %v2486_v7 = vshll.u32 %v11861_v45, 16  ;;  %v2493_v10 = vrot.slane %v2491_v60, 3 }
  0xcb   : > { %v2496_v12 = vrot.slane %v2494_v17, 4  ;;  %v1067_v15 = vsel %vm921_vm1, %v1058_v44, %v1066_v61  ;;  %v731_v14 = vrot.slane %v729_v1, 4  ;;  %v734_v9 = vrot.slane %v732_v46, 5  ;;  %v14408_v1 = vld [vmem:[%s17966_s1 + $0xb8] sm:$0xff]  }
  0xcc   : > { %v2485_v16 = vrot.slane %v2483_v4, 3  ;;  %3590 = vmatmul.mubr.bf16.gmra.mrb[28].mxu1 %v1067_v15  ;;  %v2500_v13 = vshrl.u32 %v1985_v39, 16  ;;  %v2503_v50 = vshll.u32 %v1985_v39, 16  ;;  %v2488_v21 = vrot.slane %v2486_v7, 4  ;;  %v14798_v39 = vld [vmem:[#allocation2 + $0xd4] sm:$0xf]  ;;  %13612 = vmatprep.subr.bf16.mxu1 %v14408_v1 }
  0xcd   : > { %v2497_v22 = vor.u32 %v2496_v12, %v2493_v10  ;;  %v735_v24 = vor.u32 %v734_v9, %v731_v14  ;;  %v1095_v27 = vshrl.u32 %v11789_v34, 16  ;;  %v1098_v28 = vshll.u32 %v11789_v34, 16  ;;  %13613 = vmatpush3.bf16.msra.mxu1 %v14408_v1 }
  0xce   : > { %v1103_v36 = vshrl.u32 %v11790_v20, 16  ;;  %v2502_v55 = vrot.slane %v2500_v13, 3  ;;  %v2505_v57 = vrot.slane %v2503_v50, 4  ;;  %v2489_v6 = vor.u32 %v2488_v21, %v2485_v16 }
  0xcf   : > { %v1106_v31 = vshll.u32 %v11790_v20, 16  ;;  %v1112_v41 = vshrl.u32 %v735_v24, 16  ;;  %v1115_v26 = vshll.u32 %v735_v24, 16  ;;  %v1097_v33 = vrot.slane %v1095_v27, 3  ;;  %v14797_v20 = vld [vmem:[#allocation2 + $0xd0] sm:$0xf] }
  0xd0   : > { %v1100_v19 = vrot.slane %v1098_v28, 4  ;;  %v2506_v43 = vor.u32 %v2505_v57, %v2502_v55  ;;  %v2498_v44 = vsel %vm921_vm1, %v2489_v6, %v2497_v22  ;;  %v1105_v49 = vrot.slane %v1103_v36, 3 }
  0xd1   : > { %v1108_v51 = vrot.slane %v1106_v31, 4  ;;  %v1114_v11 = vrot.slane %v1112_v41, 3  ;;  %v1117_v53 = vrot.slane %v1115_v26, 4  ;;  %v1987_v60 = vshrl.u32 %v15204_v47, 16  ;;  %v508_v41 = vld [vmem:[#allocation2 + $0x84] sm:$0xf] }
  0xd2   : > { %v1101_v45 = vor.u32 %v1100_v19, %v1097_v33  ;;  %3163 = vmatprep.mubr.bf16.mxu0 %v2506_v43  ;;  %v1990_v17 = vshll.u32 %v15204_v47, 16  ;;  %v15434_v34 = vcombine.low %v504_v23, %v505_v48  ;;  %v11863_v61 = vcombine.low %v1733_v37, %v14797_v20 }
  0xd3   : > { %v1109_v54 = vor.u32 %v1108_v51, %v1105_v49  ;;  %v1118_v46 = vor.u32 %v1117_v53, %v1114_v11  ;;  %3164 = vmatmul.mubr.bf16.gmra.mrb[32].mxu0 %v2498_v44  ;;  %v1989_v4 = vrot.slane %v1987_v60, 4  ;;  %v11864_v7 = vcombine.low %v14798_v39, %v14798_v39  ;;  %v1736_v44 = vld [vmem:[#allocation2 + $0xe0] sm:$0x8] }
  0xd4   : > { %v11791_v10 = vcombine.low %v503_v35, %v504_v23  ;;  %v1992_v15 = vrot.slane %v1990_v17, 5  ;;  %v737_v14 = vshrl.u32 %v15434_v34, 16  ;;  %v740_v47 = vshll.u32 %v15434_v34, 16  ;;  %v507_v35 = vld [vmem:[#allocation2 + $0x80] sm:$0xf] }
  0xd5   : > { %v1110_v12 = vsel %vm921_vm1, %v1101_v45, %v1109_v54  ;;  %3597 = vmatprep.mubr.bf16.mxu1 %v1118_v46  ;;  %v2526_v9 = vshrl.u32 %v11863_v61, 16  ;;  %v2529_v16 = vshll.u32 %v11863_v61, 16  ;;  %v2534_v13 = vshrl.u32 %v11864_v7, 16 }
  0xd6   : > { %v2537_v50 = vshll.u32 %v11864_v7, 16  ;;  %3598 = vmatmul.mubr.bf16.gmra.mrb[32].mxu1 %v1110_v12  ;;  %v1993_v21 = vor.u32 %v1992_v15, %v1989_v4  ;;  %v739_v22 = vrot.slane %v737_v14, 4  ;;  %v742_v24 = vrot.slane %v740_v47, 5  ;;  %v14799_v15 = vld [vmem:[#allocation2 + $0xe4] sm:$0xf] }
  0xd7   : > { %v11792_v27 = vcombine.low %v505_v48, %v505_v48  ;;  %v2528_v28 = vrot.slane %v2526_v9, 3  ;;  %v2531_v36 = vrot.slane %v2529_v16, 4  ;;  %v2536_v23 = vrot.slane %v2534_v13, 3  ;;  %v14800_v47 = vld [vmem:[#allocation2 + $0xe8] sm:$0xf] }
  0xd8   : > { %v2539_v37 = vrot.slane %v2537_v50, 4  ;;  %v2543_v55 = vshrl.u32 %v1993_v21, 16  ;;  %v2546_v57 = vshll.u32 %v1993_v21, 16  ;;  %v743_v6 = vor.u32 %v742_v24, %v739_v22 }
  0xd9   : > { %v1138_v31 = vshrl.u32 %v11791_v10, 16  ;;  %v2532_v26 = vor.u32 %v2531_v36, %v2528_v28  ;;  %v1141_v19 = vshll.u32 %v11791_v10, 16  ;;  %v1146_v43 = vshrl.u32 %v11792_v27, 16 }
  0xda   : > { %v2540_v33 = vor.u32 %v2539_v37, %v2536_v23  ;;  %v2545_v49 = vrot.slane %v2543_v55, 3  ;;  %v2548_v51 = vrot.slane %v2546_v57, 4  ;;  %v1155_v11 = vshrl.u32 %v743_v6, 16  ;;  %v506_v55 = vld [vmem:[#allocation2 + $0x7c] sm:$0x8] }
  0xdb   : > { %v1158_v53 = vshll.u32 %v743_v6, 16  ;;  %v1140_v45 = vrot.slane %v1138_v31, 3  ;;  %v1143_v60 = vrot.slane %v1141_v19, 4  ;;  %v1148_v54 = vrot.slane %v1146_v43, 3 }
  0xdc   : > { %v2541_v48 = vsel %vm921_vm1, %v2532_v26, %v2540_v33  ;;  %v2549_v17 = vor.u32 %v2548_v51, %v2545_v49  ;;  %v1157_v20 = vrot.slane %v1155_v11, 3  ;;  %v1149_v1 = vshll.u32 %v11792_v27, 16 }
  0xdd   : > { %v1160_v61 = vrot.slane %v1158_v53, 4  ;;  %v1144_v46 = vor.u32 %v1143_v60, %v1140_v45  ;;  %v1995_v4 = vshrl.u32 %v15222_v56, 16  ;;  %v1998_v39 = vshll.u32 %v15222_v56, 16 }
  0xde   : > { %v15445_v7 = vcombine.low %v507_v35, %v508_v41  ;;  %3171 = vmatprep.mubr.bf16.mxu0 %v2549_v17  ;;  %v1151_v12 = vrot.slane %v1149_v1, 4  ;;  %v11865_v14 = vcombine.low %v1736_v44, %v14799_v15  ;;  %v11866_v9 = vcombine.low %v14800_v47, %v14800_v47  ;;  %v510_v17 = vld [vmem:[#allocation2 + $0x94] sm:$0xf] }
  0xdf   : > { %v1161_v10 = vor.u32 %v1160_v61, %v1157_v20  ;;  %3172 = vmatmul.mubr.bf16.gmra.mrb[36].mxu0 %v2541_v48  ;;  %v1997_v16 = vrot.slane %v1995_v4, 4  ;;  %v2000_v13 = vrot.slane %v1998_v39, 5  ;;  %v11793_v51 = vcombine.low %v506_v55, %v507_v35  ;;  %v511_v20 = vld [vmem:[#allocation2 + $0x98] sm:$0xf]  ;;  %v1739_v61 = vld [vmem:[#allocation2 + $0xf4] sm:$0x8] }
  0xe0   : > { %v745_v50 = vshrl.u32 %v15445_v7, 16  ;;  %v748_v21 = vshll.u32 %v15445_v7, 16  ;;  %v1152_v22 = vor.u32 %v1151_v12, %v1148_v54  ;;  %v2569_v24 = vshrl.u32 %v11865_v14, 16 }
  0xe1   : > { %3605 = vmatprep.mubr.bf16.mxu1 %v1161_v10  ;;  %v2572_v56 = vshll.u32 %v11865_v14, 16  ;;  %v2577_v27 = vshrl.u32 %v11866_v9, 16  ;;  %v2001_v28 = vor.u32 %v2000_v13, %v1997_v16  ;;  %v2580_v37 = vshll.u32 %v11866_v9, 16  ;;  %v509_v10 = vld [vmem:[#allocation2 + $0x90] sm:$0x8] }
  0xe2   : > { %v747_v36 = vrot.slane %v745_v50, 4  ;;  %v750_v23 = vrot.slane %v748_v21, 5  ;;  %v1153_v57 = vsel %vm921_vm1, %v1144_v46, %v1152_v22  ;;  %v2571_v6 = vrot.slane %v2569_v24, 3 }
  0xe3   : > { %v2574_v31 = vrot.slane %v2572_v56, 4  ;;  %v2579_v26 = vrot.slane %v2577_v27, 3  ;;  %3606 = vmatmul.mubr.bf16.gmra.mrb[36].mxu1 %v1153_v57  ;;  %v2586_v33 = vshrl.u32 %v2001_v28, 16  ;;  %v2589_v19 = vshll.u32 %v2001_v28, 16  ;;  %v14801_v27 = vld [vmem:[#allocation2 + $0xf8] sm:$0xf] }
  0xe4   : > { %v751_v43 = vor.u32 %v750_v23, %v747_v36  ;;  %v2582_v44 = vrot.slane %v2580_v37, 4  ;;  %v11794_v11 = vcombine.low %v508_v41, %v508_v41  ;;  %v2003_v53 = vshrl.u32 %v15227_v62, 16  ;;  %v14802_v36 = vld [vmem:[#allocation2 + $0xfc] sm:$0xf] }
  0xe5   : > { %v2575_v49 = vor.u32 %v2574_v31, %v2571_v6  ;;  %v2588_v48 = vrot.slane %v2586_v33, 3  ;;  %v2591_v45 = vrot.slane %v2589_v19, 4  ;;  %v1181_v46 = vshrl.u32 %v11793_v51, 16  ;;  %v14425_v31 = vld [vmem:[%s17966_s1 + $0x200] sm:$0xff]  }
  0xe6   : > { %v1198_v60 = vshrl.u32 %v751_v43, 16  ;;  %v1201_v54 = vshll.u32 %v751_v43, 16  ;;  %v2583_v1 = vor.u32 %v2582_v44, %v2579_v26  ;;  %v1184_v4 = vshll.u32 %v11793_v51, 16  ;;  %13646 = vmatprep.subr.bf16.mxu1 %v14425_v31 }
  0xe7   : > { %v1189_v39 = vshrl.u32 %v11794_v11, 16  ;;  %v2592_v12 = vor.u32 %v2591_v45, %v2588_v48  ;;  %v1192_v47 = vshll.u32 %v11794_v11, 16  ;;  %v1183_v41 = vrot.slane %v1181_v46, 3 }
  0xe8   : > { %v1200_v15 = vrot.slane %v1198_v60, 3  ;;  %v1203_v14 = vrot.slane %v1201_v54, 4  ;;  %v2584_v35 = vsel %vm921_vm1, %v2575_v49, %v2583_v1  ;;  %v1186_v9 = vrot.slane %v1184_v4, 4 }
  0xe9   : > { %v1191_v16 = vrot.slane %v1189_v39, 3  ;;  %3179 = vmatprep.mubr.bf16.mxu0 %v2592_v12  ;;  %v1194_v50 = vrot.slane %v1192_v47, 4  ;;  %v2005_v21 = vrot.slane %v2003_v53, 4  ;;  %v2006_v22 = vshll.u32 %v15227_v62, 16  ;;  %v513_v39 = vld [vmem:[#allocation2 + $0xa8] sm:$0xf] }
  0xea   : > { %v1204_v13 = vor.u32 %v1203_v14, %v1200_v15  ;;  %3180 = vmatmul.mubr.bf16.gmra.mrb[40].mxu0 %v2584_v35  ;;  %v1187_v24 = vor.u32 %v1186_v9, %v1183_v41  ;;  %v15453_v56 = vcombine.low %v510_v17, %v511_v20  ;;  %v11867_v28 = vcombine.low %v1739_v61, %v14801_v27  ;;  %v1742_v12 = vld [vmem:[#allocation2 + $0x108] sm:$0x8]  ;;  %v512_v41 = vld [vmem:[#allocation2 + $0xa4] sm:$0x8] }
  0xeb   : > { %v11868_v23 = vcombine.low %v14802_v36, %v14802_v36  ;;  %v1195_v37 = vor.u32 %v1194_v50, %v1191_v16  ;;  %v2008_v55 = vrot.slane %v2006_v22, 5  ;;  %v11795_v57 = vcombine.low %v509_v10, %v510_v17  ;;  %v514_v10 = vld [vmem:[#allocation2 + $0xac] sm:$0xf] }
  0xec   : > { %3613 = vmatprep.mubr.bf16.mxu1 %v1204_v13  ;;  %v11796_v6 = vcombine.low %v511_v20, %v511_v20  ;;  %v753_v26 = vshrl.u32 %v15453_v56, 16  ;;  %v756_v62 = vshll.u32 %v15453_v56, 16  ;;  %v2612_v33 = vshrl.u32 %v11867_v28, 16 }
  0xed   : > { %v2615_v19 = vshll.u32 %v11867_v28, 16  ;;  %v1196_v43 = vsel %vm921_vm1, %v1187_v24, %v1195_v37  ;;  %v2009_v44 = vor.u32 %v2008_v55, %v2005_v21  ;;  %v2620_v49 = vshrl.u32 %v11868_v23, 16 }
  0xee   : > { %v2623_v51 = vshll.u32 %v11868_v23, 16  ;;  %3614 = vmatmul.mubr.bf16.gmra.mrb[40].mxu1 %v1196_v43  ;;  %v755_v11 = vrot.slane %v753_v26, 4  ;;  %v758_v53 = vrot.slane %v756_v62, 5  ;;  %v2614_v48 = vrot.slane %v2612_v33, 3  ;;  %v14803_v26 = vld [vmem:[#allocation2 + $0x10c] sm:$0xf] }
  0xef   : > { %v2617_v45 = vrot.slane %v2615_v19, 4  ;;  %v2629_v60 = vshrl.u32 %v2009_v44, 16  ;;  %v2632_v54 = vshll.u32 %v2009_v44, 16  ;;  %v2622_v17 = vrot.slane %v2620_v49, 3  ;;  %v14804_v43 = vld [vmem:[#allocation2 + $0x110] sm:$0xf] }
  0xf0   : > { %v2625_v20 = vrot.slane %v2623_v51, 4  ;;  %v759_v61 = vor.u32 %v758_v53, %v755_v11  ;;  %v1224_v46 = vshrl.u32 %v11795_v57, 16  ;;  %v1227_v4 = vshll.u32 %v11795_v57, 16 }
  0xf1   : > { %v2618_v1 = vor.u32 %v2617_v45, %v2614_v48  ;;  %v2631_v15 = vrot.slane %v2629_v60, 3  ;;  %v2634_v14 = vrot.slane %v2632_v54, 4  ;;  %v1232_v35 = vshrl.u32 %v11796_v6, 16 }
  0xf2   : > { %v2626_v47 = vor.u32 %v2625_v20, %v2622_v17  ;;  %v1241_v9 = vshrl.u32 %v759_v61, 16  ;;  %v1244_v16 = vshll.u32 %v759_v61, 16  ;;  %v1226_v13 = vrot.slane %v1224_v46, 3 }
  0xf3   : > { %v1229_v50 = vrot.slane %v1227_v4, 4  ;;  %v2635_v21 = vor.u32 %v2634_v14, %v2631_v15  ;;  %v1234_v24 = vrot.slane %v1232_v35, 3  ;;  %v1235_v27 = vshll.u32 %v11796_v6, 16 }
  0xf4   : > { %v2627_v22 = vsel %vm921_vm1, %v2618_v1, %v2626_v47  ;;  %v1243_v28 = vrot.slane %v1241_v9, 3  ;;  %v1246_v36 = vrot.slane %v1244_v16, 4  ;;  %v2011_v37 = vshrl.u32 %v15261_v0, 16 }
  0xf5   : > { %v1230_v23 = vor.u32 %v1229_v50, %v1226_v13  ;;  %3187 = vmatprep.mubr.bf16.mxu0 %v2635_v21  ;;  %v1237_v55 = vrot.slane %v1235_v27, 4  ;;  %v2014_v57 = vshll.u32 %v15261_v0, 16  ;;  %v15464_v31 = vcombine.low %v513_v39, %v514_v10  ;;  %v516_v13 = vld [vmem:[#allocation2 + $0xbc] sm:$0xf]  ;;  %v517_v50 = vld [vmem:[#allocation2 + $0xc0] sm:$0xf] }
  0xf6   : > { %v11869_v62 = vcombine.low %v1742_v12, %v14803_v26  ;;  %v1247_v33 = vor.u32 %v1246_v36, %v1243_v28  ;;  %3188 = vmatmul.mubr.bf16.gmra.mrb[44].mxu0 %v2627_v22  ;;  %v2013_v19 = vrot.slane %v2011_v37, 4  ;;  %v11870_v44 = vcombine.low %v14804_v43, %v14804_v43  ;;  %v1745_v28 = vld [vmem:[#allocation2 + $0x11c] sm:$0x8] }
  0xf7   : > { %v11797_v49 = vcombine.low %v512_v41, %v513_v39  ;;  %v1238_v6 = vor.u32 %v1237_v55, %v1234_v24  ;;  %v2016_v51 = vrot.slane %v2014_v57, 5  ;;  %v761_v11 = vshrl.u32 %v15464_v31, 16  ;;  %v515_v57 = vld [vmem:[#allocation2 + $0xb8] sm:$0x8] }
  0xf8   : > { %v764_v53 = vshll.u32 %v15464_v31, 16  ;;  %3621 = vmatprep.mubr.bf16.mxu1 %v1247_v33  ;;  %v2655_v48 = vshrl.u32 %v11869_v62, 16  ;;  %v2658_v45 = vshll.u32 %v11869_v62, 16  ;;  %v2663_v0 = vshrl.u32 %v11870_v44, 16 }
  0xf9   : > { %v2666_v60 = vshll.u32 %v11870_v44, 16  ;;  %v1239_v54 = vsel %vm921_vm1, %v1230_v23, %v1238_v6  ;;  %v2017_v17 = vor.u32 %v2016_v51, %v2013_v19  ;;  %v763_v20 = vrot.slane %v761_v11, 4 }
  0xfa   : > { %v766_v61 = vrot.slane %v764_v53, 5  ;;  %3622 = vmatmul.mubr.bf16.gmra.mrb[44].mxu1 %v1239_v54  ;;  %v2657_v1 = vrot.slane %v2655_v48, 3  ;;  %v2660_v46 = vrot.slane %v2658_v45, 4  ;;  %v2665_v4 = vrot.slane %v2663_v0, 3  ;;  %v14805_v53 = vld [vmem:[#allocation2 + $0x120] sm:$0xf] }
  0xfb   : > { %v2668_v39 = vrot.slane %v2666_v60, 4  ;;  %v2672_v12 = vshrl.u32 %v2017_v17, 16  ;;  %v2675_v15 = vshll.u32 %v2017_v17, 16  ;;  %v11798_v47 = vcombine.low %v514_v10, %v514_v10  ;;  %v14806_v60 = vld [vmem:[#allocation2 + $0x124] sm:$0xf] }
  0xfc   : > { %v767_v14 = vor.u32 %v766_v61, %v763_v20  ;;  %v2661_v35 = vor.u32 %v2660_v46, %v2657_v1  ;;  %v1267_v9 = vshrl.u32 %v11797_v49, 16  ;;  %v1270_v16 = vshll.u32 %v11797_v49, 16 }
  0xfd   : > { %v2669_v41 = vor.u32 %v2668_v39, %v2665_v4  ;;  %v2674_v21 = vrot.slane %v2672_v12, 3  ;;  %v2677_v22 = vrot.slane %v2675_v15, 4  ;;  %v1275_v55 = vshrl.u32 %v11798_v47, 16 }
  0xfe   : > { %v1284_v24 = vshrl.u32 %v767_v14, 16  ;;  %v1287_v27 = vshll.u32 %v767_v14, 16  ;;  %v1269_v23 = vrot.slane %v1267_v9, 3  ;;  %v1272_v37 = vrot.slane %v1270_v16, 4 }
  0xff   : > { %v2670_v36 = vsel %vm921_vm1, %v2661_v35, %v2669_v41  ;;  %v2678_v26 = vor.u32 %v2677_v22, %v2674_v21  ;;  %v1278_v33 = vshll.u32 %v11798_v47, 16  ;;  %v1277_v43 = vrot.slane %v1275_v55, 3  ;;  %v519_v55 = vld [vmem:[#allocation2 + $0xd0] sm:$0xf] }
 0x100   : > { %v1286_v62 = vrot.slane %v1284_v24, 3  ;;  %v1289_v10 = vrot.slane %v1287_v27, 4  ;;  %v1273_v19 = vor.u32 %v1272_v37, %v1269_v23  ;;  %v2019_v44 = vshrl.u32 %v15294_v3, 16 }
 0x101   : > { %v2022_v49 = vshll.u32 %v15294_v3, 16  ;;  %3195 = vmatprep.mubr.bf16.mxu0 %v2678_v26  ;;  %v1280_v51 = vrot.slane %v1278_v33, 4  ;;  %v15472_v11 = vcombine.low %v516_v13, %v517_v50  ;;  %v11871_v48 = vcombine.low %v1745_v28, %v14805_v53 }
 0x102   : > { %v1290_v6 = vor.u32 %v1289_v10, %v1286_v62  ;;  %3196 = vmatmul.mubr.bf16.gmra.mrb[48].mxu0 %v2670_v36  ;;  %v2021_v45 = vrot.slane %v2019_v44, 4  ;;  %v11872_v54 = vcombine.low %v14806_v60, %v14806_v60  ;;  %v11799_v17 = vcombine.low %v515_v57, %v516_v13  ;;  %v520_v57 = vld [vmem:[#allocation2 + $0xd4] sm:$0xf] }
 0x103   : > { %v2024_v0 = vrot.slane %v2022_v49, 5  ;;  %v1281_v20 = vor.u32 %v1280_v51, %v1277_v43  ;;  %v769_v61 = vshrl.u32 %v15472_v11, 16  ;;  %v772_v1 = vshll.u32 %v15472_v11, 16  ;;  %v518_v51 = vld [vmem:[#allocation2 + $0xcc] sm:$0x8] }
 0x104   : > { %3629 = vmatprep.mubr.bf16.mxu1 %v1290_v6  ;;  %v2698_v3 = vshrl.u32 %v11871_v48, 16  ;;  %v2701_v4 = vshll.u32 %v11871_v48, 16  ;;  %v2706_v39 = vshrl.u32 %v11872_v54, 16  ;;  %v2709_v12 = vshll.u32 %v11872_v54, 16 }
 0x105   : > { %v2025_v46 = vor.u32 %v2024_v0, %v2021_v45  ;;  %v1282_v15 = vsel %vm921_vm1, %v1273_v19, %v1281_v20  ;;  %v771_v14 = vrot.slane %v769_v61, 4  ;;  %v774_v47 = vrot.slane %v772_v1, 5  ;;  %v1748_v19 = vld [vmem:[#allocation2 + $0x130] sm:$0x8] }
 0x106   : > { %v2700_v35 = vrot.slane %v2698_v3, 3  ;;  %3630 = vmatmul.mubr.bf16.gmra.mrb[48].mxu1 %v1282_v15  ;;  %v2703_v16 = vrot.slane %v2701_v4, 4  ;;  %v2708_v13 = vrot.slane %v2706_v39, 3  ;;  %v2711_v22 = vrot.slane %v2709_v12, 4  ;;  %v14807_v3 = vld [vmem:[#allocation2 + $0x134] sm:$0xf] }
 0x107   : > { %v2715_v41 = vshrl.u32 %v2025_v46, 16  ;;  %v2718_v9 = vshll.u32 %v2025_v46, 16  ;;  %v775_v21 = vor.u32 %v774_v47, %v771_v14  ;;  %v11800_v24 = vcombine.low %v517_v50, %v517_v50  ;;  %v14808_v12 = vld [vmem:[#allocation2 + $0x138] sm:$0xf] }
 0x108   : > { %v1310_v27 = vshrl.u32 %v11799_v17, 16  ;;  %v2704_v23 = vor.u32 %v2703_v16, %v2700_v35  ;;  %v1313_v37 = vshll.u32 %v11799_v17, 16  ;;  %v2712_v10 = vor.u32 %v2711_v22, %v2708_v13 }
 0x109   : > { %v2717_v28 = vrot.slane %v2715_v41, 3  ;;  %v2720_v36 = vrot.slane %v2718_v9, 4  ;;  %v1327_v26 = vshrl.u32 %v775_v21, 16  ;;  %v1330_v62 = vshll.u32 %v775_v21, 16 }
 0x10a   : > { %v1312_v33 = vrot.slane %v1310_v27, 3  ;;  %v1315_v44 = vrot.slane %v1313_v37, 4  ;;  %v1318_v49 = vshrl.u32 %v11800_v24, 16  ;;  %v1321_v6 = vshll.u32 %v11800_v24, 16 }
 0x10b   : > { %v2721_v43 = vor.u32 %v2720_v36, %v2717_v28  ;;  %v1329_v53 = vrot.slane %v1327_v26, 3  ;;  %v1332_v48 = vrot.slane %v1330_v62, 4  ;;  %v2713_v50 = vsel %vm921_vm1, %v2704_v23, %v2712_v10 }
 0x10c   : > { %v2027_v45 = vshrl.u32 %v15304_v2, 16  ;;  %v1316_v0 = vor.u32 %v1315_v44, %v1312_v33  ;;  %v1320_v60 = vrot.slane %v1318_v49, 3  ;;  %v1323_v54 = vrot.slane %v1321_v6, 4 }
 0x10d   : > { %3203 = vmatprep.mubr.bf16.mxu0 %v2721_v43  ;;  %v2030_v17 = vshll.u32 %v15304_v2, 16  ;;  %v1333_v20 = vor.u32 %v1332_v48, %v1329_v53  ;;  %v15480_v1 = vcombine.low %v519_v55, %v520_v57  ;;  %v11873_v46 = vcombine.low %v1748_v19, %v14807_v3  ;;  %v522_v19 = vld [vmem:[#allocation2 + $0xe4] sm:$0xf]  ;;  %v523_v43 = vld [vmem:[#allocation2 + $0xe8] sm:$0xf] }
 0x10e   : > { %3204 = vmatmul.mubr.bf16.gmra.mrb[52].mxu0 %v2713_v50  ;;  %v2029_v61 = vrot.slane %v2027_v45, 4  ;;  %v1324_v4 = vor.u32 %v1323_v54, %v1320_v60  ;;  %v11874_v15 = vcombine.low %v14808_v12, %v14808_v12  ;;  %v11801_v14 = vcombine.low %v518_v51, %v519_v55 }
 0x10f   : > { %v2032_v39 = vrot.slane %v2030_v17, 5  ;;  %3637 = vmatprep.mubr.bf16.mxu1 %v1333_v20  ;;  %v777_v47 = vshrl.u32 %v15480_v1, 16  ;;  %v780_v35 = vshll.u32 %v15480_v1, 16  ;;  %v2741_v41 = vshrl.u32 %v11873_v46, 16  ;;  %v1751_v20 = vld [vmem:[#allocation2 + $0x144] sm:$0x8] }
 0x110   : > { %v2744_v9 = vshll.u32 %v11873_v46, 16  ;;  %v1325_v2 = vsel %vm921_vm1, %v1316_v0, %v1324_v4  ;;  %v2749_v13 = vshrl.u32 %v11874_v15, 16  ;;  %v2752_v21 = vshll.u32 %v11874_v15, 16 }
 0x111   : > { %v2033_v16 = vor.u32 %v2032_v39, %v2029_v61  ;;  %3638 = vmatmul.mubr.bf16.gmra.mrb[52].mxu1 %v1325_v2  ;;  %v779_v22 = vrot.slane %v777_v47, 4  ;;  %v782_v24 = vrot.slane %v780_v35, 5  ;;  %v2743_v27 = vrot.slane %v2741_v41, 3  ;;  %v14809_v35 = vld [vmem:[#allocation2 + $0x148] sm:$0xf] }
 0x112   : > { %v2746_v28 = vrot.slane %v2744_v9, 4  ;;  %v2751_v37 = vrot.slane %v2749_v13, 3  ;;  %v2754_v55 = vrot.slane %v2752_v21, 4  ;;  %v11802_v10 = vcombine.low %v520_v57, %v520_v57  ;;  %v14810_v9 = vld [vmem:[#allocation2 + $0x14c] sm:$0xf] }
 0x113   : > { %v2758_v36 = vshrl.u32 %v2033_v16, 16  ;;  %v2761_v23 = vshll.u32 %v2033_v16, 16  ;;  %v783_v26 = vor.u32 %v782_v24, %v779_v22  ;;  %v1353_v33 = vshrl.u32 %v11801_v14, 16  ;;  %v521_v16 = vld [vmem:[#allocation2 + $0xe0] sm:$0x8] }
 0x114   : > { %v2747_v62 = vor.u32 %v2746_v28, %v2743_v27  ;;  %v2755_v6 = vor.u32 %v2754_v55, %v2751_v37  ;;  %v1356_v51 = vshll.u32 %v11801_v14, 16  ;;  %v1361_v45 = vshrl.u32 %v11802_v10, 16 }
 0x115   : > { %v2760_v44 = vrot.slane %v2758_v36, 3  ;;  %v2763_v49 = vrot.slane %v2761_v23, 4  ;;  %v1370_v53 = vshrl.u32 %v783_v26, 16  ;;  %v1373_v48 = vshll.u32 %v783_v26, 16 }
 0x116   : > { %v1355_v50 = vrot.slane %v1353_v33, 3  ;;  %v2756_v60 = vsel %vm921_vm1, %v2747_v62, %v2755_v6  ;;  %v1358_v54 = vrot.slane %v1356_v51, 4  ;;  %v1364_v17 = vshll.u32 %v11802_v10, 16 }
 0x117   : > { %v2764_v0 = vor.u32 %v2763_v49, %v2760_v44  ;;  %v1372_v61 = vrot.slane %v1370_v53, 3  ;;  %v1375_v3 = vrot.slane %v1373_v48, 4  ;;  %v1363_v57 = vrot.slane %v1361_v45, 3 }
 0x118   : > { %v2035_v46 = vshrl.u32 %v15344_v29, 16  ;;  %v1359_v4 = vor.u32 %v1358_v54, %v1355_v50  ;;  %v1366_v39 = vrot.slane %v1364_v17, 4  ;;  %v2038_v12 = vshll.u32 %v15344_v29, 16 }
 0x119   : > { %3211 = vmatprep.mubr.bf16.mxu0 %v2764_v0  ;;  %v15488_v15 = vcombine.low %v522_v19, %v523_v43  ;;  %v1376_v14 = vor.u32 %v1375_v3, %v1372_v61  ;;  %v11875_v41 = vcombine.low %v1751_v20, %v14809_v35  ;;  %v11876_v2 = vcombine.low %v14810_v9, %v14810_v9  ;;  %v14382_v0 = vld [vmem:[#allocation2 + $0x24] ss:$0 sps:$4 sm:$0x11]   ;;  %v525_v3 = vld [vmem:[#allocation2 + $0xf8] sm:$0xf] }
 0x11a   : > { %3212 = vmatmul.mubr.bf16.gmra.mrb[56].mxu0 %v2756_v60  ;;  %v2037_v47 = vrot.slane %v2035_v46, 4  ;;  %v1367_v13 = vor.u32 %v1366_v39, %v1363_v57  ;;  %v2040_v21 = vrot.slane %v2038_v12, 5  ;;  %v11803_v53 = vcombine.low %v521_v16, %v522_v19  ;;  %v526_v57 = vld [vmem:[#allocation2 + $0xfc] sm:$0xf] }
 0x11b   : > { %v785_v22 = vshrl.u32 %v15488_v15, 16  ;;  %v788_v24 = vshll.u32 %v15488_v15, 16  ;;  %3645 = vmatprep.mubr.bf16.mxu1 %v1376_v14  ;;  %v2784_v27 = vshrl.u32 %v11875_v41, 16  ;;  %v2787_v28 = vshll.u32 %v11875_v41, 16 }
 0x11c   : > { %v2792_v29 = vshrl.u32 %v11876_v2, 16  ;;  %v2795_v36 = vshll.u32 %v11876_v2, 16  ;;  %v1368_v23 = vsel %vm921_vm1, %v1359_v4, %v1367_v13  ;;  %v2041_v37 = vor.u32 %v2040_v21, %v2037_v47  ;;  %v14384_v14 = vld [vmem:[#allocation2 + $0x38] ss:$0 sps:$4 sm:$0x11]  }
 0x11d   : > { %v787_v55 = vrot.slane %v785_v22, 4  ;;  %v790_v26 = vrot.slane %v788_v24, 5  ;;  %3646 = vmatmul.mubr.bf16.gmra.mrb[56].mxu1 %v1368_v23  ;;  %v2786_v62 = vrot.slane %v2784_v27, 3  ;;  %v2789_v10 = vrot.slane %v2787_v28, 4 }
 0x11e   : > { %v2794_v33 = vrot.slane %v2792_v29, 3  ;;  %v2797_v44 = vrot.slane %v2795_v36, 4  ;;  %v2801_v49 = vshrl.u32 %v2041_v37, 16  ;;  %v2804_v6 = vshll.u32 %v2041_v37, 16 }
 0x11f   : > { %v791_v51 = vor.u32 %v790_v26, %v787_v55  ;;  %v2790_v48 = vor.u32 %v2789_v10, %v2786_v62  ;;  %v11804_v45 = vcombine.low %v523_v43, %v523_v43  ;;  %v2090_v60 = vrot.slane %v15199_v40, 5  ;;  %v524_v26 = vld [vmem:[#allocation2 + $0xf4] sm:$0x8] }
 0x120   : > { %v2798_v50 = vor.u32 %v2797_v44, %v2794_v33  ;;  %v2803_v54 = vrot.slane %v2801_v49, 3  ;;  %v2806_v17 = vrot.slane %v2804_v6, 4  ;;  %v1396_v4 = vshrl.u32 %v11803_v53, 16 }
 0x121   : > { %v1413_v20 = vshrl.u32 %v791_v51, 16  ;;  %v1416_v61 = vshll.u32 %v791_v51, 16  ;;  %v1399_v39 = vshll.u32 %v11803_v53, 16  ;;  %v1404_v12 = vshrl.u32 %v11804_v45, 16 }
 0x122   : > { %v2799_v46 = vsel %vm921_vm1, %v2790_v48, %v2798_v50  ;;  %v2807_v47 = vor.u32 %v2806_v17, %v2803_v54  ;;  %v1407_v41 = vshll.u32 %v11804_v45, 16  ;;  %v1398_v43 = vrot.slane %v1396_v4, 3 }
 0x123   : > { %v1415_v19 = vrot.slane %v1413_v20, 3  ;;  %v1418_v35 = vrot.slane %v1416_v61, 4  ;;  %v1401_v9 = vrot.slane %v1399_v39, 4  ;;  %v1406_v2 = vrot.slane %v1404_v12, 3 }
 0x124   : > { %v2091_v40 = vrot.slane %v14382_v0, 5  ;;  %3219 = vmatprep.mubr.bf16.mxu0 %v2807_v47  ;;  %v1409_v13 = vrot.slane %v1407_v41, 4  ;;  %v2165_v21 = vshrl.u32 %v2090_v60, 16  ;;  %v2168_v22 = vshll.u32 %v2090_v60, 16 }
 0x125   : > { %v1419_v16 = vor.u32 %v1418_v35, %v1415_v19  ;;  %3220 = vmatmul.mubr.bf16.gmra.mrb[60].mxu0 %v2799_v46  ;;  %v1402_v24 = vor.u32 %v1401_v9, %v1398_v43  ;;  %v15496_v28 = vcombine.low %v525_v3, %v526_v57  ;;  %v2093_v29 = vrot.slane %v15219_v52, 5  ;;  %v14392_v39 = vld [vmem:[#allocation2 + $0x4c] ss:$0 sps:$4 sm:$0x11]   ;;  %v14388_v19 = vld [vmem:[%s17966_s1 + $0x180] sm:$0xff]  }
 0x126   : > { %v2092_v27 = vsel %vm872_vm0, %v2090_v60, %v2091_v40  ;;  %v1410_v36 = vor.u32 %v1409_v13, %v1406_v2  ;;  %v2167_v23 = vrot.slane %v2165_v21, 3  ;;  %v2170_v37 = vrot.slane %v2168_v22, 4  ;;  %v529_v40 = vld [vmem:[#allocation2 + $0x110] sm:$0xf] }
 0x127   : > { %3653 = vmatprep.mubr.bf16.mxu1 %v1419_v16  ;;  %v2173_v55 = vshrl.u32 %v2092_v27, 16  ;;  %v2176_v62 = vshll.u32 %v2092_v27, 16  ;;  %v793_v10 = vshrl.u32 %v15496_v28, 16  ;;  %v796_v33 = vshll.u32 %v15496_v28, 16 }
 0x128   : > { %v2094_v44 = vrot.slane %v14384_v14, 5  ;;  %v1411_v49 = vsel %vm921_vm1, %v1402_v24, %v1410_v36  ;;  %v2171_v6 = vor.u32 %v2170_v37, %v2167_v23  ;;  %v2208_v53 = vshrl.u32 %v2093_v29, 16 }
 0x129   : > { %v2175_v51 = vrot.slane %v2173_v55, 3  ;;  %3654 = vmatmul.mubr.bf16.gmra.mrb[60].mxu1 %v1411_v49  ;;  %v2178_v48 = vrot.slane %v2176_v62, 4  ;;  %v795_v52 = vrot.slane %v793_v10, 4  ;;  %v798_v50 = vrot.slane %v796_v33, 5 }
 0x12a   : > { %v2095_v45 = vsel %vm872_vm0, %v2093_v29, %v2094_v44  ;;  %v2210_v0 = vrot.slane %v2208_v53, 3  ;;  %v2211_v60 = vshll.u32 %v2093_v29, 16  ;;  %v11805_v46 = vcombine.low %v524_v26, %v525_v3  ;;  %v14390_v3 = vld [vmem:[%s17966_s1 + $0x1c8] sm:$0xff]   ;;  %v14394_v26 = vld [vmem:[#allocation2 + $0x60] ss:$0 sps:$4 sm:$0x11]  }
 0x12b   : > { %v2216_v54 = vshrl.u32 %v2095_v45, 16  ;;  %v2219_v17 = vshll.u32 %v2095_v45, 16  ;;  %v2179_v20 = vor.u32 %v2178_v48, %v2175_v51  ;;  %v799_v61 = vor.u32 %v798_v50, %v795_v52 }
 0x12c   : > { %v11806_v4 = vcombine.low %v526_v57, %v526_v57  ;;  %v2213_v12 = vrot.slane %v2211_v60, 4  ;;  %v2096_v35 = vrot.slane %v15257_v58, 5  ;;  %v1439_v2 = vshrl.u32 %v11805_v46, 16  ;;  %v528_v57 = vld [vmem:[#allocation2 + $0x10c] sm:$0xf] }
 0x12d   : > { %v2218_v14 = vrot.slane %v2216_v54, 3  ;;  %v2221_v47 = vrot.slane %v2219_v17, 4  ;;  %v2180_v41 = vsel %vm921_vm1, %v2171_v6, %v2179_v20  ;;  %v1456_v43 = vshrl.u32 %v799_v61, 16  ;;  %v14391_v6 = vld [vmem:[%s17966_s1 + $0x188] sm:$0xff]   ;;  %v14397_v54 = vld [vmem:[%s17966_s1 + $0x1d0] sm:$0xff]  }
 0x12e   : > { %v1459_v9 = vshll.u32 %v799_v61, 16  ;;  %13566 = vmatprep.mubr.bf16.mxu0 %v2180_v41  ;;  %v2214_v16 = vor.u32 %v2213_v12, %v2210_v0  ;;  %v1442_v21 = vshll.u32 %v11805_v46, 16  ;;  %v1447_v22 = vshrl.u32 %v11806_v4, 16  ;;  %v527_v60 = vld [vmem:[#allocation2 + $0x108] sm:$0x8] }
 0x12f   : > { %v2222_v13 = vor.u32 %v2221_v47, %v2218_v14  ;;  %v1458_v24 = vrot.slane %v1456_v43, 3  ;;  %v1441_v29 = vrot.slane %v1439_v2, 3  ;;  %v1450_v58 = vshll.u32 %v11806_v4, 16  ;;  %v14399_v43 = vld [vmem:[%s17966_s1 + $0x1d8] sm:$0xff]  }
 0x130   : > { %v1461_v27 = vrot.slane %v1459_v9, 4  ;;  %v1444_v23 = vrot.slane %v1442_v21, 4  ;;  %v1449_v37 = vrot.slane %v1447_v22, 3  ;;  %v2097_v55 = vrot.slane %v14392_v39, 5 }
 0x131   : > { %v2223_v36 = vsel %vm921_vm1, %v2214_v16, %v2222_v13  ;;  %v1452_v10 = vrot.slane %v1450_v58, 4  ;;  %v2251_v33 = vshrl.u32 %v2096_v35, 16  ;;  %v2254_v44 = vshll.u32 %v2096_v35, 16 }
 0x132   : > { %v1462_v62 = vor.u32 %v1461_v27, %v1458_v24  ;;  %13567 = vmatmul.mubr.bf16.vlgmr.msra.gmra.mrb[64].mxu0 %v2223_v36  ;;  %v1445_v49 = vor.u32 %v1444_v23, %v1441_v29  ;;  %v2098_v51 = vsel %vm872_vm0, %v2096_v35, %v2097_v55  ;;  %v15516_v53 = vcombine.low %v528_v57, %v529_v40  ;;  %v14401_v27 = vld [vmem:[#allocation2 + $0x74] ss:$0 sps:$4 sm:$0x11]   ;;  %v14400_v23 = vld [vmem:[%s17966_s1 + $0x198] sm:$0xff]  }
 0x133   : > { %12983 = vmatpush3.bf16.msra.mxu0 %v14388_v19  ;;  %v2099_v48 = vrot.slane %v15301_v18, 5  ;;  %v1453_v52 = vor.u32 %v1452_v10, %v1449_v37  ;;  %v2253_v50 = vrot.slane %v2251_v33, 3  ;;  %v2256_v45 = vrot.slane %v2254_v44, 4  ;;  %v14398_v18 = vld [vmem:[%s17966_s1 + $0x190] sm:$0xff]   ;;  %v15537_v33 = vld [vmem:[#allocation2 + $0x120] sm:$0xf] }
 0x134   : > { %3661 = vmatprep.mubr.bf16.mxu1 %v1462_v62  ;;  %12984 = vmatprep.subr.bf16.mxu0 %v14390_v3  ;;  %v2259_v0 = vshrl.u32 %v2098_v51, 16  ;;  %v2262_v17 = vshll.u32 %v2098_v51, 16  ;;  %v801_v20 = vshrl.u32 %v15516_v53, 16  ;;  %v804_v61 = vshll.u32 %v15516_v53, 16 }
 0x135   : > { %v2100_v46 = vrot.slane %v14394_v26, 5  ;;  %v1454_v4 = vsel %vm921_vm1, %v1445_v49, %v1453_v52  ;;  %v2257_v39 = vor.u32 %v2256_v45, %v2253_v50  ;;  %v2294_v14 = vshrl.u32 %v2099_v48, 16 }
 0x136   : > { %v2261_v12 = vrot.slane %v2259_v0, 3  ;;  %3662 = vmatmul.mubr.bf16.gmra.mrb[64].mxu1 %v1454_v4  ;;  %v2264_v47 = vrot.slane %v2262_v17, 4  ;;  %v803_v19 = vrot.slane %v801_v20, 4  ;;  %v806_v35 = vrot.slane %v804_v61, 5 }
 0x137   : > { %12985 = vmatpush3.bf16.msra.mxu0 %v14391_v6  ;;  %v2101_v41 = vsel %vm872_vm0, %v2099_v48, %v2100_v46  ;;  %v2296_v9 = vrot.slane %v2294_v14, 3  ;;  %v2297_v2 = vshll.u32 %v2099_v48, 16  ;;  %v11807_v22 = vcombine.low %v527_v60, %v528_v57  ;;  %v15539_v57 = vld [vmem:[#allocation2 + $0x124] sm:$0xf] }
 0x138   : > { %v2302_v3 = vshrl.u32 %v2101_v41, 16  ;;  %v2305_v16 = vshll.u32 %v2101_v41, 16  ;;  %12986 = vmatprep.subr.bf16.mxu0 %v14397_v54  ;;  %v2265_v13 = vor.u32 %v2264_v47, %v2261_v12  ;;  %v807_v21 = vor.u32 %v806_v35, %v803_v19  ;;  %v14403_v17 = vld [vmem:[#allocation2 + $0x88] ss:$0 sps:$4 sm:$0x11]   ;;  %v14407_v47 = vld [vmem:[%s17966_s1 + $0x1a0] sm:$0xff]  }
 0x139   : > { %v11808_v24 = vcombine.low %v529_v40, %v529_v40  ;;  %v2299_v29 = vrot.slane %v2297_v2, 4  ;;  %v2102_v37 = vrot.slane %v15356_v42, 5  ;;  %v1482_v10 = vshrl.u32 %v11807_v22, 16  ;;  %v14406_v40 = vld [vmem:[%s17966_s1 + $0x1e0] sm:$0xff]  }
 0x13a   : > { %v2304_v58 = vrot.slane %v2302_v3, 3  ;;  %v2307_v36 = vrot.slane %v2305_v16, 4  ;;  %v2266_v55 = vsel %vm921_vm1, %v2257_v39, %v2265_v13  ;;  %v1499_v26 = vshrl.u32 %v807_v21, 16 }
 0x13b   : > { %v1502_v62 = vshll.u32 %v807_v21, 16  ;;  %12987 = vmatpush3.bf16.msra.mxu0 %v14398_v18  ;;  %13570 = vmatprep.mubr.bf16.mxu0 %v2266_v55  ;;  %v2300_v44 = vor.u32 %v2299_v29, %v2296_v9  ;;  %v1485_v6 = vshll.u32 %v11807_v22, 16  ;;  %v1490_v51 = vshrl.u32 %v11808_v24, 16  ;;  %v14409_v9 = vld [vmem:[%s17966_s1 + $0x1e8] sm:$0xff]  }
 0x13c   : > { %v2308_v49 = vor.u32 %v2307_v36, %v2304_v58  ;;  %12988 = vmatprep.subr.bf16.mxu0 %v14399_v43  ;;  %v1501_v42 = vrot.slane %v1499_v26, 3  ;;  %v1484_v52 = vrot.slane %v1482_v10, 3  ;;  %v1493_v50 = vshll.u32 %v11808_v24, 16 }
 0x13d   : > { %v1504_v48 = vrot.slane %v1502_v62, 4  ;;  %v1487_v0 = vrot.slane %v1485_v6, 4  ;;  %v1492_v60 = vrot.slane %v1490_v51, 3  ;;  %v2103_v54 = vrot.slane %v14401_v27, 5  ;;  %v530_v27 = vld [vmem:[#allocation2 + $0x11c] sm:$0x8] }
 0x13e   : > { %v2309_v45 = vsel %vm921_vm1, %v2300_v44, %v2308_v49  ;;  %v1495_v61 = vrot.slane %v1493_v50, 4  ;;  %v2337_v46 = vshrl.u32 %v2102_v37, 16  ;;  %v2340_v18 = vshll.u32 %v2102_v37, 16  ;;  %v14411_v44 = vld [vmem:[#allocation2 + $0x9c] ss:$0 sps:$4 sm:$0x11]  }
 0x13f   : > { %v1505_v20 = vor.u32 %v1504_v48, %v1501_v42  ;;  %13571 = vmatmul.mubr.bf16.gmra.mrb[68].mxu0 %v2309_v45  ;;  %v1488_v4 = vor.u32 %v1487_v0, %v1484_v52  ;;  %v2104_v39 = vsel %vm872_vm0, %v2102_v37, %v2103_v54  ;;  %v15548_v12 = vcombine.low %v15537_v33, %v15539_v57  ;;  %v14410_v37 = vld [vmem:[%s17966_s1 + $0x1a8] sm:$0xff]   ;;  %v14416_v49 = vld [vmem:[%s17966_s1 + $0x1f0] sm:$0xff]  }
 0x140   : > { %12989 = vmatpush3.bf16.msra.mxu0 %v14400_v23  ;;  %v2105_v14 = vrot.slane %v15370_v59, 5  ;;  %v1496_v19 = vor.u32 %v1495_v61, %v1492_v60  ;;  %v2339_v35 = vrot.slane %v2337_v46, 3  ;;  %v2342_v41 = vrot.slane %v2340_v18, 4 }
 0x141   : > { %3669 = vmatprep.mubr.bf16.mxu1 %v1505_v20  ;;  %v2345_v43 = vshrl.u32 %v2104_v39, 16  ;;  %12990 = vmatprep.subr.bf16.mxu0 %v14406_v40  ;;  %v2348_v2 = vshll.u32 %v2104_v39, 16  ;;  %v809_v3 = vshrl.u32 %v15548_v12, 16  ;;  %v812_v16 = vshll.u32 %v15548_v12, 16  ;;  %v14418_v39 = vld [vmem:[%s17966_s1 + $0x1f8] sm:$0xff]  }
 0x142   : > { %v2106_v59 = vrot.slane %v14403_v17, 5  ;;  %v1497_v13 = vsel %vm921_vm1, %v1488_v4, %v1496_v19  ;;  %v2343_v21 = vor.u32 %v2342_v41, %v2339_v35  ;;  %v2380_v24 = vshrl.u32 %v2105_v14, 16  ;;  %v14417_v17 = vld [vmem:[%s17966_s1 + $0x1b0] sm:$0xff]   ;;  %v535_v4 = vld [vmem:[#allocation2 + $0x138] sm:$0xf] }
 0x143   : > { %v2347_v22 = vrot.slane %v2345_v43, 3  ;;  %3670 = vmatmul.mubr.bf16.gmra.mrb[68].mxu1 %v1497_v13  ;;  %v2350_v29 = vrot.slane %v2348_v2, 4  ;;  %v811_v58 = vrot.slane %v809_v3, 4  ;;  %v814_v36 = vrot.slane %v812_v16, 5  ;;  %v15564_v55 = vpop.f32.mrb[0].mxu0 }
 0x144   : > { %v2107_v23 = vsel %vm872_vm0, %v2105_v14, %v2106_v59  ;;  %12991 = vmatpush3.bf16.msra.mxu0 %v14407_v47  ;;  %18002 = vst [vmem:[#allocation7_spill] sm:$0xff] %v15564_v55  ;;  %v2382_v26 = vrot.slane %v2380_v24, 3  ;;  %v2383_v62 = vshll.u32 %v2105_v14, 16  ;;  %v15569_v6 = vpop.f32.mrb[1].mxu0  ;;  %v11809_v48 = vcombine.low %v530_v27, %v15537_v33 }
 0x145   : > { %v2388_v10 = vshrl.u32 %v2107_v23, 16  ;;  %v2391_v40 = vshll.u32 %v2107_v23, 16  ;;  %12992 = vmatprep.subr.bf16.mxu0 %v14409_v9  ;;  %18003 = vst [vmem:[#allocation8_spill] sm:$0xff] %v15569_v6  ;;  %v2351_v51 = vor.u32 %v2350_v29, %v2347_v22  ;;  %v815_v42 = vor.u32 %v814_v36, %v811_v58  ;;  %v15574_v50 = vpop.f32.mrb[2].mxu0  ;;  %v3879_v6 = vld [vmem:[#allocation2 + $0xc0] sm:$0xf] }
 0x146   : > { %v11810_v52 = vcombine.low %v15539_v57, %v15539_v57  ;;  %18004 = vst [vmem:[#allocation9_spill] sm:$0xff] %v15574_v50  ;;  %v2385_v45 = vrot.slane %v2383_v62, 4  ;;  %v2108_v54 = vrot.slane %v15383_v38, 5  ;;  %v15580_v20 = vpop.f32.mrb[3].mxu0  ;;  %v1525_v18 = vshrl.u32 %v11809_v48, 16 }
 0x147   : > { %v2390_v0 = vrot.slane %v2388_v10, 3  ;;  %v2393_v60 = vrot.slane %v2391_v40, 4  ;;  %18005 = vst [vmem:[#allocation10_spill] sm:$0xff] %v15580_v20  ;;  %v2352_v61 = vsel %vm921_vm1, %v2343_v21, %v2351_v51  ;;  %v1542_v46 = vshrl.u32 %v815_v42, 16  ;;  %v534_v57 = vld [vmem:[#allocation2 + $0x134] sm:$0xf] }
 0x148   : > { %v1545_v33 = vshll.u32 %v815_v42, 16  ;;  %12993 = vmatpush3.bf16.msra.mxu0 %v14410_v37  ;;  %13574 = vmatprep.mubr.bf16.mxu0 %v2352_v61  ;;  %v2386_v38 = vor.u32 %v2385_v45, %v2382_v26  ;;  %v1528_v47 = vshll.u32 %v11809_v48, 16  ;;  %v1533_v19 = vshrl.u32 %v11810_v52, 16  ;;  %v14413_v35 = vld [vmem:[#allocation2 + $0xb0] ss:$0 sps:$4 sm:$0x11]  }
 0x149   : > { %v2394_v14 = vor.u32 %v2393_v60, %v2390_v0  ;;  %12994 = vmatprep.subr.bf16.mxu0 %v14416_v49  ;;  %v1544_v41 = vrot.slane %v1542_v46, 3  ;;  %v1527_v9 = vrot.slane %v1525_v18, 3  ;;  %v1536_v2 = vshll.u32 %v11810_v52, 16  ;;  %v14419_v37 = vld [vmem:[%s17966_s1 + $0x1b8] sm:$0xff]   ;;  %v533_v0 = vld [vmem:[#allocation2 + $0x130] sm:$0x8] }
 0x14a   : > { %v1547_v43 = vrot.slane %v1545_v33, 4  ;;  %v1530_v16 = vrot.slane %v1528_v47, 4  ;;  %v1535_v59 = vrot.slane %v1533_v19, 3  ;;  %v2109_v13 = vrot.slane %v14411_v44, 5 }
 0x14b   : > { %v2395_v3 = vsel %vm921_vm1, %v2386_v38, %v2394_v14  ;;  %v1538_v22 = vrot.slane %v1536_v2, 4  ;;  %v2423_v24 = vshrl.u32 %v2108_v54, 16  ;;  %v2426_v27 = vshll.u32 %v2108_v54, 16  ;;  %v14462_v50 = vld [vmem:[#allocation2 + $0x128] ss:$0 sps:$4 sm:$0x11]  }
 0x14c   : > { %v1548_v21 = vor.u32 %v1547_v43, %v1544_v41  ;;  %13575 = vmatmul.mubr.bf16.gmra.mrb[72].mxu0 %v2395_v3  ;;  %v1531_v29 = vor.u32 %v1530_v16, %v1527_v9  ;;  %v2110_v58 = vsel %vm872_vm0, %v2108_v54, %v2109_v13  ;;  %v15588_v36 = vcombine.low %v534_v57, %v535_v4  ;;  %v14420_v9 = vld [vmem:[#allocation2 + $0x10] ss:$0 sps:$4 sm:$0x11]  }
 0x14d   : > { %v2111_v23 = vrot.slane %v15409_v30, 5  ;;  %12995 = vmatpush3.bf16.msra.mxu0 %v14417_v17  ;;  %v1539_v26 = vor.u32 %v1538_v22, %v1535_v59  ;;  %v2425_v62 = vrot.slane %v2423_v24, 3  ;;  %v2428_v10 = vrot.slane %v2426_v27, 4 }
 0x14e   : > { %3677 = vmatprep.mubr.bf16.mxu1 %v1548_v21  ;;  %v2431_v40 = vshrl.u32 %v2110_v58, 16  ;;  %12996 = vmatprep.subr.bf16.mxu0 %v14418_v39  ;;  %v2434_v44 = vshll.u32 %v2110_v58, 16  ;;  %v817_v49 = vshrl.u32 %v15588_v36, 16  ;;  %v820_v51 = vshll.u32 %v15588_v36, 16  ;;  %v3858_v58 = vld [vmem:[#allocation2 + $0x34] sm:$0xf] }
 0x14f   : > { %v2112_v42 = vrot.slane %v14413_v35, 5  ;;  %v1540_v48 = vsel %vm921_vm1, %v1531_v29, %v1539_v26  ;;  %v2429_v30 = vor.u32 %v2428_v10, %v2425_v62  ;;  %v2466_v45 = vshrl.u32 %v2111_v23, 16  ;;  %v15597_v60 = vpop.f32.mrb[4].mxu0  ;;  %v3857_v29 = vld [vmem:[#allocation2 + $0x30] sm:$0xf] }
 0x150   : > { %v2433_v52 = vrot.slane %v2431_v40, 3  ;;  %18006 = vst [vmem:[#allocation11_spill] sm:$0xff] %v15597_v60  ;;  %3678 = vmatmul.mubr.bf16.gmra.mrb[72].mxu1 %v1540_v48  ;;  %v2436_v54 = vrot.slane %v2434_v44, 4  ;;  %v819_v17 = vrot.slane %v817_v49, 4  ;;  %v822_v61 = vrot.slane %v820_v51, 5  ;;  %v15600_v33 = vpop.f32.mrb[5].mxu0 }
 0x151   : > { %v2113_v46 = vsel %vm872_vm0, %v2111_v23, %v2112_v42  ;;  %12997 = vmatpush3.bf16.msra.mxu0 %v14419_v37  ;;  %18007 = vst [vmem:[#allocation12_spill] sm:$0xff] %v15600_v33  ;;  %v2468_v18 = vrot.slane %v2466_v45, 3  ;;  %v2469_v39 = vshll.u32 %v2111_v23, 16  ;;  %v15602_v47 = vpop.f32.mrb[6].mxu0  ;;  %v11811_v41 = vcombine.low %v533_v0, %v534_v57 }
 0x152   : > { %v2474_v38 = vshrl.u32 %v2113_v46, 16  ;;  %v2477_v14 = vshll.u32 %v2113_v46, 16  ;;  %18008 = vst [vmem:[#allocation13_spill] sm:$0xff] %v15602_v47  ;;  %v2437_v19 = vor.u32 %v2436_v54, %v2433_v52  ;;  %v823_v35 = vor.u32 %v822_v61, %v819_v17  ;;  %v15604_v2 = vpop.f32.mrb[7].mxu0 }
 0x153   : > { %v11812_v43 = vcombine.low %v535_v4, %v535_v4  ;;  %18009 = vst [vmem:[#allocation14_spill] sm:$0xff] %v15604_v2  ;;  %v2471_v3 = vrot.slane %v2469_v39, 4  ;;  %v873_v13 = vrot.slane %v15349_v25, 5  ;;  %v1568_v27 = vshrl.u32 %v11811_v41, 16 }
 0x154   : > { %v2476_v16 = vrot.slane %v2474_v38, 3  ;;  %v2479_v59 = vrot.slane %v2477_v14, 4  ;;  %v2438_v21 = vsel %vm921_vm1, %v2429_v30, %v2437_v19  ;;  %v1585_v22 = vshrl.u32 %v823_v35, 16  ;;  %v14422_v42 = vld [vmem:[#allocation2 + $0x24] ss:$0 sps:$4 sm:$0x11]  }
 0x155   : > { %v1588_v24 = vshll.u32 %v823_v35, 16  ;;  %13578 = vmatprep.mubr.bf16.mxu0 %v2438_v21  ;;  %v2472_v23 = vor.u32 %v2471_v3, %v2468_v18  ;;  %v1571_v57 = vshll.u32 %v11811_v41, 16  ;;  %v1576_v4 = vshrl.u32 %v11812_v43, 16 }
 0x156   : > { %v2480_v37 = vor.u32 %v2479_v59, %v2476_v16  ;;  %v1587_v26 = vrot.slane %v1585_v22, 3  ;;  %v1570_v10 = vrot.slane %v1568_v27, 3  ;;  %v1579_v40 = vshll.u32 %v11812_v43, 16  ;;  %v3856_v59 = vld [vmem:[#allocation2 + $0x2c] sm:$0x8] }
 0x157   : > { %v1590_v62 = vrot.slane %v1588_v24, 4  ;;  %v1573_v49 = vrot.slane %v1571_v57, 4  ;;  %v1578_v25 = vrot.slane %v1576_v4, 3  ;;  %v874_v51 = vrot.slane %v14420_v9, 5 }
 0x158   : > { %v2481_v44 = vsel %vm921_vm1, %v2472_v23, %v2480_v37  ;;  %v1581_v30 = vrot.slane %v1579_v40, 4  ;;  %v949_v52 = vshrl.u32 %v873_v13, 16  ;;  %v952_v45 = vshll.u32 %v873_v13, 16 }
 0x159   : > { %v1591_v48 = vor.u32 %v1590_v62, %v1587_v26  ;;  %13579 = vmatmul.mubr.bf16.gmra.mrb[76].mxu0 %v2481_v44  ;;  %v1574_v0 = vor.u32 %v1573_v49, %v1570_v10  ;;  %v875_v54 = vsel %vm872_vm0, %v873_v13, %v874_v51  ;;  %v15610_v17 = vcombine.low %v3857_v29, %v3858_v58  ;;  %v14426_v44 = vld [vmem:[#allocation2 + $0x38] ss:$0 sps:$4 sm:$0x11]  }
 0x15a   : > { %v876_v61 = vrot.slane %v15372_v63, 5  ;;  %v1582_v46 = vor.u32 %v1581_v30, %v1578_v25  ;;  %v951_v18 = vrot.slane %v949_v52, 3  ;;  %v954_v39 = vrot.slane %v952_v45, 4 }
 0x15b   : > { %3685 = vmatprep.mubr.bf16.mxu1 %v1591_v48  ;;  %v957_v38 = vshrl.u32 %v875_v54, 16  ;;  %v960_v14 = vshll.u32 %v875_v54, 16  ;;  %v4065_v19 = vshrl.u32 %v15610_v17, 16  ;;  %v4068_v35 = vshll.u32 %v15610_v17, 16 }
 0x15c   : > { %v877_v41 = vrot.slane %v14422_v42, 5  ;;  %v1583_v43 = vsel %vm921_vm1, %v1574_v0, %v1582_v46  ;;  %v955_v9 = vor.u32 %v954_v39, %v951_v18  ;;  %v992_v16 = vshrl.u32 %v876_v61, 16  ;;  %v3861_v46 = vld [vmem:[#allocation2 + $0x48] sm:$0xf] }
 0x15d   : > { %v959_v3 = vrot.slane %v957_v38, 3  ;;  %3686 = vmatmul.mubr.bf16.gmra.mrb[76].mxu1 %v1583_v43  ;;  %v962_v13 = vrot.slane %v960_v14, 4  ;;  %v4067_v63 = vrot.slane %v4065_v19, 4  ;;  %v4070_v21 = vrot.slane %v4068_v35, 5  ;;  %v15617_v24 = vpop.f32.mrb[8].mxu0 }
 0x15e   : > { %v878_v22 = vsel %vm872_vm0, %v876_v61, %v877_v41  ;;  %18010 = vst [vmem:[#allocation15_spill] sm:$0xff] %v15617_v24  ;;  %v994_v27 = vrot.slane %v992_v16, 3  ;;  %v995_v23 = vshll.u32 %v876_v61, 16  ;;  %v15619_v4 = vpop.f32.mrb[9].mxu0  ;;  %v12005_v10 = vcombine.low %v3856_v59, %v3857_v29  ;;  %v3860_v61 = vld [vmem:[#allocation2 + $0x44] sm:$0xf] }
 0x15f   : > { %v1000_v37 = vshrl.u32 %v878_v22, 16  ;;  %v1003_v57 = vshll.u32 %v878_v22, 16  ;;  %18011 = vst [vmem:[#allocation16_spill] sm:$0xff] %v15619_v4  ;;  %v963_v26 = vor.u32 %v962_v13, %v959_v3  ;;  %v4071_v62 = vor.u32 %v4070_v21, %v4067_v63  ;;  %v15621_v49 = vpop.f32.mrb[10].mxu0  ;;  %v14431_v29 = vld [vmem:[%s17966_s1 + $0x208] sm:$0xff]  }
 0x160   : > { %v12006_v40 = vcombine.low %v3858_v58, %v3858_v58  ;;  %18012 = vst [vmem:[#allocation17_spill] sm:$0xff] %v15621_v49  ;;  %v997_v25 = vrot.slane %v995_v23, 4  ;;  %v879_v48 = vrot.slane %v15394_v8, 5  ;;  %v15624_v30 = vpop.f32.mrb[11].mxu0  ;;  %v4289_v54 = vshrl.u32 %v12005_v10, 16 }
 0x161   : > { %v1002_v51 = vrot.slane %v1000_v37, 3  ;;  %v1005_v42 = vrot.slane %v1003_v57, 4  ;;  %18013 = vst [vmem:[#allocation18_spill] sm:$0xff] %v15624_v30  ;;  %v964_v52 = vsel %vm921_vm1, %v955_v9, %v963_v26  ;;  %v4306_v45 = vshrl.u32 %v4071_v62, 16 }
 0x162   : > { %v4309_v0 = vshll.u32 %v4071_v62, 16  ;;  %13614 = vmatprep.mubr.bf16.mxu1 %v964_v52  ;;  %v998_v58 = vor.u32 %v997_v25, %v994_v27  ;;  %v4292_v39 = vshll.u32 %v12005_v10, 16  ;;  %v4297_v38 = vshrl.u32 %v12006_v40, 16  ;;  %v14428_v16 = vld [vmem:[#allocation2 + $0x4c] ss:$0 sps:$4 sm:$0x11]  }
 0x163   : > { %v1006_v18 = vor.u32 %v1005_v42, %v1002_v51  ;;  %v4308_v14 = vrot.slane %v4306_v45, 3  ;;  %v4291_v19 = vrot.slane %v4289_v54, 3  ;;  %v4300_v35 = vshll.u32 %v12006_v40, 16  ;;  %v14811_v27 = vld [vmem:[%s17966_s1 + $0x200] sm:$0xff]  }
 0x164   : > { %v4311_v8 = vrot.slane %v4309_v0, 4  ;;  %v4294_v43 = vrot.slane %v4292_v39, 4  ;;  %v4299_v9 = vrot.slane %v4297_v38, 3  ;;  %v880_v3 = vrot.slane %v14426_v44, 5  ;;  %v14437_v44 = vld [vmem:[%s17966_s1 + $0x210] sm:$0xff]  }
 0x165   : > { %v1007_v41 = vsel %vm921_vm1, %v998_v58, %v1006_v18  ;;  %v4302_v13 = vrot.slane %v4300_v35, 4  ;;  %v1035_v63 = vshrl.u32 %v879_v48, 16  ;;  %v1038_v21 = vshll.u32 %v879_v48, 16  ;;  %v3859_v54 = vld [vmem:[#allocation2 + $0x40] sm:$0x8] }
 0x166   : > { %v4312_v59 = vor.u32 %v4311_v8, %v4308_v14  ;;  %13615 = vmatmul.mubr.bf16.vlgmr.msra.gmra.mrb[80].mxu1 %v1007_v41  ;;  %v4295_v22 = vor.u32 %v4294_v43, %v4291_v19  ;;  %v881_v23 = vsel %vm872_vm0, %v879_v48, %v880_v3  ;;  %v15635_v37 = vcombine.low %v3860_v61, %v3861_v46  ;;  %v14443_v43 = vld [vmem:[%s17966_s1 + $0x218] sm:$0xff]  }
 0x167   : > { %13647 = vmatpush3.bf16.msra.mxu1 %v14811_v27  ;;  %v882_v57 = vrot.slane %v15411_v32, 5  ;;  %v4303_v26 = vor.u32 %v4302_v13, %v4299_v9  ;;  %v1037_v62 = vrot.slane %v1035_v63, 3  ;;  %v1040_v10 = vrot.slane %v1038_v21, 4  ;;  %v14432_v63 = vld [vmem:[#allocation2 + $0x60] ss:$0 sps:$4 sm:$0x11]  }
 0x168   : > { %5249 = vmatprep.mubr.bf16.mxu0 %v4312_v59  ;;  %v1043_v40 = vshrl.u32 %v881_v23, 16  ;;  %13648 = vmatprep.subr.bf16.mxu1 %v14431_v29  ;;  %v1046_v25 = vshll.u32 %v881_v23, 16  ;;  %v4073_v51 = vshrl.u32 %v15635_v37, 16  ;;  %v4076_v42 = vshll.u32 %v15635_v37, 16 }
 0x169   : > { %v883_v48 = vrot.slane %v14428_v16, 5  ;;  %v4304_v52 = vsel %vm921_vm1, %v4295_v22, %v4303_v26  ;;  %v1041_v45 = vor.u32 %v1040_v10, %v1037_v62  ;;  %v1078_v0 = vshrl.u32 %v882_v57, 16 }
 0x16a   : > { %v1045_v32 = vrot.slane %v1043_v40, 3  ;;  %5250 = vmatmul.mubr.bf16.vlgmr.msra.gmra.mrb[80].mxu0 %v4304_v52  ;;  %v1048_v58 = vrot.slane %v1046_v25, 4  ;;  %v4075_v18 = vrot.slane %v4073_v51, 4  ;;  %v4078_v39 = vrot.slane %v4076_v42, 5  ;;  %v3863_v25 = vld [vmem:[#allocation2 + $0x58] sm:$0xf] }
 0x16b   : > { %v884_v38 = vsel %vm872_vm0, %v882_v57, %v883_v48  ;;  %13649 = vmatpush3.bf16.msra.mxu1 %v14431_v29  ;;  %v15645_v14 = vpop.f32.mrb[12].mxu0  ;;  %v1080_v8 = vrot.slane %v1078_v0, 3  ;;  %v1081_v19 = vshll.u32 %v882_v57, 16  ;;  %v12007_v59 = vcombine.low %v3859_v54, %v3860_v61  ;;  %v3864_v51 = vld [vmem:[#allocation2 + $0x5c] sm:$0xf]  ;;  %v14449_v61 = vld [vmem:[%s17966_s1 + $0x220] sm:$0xff]  }
 0x16c   : > { %18014 = vst [vmem:[#allocation19_spill] sm:$0xff] %v15645_v14  ;;  %v1086_v35 = vshrl.u32 %v884_v38, 16  ;;  %v1089_v41 = vshll.u32 %v884_v38, 16  ;;  %13650 = vmatprep.subr.bf16.mxu1 %v14437_v44  ;;  %v15650_v9 = vpop.f32.mrb[13].mxu0  ;;  %v1049_v3 = vor.u32 %v1048_v58, %v1045_v32  ;;  %v4079_v16 = vor.u32 %v4078_v39, %v4075_v18 }
 0x16d   : > { %18015 = vst [vmem:[#allocation20_spill] sm:$0xff] %v15650_v9  ;;  %v12008_v13 = vcombine.low %v3861_v46, %v3861_v46  ;;  %v15652_v21 = vpop.f32.mrb[14].mxu0  ;;  %v1083_v29 = vrot.slane %v1081_v19, 4  ;;  %v885_v23 = vrot.slane %v15424_v5, 5  ;;  %v4332_v40 = vshrl.u32 %v12007_v59, 16 }
 0x16e   : > { %18016 = vst [vmem:[#allocation21_spill] sm:$0xff] %v15652_v21  ;;  %v1088_v22 = vrot.slane %v1086_v35, 3  ;;  %v1091_v27 = vrot.slane %v1089_v41, 4  ;;  %v15655_v57 = vpop.f32.mrb[15].mxu0  ;;  %v1050_v26 = vsel %vm921_vm1, %v1041_v45, %v1049_v3  ;;  %v4349_v62 = vshrl.u32 %v4079_v16, 16 }
 0x16f   : > { %18017 = vst [vmem:[#allocation22_spill] sm:$0xff] %v15655_v57  ;;  %v4352_v10 = vshll.u32 %v4079_v16, 16  ;;  %13651 = vmatpush3.bf16.msra.mxu1 %v14437_v44  ;;  %13618 = vmatprep.mubr.bf16.mxu1 %v1050_v26  ;;  %v1084_v46 = vor.u32 %v1083_v29, %v1080_v8  ;;  %v4335_v48 = vshll.u32 %v12007_v59, 16  ;;  %v4340_v52 = vshrl.u32 %v12008_v13, 16 }
 0x170   : > { %v1092_v42 = vor.u32 %v1091_v27, %v1088_v22  ;;  %v14434_v5 = vld [vmem:[#allocation2 + $0x74] ss:$0 sps:$4 sm:$0x11]   ;;  %13652 = vmatprep.subr.bf16.mxu1 %v14443_v43  ;;  %v4351_v32 = vrot.slane %v4349_v62, 3  ;;  %v4334_v45 = vrot.slane %v4332_v40, 3  ;;  %v4343_v54 = vshll.u32 %v12008_v13, 16 }
 0x171   : > { %v4354_v0 = vrot.slane %v4352_v10, 4  ;;  %v4337_v18 = vrot.slane %v4335_v48, 4  ;;  %v4342_v39 = vrot.slane %v4340_v52, 3  ;;  %v886_v44 = vrot.slane %v14432_v63, 5  ;;  %v14455_v63 = vld [vmem:[%s17966_s1 + $0x228] sm:$0xff]  }
 0x172   : > { %v1093_v58 = vsel %vm921_vm1, %v1084_v46, %v1092_v42  ;;  %v4345_v19 = vrot.slane %v4343_v54, 4  ;;  %v1121_v35 = vshrl.u32 %v885_v23, 16  ;;  %v1124_v41 = vshll.u32 %v885_v23, 16  ;;  %v3862_v42 = vld [vmem:[#allocation2 + $0x54] sm:$0x8] }
 0x173   : > { %v4355_v38 = vor.u32 %v4354_v0, %v4351_v32  ;;  %13619 = vmatmul.mubr.bf16.gmra.mrb[84].mxu1 %v1093_v58  ;;  %v4338_v8 = vor.u32 %v4337_v18, %v4334_v45  ;;  %v887_v3 = vsel %vm872_vm0, %v885_v23, %v886_v44  ;;  %v15663_v16 = vcombine.low %v3863_v25, %v3864_v51 }
 0x174   : > { %v888_v59 = vrot.slane %v15434_v34, 5  ;;  %13653 = vmatpush3.bf16.msra.mxu1 %v14443_v43  ;;  %v4346_v13 = vor.u32 %v4345_v19, %v4342_v39  ;;  %v1123_v29 = vrot.slane %v1121_v35, 3  ;;  %v1126_v22 = vrot.slane %v1124_v41, 4 }
 0x175   : > { %5257 = vmatprep.mubr.bf16.mxu0 %v4355_v38  ;;  %v1129_v27 = vshrl.u32 %v887_v3, 16  ;;  %13654 = vmatprep.subr.bf16.mxu1 %v14449_v61  ;;  %v1132_v26 = vshll.u32 %v887_v3, 16  ;;  %v4081_v62 = vshrl.u32 %v15663_v16, 16  ;;  %v4084_v23 = vshll.u32 %v15663_v16, 16 }
 0x176   : > { %v889_v10 = vrot.slane %v14434_v5, 5  ;;  %v4347_v40 = vsel %vm921_vm1, %v4338_v8, %v4346_v13  ;;  %v1127_v34 = vor.u32 %v1126_v22, %v1123_v29  ;;  %v1164_v46 = vshrl.u32 %v888_v59, 16  ;;  %v14461_v5 = vld [vmem:[%s17966_s1 + $0x230] sm:$0xff]   ;;  %v14438_v8 = vld [vmem:[#allocation2 + $0x88] ss:$0 sps:$4 sm:$0x11]  }
 0x177   : > { %v1131_v43 = vrot.slane %v1129_v27, 3  ;;  %5258 = vmatmul.mubr.bf16.gmra.mrb[84].mxu0 %v4347_v40  ;;  %v1134_v48 = vrot.slane %v1132_v26, 4  ;;  %v4083_v52 = vrot.slane %v4081_v62, 4  ;;  %v4086_v32 = vrot.slane %v4084_v23, 5  ;;  %v15673_v45 = vpop.f32.mrb[16].mxu0 }
 0x178   : > { %v890_v0 = vsel %vm872_vm0, %v888_v59, %v889_v10  ;;  %13655 = vmatpush3.bf16.msra.mxu1 %v14449_v61  ;;  %18018 = vst [vmem:[#allocation23_spill] sm:$0xff] %v15673_v45  ;;  %v1166_v54 = vrot.slane %v1164_v46, 3  ;;  %v1167_v58 = vshll.u32 %v888_v59, 16  ;;  %v15678_v44 = vpop.f32.mrb[17].mxu0  ;;  %v12009_v35 = vcombine.low %v3862_v42, %v3863_v25  ;;  %v3866_v40 = vld [vmem:[#allocation2 + $0x6c] sm:$0xf] }
 0x179   : > { %v1172_v18 = vshrl.u32 %v890_v0, 16  ;;  %v1175_v39 = vshll.u32 %v890_v0, 16  ;;  %13656 = vmatprep.subr.bf16.mxu1 %v14455_v63  ;;  %18019 = vst [vmem:[#allocation24_spill] sm:$0xff] %v15678_v44  ;;  %v1135_v38 = vor.u32 %v1134_v48, %v1131_v43  ;;  %v4087_v19 = vor.u32 %v4086_v32, %v4083_v52  ;;  %v15680_v3 = vpop.f32.mrb[18].mxu0  ;;  %v3867_v25 = vld [vmem:[#allocation2 + $0x70] sm:$0xf] }
 0x17a   : > { %v12010_v41 = vcombine.low %v3864_v51, %v3864_v51  ;;  %18020 = vst [vmem:[#allocation25_spill] sm:$0xff] %v15680_v3  ;;  %v1169_v61 = vrot.slane %v1167_v58, 4  ;;  %v891_v59 = vrot.slane %v15445_v7, 5  ;;  %v15683_v22 = vpop.f32.mrb[16].mxu1  ;;  %v15685_v27 = vpop.f32.mrb[19].mxu0  ;;  %v4375_v10 = vshrl.u32 %v12009_v35, 16 }
 0x17b   : > { %v1174_v13 = vrot.slane %v1172_v18, 3  ;;  %v1177_v29 = vrot.slane %v1175_v39, 4  ;;  %18021 = vst [vmem:[#allocation26_spill] sm:$0xff] %v15685_v27  ;;  %v1136_v26 = vsel %vm921_vm1, %v1127_v34, %v1135_v38  ;;  %v4392_v62 = vshrl.u32 %v4087_v19, 16  ;;  %v15688_v51 = vpop.f32.mrb[17].mxu1  ;;  %v14467_v18 = vld [vmem:[%s17966_s1 + $0x238] sm:$0xff]  }
 0x17c   : > { %v4395_v23 = vshll.u32 %v4087_v19, 16  ;;  %13657 = vmatpush3.bf16.msra.mxu1 %v14455_v63  ;;  %13622 = vmatprep.mubr.bf16.mxu1 %v1136_v26  ;;  %v1170_v43 = vor.u32 %v1169_v61, %v1166_v54  ;;  %v4378_v42 = vshll.u32 %v12009_v35, 16  ;;  %v4383_v48 = vshrl.u32 %v12010_v41, 16  ;;  %v14440_v7 = vld [vmem:[#allocation2 + $0x9c] ss:$0 sps:$4 sm:$0x11]  }
 0x17d   : > { %v1178_v46 = vor.u32 %v1177_v29, %v1174_v13  ;;  %13658 = vmatprep.subr.bf16.mxu1 %v14461_v5  ;;  %v15690_v52 = vpop.f32.mrb[18].mxu1  ;;  %v4394_v32 = vrot.slane %v4392_v62, 3  ;;  %v4377_v34 = vrot.slane %v4375_v10, 3  ;;  %v4386_v58 = vshll.u32 %v12010_v41, 16 }
 0x17e   : > { %v4397_v0 = vrot.slane %v4395_v23, 4  ;;  %v15695_v63 = vpop.f32.mrb[19].mxu1  ;;  %v4380_v54 = vrot.slane %v4378_v42, 4  ;;  %v4385_v38 = vrot.slane %v4383_v48, 3  ;;  %v892_v19 = vrot.slane %v14438_v8, 5 }
 0x17f   : > { %v1179_v39 = vsel %vm921_vm1, %v1170_v43, %v1178_v46  ;;  %v4388_v61 = vrot.slane %v4386_v58, 4  ;;  %v1207_v13 = vshrl.u32 %v891_v59, 16  ;;  %v1210_v29 = vshll.u32 %v891_v59, 16 }
 0x180   : > { %v4398_v35 = vor.u32 %v4397_v0, %v4394_v32  ;;  %13623 = vmatmul.mubr.bf16.gmra.mrb[88].mxu1 %v1179_v39  ;;  %v4381_v26 = vor.u32 %v4380_v54, %v4377_v34  ;;  %v893_v62 = vsel %vm872_vm0, %v891_v59, %v892_v19  ;;  %v15699_v41 = vcombine.low %v3866_v40, %v3867_v25  ;;  %v3865_v39 = vld [vmem:[#allocation2 + $0x68] sm:$0x8] }
 0x181   : > { %v894_v23 = vrot.slane %v15453_v56, 5  ;;  %13659 = vmatpush3.bf16.msra.mxu1 %v14461_v5  ;;  %v4389_v10 = vor.u32 %v4388_v61, %v4385_v38  ;;  %v1209_v27 = vrot.slane %v1207_v13, 3  ;;  %v1212_v43 = vrot.slane %v1210_v29, 4 }
 0x182   : > { %5265 = vmatprep.mubr.bf16.mxu0 %v4398_v35  ;;  %v1215_v46 = vshrl.u32 %v893_v62, 16  ;;  %13660 = vmatprep.subr.bf16.mxu1 %v14467_v18  ;;  %v1218_v8 = vshll.u32 %v893_v62, 16  ;;  %v4089_v42 = vshrl.u32 %v15699_v41, 16  ;;  %v4092_v48 = vshll.u32 %v15699_v41, 16 }
 0x183   : > { %v895_v32 = vrot.slane %v14440_v7, 5  ;;  %v4390_v0 = vsel %vm921_vm1, %v4381_v26, %v4389_v10  ;;  %v1213_v59 = vor.u32 %v1212_v43, %v1209_v27  ;;  %v1250_v58 = vshrl.u32 %v894_v23, 16  ;;  %v15705_v56 = vpop.f32.mrb[20].mxu0 }
 0x184   : > { %v1217_v34 = vrot.slane %v1215_v46, 3  ;;  %18022 = vst [vmem:[#allocation27_spill] sm:$0xff] %v15705_v56  ;;  %5266 = vmatmul.mubr.bf16.gmra.mrb[88].mxu0 %v4390_v0  ;;  %v1220_v5 = vrot.slane %v1218_v8, 4  ;;  %v4091_v54 = vrot.slane %v4089_v42, 4  ;;  %v4094_v38 = vrot.slane %v4092_v48, 5  ;;  %v15708_v35 = vpop.f32.mrb[21].mxu0 }
 0x185   : > { %v896_v19 = vsel %vm872_vm0, %v894_v23, %v895_v32  ;;  %13661 = vmatpush3.bf16.msra.mxu1 %v14467_v18  ;;  %18023 = vst [vmem:[#allocation28_spill] sm:$0xff] %v15708_v35  ;;  %v1252_v61 = vrot.slane %v1250_v58, 3  ;;  %v1253_v13 = vshll.u32 %v894_v23, 16  ;;  %v15710_v26 = vpop.f32.mrb[22].mxu0  ;;  %v12011_v10 = vcombine.low %v3865_v39, %v3866_v40  ;;  %v3872_v56 = vld [vmem:[#allocation2 + $0x94] sm:$0xf] }
 0x186   : > { %v1258_v7 = vshrl.u32 %v896_v19, 16  ;;  %v1261_v29 = vshll.u32 %v896_v19, 16  ;;  %18024 = vst [vmem:[#allocation29_spill] sm:$0xff] %v15710_v26  ;;  %v1221_v27 = vor.u32 %v1220_v5, %v1217_v34  ;;  %v4095_v62 = vor.u32 %v4094_v38, %v4091_v54  ;;  %v14444_v46 = vld [vmem:[#allocation2 + $0xb0] ss:$0 sps:$4 sm:$0x11]  }
 0x187   : > { %v12012_v43 = vcombine.low %v3867_v25, %v3867_v25  ;;  %v15712_v0 = vpop.f32.mrb[23].mxu0  ;;  %v1255_v8 = vrot.slane %v1253_v13, 4  ;;  %v897_v18 = vrot.slane %v15464_v31, 5  ;;  %v15715_v32 = vpop.f32.mrb[20].mxu1  ;;  %v4418_v3 = vshrl.u32 %v12011_v10, 16 }
 0x188   : > { %18025 = vst [vmem:[#allocation30_spill] sm:$0xff] %v15712_v0  ;;  %v1260_v42 = vrot.slane %v1258_v7, 3  ;;  %v1263_v48 = vrot.slane %v1261_v29, 4  ;;  %v1222_v23 = vsel %vm921_vm1, %v1213_v59, %v1221_v27  ;;  %v4435_v58 = vshrl.u32 %v4095_v62, 16  ;;  %v3869_v26 = vld [vmem:[#allocation2 + $0x80] sm:$0xf] }
 0x189   : > { %v4438_v19 = vshll.u32 %v4095_v62, 16  ;;  %v3870_v34 = vld [vmem:[#allocation2 + $0x84] sm:$0xf]  ;;  %v15718_v5 = vpop.f32.mrb[21].mxu1  ;;  %13626 = vmatprep.mubr.bf16.mxu1 %v1222_v23  ;;  %v1256_v40 = vor.u32 %v1255_v8, %v1252_v61  ;;  %v4421_v39 = vshll.u32 %v12011_v10, 16  ;;  %v4426_v54 = vshrl.u32 %v12012_v43, 16 }
 0x18a   : > { %v1264_v25 = vor.u32 %v1263_v48, %v1260_v42  ;;  %v14446_v38 = vld [vmem:[#allocation2 + $0xc4] ss:$0 sps:$4 sm:$0x11]   ;;  %v15720_v13 = vpop.f32.mrb[22].mxu1  ;;  %v4437_v31 = vrot.slane %v4435_v58, 3  ;;  %v4420_v29 = vrot.slane %v4418_v3, 3  ;;  %v15726_v23 = vcombine.low %v3869_v26, %v3870_v34 }
 0x18b   : > { %v4440_v7 = vrot.slane %v4438_v19, 4  ;;  %v4429_v0 = vshll.u32 %v12012_v43, 16  ;;  %v15722_v59 = vpop.f32.mrb[23].mxu1  ;;  %v4423_v62 = vrot.slane %v4421_v39, 4  ;;  %v4428_v44 = vrot.slane %v4426_v54, 3 }
 0x18c   : > { %v1265_v27 = vsel %vm921_vm1, %v1256_v40, %v1264_v25  ;;  %v898_v45 = vrot.slane %v14444_v46, 5  ;;  %v1293_v8 = vshrl.u32 %v897_v18, 16  ;;  %v1296_v10 = vshll.u32 %v897_v18, 16 }
 0x18d   : > { %v4441_v35 = vor.u32 %v4440_v7, %v4437_v31  ;;  %13627 = vmatmul.mubr.bf16.gmra.mrb[92].mxu1 %v1265_v27  ;;  %v4431_v61 = vrot.slane %v4429_v0, 4  ;;  %v4424_v42 = vor.u32 %v4423_v62, %v4420_v29  ;;  %v900_v3 = vrot.slane %v15472_v11, 5 }
 0x18e   : > { %v899_v48 = vsel %vm872_vm0, %v897_v18, %v898_v45  ;;  %v1295_v58 = vrot.slane %v1293_v8, 3  ;;  %v1298_v19 = vrot.slane %v1296_v10, 4  ;;  %v15729_v25 = vpop.f32.mrb[24].mxu0  ;;  %v4097_v39 = vshrl.u32 %v15726_v23, 16 }
 0x18f   : > { %5273 = vmatprep.mubr.bf16.mxu0 %v4441_v35  ;;  %v4432_v43 = vor.u32 %v4431_v61, %v4428_v44  ;;  %v1301_v40 = vshrl.u32 %v899_v48, 16  ;;  %18026 = vst [vmem:[#allocation31_spill] sm:$0xff] %v15729_v25  ;;  %v1304_v46 = vshll.u32 %v899_v48, 16  ;;  %v4100_v0 = vshll.u32 %v15726_v23, 16  ;;  %v15733_v31 = vpop.f32.mrb[25].mxu0 }
 0x190   : > { %v901_v54 = vrot.slane %v14446_v38, 5  ;;  %18027 = vst [vmem:[#allocation32_spill] sm:$0xff] %v15733_v31  ;;  %v1299_v18 = vor.u32 %v1298_v19, %v1295_v58  ;;  %v1336_v11 = vshrl.u32 %v900_v3, 16  ;;  %v3868_v35 = vld [vmem:[#allocation2 + $0x7c] sm:$0x8]  ;;  %v15736_v44 = vpop.f32.mrb[26].mxu0  ;;  %v12014_v19 = vcombine.low %v3870_v34, %v3870_v34 }
 0x191   : > { %v4433_v45 = vsel %vm921_vm1, %v4424_v42, %v4432_v43  ;;  %v1303_v7 = vrot.slane %v1301_v40, 3  ;;  %18028 = vst [vmem:[#allocation33_spill] sm:$0xff] %v15736_v44  ;;  %v1306_v29 = vrot.slane %v1304_v46, 4  ;;  %v4099_v27 = vrot.slane %v4097_v39, 4  ;;  %v15739_v8 = vpop.f32.mrb[27].mxu0 }
 0x192   : > { %5274 = vmatmul.mubr.bf16.gmra.mrb[92].mxu0 %v4433_v45  ;;  %v4102_v62 = vrot.slane %v4100_v0, 5  ;;  %v902_v61 = vsel %vm872_vm0, %v900_v3, %v901_v54  ;;  %18029 = vst [vmem:[#allocation34_spill] sm:$0xff] %v15739_v8  ;;  %v1338_v10 = vrot.slane %v1336_v11, 3  ;;  %v1339_v38 = vshll.u32 %v900_v3, 16  ;;  %v15741_v25 = vpop.f32.mrb[24].mxu1 }
 0x193   : > { %v1344_v48 = vshrl.u32 %v902_v61, 16  ;;  %v1347_v31 = vshll.u32 %v902_v61, 16  ;;  %v1307_v42 = vor.u32 %v1306_v29, %v1303_v7  ;;  %v12013_v58 = vcombine.low %v3868_v35, %v3869_v26  ;;  %v14450_v40 = vld [vmem:[#allocation2 + $0xd8] ss:$0 sps:$4 sm:$0x11]   ;;  %v15743_v44 = vpop.f32.mrb[25].mxu1 }
 0x194   : > { %v4103_v43 = vor.u32 %v4102_v62, %v4099_v27  ;;  %v1341_v46 = vrot.slane %v1339_v38, 4  ;;  %v903_v54 = vrot.slane %v15480_v1, 5  ;;  %v15746_v45 = vpop.f32.mrb[26].mxu1  ;;  %v3873_v7 = vld [vmem:[#allocation2 + $0x98] sm:$0xf]  ;;  %v4469_v27 = vshrl.u32 %v12014_v19, 16 }
 0x195   : > { %v1346_v39 = vrot.slane %v1344_v48, 3  ;;  %v1349_v0 = vrot.slane %v1347_v31, 4  ;;  %v1308_v3 = vsel %vm921_vm1, %v1299_v18, %v1307_v42  ;;  %v4461_v8 = vshrl.u32 %v12013_v58, 16  ;;  %v15749_v29 = vpop.f32.mrb[27].mxu1 }
 0x196   : > { %v4478_v11 = vshrl.u32 %v4103_v43, 16  ;;  %v4481_v61 = vshll.u32 %v4103_v43, 16  ;;  %13630 = vmatprep.mubr.bf16.mxu1 %v1308_v3  ;;  %v1342_v26 = vor.u32 %v1341_v46, %v1338_v10  ;;  %v4464_v35 = vshll.u32 %v12013_v58, 16  ;;  %v14452_v62 = vld [vmem:[#allocation2 + $0xec] ss:$0 sps:$4 sm:$0x11]  }
 0x197   : > { %v1350_v34 = vor.u32 %v1349_v0, %v1346_v39  ;;  %v4463_v1 = vrot.slane %v4461_v8, 3  ;;  %v4472_v48 = vshll.u32 %v12014_v19, 16  ;;  %v4471_v42 = vrot.slane %v4469_v27, 3 }
 0x198   : > { %v4480_v31 = vrot.slane %v4478_v11, 3  ;;  %v4483_v38 = vrot.slane %v4481_v61, 4  ;;  %v4466_v18 = vrot.slane %v4464_v35, 4  ;;  %v904_v43 = vrot.slane %v14450_v40, 5  ;;  %v3871_v11 = vld [vmem:[#allocation2 + $0x90] sm:$0x8] }
 0x199   : > { %v1351_v30 = vsel %vm921_vm1, %v1342_v26, %v1350_v34  ;;  %v4474_v57 = vrot.slane %v4472_v48, 4  ;;  %v1379_v21 = vshrl.u32 %v903_v54, 16  ;;  %v1382_v4 = vshll.u32 %v903_v54, 16 }
 0x19a   : > { %v4484_v49 = vor.u32 %v4483_v38, %v4480_v31  ;;  %13631 = vmatmul.mubr.bf16.gmra.mrb[0].mxu1 %v1351_v30  ;;  %v4467_v3 = vor.u32 %v4466_v18, %v4463_v1  ;;  %v905_v10 = vsel %vm872_vm0, %v903_v54, %v904_v43  ;;  %v15753_v58 = vcombine.low %v3872_v56, %v3873_v7 }
 0x19b   : > { %v906_v46 = vrot.slane %v15488_v15, 5  ;;  %v4475_v8 = vor.u32 %v4474_v57, %v4471_v42  ;;  %v1381_v19 = vrot.slane %v1379_v21, 3  ;;  %v1384_v39 = vrot.slane %v1382_v4, 4 }
 0x19c   : > { %5281 = vmatprep.mubr.bf16.mxu0 %v4484_v49  ;;  %v1387_v0 = vshrl.u32 %v905_v10, 16  ;;  %v15756_v61 = vpop.f32.mrb[28].mxu0  ;;  %v1390_v40 = vshll.u32 %v905_v10, 16  ;;  %v4105_v30 = vshrl.u32 %v15753_v58, 16  ;;  %v4108_v26 = vshll.u32 %v15753_v58, 16 }
 0x19d   : > { %18030 = vst [vmem:[#allocation35_spill] sm:$0xff] %v15756_v61  ;;  %v907_v34 = vrot.slane %v14452_v62, 5  ;;  %v15760_v35 = vpop.f32.mrb[29].mxu0  ;;  %v4476_v54 = vsel %vm921_vm1, %v4467_v3, %v4475_v8  ;;  %v1385_v27 = vor.u32 %v1384_v39, %v1381_v19  ;;  %v1422_v49 = vshrl.u32 %v906_v46, 16 }
 0x19e   : > { %18031 = vst [vmem:[#allocation36_spill] sm:$0xff] %v15760_v35  ;;  %v1389_v15 = vrot.slane %v1387_v0, 3  ;;  %v15763_v57 = vpop.f32.mrb[30].mxu0  ;;  %5282 = vmatmul.mubr.bf16.gmra.mrb[96].mxu0 %v4476_v54  ;;  %v1392_v4 = vrot.slane %v1390_v40, 4  ;;  %v4107_v21 = vrot.slane %v4105_v30, 4  ;;  %v4110_v31 = vrot.slane %v4108_v26, 5 }
 0x19f   : > { %18032 = vst [vmem:[#allocation37_spill] sm:$0xff] %v15763_v57  ;;  %v908_v38 = vsel %vm872_vm0, %v906_v46, %v907_v34  ;;  %v15766_v1 = vpop.f32.mrb[31].mxu0  ;;  %v1424_v48 = vrot.slane %v1422_v49, 3  ;;  %v1425_v18 = vshll.u32 %v906_v46, 16  ;;  %v15768_v43 = vpop.f32.mrb[28].mxu1  ;;  %v12015_v8 = vcombine.low %v3871_v11, %v3872_v56 }
 0x1a0   : > { %18033 = vst [vmem:[#allocation38_spill] sm:$0xff] %v15766_v1  ;;  %v1430_v62 = vshrl.u32 %v908_v38, 16  ;;  %v1433_v42 = vshll.u32 %v908_v38, 16  ;;  %v1393_v3 = vor.u32 %v1392_v4, %v1389_v15  ;;  %v4111_v10 = vor.u32 %v4110_v31, %v4107_v21  ;;  %v14456_v39 = vld [vmem:[#allocation2 + $0x100] ss:$0 sps:$4 sm:$0x11]  }
 0x1a1   : > { %v12016_v19 = vcombine.low %v3873_v7, %v3873_v7  ;;  %v15770_v0 = vpop.f32.mrb[29].mxu1  ;;  %v1427_v40 = vrot.slane %v1425_v18, 4  ;;  %v909_v34 = vrot.slane %v15496_v28, 5  ;;  %v4504_v1 = vshrl.u32 %v12015_v8, 16  ;;  %v3875_v57 = vld [vmem:[#allocation2 + $0xa8] sm:$0xf] }
 0x1a2   : > { %v1432_v30 = vrot.slane %v1430_v62, 3  ;;  %v1435_v26 = vrot.slane %v1433_v42, 4  ;;  %v15773_v54 = vpop.f32.mrb[30].mxu1  ;;  %v1394_v46 = vsel %vm921_vm1, %v1385_v27, %v1393_v3  ;;  %v4521_v49 = vshrl.u32 %v4111_v10, 16  ;;  %v3876_v21 = vld [vmem:[#allocation2 + $0xac] sm:$0xf] }
 0x1a3   : > { %v4524_v38 = vshll.u32 %v4111_v10, 16  ;;  %v15776_v15 = vpop.f32.mrb[31].mxu1  ;;  %13634 = vmatprep.mubr.bf16.mxu1 %v1394_v46  ;;  %v1428_v56 = vor.u32 %v1427_v40, %v1424_v48  ;;  %v4507_v11 = vshll.u32 %v12015_v8, 16  ;;  %v4512_v4 = vshrl.u32 %v12016_v19, 16 }
 0x1a4   : > { %v1436_v7 = vor.u32 %v1435_v26, %v1432_v30  ;;  %v4523_v31 = vrot.slane %v4521_v49, 3  ;;  %v4506_v62 = vrot.slane %v4504_v1, 3  ;;  %v4515_v28 = vshll.u32 %v12016_v19, 16  ;;  %v14458_v10 = vld [vmem:[#allocation2 + $0x114] ss:$0 sps:$4 sm:$0x11]  }
 0x1a5   : > { %v4526_v18 = vrot.slane %v4524_v38, 4  ;;  %v4509_v35 = vrot.slane %v4507_v11, 4  ;;  %v4514_v27 = vrot.slane %v4512_v4, 3  ;;  %v910_v3 = vrot.slane %v14456_v39, 5 }
 0x1a6   : > { %v1437_v42 = vsel %vm921_vm1, %v1428_v56, %v1436_v7  ;;  %v4517_v24 = vrot.slane %v4515_v28, 4  ;;  %v1465_v9 = vshrl.u32 %v909_v34, 16  ;;  %v1468_v46 = vshll.u32 %v909_v34, 16  ;;  %v15779_v48 = vpop.f32.mrb[32].mxu0  ;;  %v3874_v56 = vld [vmem:[#allocation2 + $0xa4] sm:$0x8] }
 0x1a7   : > { %v4527_v61 = vor.u32 %v4526_v18, %v4523_v31  ;;  %13635 = vmatmul.mubr.bf16.gmra.mrb[4].mxu1 %v1437_v42  ;;  %v4510_v8 = vor.u32 %v4509_v35, %v4506_v62  ;;  %v911_v40 = vsel %vm872_vm0, %v909_v34, %v910_v3  ;;  %v15782_v30 = vcombine.low %v3875_v57, %v3876_v21  ;;  %v15785_v19 = vpop.f32.mrb[33].mxu0 }
 0x1a8   : > { %v912_v1 = vrot.slane %v15516_v53, 5  ;;  %v4518_v26 = vor.u32 %v4517_v24, %v4514_v27  ;;  %v1467_v39 = vrot.slane %v1465_v9, 3  ;;  %v1470_v49 = vrot.slane %v1468_v46, 4  ;;  %v15787_v7 = vpop.f32.mrb[34].mxu0 }
 0x1a9   : > { %5289 = vmatprep.mubr.bf16.mxu0 %v4527_v61  ;;  %v1473_v38 = vshrl.u32 %v911_v40, 16  ;;  %v1476_v11 = vshll.u32 %v911_v40, 16  ;;  %v4113_v4 = vshrl.u32 %v15782_v30, 16  ;;  %v4116_v35 = vshll.u32 %v15782_v30, 16  ;;  %v15791_v31 = vpop.f32.mrb[32].mxu1  ;;  %v15793_v18 = vpop.f32.mrb[35].mxu0 }
 0x1aa   : > { %v913_v34 = vrot.slane %v14458_v10, 5  ;;  %v4519_v53 = vsel %vm921_vm1, %v4510_v8, %v4518_v26  ;;  %v1471_v61 = vor.u32 %v1470_v49, %v1467_v39  ;;  %v1508_v9 = vshrl.u32 %v912_v1, 16  ;;  %v15796_v62 = vpop.f32.mrb[33].mxu1 }
 0x1ab   : > { %v1475_v24 = vrot.slane %v1473_v38, 3  ;;  %5290 = vmatmul.mubr.bf16.gmra.mrb[100].mxu0 %v4519_v53  ;;  %v1478_v28 = vrot.slane %v1476_v11, 4  ;;  %v4115_v42 = vrot.slane %v4113_v4, 4  ;;  %v4118_v27 = vrot.slane %v4116_v35, 5  ;;  %v15799_v46 = vpop.f32.mrb[34].mxu1 }
 0x1ac   : > { %v914_v3 = vsel %vm872_vm0, %v912_v1, %v913_v34  ;;  %v1510_v10 = vrot.slane %v1508_v9, 3  ;;  %v1511_v40 = vshll.u32 %v912_v1, 16  ;;  %v15801_v2 = vpop.f32.mrb[35].mxu1  ;;  %v12017_v39 = vcombine.low %v3874_v56, %v3875_v57  ;;  %v3878_v1 = vld [vmem:[#allocation2 + $0xbc] sm:$0xf] }
 0x1ad   : > { %v1516_v14 = vshrl.u32 %v914_v3, 16  ;;  %v1519_v20 = vshll.u32 %v914_v3, 16  ;;  %v1479_v8 = vor.u32 %v1478_v28, %v1475_v24  ;;  %v4119_v26 = vor.u32 %v4118_v27, %v4115_v42  ;;  %v14464_v28 = vld [vmem:[#allocation2 + $0x13c] ss:$0 sps:$4 sm:$0x11]  }
 0x1ae   : > { %v12018_v49 = vcombine.low %v3876_v21, %v3876_v21  ;;  %v1513_v38 = vrot.slane %v1511_v40, 4  ;;  %v915_v4 = vrot.slane %v15548_v12, 5  ;;  %v4547_v9 = vshrl.u32 %v12017_v39, 16 }
 0x1af   : > { %v1518_v53 = vrot.slane %v1516_v14, 3  ;;  %v1521_v11 = vrot.slane %v1519_v20, 4  ;;  %v1480_v35 = vsel %vm921_vm1, %v1471_v61, %v1479_v8  ;;  %v4564_v34 = vshrl.u32 %v4119_v26, 16 }
 0x1b0   : > { %v4567_v47 = vshll.u32 %v4119_v26, 16  ;;  %13638 = vmatprep.mubr.bf16.mxu1 %v1480_v35  ;;  %v1514_v3 = vor.u32 %v1513_v38, %v1510_v10  ;;  %v4550_v33 = vshll.u32 %v12017_v39, 16  ;;  %v4555_v24 = vshrl.u32 %v12018_v49, 16 }
 0x1b1   : > { %v1522_v55 = vor.u32 %v1521_v11, %v1518_v53  ;;  %v4566_v57 = vrot.slane %v4564_v34, 3  ;;  %v4549_v56 = vrot.slane %v4547_v9, 3  ;;  %v4558_v14 = vshll.u32 %v12018_v49, 16  ;;  %v3877_v34 = vld [vmem:[#allocation2 + $0xb8] sm:$0x8] }
 0x1b2   : > { %v4569_v21 = vrot.slane %v4567_v47, 4  ;;  %v4552_v12 = vrot.slane %v4550_v33, 4  ;;  %v4557_v42 = vrot.slane %v4555_v24, 3  ;;  %v916_v61 = vrot.slane %v14462_v50, 5  ;;  %v15806_v27 = vpop.f32.mrb[36].mxu0 }
 0x1b3   : > { %v1523_v20 = vsel %vm921_vm1, %v1514_v3, %v1522_v55  ;;  %v4560_v8 = vrot.slane %v4558_v14, 4  ;;  %v1551_v26 = vshrl.u32 %v915_v4, 16  ;;  %v1554_v10 = vshll.u32 %v915_v4, 16  ;;  %v15808_v38 = vpop.f32.mrb[37].mxu0 }
 0x1b4   : > { %v4570_v40 = vor.u32 %v4569_v21, %v4566_v57  ;;  %13639 = vmatmul.mubr.bf16.gmra.mrb[8].mxu1 %v1523_v20  ;;  %18034 = vst [vmem:[#allocation39_spill] sm:$0xff] %v15808_v38  ;;  %v4553_v39 = vor.u32 %v4552_v12, %v4549_v56  ;;  %v917_v53 = vsel %vm872_vm0, %v915_v4, %v916_v61  ;;  %v918_v49 = vrot.slane %v15588_v36, 5  ;;  %v15814_v55 = vpop.f32.mrb[38].mxu0  ;;  %v3881_v21 = vld [vmem:[#allocation2 + $0xd0] sm:$0xf] }
 0x1b5   : > { %v15811_v47 = vcombine.low %v3878_v1, %v3879_v6  ;;  %18035 = vst [vmem:[#allocation40_spill] sm:$0xff] %v15814_v55  ;;  %v4561_v50 = vor.u32 %v4560_v8, %v4557_v42  ;;  %v1553_v33 = vrot.slane %v1551_v26, 3  ;;  %v1556_v11 = vrot.slane %v1554_v10, 4  ;;  %v15816_v9 = vpop.f32.mrb[39].mxu0  ;;  %v15820_v56 = vld [vmem:[#allocation2 + $0xd4] sm:$0xf] }
 0x1b6   : > { %5297 = vmatprep.mubr.bf16.mxu0 %v4570_v40  ;;  %v1559_v35 = vshrl.u32 %v917_v53, 16  ;;  %18036 = vst [vmem:[#allocation41_spill] sm:$0xff] %v15816_v9  ;;  %v1562_v3 = vshll.u32 %v917_v53, 16  ;;  %v919_v4 = vrot.slane %v14464_v28, 5  ;;  %v15822_v36 = vpop.f32.mrb[36].mxu1  ;;  %v1594_v42 = vshrl.u32 %v918_v49, 16 }
 0x1b7   : > { %v4121_v24 = vshrl.u32 %v15811_v47, 16  ;;  %v4124_v57 = vshll.u32 %v15811_v47, 16  ;;  %18037 = vst [vmem:[#allocation42_spill] sm:$0xff] %v15822_v36  ;;  %v4562_v14 = vsel %vm921_vm1, %v4553_v39, %v4561_v50  ;;  %v1557_v20 = vor.u32 %v1556_v11, %v1553_v33  ;;  %v15825_v61 = vpop.f32.mrb[37].mxu1  ;;  %v3880_v38 = vld [vmem:[#allocation2 + $0xcc] sm:$0x8] }
 0x1b8   : > { %v1561_v12 = vrot.slane %v1559_v35, 3  ;;  %18038 = vst [vmem:[#allocation43_spill] sm:$0xff] %v15825_v61  ;;  %5298 = vmatmul.mubr.bf16.gmra.mrb[104].mxu0 %v4562_v14  ;;  %v1564_v40 = vrot.slane %v1562_v3, 4  ;;  %v920_v10 = vsel %vm872_vm0, %v918_v49, %v919_v4  ;;  %v15828_v53 = vpop.f32.mrb[38].mxu1  ;;  %v1596_v28 = vrot.slane %v1594_v42, 3  ;;  %v14509_v4 = vld [vmem:[#allocation4 + $0xc0] sm:$0xff]  }
 0x1b9   : > { %v4123_v8 = vrot.slane %v4121_v24, 4  ;;  %v4126_v26 = vrot.slane %v4124_v57, 5  ;;  %18039 = vst [vmem:[#allocation44_spill] sm:$0xff] %v15828_v53  ;;  %v1597_v60 = vshll.u32 %v918_v49, 16  ;;  %v1602_v9 = vshrl.u32 %v920_v10, 16  ;;  %v15830_v36 = vpop.f32.mrb[39].mxu1 }
 0x1ba   : > { %v1605_v55 = vshll.u32 %v920_v10, 16  ;;  %v1565_v39 = vor.u32 %v1564_v40, %v1561_v12  ;;  %v12019_v33 = vcombine.low %v3877_v34, %v3878_v1  ;;  %v12020_v11 = vcombine.low %v3879_v6, %v3879_v6  ;;  %v14469_v24 = vld [vmem:[#allocation2 + $0x38] ss:$0 sps:$4 sm:$0x11]   ;;  %v14508_v57 = vld [vmem:[#allocation4 + $0x100] sm:$0xff]  }
 0x1bb   : > { %v4127_v50 = vor.u32 %v4126_v26, %v4123_v8  ;;  %v1599_v35 = vrot.slane %v1597_v60, 4  ;;  %v1604_v61 = vrot.slane %v1602_v9, 3  ;;  %v15833_v3 = vcombine.low %v3881_v21, %v15820_v56  ;;  %13118 = vmatprep.subr.bf16.mxu0 %v14508_v57 }
 0x1bc   : > { %v1607_v14 = vrot.slane %v1605_v55, 4  ;;  %v1566_v42 = vsel %vm921_vm1, %v1557_v20, %v1565_v39  ;;  %v4590_v10 = vshrl.u32 %v12019_v33, 16  ;;  %v4593_v1 = vshll.u32 %v12019_v33, 16  ;;  %13119 = vmatpush3.bf16.msra.mxu0 %v14509_v4 }
 0x1bd   : > { %v4607_v49 = vshrl.u32 %v4127_v50, 16  ;;  %v4610_v53 = vshll.u32 %v4127_v50, 16  ;;  %13642 = vmatprep.mubr.bf16.mxu1 %v1566_v42  ;;  %v1600_v12 = vor.u32 %v1599_v35, %v1596_v28  ;;  %v4598_v6 = vshrl.u32 %v12020_v11, 16  ;;  %v15836_v60 = vpop.f32.mrb[40].mxu0 }
 0x1be   : > { %v1608_v40 = vor.u32 %v1607_v14, %v1604_v61  ;;  %18040 = vst [vmem:[#allocation45_spill] sm:$0xff] %v15836_v60  ;;  %v4592_v9 = vrot.slane %v4590_v10, 3  ;;  %v4601_v8 = vshll.u32 %v12020_v11, 16  ;;  %v15838_v26 = vpop.f32.mrb[41].mxu0  ;;  %v4595_v39 = vrot.slane %v4593_v1, 4 }
 0x1bf   : > { %v4609_v55 = vrot.slane %v4607_v49, 3  ;;  %v4612_v34 = vrot.slane %v4610_v53, 4  ;;  %18041 = vst [vmem:[#allocation46_spill] sm:$0xff] %v15838_v26  ;;  %v4600_v50 = vrot.slane %v4598_v6, 3  ;;  %v4129_v42 = vshrl.u32 %v15833_v3, 16  ;;  %v15842_v28 = vpop.f32.mrb[42].mxu0 }
 0x1c0   : > { %v1609_v20 = vsel %vm921_vm1, %v1600_v12, %v1608_v40  ;;  %18042 = vst [vmem:[#allocation47_spill] sm:$0xff] %v15842_v28  ;;  %v4603_v33 = vrot.slane %v4601_v8, 4  ;;  %v4132_v35 = vshll.u32 %v15833_v3, 16  ;;  %v4240_v53 = vrot.slane %v15610_v17, 5  ;;  %v15846_v14 = vpop.f32.mrb[43].mxu0 }
 0x1c1   : > { %v4613_v61 = vor.u32 %v4612_v34, %v4609_v55  ;;  %13643 = vmatmul.mubr.bf16.gmra.mrb[12].mxu1 %v1609_v20  ;;  %18043 = vst [vmem:[#allocation48_spill] sm:$0xff] %v15846_v14  ;;  %v4596_v11 = vor.u32 %v4595_v39, %v4592_v9  ;;  %v4131_v57 = vrot.slane %v4129_v42, 4  ;;  %v4241_v4 = vrot.slane %v14469_v24, 5  ;;  %v15848_v10 = vpop.f32.mrb[40].mxu1  ;;  %v15858_v42 = vld [vmem:[#allocation2 + $0xe4] sm:$0xf] }
 0x1c2   : > { %v12021_v49 = vcombine.low %v3880_v38, %v3881_v21  ;;  %18044 = vst [vmem:[#allocation49_spill] sm:$0xff] %v15848_v10  ;;  %v4604_v12 = vor.u32 %v4603_v33, %v4600_v50  ;;  %v4134_v40 = vrot.slane %v4132_v35, 5  ;;  %v4315_v1 = vshrl.u32 %v4240_v53, 16  ;;  %v15850_v55 = vpop.f32.mrb[41].mxu1  ;;  %v14510_v35 = vld [vmem:[#allocation4 + $0x108] sm:$0xff]  }
 0x1c3   : > { %5305 = vmatprep.mubr.bf16.mxu0 %v4613_v61  ;;  %v4318_v6 = vshll.u32 %v4240_v53, 16  ;;  %18045 = vst [vmem:[#allocation50_spill] sm:$0xff] %v15850_v55  ;;  %v4242_v34 = vsel %vm872_vm0, %v4240_v53, %v4241_v4  ;;  %v12022_v17 = vcombine.low %v15820_v56, %v15820_v56  ;;  %v14472_v9 = vld [vmem:[#allocation2 + $0x4c] ss:$0 sps:$4 sm:$0x11]   ;;  %v15855_v39 = vpop.f32.mrb[42].mxu1  ;;  %13120 = vmatprep.subr.bf16.mxu0 %v14510_v35 }
 0x1c4   : > { %v4633_v8 = vshrl.u32 %v12021_v49, 16  ;;  %v4636_v20 = vshll.u32 %v12021_v49, 16  ;;  %18046 = vst [vmem:[#allocation51_spill] sm:$0xff] %v15855_v39  ;;  %v4605_v38 = vsel %vm921_vm1, %v4596_v11, %v4604_v12  ;;  %v4135_v21 = vor.u32 %v4134_v40, %v4131_v57  ;;  %v15860_v61 = vld [vmem:[#allocation2 + $0xe8] sm:$0xf]  ;;  %v15862_v33 = vpop.f32.mrb[43].mxu1 }
 0x1c5   : > { %v4317_v24 = vrot.slane %v4315_v1, 3  ;;  %v4320_v50 = vrot.slane %v4318_v6, 4  ;;  %18047 = vst [vmem:[#allocation52_spill] sm:$0xff] %v15862_v33  ;;  %v14511_v53 = vld [vmem:[#allocation4 + $0xc8] sm:$0xff]   ;;  %5306 = vmatmul.mubr.bf16.gmra.mrb[108].mxu0 %v4605_v38  ;;  %v4323_v56 = vshrl.u32 %v4242_v34, 16  ;;  %v4326_v4 = vshll.u32 %v4242_v34, 16 }
 0x1c6   : > { %v4635_v49 = vrot.slane %v4633_v8, 3  ;;  %v4638_v14 = vrot.slane %v4636_v20, 4  ;;  %v4650_v28 = vshrl.u32 %v4135_v21, 16  ;;  %v4653_v39 = vshll.u32 %v4135_v21, 16  ;;  %13121 = vmatpush3.bf16.msra.mxu0 %v14511_v53  ;;  %v3883_v35 = vld [vmem:[#allocation2 + $0xe0] sm:$0x8] }
 0x1c7   : > { %v4321_v55 = vor.u32 %v4320_v50, %v4317_v24  ;;  %v4641_v11 = vshrl.u32 %v12022_v17, 16  ;;  %v4325_v57 = vrot.slane %v4323_v56, 3  ;;  %v4328_v12 = vrot.slane %v4326_v4, 4  ;;  %v14474_v6 = vld [vmem:[#allocation2 + $0x60] ss:$0 sps:$4 sm:$0x11]  }
 0x1c8   : > { %v4639_v40 = vor.u32 %v4638_v14, %v4635_v49  ;;  %v4644_v1 = vshll.u32 %v12022_v17, 16  ;;  %v4652_v10 = vrot.slane %v4650_v28, 3  ;;  %v4655_v33 = vrot.slane %v4653_v39, 4  ;;  %v14512_v39 = vld [vmem:[#allocation4 + $0x110] sm:$0xff]  }
 0x1c9   : > { %v4643_v26 = vrot.slane %v4641_v11, 3  ;;  %v4243_v38 = vrot.slane %v15635_v37, 5  ;;  %v4329_v60 = vor.u32 %v4328_v12, %v4325_v57  ;;  %v4244_v8 = vrot.slane %v14472_v9, 5  ;;  %v15869_v21 = vpop.f32.mrb[44].mxu0  ;;  %v14513_v57 = vld [vmem:[#allocation4 + $0xd0] sm:$0xff]   ;;  %13122 = vmatprep.subr.bf16.mxu0 %v14512_v39 }
 0x1ca   : > { %v4646_v34 = vrot.slane %v4644_v1, 4  ;;  %v15867_v20 = vcombine.low %v15858_v42, %v15860_v61  ;;  %v4656_v24 = vor.u32 %v4655_v33, %v4652_v10  ;;  %v4246_v17 = vrot.slane %v15663_v16, 5  ;;  %v15872_v28 = vpop.f32.mrb[45].mxu0  ;;  %13123 = vmatpush3.bf16.msra.mxu0 %v14513_v57 }
 0x1cb   : > { %v4358_v50 = vshrl.u32 %v4243_v38, 16  ;;  %v4361_v14 = vshll.u32 %v4243_v38, 16  ;;  %v4330_v37 = vsel %vm921_vm1, %v4321_v55, %v4329_v60  ;;  %v4245_v9 = vsel %vm872_vm0, %v4243_v38, %v4244_v8  ;;  %v15877_v4 = vpop.f32.mrb[46].mxu0 }
 0x1cc   : > { %v4647_v53 = vor.u32 %v4646_v34, %v4643_v26  ;;  %v4137_v56 = vshrl.u32 %v15867_v20, 16  ;;  %18048 = vst [vmem:[#allocation53_spill] sm:$0xff] %v15877_v4  ;;  %5313 = vmatprep.mubr.bf16.mxu0 %v4656_v24  ;;  %13662 = vmatprep.mubr.bf16.mxu1 %v4330_v37  ;;  %v4366_v49 = vshrl.u32 %v4245_v9, 16  ;;  %v4369_v11 = vshll.u32 %v4245_v9, 16  ;;  %v15879_v16 = vpop.f32.mrb[47].mxu0 }
 0x1cd   : > { %v4360_v10 = vrot.slane %v4358_v50, 3  ;;  %v4363_v33 = vrot.slane %v4361_v14, 4  ;;  %18049 = vst [vmem:[#allocation54_spill] sm:$0xff] %v15879_v16  ;;  %v4140_v60 = vshll.u32 %v15867_v20, 16  ;;  %v4247_v26 = vrot.slane %v14474_v6, 5  ;;  %v15883_v55 = vpop.f32.mrb[44].mxu1 }
 0x1ce   : > { %v4648_v12 = vsel %vm921_vm1, %v4639_v40, %v4647_v53  ;;  %v4139_v1 = vrot.slane %v4137_v56, 4  ;;  %18050 = vst [vmem:[#allocation55_spill] sm:$0xff] %v15883_v55  ;;  %v4368_v34 = vrot.slane %v4366_v49, 3  ;;  %v4371_v8 = vrot.slane %v4369_v11, 4  ;;  %v15885_v50 = vpop.f32.mrb[45].mxu1 }
 0x1cf   : > { %5314 = vmatmul.mubr.bf16.gmra.mrb[112].mxu0 %v4648_v12  ;;  %v4364_v38 = vor.u32 %v4363_v33, %v4360_v10  ;;  %v4401_v24 = vshrl.u32 %v4246_v17, 16  ;;  %18051 = vst [vmem:[#allocation56_spill] sm:$0xff] %v15885_v50  ;;  %v4142_v14 = vrot.slane %v4140_v60, 5  ;;  %v4248_v37 = vsel %vm872_vm0, %v4246_v17, %v4247_v26  ;;  %v14477_v53 = vld [vmem:[#allocation2 + $0x74] ss:$0 sps:$4 sm:$0x11]  }
 0x1d0   : > { %v4404_v9 = vshll.u32 %v4246_v17, 16  ;;  %v12023_v40 = vcombine.low %v3883_v35, %v15858_v42  ;;  %v15889_v56 = vpop.f32.mrb[46].mxu1  ;;  %v4372_v6 = vor.u32 %v4371_v8, %v4368_v34  ;;  %v4409_v39 = vshrl.u32 %v4248_v37, 16  ;;  %v14479_v4 = vld [vmem:[#allocation2 + $0x88] ss:$0 sps:$4 sm:$0x11]  }
 0x1d1   : > { %18052 = vst [vmem:[#allocation57_spill] sm:$0xff] %v15889_v56  ;;  %v4403_v16 = vrot.slane %v4401_v24, 3  ;;  %v4412_v12 = vshll.u32 %v4248_v37, 16  ;;  %v15891_v10 = vpop.f32.mrb[47].mxu1  ;;  %v4143_v33 = vor.u32 %v4142_v14, %v4139_v1  ;;  %v12024_v11 = vcombine.low %v15860_v61, %v15860_v61  ;;  %v3887_v24 = vld [vmem:[#allocation2 + $0xf8] sm:$0xf] }
 0x1d2   : > { %18053 = vst [vmem:[#allocation58_spill] sm:$0xff] %v15891_v10  ;;  %v4406_v49 = vrot.slane %v4404_v9, 4  ;;  %v4676_v60 = vshrl.u32 %v12023_v40, 16  ;;  %v4373_v17 = vsel %vm921_vm1, %v4364_v38, %v4372_v6  ;;  %v4411_v26 = vrot.slane %v4409_v39, 3  ;;  %v3888_v37 = vld [vmem:[#allocation2 + $0xfc] sm:$0xf] }
 0x1d3   : > { %v4414_v42 = vrot.slane %v4412_v12, 4  ;;  %v4679_v35 = vshll.u32 %v12023_v40, 16  ;;  %13663 = vmatmul.mubr.bf16.vlgmr.msra.gmra.mrb[80].mxu1 %v4373_v17  ;;  %v4693_v56 = vshrl.u32 %v4143_v33, 16  ;;  %v4696_v57 = vshll.u32 %v4143_v33, 16 }
 0x1d4   : > { %v4407_v34 = vor.u32 %v4406_v49, %v4403_v16  ;;  %v4678_v8 = vrot.slane %v4676_v60, 3  ;;  %v4684_v14 = vshrl.u32 %v12024_v11, 16  ;;  %v4687_v9 = vshll.u32 %v12024_v11, 16 }
 0x1d5   : > { %v4415_v10 = vor.u32 %v4414_v42, %v4411_v26  ;;  %v4681_v1 = vrot.slane %v4679_v35, 4  ;;  %v4695_v50 = vrot.slane %v4693_v56, 3  ;;  %v4698_v61 = vrot.slane %v4696_v57, 4  ;;  %v15897_v6 = vpop.f32.mrb[48].mxu0  ;;  %v3886_v35 = vld [vmem:[#allocation2 + $0xf4] sm:$0x8] }
 0x1d6   : > { %v4249_v55 = vrot.slane %v15699_v41, 5  ;;  %v4250_v38 = vrot.slane %v14477_v53, 5  ;;  %v4686_v12 = vrot.slane %v4684_v14, 3  ;;  %v4689_v16 = vrot.slane %v4687_v9, 4  ;;  %v15900_v33 = vpop.f32.mrb[49].mxu0 }
 0x1d7   : > { %v4416_v40 = vsel %vm921_vm1, %v4407_v34, %v4415_v10  ;;  %v4682_v39 = vor.u32 %v4681_v1, %v4678_v8  ;;  %18054 = vst [vmem:[#allocation59_spill] sm:$0xff] %v15900_v33  ;;  %v4699_v49 = vor.u32 %v4698_v61, %v4695_v50  ;;  %v15903_v56 = vpop.f32.mrb[50].mxu0  ;;  %v15905_v42 = vcombine.low %v3887_v24, %v3888_v37 }
 0x1d8   : > { %13666 = vmatprep.mubr.bf16.mxu1 %v4416_v40  ;;  %v4251_v60 = vsel %vm872_vm0, %v4249_v55, %v4250_v38  ;;  %v4444_v17 = vshrl.u32 %v4249_v55, 16  ;;  %v4447_v11 = vshll.u32 %v4249_v55, 16  ;;  %18055 = vst [vmem:[#allocation60_spill] sm:$0xff] %v15903_v56  ;;  %v4690_v26 = vor.u32 %v4689_v16, %v4686_v12  ;;  %v15907_v10 = vpop.f32.mrb[51].mxu0 }
 0x1d9   : > { %v4452_v41 = vshrl.u32 %v4251_v60, 16  ;;  %v4455_v53 = vshll.u32 %v4251_v60, 16  ;;  %18056 = vst [vmem:[#allocation61_spill] sm:$0xff] %v15907_v10  ;;  %5321 = vmatprep.mubr.bf16.mxu0 %v4699_v49  ;;  %v4252_v50 = vrot.slane %v15726_v23, 5  ;;  %v4253_v8 = vrot.slane %v14479_v4, 5  ;;  %v15910_v1 = vpop.f32.mrb[48].mxu1 }
 0x1da   : > { %v4446_v57 = vrot.slane %v4444_v17, 3  ;;  %v4449_v34 = vrot.slane %v4447_v11, 4  ;;  %18057 = vst [vmem:[#allocation62_spill] sm:$0xff] %v15910_v1  ;;  %v4691_v55 = vsel %vm921_vm1, %v4682_v39, %v4690_v26  ;;  %v4145_v61 = vshrl.u32 %v15905_v42, 16  ;;  %v15914_v38 = vpop.f32.mrb[49].mxu1 }
 0x1db   : > { %v4454_v14 = vrot.slane %v4452_v41, 3  ;;  %v4457_v9 = vrot.slane %v4455_v53, 4  ;;  %18058 = vst [vmem:[#allocation63_spill] sm:$0xff] %v15914_v38  ;;  %5322 = vmatmul.mubr.bf16.gmra.mrb[116].mxu0 %v4691_v55  ;;  %v4148_v12 = vshll.u32 %v15905_v42, 16  ;;  %v4254_v16 = vsel %vm872_vm0, %v4252_v50, %v4253_v8  ;;  %v15918_v60 = vpop.f32.mrb[50].mxu1 }
 0x1dc   : > { %v4450_v40 = vor.u32 %v4449_v34, %v4446_v57  ;;  %v4487_v49 = vshrl.u32 %v4252_v50, 16  ;;  %18059 = vst [vmem:[#allocation64_spill] sm:$0xff] %v15918_v60  ;;  %v4147_v4 = vrot.slane %v4145_v61, 4  ;;  %v4490_v17 = vshll.u32 %v4252_v50, 16  ;;  %v15920_v26 = vpop.f32.mrb[51].mxu1 }
 0x1dd   : > { %v4458_v23 = vor.u32 %v4457_v9, %v4454_v14  ;;  %v4495_v11 = vshrl.u32 %v4254_v16, 16  ;;  %v14482_v39 = vld [vmem:[#allocation2 + $0x9c] ss:$0 sps:$4 sm:$0x11]   ;;  %18060 = vst [vmem:[#allocation65_spill] sm:$0xff] %v15920_v26  ;;  %v4150_v41 = vrot.slane %v4148_v12, 5  ;;  %v12025_v56 = vcombine.low %v3886_v35, %v3887_v24 }
 0x1de   : > { %v4489_v53 = vrot.slane %v4487_v49, 3  ;;  %v4498_v10 = vshll.u32 %v4254_v16, 16  ;;  %v4492_v34 = vrot.slane %v4490_v17, 4  ;;  %v12026_v38 = vcombine.low %v3888_v37, %v3888_v37  ;;  %v3891_v17 = vld [vmem:[#allocation2 + $0x110] sm:$0xf] }
 0x1df   : > { %v4459_v57 = vsel %vm921_vm1, %v4450_v40, %v4458_v23  ;;  %v4497_v55 = vrot.slane %v4495_v11, 3  ;;  %v4151_v8 = vor.u32 %v4150_v41, %v4147_v4  ;;  %v4719_v60 = vshrl.u32 %v12025_v56, 16 }
 0x1e0   : > { %13667 = vmatmul.mubr.bf16.gmra.mrb[84].mxu1 %v4459_v57  ;;  %v4500_v1 = vrot.slane %v4498_v10, 4  ;;  %v4722_v14 = vshll.u32 %v12025_v56, 16  ;;  %v4493_v9 = vor.u32 %v4492_v34, %v4489_v53  ;;  %v4727_v50 = vshrl.u32 %v12026_v38, 16  ;;  %v3890_v10 = vld [vmem:[#allocation2 + $0x10c] sm:$0xf] }
 0x1e1   : > { %v4730_v61 = vshll.u32 %v12026_v38, 16  ;;  %v4255_v33 = vrot.slane %v15753_v58, 5  ;;  %v15924_v26 = vpop.f32.mrb[52].mxu0  ;;  %v4736_v12 = vshrl.u32 %v4151_v8, 16  ;;  %v4739_v16 = vshll.u32 %v4151_v8, 16 }
 0x1e2   : > { %v4501_v24 = vor.u32 %v4500_v1, %v4497_v55  ;;  %v4721_v35 = vrot.slane %v4719_v60, 3  ;;  %v15926_v40 = vpop.f32.mrb[53].mxu0  ;;  %v4724_v49 = vrot.slane %v4722_v14, 4  ;;  %v4729_v37 = vrot.slane %v4727_v50, 3  ;;  %v3889_v57 = vld [vmem:[#allocation2 + $0x108] sm:$0x8] }
 0x1e3   : > { %v4732_v23 = vrot.slane %v4730_v61, 4  ;;  %v4256_v4 = vrot.slane %v14482_v39, 5  ;;  %v14484_v56 = vld [vmem:[#allocation2 + $0xb0] ss:$0 sps:$4 sm:$0x11]   ;;  %v15928_v11 = vpop.f32.mrb[54].mxu0 }
 0x1e4   : > { %18061 = vst [vmem:[#allocation66_spill] sm:$0xff] %v15928_v11  ;;  %v4738_v38 = vrot.slane %v4736_v12, 3  ;;  %v4741_v41 = vrot.slane %v4739_v16, 4  ;;  %v4502_v58 = vsel %vm921_vm1, %v4493_v9, %v4501_v24  ;;  %v4530_v53 = vshrl.u32 %v4255_v33, 16  ;;  %v15931_v34 = vpop.f32.mrb[55].mxu0  ;;  %v15934_v39 = vpop.f32.mrb[52].mxu1 }
 0x1e5   : > { %13670 = vmatprep.mubr.bf16.mxu1 %v4502_v58  ;;  %v4725_v1 = vor.u32 %v4724_v49, %v4721_v35  ;;  %v4733_v60 = vor.u32 %v4732_v23, %v4729_v37  ;;  %v4257_v55 = vsel %vm872_vm0, %v4255_v33, %v4256_v4  ;;  %v4533_v8 = vshll.u32 %v4255_v33, 16  ;;  %v14514_v14 = vld [vmem:[#allocation4 + $0x118] sm:$0xff]   ;;  %v15936_v16 = vpop.f32.mrb[53].mxu1 }
 0x1e6   : > { %v4742_v50 = vor.u32 %v4741_v41, %v4738_v38  ;;  %v4532_v61 = vrot.slane %v4530_v53, 3  ;;  %v4538_v11 = vshrl.u32 %v4257_v55, 16  ;;  %v4541_v12 = vshll.u32 %v4257_v55, 16  ;;  %v15947_v33 = vpop.f32.mrb[54].mxu1  ;;  %13124 = vmatprep.subr.bf16.mxu0 %v14514_v14  ;;  %v14515_v49 = vld [vmem:[#allocation4 + $0xd8] sm:$0xff]  }
 0x1e7   : > { %v4734_v9 = vsel %vm921_vm1, %v4725_v1, %v4733_v60  ;;  %v4535_v24 = vrot.slane %v4533_v8, 4  ;;  %v15941_v58 = vadd.f32 %v15688_v51, %v15683_v22  ;;  %v15945_v35 = vadd.f32 %v15695_v63, %v15690_v52  ;;  %v15952_v41 = vpop.f32.mrb[55].mxu1  ;;  %13125 = vmatpush3.bf16.msra.mxu0 %v14515_v49 }
 0x1e8   : > { %5329 = vmatprep.mubr.bf16.mxu0 %v4742_v50  ;;  %v4540_v37 = vrot.slane %v4538_v11, 3  ;;  %v4543_v23 = vrot.slane %v4541_v12, 4  ;;  %v15949_v4 = vcombine.low %v3890_v10, %v3891_v17  ;;  %v4258_v38 = vrot.slane %v15782_v30, 5  ;;  %18064 = vst [vmem:[#allocation69_spill] sm:$0xff] %v15952_v41 }
 0x1e9   : > { %18062 = vst [vmem:[#allocation67_spill] sm:$0xff] %v15941_v58  ;;  %18063 = vst [vmem:[#allocation68_spill] sm:$0xff] %v15945_v35  ;;  %5330 = vmatmul.mubr.bf16.gmra.mrb[120].mxu0 %v4734_v9  ;;  %v4536_v22 = vor.u32 %v4535_v24, %v4532_v61  ;;  %v4259_v51 = vrot.slane %v14484_v56, 5  ;;  %v12027_v53 = vcombine.low %v3889_v57, %v3890_v10  ;;  %v14487_v30 = vld [vmem:[#allocation2 + $0xc4] ss:$0 sps:$4 sm:$0x11]  }
 0x1ea   : > { %v12028_v1 = vcombine.low %v3891_v17, %v3891_v17  ;;  %v4544_v52 = vor.u32 %v4543_v23, %v4540_v37  ;;  %v4153_v63 = vshrl.u32 %v15949_v4, 16  ;;  %v4156_v60 = vshll.u32 %v15949_v4, 16 }
 0x1eb   : > { %v4573_v55 = vshrl.u32 %v4258_v38, 16  ;;  %v4260_v11 = vsel %vm872_vm0, %v4258_v38, %v4259_v51  ;;  %v4576_v8 = vshll.u32 %v4258_v38, 16  ;;  %v4762_v14 = vshrl.u32 %v12027_v53, 16 }
 0x1ec   : > { %v4765_v50 = vshll.u32 %v12027_v53, 16  ;;  %v4545_v12 = vsel %vm921_vm1, %v4536_v22, %v4544_v52  ;;  %v4155_v9 = vrot.slane %v4153_v63, 4  ;;  %v4158_v61 = vrot.slane %v4156_v60, 5 }
 0x1ed   : > { %v4575_v56 = vrot.slane %v4573_v55, 3  ;;  %13671 = vmatmul.mubr.bf16.gmra.mrb[88].mxu1 %v4545_v12  ;;  %v4578_v10 = vrot.slane %v4576_v8, 4  ;;  %v4581_v17 = vshrl.u32 %v4260_v11, 16  ;;  %v4584_v57 = vshll.u32 %v4260_v11, 16  ;;  %v15958_v37 = vpop.f32.mrb[56].mxu0 }
 0x1ee   : > { %v4764_v24 = vrot.slane %v4762_v14, 3  ;;  %v4159_v23 = vor.u32 %v4158_v61, %v4155_v9  ;;  %v4767_v49 = vrot.slane %v4765_v50, 4  ;;  %v4770_v35 = vshrl.u32 %v12028_v1, 16  ;;  %v15960_v38 = vpop.f32.mrb[57].mxu0  ;;  %v3893_v8 = vld [vmem:[#allocation2 + $0x120] sm:$0xf] }
 0x1ef   : > { %v4773_v51 = vshll.u32 %v12028_v1, 16  ;;  %18065 = vst [vmem:[#allocation70_spill] sm:$0xff] %v15960_v38  ;;  %v4579_v53 = vor.u32 %v4578_v10, %v4575_v56  ;;  %v4583_v58 = vrot.slane %v4581_v17, 3  ;;  %v4586_v41 = vrot.slane %v4584_v57, 4  ;;  %v15963_v52 = vpop.f32.mrb[58].mxu0 }
 0x1f0   : > { %v4261_v22 = vrot.slane %v15811_v47, 5  ;;  %18066 = vst [vmem:[#allocation71_spill] sm:$0xff] %v15963_v52  ;;  %v4779_v63 = vshrl.u32 %v4159_v23, 16  ;;  %v4782_v60 = vshll.u32 %v4159_v23, 16  ;;  %v4768_v55 = vor.u32 %v4767_v49, %v4764_v24  ;;  %v3894_v14 = vld [vmem:[#allocation2 + $0x124] sm:$0xf] }
 0x1f1   : > { %v4772_v11 = vrot.slane %v4770_v35, 3  ;;  %v14489_v12 = vld [vmem:[#allocation2 + $0xd8] ss:$0 sps:$4 sm:$0x11]   ;;  %v15965_v9 = vpop.f32.mrb[59].mxu0  ;;  %v4587_v50 = vor.u32 %v4586_v41, %v4583_v58  ;;  %v4775_v1 = vrot.slane %v4773_v51, 4  ;;  %v15971_v57 = vadd.f32 %v15718_v5, %v15715_v32 }
 0x1f2   : > { %18067 = vst [vmem:[#allocation72_spill] sm:$0xff] %v15965_v9  ;;  %v4262_v61 = vrot.slane %v14487_v30, 5  ;;  %v4616_v38 = vshrl.u32 %v4261_v22, 16  ;;  %v15967_v56 = vpop.f32.mrb[56].mxu1  ;;  %v4781_v10 = vrot.slane %v4779_v63, 3  ;;  %v4784_v17 = vrot.slane %v4782_v60, 4 }
 0x1f3   : > { %v4619_v47 = vshll.u32 %v4261_v22, 16  ;;  %18068 = vst [vmem:[#allocation73_spill] sm:$0xff] %v15971_v57  ;;  %v15973_v24 = vpop.f32.mrb[57].mxu1  ;;  %v4588_v35 = vsel %vm921_vm1, %v4579_v53, %v4587_v50  ;;  %v4776_v23 = vor.u32 %v4775_v1, %v4772_v11  ;;  %v3892_v41 = vld [vmem:[#allocation2 + $0x11c] sm:$0x8]  ;;  %v15984_v5 = vadd.f32 %v15722_v59, %v15720_v13 }
 0x1f4   : > { %v4263_v49 = vsel %vm872_vm0, %v4261_v22, %v4262_v61  ;;  %v4618_v58 = vrot.slane %v4616_v38, 3  ;;  %v15977_v30 = vpop.f32.mrb[58].mxu1  ;;  %v4785_v51 = vor.u32 %v4784_v17, %v4781_v10  ;;  %13674 = vmatprep.mubr.bf16.mxu1 %v4588_v35  ;;  %v15986_v53 = vcombine.low %v3893_v8, %v3894_v14  ;;  %v14516_v61 = vld [vmem:[#allocation4 + $0x140] sm:$0xff]  }
 0x1f5   : > { %v4621_v63 = vrot.slane %v4619_v47, 4  ;;  %v4624_v60 = vshrl.u32 %v4263_v49, 16  ;;  %v4627_v9 = vshll.u32 %v4263_v49, 16  ;;  %v15979_v52 = vpop.f32.mrb[59].mxu1  ;;  %v4777_v32 = vsel %vm921_vm1, %v4768_v55, %v4776_v23  ;;  %18069 = vst [vmem:[#allocation74_spill] sm:$0xff] %v15984_v5  ;;  %13694 = vmatprep.subr.bf16.mxu1 %v14516_v61 }
 0x1f6   : > { %v4264_v38 = vrot.slane %v15833_v3, 5  ;;  %5337 = vmatprep.mubr.bf16.mxu0 %v4785_v51  ;;  %v4265_v1 = vrot.slane %v14489_v12, 5  ;;  %v4161_v10 = vshrl.u32 %v15986_v53, 16  ;;  %v4164_v17 = vshll.u32 %v15986_v53, 16  ;;  %13695 = vmatpush3.bf16.msra.mxu1 %v14516_v61 }
 0x1f7   : > { %v4622_v22 = vor.u32 %v4621_v63, %v4618_v58  ;;  %v4626_v11 = vrot.slane %v4624_v60, 3  ;;  %v4629_v50 = vrot.slane %v4627_v9, 4  ;;  %5338 = vmatmul.mubr.bf16.gmra.mrb[124].mxu0 %v4777_v32  ;;  %v12029_v59 = vcombine.low %v3892_v41, %v3893_v8  ;;  %v14492_v49 = vld [vmem:[#allocation2 + $0xec] ss:$0 sps:$4 sm:$0x11]  }
 0x1f8   : > { %v4659_v55 = vshrl.u32 %v4264_v38, 16  ;;  %v4662_v47 = vshll.u32 %v4264_v38, 16  ;;  %v4266_v13 = vsel %vm872_vm0, %v4264_v38, %v4265_v1  ;;  %v12030_v23 = vcombine.low %v3894_v14, %v3894_v14  ;;  %v15992_v12 = vpop.f32.mrb[60].mxu0 }
 0x1f9   : > { %v4630_v35 = vor.u32 %v4629_v50, %v4626_v11  ;;  %v4163_v3 = vrot.slane %v4161_v10, 4  ;;  %v4166_v58 = vrot.slane %v4164_v17, 5  ;;  %18070 = vst [vmem:[#allocation75_spill] sm:$0xff] %v15992_v12  ;;  %v4667_v60 = vshrl.u32 %v4266_v13, 16  ;;  %v15995_v57 = vpop.f32.mrb[61].mxu0 }
 0x1fa   : > { %v4661_v51 = vrot.slane %v4659_v55, 3  ;;  %v4664_v9 = vrot.slane %v4662_v47, 4  ;;  %v4670_v32 = vshll.u32 %v4266_v13, 16  ;;  %v4805_v5 = vshrl.u32 %v12029_v59, 16  ;;  %18071 = vst [vmem:[#allocation76_spill] sm:$0xff] %v15995_v57  ;;  %v15997_v11 = vpop.f32.mrb[62].mxu0 }
 0x1fb   : > { %v4631_v63 = vsel %vm921_vm1, %v4622_v22, %v4630_v35  ;;  %v4167_v38 = vor.u32 %v4166_v58, %v4163_v3  ;;  %v4808_v14 = vshll.u32 %v12029_v59, 16  ;;  %v4813_v41 = vshrl.u32 %v12030_v23, 16  ;;  %v15999_v55 = vpop.f32.mrb[63].mxu0  ;;  %v3896_v13 = vld [vmem:[#allocation2 + $0x134] sm:$0xf] }
 0x1fc   : > { %13675 = vmatmul.mubr.bf16.gmra.mrb[92].mxu1 %v4631_v63  ;;  %v4665_v8 = vor.u32 %v4664_v9, %v4661_v51  ;;  %v4669_v50 = vrot.slane %v4667_v60, 3  ;;  %v4672_v1 = vrot.slane %v4670_v32, 4  ;;  %v4807_v10 = vrot.slane %v4805_v5, 3  ;;  %18072 = vst [vmem:[#allocation77_spill] sm:$0xff] %v15999_v55  ;;  %v3897_v12 = vld [vmem:[#allocation2 + $0x138] sm:$0xf] }
 0x1fd   : > { %v4816_v17 = vshll.u32 %v12030_v23, 16  ;;  %v4822_v61 = vshrl.u32 %v4167_v38, 16  ;;  %v4825_v22 = vshll.u32 %v4167_v38, 16  ;;  %v4810_v47 = vrot.slane %v4808_v14, 4  ;;  %v16001_v57 = vpop.f32.mrb[60].mxu1 }
 0x1fe   : > { %v4815_v35 = vrot.slane %v4813_v41, 3  ;;  %v4673_v3 = vor.u32 %v4672_v1, %v4669_v50  ;;  %v4267_v59 = vrot.slane %v15867_v20, 5  ;;  %v4268_v51 = vrot.slane %v14492_v49, 5  ;;  %v14494_v9 = vld [vmem:[#allocation2 + $0x100] ss:$0 sps:$4 sm:$0x11]  }
 0x1ff   : > { %v4818_v58 = vrot.slane %v4816_v17, 4  ;;  %v16004_v63 = vpop.f32.mrb[61].mxu1  ;;  %v4824_v5 = vrot.slane %v4822_v61, 3  ;;  %v4827_v23 = vrot.slane %v4825_v22, 4  ;;  %v4811_v60 = vor.u32 %v4810_v47, %v4807_v10  ;;  %v3895_v38 = vld [vmem:[#allocation2 + $0x130] sm:$0x8] }
 0x200   : > { %v16008_v32 = vadd.f32 %v15743_v44, %v15741_v25  ;;  %v16010_v14 = vpop.f32.mrb[62].mxu1  ;;  %v14517_v41 = vld [vmem:[#allocation4 + $0x120] sm:$0xff]   ;;  %v4674_v50 = vsel %vm921_vm1, %v4665_v8, %v4673_v3  ;;  %v4269_v20 = vsel %vm872_vm0, %v4267_v59, %v4268_v51  ;;  %v4702_v49 = vshrl.u32 %v4267_v59, 16 }
 0x201   : > { %v4819_v1 = vor.u32 %v4818_v58, %v4815_v35  ;;  %v16014_v17 = vpop.f32.mrb[63].mxu1  ;;  %v4828_v55 = vor.u32 %v4827_v23, %v4824_v5  ;;  %13678 = vmatprep.mubr.bf16.mxu1 %v4674_v50  ;;  %v4705_v61 = vshll.u32 %v4267_v59, 16  ;;  %v4710_v10 = vshrl.u32 %v4269_v20, 16  ;;  %13126 = vmatprep.subr.bf16.mxu0 %v14517_v41  ;;  %v14518_v25 = vld [vmem:[#allocation4 + $0xe0] sm:$0xff]   ;;  %v14519_v59 = vld [vmem:[#allocation4 + $0x148] sm:$0xff]  }
 0x202   : > { %18073 = vst [vmem:[#allocation78_spill] sm:$0xff] %v16008_v32  ;;  %v4713_v22 = vshll.u32 %v4269_v20, 16  ;;  %v4704_v47 = vrot.slane %v4702_v49, 3  ;;  %v16019_v32 = vadd.f32 %v15749_v29, %v15746_v45  ;;  %v16021_v8 = vcombine.low %v3896_v13, %v3897_v12  ;;  %13127 = vmatpush3.bf16.msra.mxu0 %v14518_v25  ;;  %13696 = vmatprep.subr.bf16.mxu1 %v14519_v59 }
 0x203   : > { %v4820_v44 = vsel %vm921_vm1, %v4811_v60, %v4819_v1  ;;  %5345 = vmatprep.mubr.bf16.mxu0 %v4828_v55  ;;  %v4707_v35 = vrot.slane %v4705_v61, 4  ;;  %v4712_v3 = vrot.slane %v4710_v10, 3  ;;  %v4270_v51 = vrot.slane %v15905_v42, 5  ;;  %v14497_v10 = vld [vmem:[#allocation2 + $0x114] ss:$0 sps:$4 sm:$0x11]   ;;  %13697 = vmatpush3.bf16.msra.mxu1 %v14519_v59 }
 0x204   : > { %18074 = vst [vmem:[#allocation79_spill] sm:$0xff] %v16019_v32  ;;  %v4715_v58 = vrot.slane %v4713_v22, 4  ;;  %5346 = vmatmul.mubr.bf16.gmra.mrb[128].mxu0 %v4820_v44  ;;  %v4169_v5 = vshrl.u32 %v16021_v8, 16  ;;  %v4172_v23 = vshll.u32 %v16021_v8, 16  ;;  %v4271_v60 = vrot.slane %v14494_v9, 5 }
 0x205   : > { %v12031_v41 = vcombine.low %v3895_v38, %v3896_v13  ;;  %v4708_v50 = vor.u32 %v4707_v35, %v4704_v47  ;;  %v4745_v29 = vshrl.u32 %v4270_v51, 16  ;;  %v4748_v1 = vshll.u32 %v4270_v51, 16  ;;  %v16026_v20 = vpop.f32.mrb[64].mxu0 }
 0x206   : > { %v4716_v45 = vor.u32 %v4715_v58, %v4712_v3  ;;  %18075 = vst [vmem:[#allocation80_spill] sm:$0xff] %v16026_v20  ;;  %v4171_v55 = vrot.slane %v4169_v5, 4  ;;  %v4174_v49 = vrot.slane %v4172_v23, 5  ;;  %v4272_v42 = vsel %vm872_vm0, %v4270_v51, %v4271_v60  ;;  %v16029_v22 = vpop.f32.mrb[65].mxu0 }
 0x207   : > { %v12032_v61 = vcombine.low %v3897_v12, %v3897_v12  ;;  %18076 = vst [vmem:[#allocation81_spill] sm:$0xff] %v16029_v22  ;;  %v4747_v9 = vrot.slane %v4745_v29, 3  ;;  %v4750_v13 = vrot.slane %v4748_v1, 4  ;;  %v4753_v38 = vshrl.u32 %v4272_v42, 16  ;;  %v16032_v44 = vpop.f32.mrb[66].mxu0 }
 0x208   : > { %v4717_v25 = vsel %vm921_vm1, %v4708_v50, %v4716_v45  ;;  %18077 = vst [vmem:[#allocation82_spill] sm:$0xff] %v16032_v44  ;;  %v4175_v47 = vor.u32 %v4174_v49, %v4171_v55  ;;  %v4756_v35 = vshll.u32 %v4272_v42, 16  ;;  %v4848_v3 = vshrl.u32 %v12031_v41, 16  ;;  %v16034_v5 = vpop.f32.mrb[67].mxu0  ;;  %v3899_v49 = vld [vmem:[#allocation2 + $0x148] sm:$0xf] }
 0x209   : > { %13679 = vmatmul.mubr.bf16.gmra.mrb[0].mxu1 %v4717_v25  ;;  %v4851_v58 = vshll.u32 %v12031_v41, 16  ;;  %18078 = vst [vmem:[#allocation83_spill] sm:$0xff] %v16034_v5  ;;  %v4751_v51 = vor.u32 %v4750_v13, %v4747_v9  ;;  %v4755_v12 = vrot.slane %v4753_v38, 3  ;;  %v4856_v23 = vshrl.u32 %v12032_v61, 16  ;;  %v16036_v45 = vpop.f32.mrb[64].mxu1 }
 0x20a   : > { %v4859_v60 = vshll.u32 %v12032_v61, 16  ;;  %v4865_v32 = vshrl.u32 %v4175_v47, 16  ;;  %v4868_v59 = vshll.u32 %v4175_v47, 16  ;;  %v4758_v22 = vrot.slane %v4756_v35, 4  ;;  %18079 = vst [vmem:[#allocation84_spill] sm:$0xff] %v16036_v45  ;;  %v16039_v25 = vpop.f32.mrb[65].mxu1 }
 0x20b   : > { %v4850_v50 = vrot.slane %v4848_v3, 3  ;;  %v4853_v29 = vrot.slane %v4851_v58, 4  ;;  %v4858_v1 = vrot.slane %v4856_v23, 3  ;;  %v4273_v55 = vrot.slane %v15949_v4, 5  ;;  %v3900_v42 = vld [vmem:[#allocation2 + $0x14c] sm:$0xf] }
 0x20c   : > { %v4861_v44 = vrot.slane %v4859_v60, 4  ;;  %v14499_v41 = vld [vmem:[#allocation2 + $0x128] ss:$0 sps:$4 sm:$0x11]   ;;  %v4867_v9 = vrot.slane %v4865_v32, 3  ;;  %v4870_v13 = vrot.slane %v4868_v59, 4  ;;  %v4759_v38 = vor.u32 %v4758_v22, %v4755_v12 }
 0x20d   : > { %v4274_v61 = vrot.slane %v14497_v10, 5  ;;  %v3898_v5 = vld [vmem:[#allocation2 + $0x144] sm:$0x8]  ;;  %v16041_v47 = vpop.f32.mrb[66].mxu1  ;;  %v4854_v35 = vor.u32 %v4853_v29, %v4850_v50  ;;  %v4788_v20 = vshrl.u32 %v4273_v55, 16  ;;  %v4791_v58 = vshll.u32 %v4273_v55, 16 }
 0x20e   : > { %v4862_v3 = vor.u32 %v4861_v44, %v4858_v1  ;;  %v16043_v23 = vpop.f32.mrb[67].mxu1  ;;  %v4871_v60 = vor.u32 %v4870_v13, %v4867_v9  ;;  %v4760_v4 = vsel %vm921_vm1, %v4751_v51, %v4759_v38  ;;  %v16049_v32 = vadd.f32 %v15770_v0, %v15768_v43  ;;  %v14520_v1 = vld [vmem:[#allocation4 + $0x150] sm:$0xff]  }
 0x20f   : > { %v4275_v45 = vsel %vm872_vm0, %v4273_v55, %v4274_v61  ;;  %13682 = vmatprep.mubr.bf16.mxu1 %v4760_v4  ;;  %v4790_v22 = vrot.slane %v4788_v20, 3  ;;  %v4793_v12 = vrot.slane %v4791_v58, 4  ;;  %v16054_v50 = vadd.f32 %v15776_v15, %v15773_v54  ;;  %13698 = vmatprep.subr.bf16.mxu1 %v14520_v1 }
 0x210   : > { %18080 = vst [vmem:[#allocation85_spill] sm:$0xff] %v16049_v32  ;;  %v4863_v10 = vsel %vm921_vm1, %v4854_v35, %v4862_v3  ;;  %v4796_v59 = vshrl.u32 %v4275_v45, 16  ;;  %5353 = vmatprep.mubr.bf16.mxu0 %v4871_v60  ;;  %v4799_v44 = vshll.u32 %v4275_v45, 16  ;;  %v16056_v29 = vcombine.low %v3899_v49, %v3900_v42  ;;  %v14502_v3 = vld [vmem:[#allocation2 + $0x13c] ss:$0 sps:$4 sm:$0x11]   ;;  %13699 = vmatpush3.bf16.msra.mxu1 %v14520_v1 }
 0x211   : > { %18081 = vst [vmem:[#allocation86_spill] sm:$0xff] %v16054_v50  ;;  %v4276_v51 = vrot.slane %v15986_v53, 5  ;;  %5354 = vmatmul.mubr.bf16.gmra.mrb[132].mxu0 %v4863_v10  ;;  %v4794_v43 = vor.u32 %v4793_v12, %v4790_v22  ;;  %v4277_v55 = vrot.slane %v14499_v41, 5  ;;  %v12033_v9 = vcombine.low %v3898_v5, %v3899_v49 }
 0x212   : > { %v4798_v0 = vrot.slane %v4796_v59, 3  ;;  %v4801_v13 = vrot.slane %v4799_v44, 4  ;;  %v4177_v20 = vshrl.u32 %v16056_v29, 16  ;;  %v4180_v38 = vshll.u32 %v16056_v29, 16  ;;  %v16061_v61 = vpop.f32.mrb[68].mxu0 }
 0x213   : > { %v4831_v45 = vshrl.u32 %v4276_v51, 16  ;;  %v4278_v54 = vsel %vm872_vm0, %v4276_v51, %v4277_v55  ;;  %v4834_v15 = vshll.u32 %v4276_v51, 16  ;;  %v12034_v35 = vcombine.low %v3900_v42, %v3900_v42  ;;  %v16064_v58 = vpop.f32.mrb[69].mxu0 }
 0x214   : > { %v4891_v53 = vshrl.u32 %v12033_v9, 16  ;;  %v4802_v41 = vor.u32 %v4801_v13, %v4798_v0  ;;  %v4179_v5 = vrot.slane %v4177_v20, 4  ;;  %v4182_v49 = vrot.slane %v4180_v38, 5  ;;  %v16066_v4 = vpop.f32.mrb[70].mxu0 }
 0x215   : > { %v4833_v60 = vrot.slane %v4831_v45, 3  ;;  %18082 = vst [vmem:[#allocation87_spill] sm:$0xff] %v16066_v4  ;;  %v4836_v10 = vrot.slane %v4834_v15, 4  ;;  %v4839_v22 = vshrl.u32 %v4278_v54, 16  ;;  %v4842_v12 = vshll.u32 %v4278_v54, 16  ;;  %v16068_v44 = vpop.f32.mrb[71].mxu0 }
 0x216   : > { %v4893_v59 = vrot.slane %v4891_v53, 3  ;;  %18083 = vst [vmem:[#allocation88_spill] sm:$0xff] %v16068_v44  ;;  %v4803_v51 = vsel %vm921_vm1, %v4794_v43, %v4802_v41  ;;  %v4183_v42 = vor.u32 %v4182_v49, %v4179_v5  ;;  %v4894_v55 = vshll.u32 %v12033_v9, 16  ;;  %v16071_v20 = vpop.f32.mrb[68].mxu1  ;;  %v14521_v49 = vld [vmem:[#allocation4 + $0x128] sm:$0xff]  }
 0x217   : > { %v4899_v50 = vshrl.u32 %v12034_v35, 16  ;;  %13683 = vmatmul.mubr.bf16.gmra.mrb[4].mxu1 %v4803_v51  ;;  %v4837_v32 = vor.u32 %v4836_v10, %v4833_v60  ;;  %v4841_v1 = vrot.slane %v4839_v22, 3  ;;  %v4844_v0 = vrot.slane %v4842_v12, 4  ;;  %v16073_v54 = vpop.f32.mrb[69].mxu1  ;;  %v3902_v12 = vld [vmem:[#allocation2 + $0x15c] sm:$0xf]  ;;  %13128 = vmatprep.subr.bf16.mxu0 %v14521_v49 }
 0x218   : > { %v4902_v13 = vshll.u32 %v12034_v35, 16  ;;  %v4908_v38 = vshrl.u32 %v4183_v42, 16  ;;  %v4911_v45 = vshll.u32 %v4183_v42, 16  ;;  %v4896_v15 = vrot.slane %v4894_v55, 4  ;;  %v16076_v5 = vpop.f32.mrb[70].mxu1 }
 0x219   : > { %v4901_v4 = vrot.slane %v4899_v50, 3  ;;  %v4845_v53 = vor.u32 %v4844_v0, %v4841_v1  ;;  %v4279_v43 = vrot.slane %v16021_v8, 5  ;;  %v4280_v41 = vrot.slane %v14502_v3, 5  ;;  %v14504_v9 = vld [vmem:[#allocation2 + $0x150] ss:$0 sps:$4 sm:$0x11]  }
 0x21a   : > { %v4904_v44 = vrot.slane %v4902_v13, 4  ;;  %18084 = vst [vmem:[#allocation89_spill] sm:$0xff] %v16076_v5  ;;  %v4910_v60 = vrot.slane %v4908_v38, 3  ;;  %v4913_v10 = vrot.slane %v4911_v45, 4  ;;  %v4897_v35 = vor.u32 %v4896_v15, %v4893_v59  ;;  %v3903_v50 = vld [vmem:[#allocation2 + $0x160] sm:$0xf] }
 0x21b   : > { %v16080_v22 = vadd.f32 %v15785_v19, %v15779_v48  ;;  %v3901_v51 = vld [vmem:[#allocation2 + $0x158] sm:$0x8]  ;;  %v16082_v42 = vld [vmem:[#allocation2 + $0x164] ss:$0 sps:$4 sm:$0x11]   ;;  %v16084_v55 = vpop.f32.mrb[71].mxu1  ;;  %v4846_v8 = vsel %vm921_vm1, %v4837_v32, %v4845_v53  ;;  %v4281_v1 = vsel %vm872_vm0, %v4279_v43, %v4280_v41  ;;  %v16091_v5 = vadd.f32 %v15796_v62, %v15791_v31 }
 0x21c   : > { %v4905_v3 = vor.u32 %v4904_v44, %v4901_v4  ;;  %v4874_v0 = vshrl.u32 %v4279_v43, 16  ;;  %v14522_v13 = vld [vmem:[#allocation4 + $0xe8] sm:$0xff]   ;;  %v4914_v59 = vor.u32 %v4913_v10, %v4910_v60  ;;  %13686 = vmatprep.mubr.bf16.mxu1 %v4846_v8  ;;  %v4877_v38 = vshll.u32 %v4279_v43, 16  ;;  %v14523_v4 = vld [vmem:[#allocation4 + $0x158] sm:$0xff]  }
 0x21d   : > { %v4882_v48 = vshrl.u32 %v4281_v1, 16  ;;  %v4885_v19 = vshll.u32 %v4281_v1, 16  ;;  %v16095_v32 = vadd.f32 %v15793_v18, %v15787_v7  ;;  %13129 = vmatpush3.bf16.msra.mxu0 %v14522_v13  ;;  %v16099_v43 = vadd.f32 %v15801_v2, %v15799_v46  ;;  %13700 = vmatprep.subr.bf16.mxu1 %v14523_v4 }
 0x21e   : > { %v4906_v45 = vsel %vm921_vm1, %v4897_v35, %v4905_v3  ;;  %v4876_v15 = vrot.slane %v4874_v0, 3  ;;  %5361 = vmatprep.mubr.bf16.mxu0 %v4914_v59  ;;  %v4879_v44 = vrot.slane %v4877_v38, 4  ;;  %v12052_v49 = vcombine.low %v3902_v12, %v3903_v50  ;;  %13701 = vmatpush3.bf16.msra.mxu1 %v14523_v4 }
 0x21f   : > { %v4884_v53 = vrot.slane %v4882_v48, 3  ;;  %v4887_v41 = vrot.slane %v4885_v19, 4  ;;  %18085 = vst [vmem:[#allocation90_spill] sm:$0xff] %v16099_v43  ;;  %5362 = vmatmul.mubr.bf16.gmra.mrb[136].mxu0 %v4906_v45  ;;  %v4282_v60 = vrot.slane %v16056_v29, 5  ;;  %v4283_v31 = vrot.slane %v14504_v9, 5  ;;  %v16102_v10 = vpop.f32.mrb[72].mxu0 }
 0x220   : > { %v12035_v62 = vcombine.low %v3901_v51, %v3902_v12  ;;  %v4880_v7 = vor.u32 %v4879_v44, %v4876_v15  ;;  %v12036_v35 = vcombine.low %v3903_v50, %v3903_v50  ;;  %v4286_v8 = vrot.slane %v16082_v42, 5  ;;  %v16105_v3 = vpop.f32.mrb[73].mxu0 }
 0x221   : > { %v4888_v18 = vor.u32 %v4887_v41, %v4884_v53  ;;  %v4185_v1 = vshrl.u32 %v12052_v49, 16  ;;  %v4188_v2 = vshll.u32 %v12052_v49, 16  ;;  %v4284_v46 = vsel %vm872_vm0, %v4282_v60, %v4283_v31  ;;  %v16108_v13 = vpop.f32.mrb[74].mxu0 }
 0x222   : > { %v4917_v0 = vshrl.u32 %v4282_v60, 16  ;;  %18086 = vst [vmem:[#allocation91_spill] sm:$0xff] %v16108_v13  ;;  %v4920_v9 = vshll.u32 %v4282_v60, 16  ;;  %v4925_v12 = vshrl.u32 %v4284_v46, 16  ;;  %v4928_v51 = vshll.u32 %v4284_v46, 16  ;;  %v16111_v59 = vpop.f32.mrb[75].mxu0 }
 0x223   : > { %v4889_v29 = vsel %vm921_vm1, %v4880_v7, %v4888_v18  ;;  %18087 = vst [vmem:[#allocation92_spill] sm:$0xff] %v16111_v59  ;;  %v4187_v50 = vrot.slane %v4185_v1, 4  ;;  %v4190_v42 = vrot.slane %v4188_v2, 5  ;;  %v4934_v48 = vshrl.u32 %v12035_v62, 16  ;;  %v16113_v44 = vpop.f32.mrb[72].mxu1 }
 0x224   : > { %13687 = vmatmul.mubr.bf16.gmra.mrb[8].mxu1 %v4889_v29  ;;  %v4919_v38 = vrot.slane %v4917_v0, 3  ;;  %v4922_v19 = vrot.slane %v4920_v9, 4  ;;  %v4927_v45 = vrot.slane %v4925_v12, 3  ;;  %v4930_v15 = vrot.slane %v4928_v51, 4  ;;  %v16115_v60 = vpop.f32.mrb[73].mxu1 }
 0x225   : > { %v4937_v4 = vshll.u32 %v12035_v62, 16  ;;  %v4191_v53 = vor.u32 %v4190_v42, %v4187_v50  ;;  %v4936_v41 = vrot.slane %v4934_v48, 3  ;;  %v4942_v31 = vshrl.u32 %v12036_v35, 16  ;;  %v16117_v1 = vpop.f32.mrb[74].mxu1 }
 0x226   : > { %v4945_v7 = vshll.u32 %v12036_v35, 16  ;;  %v4923_v18 = vor.u32 %v4922_v19, %v4919_v38  ;;  %v4931_v46 = vor.u32 %v4930_v15, %v4927_v45  ;;  %v4285_v29 = vrot.slane %v12052_v49, 5  ;;  %v16119_v51 = vpop.f32.mrb[75].mxu1 }
 0x227   : > { %v4939_v43 = vrot.slane %v4937_v4, 4  ;;  %v4951_v2 = vshrl.u32 %v4191_v53, 16  ;;  %v4954_v0 = vshll.u32 %v4191_v53, 16  ;;  %v4944_v9 = vrot.slane %v4942_v31, 3  ;;  %v18088_v4 = vld [vmem:[#allocation39_spill] sm:$0xff] }
 0x228   : > { %v4947_v12 = vrot.slane %v4945_v7, 4  ;;  %v4932_v62 = vsel %vm921_vm1, %v4923_v18, %v4931_v46  ;;  %v4287_v42 = vsel %vm872_vm0, %v4285_v29, %v4286_v8  ;;  %v4960_v35 = vshrl.u32 %v4285_v29, 16  ;;  %v18089_v18 = vld [vmem:[#allocation42_spill] sm:$0xff] }
 0x229   : > { %v4940_v50 = vor.u32 %v4939_v43, %v4936_v41  ;;  %v4953_v48 = vrot.slane %v4951_v2, 3  ;;  %v4956_v59 = vrot.slane %v4954_v0, 4  ;;  %13690 = vmatprep.mubr.bf16.mxu1 %v4932_v62  ;;  %v4963_v19 = vshll.u32 %v4285_v29, 16  ;;  %v18090_v43 = vld [vmem:[#allocation43_spill] sm:$0xff]  ;;  %v18091_v2 = vld [vmem:[#allocation40_spill] sm:$0xff]  ;;  %v18092_v0 = vld [vmem:[#allocation41_spill] sm:$0xff] }
 0x22a   : > { %v4948_v38 = vor.u32 %v4947_v12, %v4944_v9  ;;  %v4962_v49 = vrot.slane %v4960_v35, 3  ;;  %v4968_v45 = vshrl.u32 %v4287_v42, 16  ;;  %v4971_v15 = vshll.u32 %v4287_v42, 16  ;;  %v18093_v29 = vld [vmem:[#allocation44_spill] sm:$0xff]  ;;  %v18096_v35 = vld [vmem:[#allocation49_spill] sm:$0xff] }
 0x22b   : > { %v12782_v53 = vadd.f32 %v18088_v4, %v15806_v27  ;;  %v4957_v31 = vor.u32 %v4956_v59, %v4953_v48  ;;  %v4965_v13 = vrot.slane %v4963_v19, 4  ;;  %v16128_v41 = vadd.f32 %v18090_v43, %v18089_v18  ;;  %v18094_v59 = vld [vmem:[#allocation45_spill] sm:$0xff]  ;;  %v18097_v48 = vld [vmem:[#allocation50_spill] sm:$0xff]  ;;  %v18099_v19 = vld [vmem:[#allocation47_spill] sm:$0xff] }
 0x22c   : > { %v4949_v7 = vsel %vm921_vm1, %v4940_v50, %v4948_v38  ;;  %v4970_v8 = vrot.slane %v4968_v45, 3  ;;  %v4973_v46 = vrot.slane %v4971_v15, 4  ;;  %v12785_v9 = vadd.f32 %v18092_v0, %v18091_v2  ;;  %v16136_v62 = vpop.f32.mrb[76].mxu0  ;;  %v18095_v50 = vld [vmem:[#allocation46_spill] sm:$0xff]  ;;  %v18100_v45 = vld [vmem:[#allocation48_spill] sm:$0xff] }
 0x22d   : > { %v16134_v12 = vadd.f32 %v15830_v36, %v18093_v29  ;;  %5369 = vmatprep.mubr.bf16.mxu0 %v4957_v31  ;;  %v4966_v27 = vor.u32 %v4965_v13, %v4962_v49  ;;  %v12788_v42 = vadd.f32 %v18095_v50, %v18094_v59  ;;  %v16142_v38 = vadd.f32 %v18097_v48, %v18096_v35  ;;  %v16146_v4 = vpop.f32.mrb[77].mxu0  ;;  %v18101_v36 = vld [vmem:[#allocation51_spill] sm:$0xff]  ;;  %v18102_v43 = vld [vmem:[#allocation52_spill] sm:$0xff]  ;;  %v18107_v59 = vld [vmem:[#allocation53_spill] sm:$0xff] }
 0x22e   : > { %v12791_v15 = vadd.f32 %v18100_v45, %v18099_v19  ;;  %5370 = vmatmul.mubr.bf16.gmra.mrb[140].mxu0 %v4949_v7  ;;  %v4974_v18 = vor.u32 %v4973_v46, %v4970_v8  ;;  %v16150_v2 = vadd.f32 %v18102_v43, %v18101_v36  ;;  %v12794_v13 = vadd.f32 %v15872_v28, %v15869_v21  ;;  %v18104_v49 = vld [vmem:[#allocation55_spill] sm:$0xff]  ;;  %v18105_v31 = vld [vmem:[#allocation56_spill] sm:$0xff]  ;;  %v16158_v29 = vpop.f32.mrb[78].mxu0  ;;  %v18108_v50 = vld [vmem:[#allocation54_spill] sm:$0xff] }
 0x22f   : > { %18098 = vst [vmem:[#allocation39_spill] sm:$0xff] %v16142_v38  ;;  %v16156_v0 = vadd.f32 %v18105_v31, %v18104_v49  ;;  %v12797_v35 = vadd.f32 %v18108_v50, %v18107_v59  ;;  %v18109_v48 = vld [vmem:[#allocation57_spill] sm:$0xff]  ;;  %v18110_v19 = vld [vmem:[#allocation58_spill] sm:$0xff]  ;;  %v18111_v8 = vld [vmem:[#allocation59_spill] sm:$0xff]  ;;  %v16170_v21 = vpop.f32.mrb[79].mxu0  ;;  %v12806_v50 = vadd.f32 %v15926_v40, %v15924_v26 }
 0x230   : > { %18103 = vst [vmem:[#allocation42_spill] sm:$0xff] %v16150_v2  ;;  %v16164_v7 = vadd.f32 %v18110_v19, %v18109_v48  ;;  %v12800_v46 = vadd.f32 %v18111_v8, %v15897_v6  ;;  %v18112_v45 = vld [vmem:[#allocation62_spill] sm:$0xff]  ;;  %v18113_v36 = vld [vmem:[#allocation63_spill] sm:$0xff]  ;;  %v4975_v28 = vsel %vm921_vm1, %v4966_v27, %v4974_v18  ;;  %v18114_v49 = vld [vmem:[#allocation60_spill] sm:$0xff]  ;;  %v12918_v6 = vadd.f32 %v15936_v16, %v15934_v39 }
 0x231   : > { %18106 = vst [vmem:[#allocation43_spill] sm:$0xff] %v16156_v0  ;;  %v12912_v43 = vadd.f32 %v18113_v36, %v18112_v45  ;;  %v18115_v31 = vld [vmem:[#allocation61_spill] sm:$0xff]  ;;  %v18116_v38 = vld [vmem:[#allocation64_spill] sm:$0xff]  ;;  %13691 = vmatmul.mubr.bf16.gmra.mrb[12].mxu1 %v4975_v28  ;;  %v18118_v19 = vld [vmem:[#allocation66_spill] sm:$0xff]  ;;  %v16188_v45 = vpop.f32.mrb[76].mxu1 }
 0x232   : > { %v12803_v2 = vadd.f32 %v18115_v31, %v18114_v49  ;;  %v18117_v0 = vld [vmem:[#allocation65_spill] sm:$0xff]  ;;  %v12809_v8 = vadd.f32 %v15931_v34, %v18118_v19  ;;  %v18120_v26 = vld [vmem:[#allocation70_spill] sm:$0xff]  ;;  %v18122_v36 = vld [vmem:[#allocation72_spill] sm:$0xff]  ;;  %v16201_v16 = vpop.f32.mrb[77].mxu1  ;;  %v16203_v34 = vadd.f32 %v12918_v6, %v12782_v53 }
 0x233   : > { %v12915_v59 = vadd.f32 %v18117_v0, %v18116_v38  ;;  %v16180_v48 = vadd.f32 %v12912_v43, %v16080_v22  ;;  %v18119_v27 = vld [vmem:[#allocation69_spill] sm:$0xff]  ;;  %v12812_v40 = vadd.f32 %v18120_v26, %v15958_v37  ;;  %v12924_v22 = vadd.f32 %v15973_v24, %v15967_v56  ;;  %v18121_v0 = vld [vmem:[#allocation71_spill] sm:$0xff]  ;;  %v18124_v28 = vld [vmem:[#allocation76_spill] sm:$0xff]  ;;  %v16213_v37 = vpop.f32.mrb[78].mxu1 }
 0x234   : > { %v12921_v18 = vadd.f32 %v18119_v27, %v15947_v33  ;;  %v16199_v39 = vadd.f32 %v18122_v36, %v18121_v0  ;;  %v18123_v43 = vld [vmem:[#allocation75_spill] sm:$0xff]  ;;  %v12930_v24 = vadd.f32 %v16004_v63, %v16001_v57  ;;  %v18125_v31 = vld [vmem:[#allocation77_spill] sm:$0xff]  ;;  %v18127_v6 = vld [vmem:[#allocation12_spill] sm:$0xff] }
 0x235   : > { %v16191_v38 = vadd.f32 %v12915_v59, %v16095_v32  ;;  %v12927_v32 = vadd.f32 %v15979_v52, %v15977_v30  ;;  %v16211_v49 = vadd.f32 %v18124_v28, %v18123_v43  ;;  %v16215_v56 = vadd.f32 %v12924_v22, %v12788_v42  ;;  %v16225_v59 = vpop.f32.mrb[79].mxu1  ;;  %v18126_v30 = vld [vmem:[#allocation11_spill] sm:$0xff]  ;;  %v18129_v42 = vld [vmem:[#allocation8_spill] sm:$0xff]  ;;  %v18131_v0 = vld [vmem:[#allocation13_spill] sm:$0xff] }
 0x236   : > { %v16205_v33 = vadd.f32 %v12921_v18, %v12785_v9  ;;  %v16221_v53 = vadd.f32 %v18125_v31, %v15997_v11  ;;  %v12933_v9 = vadd.f32 %v16014_v17, %v16010_v14  ;;  %v12734_v19 = vadd.f32 %v18127_v6, %v18126_v30  ;;  %v18128_v27 = vld [vmem:[#allocation7_spill] sm:$0xff]  ;;  %v18130_v26 = vld [vmem:[#allocation84_spill] sm:$0xff]  ;;  %v18132_v14 = vld [vmem:[#allocation14_spill] sm:$0xff] }
 0x237   : > { %v16227_v52 = vadd.f32 %v12927_v32, %v12791_v15  ;;  %v12728_v18 = vadd.f32 %v18129_v42, %v18128_v27  ;;  %v12936_v57 = vadd.f32 %v16039_v25, %v18130_v26  ;;  %v14524_v63 = vld [vmem:[#allocation4 + $0x160] sm:$0xff]   ;;  %v16235_v22 = vadd.f32 %v12930_v24, %v12794_v13  ;;  %v18133_v36 = vld [vmem:[#allocation9_spill] sm:$0xff]  ;;  %v18134_v15 = vld [vmem:[#allocation10_spill] sm:$0xff] }
 0x238   : > { %v16237_v11 = vadd.f32 %v12933_v9, %v12797_v35  ;;  %v12737_v17 = vadd.f32 %v18132_v14, %v18131_v0  ;;  %v12731_v32 = vadd.f32 %v18134_v15, %v18133_v36  ;;  %v18135_v43 = vld [vmem:[#allocation80_spill] sm:$0xff]  ;;  %v18136_v31 = vld [vmem:[#allocation81_spill] sm:$0xff]  ;;  %v12939_v25 = vadd.f32 %v16043_v23, %v16041_v47  ;;  %13702 = vmatprep.subr.bf16.mxu1 %v14524_v63  ;;  %v18137_v13 = vld [vmem:[#allocation82_spill] sm:$0xff] }
 0x239   : > { %v3271_v28 = vadd.f32 %v18135_v43, %v12734_v19  ;;  %v3263_v30 = vadd.f32 %v12728_v18, %v18136_v31  ;;  %v16245_v6 = vadd.f32 %v12936_v57, %v12800_v46  ;;  %v18138_v35 = vld [vmem:[#allocation83_spill] sm:$0xff]  ;;  %v18140_v42 = vld [vmem:[#allocation20_spill] sm:$0xff]  ;;  %13703 = vmatpush3.bf16.msra.mxu1 %v14524_v63  ;;  %v18143_v19 = vld [vmem:[#allocation73_spill] sm:$0xff]  ;;  %v12942_v47 = vadd.f32 %v16073_v54, %v16071_v20 }
 0x23a   : > { %v3274_v24 = vadd.f32 %v18137_v13, %v12737_v17  ;;  %v3266_v9 = vadd.f32 %v12731_v32, %v18138_v35  ;;  %v18139_v27 = vld [vmem:[#allocation19_spill] sm:$0xff]  ;;  %v18142_v14 = vld [vmem:[#allocation16_spill] sm:$0xff]  ;;  %v16261_v57 = vadd.f32 %v12939_v25, %v12803_v2  ;;  %v18145_v23 = vld [vmem:[#allocation74_spill] sm:$0xff] }
 0x23b   : > { %v12746_v26 = vadd.f32 %v18140_v42, %v18139_v27  ;;  %v18141_v0 = vld [vmem:[#allocation15_spill] sm:$0xff]  ;;  %v16256_v15 = vadd.f32 %v18143_v19, %v3271_v28  ;;  %v18146_v32 = vld [vmem:[#allocation68_spill] sm:$0xff]  ;;  %v14525_v13 = vld [vmem:[#allocation4 + $0x130] sm:$0xff]   ;;  %v16271_v28 = vadd.f32 %v12942_v47, %v12806_v50 }
 0x23c   : > { %v12740_v36 = vadd.f32 %v18142_v14, %v18141_v0  ;;  %v18144_v46 = vld [vmem:[#allocation67_spill] sm:$0xff]  ;;  %v16266_v17 = vadd.f32 %v18145_v23, %v3274_v24  ;;  %v3571_v43 = vadd.f32 %v18146_v32, %v3266_v9  ;;  %v18147_v35 = vld [vmem:[#allocation21_spill] sm:$0xff]  ;;  %v18150_v25 = vld [vmem:[#allocation18_spill] sm:$0xff]  ;;  %13130 = vmatprep.subr.bf16.mxu0 %v14525_v13 }
 0x23d   : > { %v16259_v18 = vadd.f32 %v18144_v46, %v3263_v30  ;;  %v3287_v31 = vadd.f32 %v16061_v61, %v12746_v26  ;;  %v18148_v30 = vld [vmem:[#allocation22_spill] sm:$0xff]  ;;  %v18149_v2 = vld [vmem:[#allocation17_spill] sm:$0xff]  ;;  %v18154_v61 = vld [vmem:[#allocation27_spill] sm:$0xff]  ;;  %v12998_v13 = vpop.f32.mrb[80].mxu0 }
 0x23e   : > { %v3279_v63 = vadd.f32 %v12740_v36, %v16064_v58  ;;  %v12749_v27 = vadd.f32 %v18148_v30, %v18147_v35  ;;  %v12743_v42 = vadd.f32 %v18150_v25, %v18149_v2  ;;  %v18151_v0 = vld [vmem:[#allocation89_spill] sm:$0xff]  ;;  %v18153_v9 = vld [vmem:[#allocation78_spill] sm:$0xff]  ;;  %v18155_v58 = vld [vmem:[#allocation28_spill] sm:$0xff] }
 0x23f   : > { %v12945_v20 = vadd.f32 %v16084_v55, %v18151_v0  ;;  %v18152_v54 = vld [vmem:[#allocation85_spill] sm:$0xff]  ;;  %v12758_v26 = vadd.f32 %v18155_v58, %v18154_v61  ;;  %v18156_v50 = vld [vmem:[#allocation23_spill] sm:$0xff]  ;;  %v18157_v36 = vld [vmem:[#allocation24_spill] sm:$0xff]  ;;  %v12948_v55 = vadd.f32 %v16115_v60, %v16113_v44  ;;  %v12951_v44 = vadd.f32 %v16119_v51, %v16117_v1 }
 0x240   : > { %v16280_v24 = vadd.f32 %v18152_v54, %v3287_v31  ;;  %v16283_v14 = vadd.f32 %v18153_v9, %v3279_v63  ;;  %v12752_v19 = vadd.f32 %v18157_v36, %v18156_v50  ;;  %v18158_v46 = vld [vmem:[#allocation87_spill] sm:$0xff]  ;;  %v18159_v23 = vld [vmem:[#allocation88_spill] sm:$0xff]  ;;  %v18160_v30 = vld [vmem:[#allocation29_spill] sm:$0xff] }
 0x241   : > { %v3290_v47 = vadd.f32 %v18158_v46, %v12749_v27  ;;  %v3282_v32 = vadd.f32 %v12743_v42, %v18159_v23  ;;  %v16291_v35 = vadd.f32 %v12945_v20, %v12809_v8  ;;  %v3303_v31 = vadd.f32 %v16102_v10, %v12758_v26  ;;  %v18161_v2 = vld [vmem:[#allocation30_spill] sm:$0xff]  ;;  %v18162_v0 = vld [vmem:[#allocation25_spill] sm:$0xff]  ;;  %v18165_v42 = vld [vmem:[#allocation79_spill] sm:$0xff]  ;;  %v12999_v10 = vpop.f32.mrb[81].mxu0 }
 0x242   : > { %v3295_v63 = vadd.f32 %v12752_v19, %v16105_v3  ;;  %v12761_v25 = vadd.f32 %v18161_v2, %v18160_v30  ;;  %v18163_v54 = vld [vmem:[#allocation26_spill] sm:$0xff]  ;;  %v16305_v20 = vadd.f32 %v12948_v55, %v12812_v40  ;;  %v14526_v60 = vld [vmem:[#allocation4 + $0xf0] sm:$0xff]   ;;  %v18166_v26 = vld [vmem:[#allocation91_spill] sm:$0xff]  ;;  %v13001_v46 = vpop.f32.mrb[82].mxu0 }
 0x243   : > { %v12755_v9 = vadd.f32 %v18163_v54, %v18162_v0  ;;  %v18164_v61 = vld [vmem:[#allocation86_spill] sm:$0xff]  ;;  %v3587_v8 = vadd.f32 %v18165_v42, %v3282_v32  ;;  %v16310_v3 = vadd.f32 %v16128_v41, %v3303_v31  ;;  %v18167_v36 = vld [vmem:[#allocation92_spill] sm:$0xff]  ;;  %v18168_v40 = vld [vmem:[#allocation35_spill] sm:$0xff]  ;;  %v12954_v41 = vadd.f32 %v16201_v16, %v16188_v45  ;;  %v13002_v31 = vpop.f32.mrb[83].mxu0  ;;  %13131 = vmatpush3.bf16.msra.mxu0 %v14526_v60 }
 0x244   : > { %v16302_v27 = vadd.f32 %v18164_v61, %v3290_v47  ;;  %v16313_v58 = vadd.f32 %v16091_v5, %v3295_v63  ;;  %v3306_v50 = vadd.f32 %v18166_v26, %v12761_v25  ;;  %v16318_v47 = vadd.f32 %v12951_v44, %v16199_v39  ;;  %v18169_v23 = vld [vmem:[#allocation36_spill] sm:$0xff]  ;;  %v18170_v1 = vld [vmem:[#allocation31_spill] sm:$0xff]  ;;  %v18172_v30 = vld [vmem:[#allocation90_spill] sm:$0xff] }
 0x245   : > { %v3298_v19 = vadd.f32 %v12755_v9, %v18167_v36  ;;  %v12770_v32 = vadd.f32 %v18169_v23, %v18168_v40  ;;  %v18171_v51 = vld [vmem:[#allocation32_spill] sm:$0xff]  ;;  %v18173_v39 = vld [vmem:[#allocation37_spill] sm:$0xff]  ;;  %v18174_v25 = vld [vmem:[#allocation38_spill] sm:$0xff]  ;;  %v16339_v45 = vadd.f32 %v12954_v41, %v16211_v49  ;;  %v13000_v26 = vadd.f32 %v12999_v10, %v12998_v13 }
 0x246   : > { %v12764_v55 = vadd.f32 %v18171_v51, %v18170_v1  ;;  %v14527_v5 = vld [vmem:[#allocation4 + $0x168] sm:$0xff]   ;;  %v16327_v63 = vadd.f32 %v16134_v12, %v3306_v50  ;;  %v12773_v0 = vadd.f32 %v18174_v25, %v18173_v39  ;;  %v18175_v54 = vld [vmem:[#allocation33_spill] sm:$0xff]  ;;  %v18176_v9 = vld [vmem:[#allocation34_spill] sm:$0xff]  ;;  %v12957_v12 = vadd.f32 %v16225_v59, %v16213_v37 }
 0x247   : > { %v16330_v2 = vadd.f32 %v18172_v30, %v3298_v19  ;;  %v12767_v61 = vadd.f32 %v18176_v9, %v18175_v54  ;;  %v3319_v42 = vadd.f32 %v16136_v62, %v12770_v32  ;;  %13704 = vmatprep.subr.bf16.mxu1 %v14527_v5  ;;  %v13003_v50 = vadd.f32 %v13002_v31, %v13001_v46  ;;  %v18177_v36 = vld [vmem:[#allocation43_spill] sm:$0xff]  ;;  %v18180_v37 = vld [vmem:[#allocation42_spill] sm:$0xff]  ;;  %v14528_v1 = vld [vmem:[#allocation4 + $0x170] sm:$0xff]  }
 0x248   : > { %v3311_v44 = vadd.f32 %v12764_v55, %v16146_v4  ;;  %v3322_v16 = vadd.f32 %v16158_v29, %v12773_v0  ;;  %13705 = vmatpush3.bf16.msra.mxu1 %v14527_v5  ;;  %v18178_v62 = vld [vmem:[#allocation39_spill] sm:$0xff]  ;;  %v16352_v4 = vadd.f32 %v12957_v12, %v16221_v53  ;;  %v16361_v29 = vadd.f32 %v13000_v26, %v16259_v18  ;;  %v14529_v55 = vld [vmem:[#allocation4 + $0x138] sm:$0xff]  }
 0x249   : > { %v3314_v60 = vadd.f32 %v12767_v61, %v16170_v21  ;;  %v16346_v19 = vadd.f32 %v18177_v36, %v3319_v42  ;;  %v16363_v21 = vadd.f32 %v13003_v50, %v3571_v43  ;;  %13706 = vmatprep.subr.bf16.mxu1 %v14528_v1  ;;  %13132 = vmatprep.subr.bf16.mxu0 %v14529_v55  ;;  %v14530_v5 = vld [vmem:[#allocation4 + $0xf8] sm:$0xff]  }
 0x24a   : > { %v16349_v40 = vadd.f32 %v18178_v62, %v3311_v44  ;;  %18179 = vst [vmem:[#allocation40_spill] sm:$0xff] %v16352_v4  ;;  %v16355_v49 = vadd.f32 %v16164_v7, %v3322_v16  ;;  %v13004_v13 = vpop.f32.mrb[84].mxu0  ;;  %13133 = vmatpush3.bf16.msra.mxu0 %v14530_v5  ;;  %v16379_v16 = vld [vmem:[#allocation4 + $0x80] sm:$0xff]  }
 0x24b   : > { %v16358_v59 = vadd.f32 %v18180_v37, %v3314_v60  ;;  %v13005_v10 = vpop.f32.mrb[85].mxu0 }
 0x24c   : > { %v13006_v46 = vadd.f32 %v13005_v10, %v13004_v13  ;;  %v13007_v23 = vpop.f32.mrb[86].mxu0  ;;  %13707 = vmatpush3.bf16.msra.mxu1 %v14528_v1 }
 0x24d   : > { %v13008_v32 = vpop.f32.mrb[87].mxu0 }
 0x24e   : > { %v13009_v51 = vadd.f32 %v13008_v32, %v13007_v23  ;;  %v16366_v53 = vadd.f32 %v13006_v46, %v16256_v15  ;;  %v14531_v15 = vld [vmem:[#allocation4 + $0x178] sm:$0xff]  }
 0x24f   : > { %13708 = vmatprep.subr.bf16.mxu1 %v14531_v15 }
 0x250   : > { %v16369_v7 = vadd.f32 %v13009_v51, %v16266_v17  ;;  %13709 = vmatpush3.bf16.msra.mxu1 %v14531_v15 }
 0x251   : > { %13742 = vmatprep.subr.bf16.mxu1 %v16379_v16 }
 0x257   : > { %v13010_v18 = vpop.f32.mrb[88].mxu0 }
 0x258   : > { %v13011_v43 = vpop.f32.mrb[89].mxu0 }
 0x259   : > { %v13012_v41 = vadd.f32 %v13011_v43, %v13010_v18  ;;  %v13013_v31 = vpop.f32.mrb[90].mxu0 }
 0x25a   : > { %v13014_v30 = vpop.f32.mrb[91].mxu0 }
 0x25b   : > { %v13015_v39 = vadd.f32 %v13014_v30, %v13013_v31  ;;  %v16372_v25 = vadd.f32 %v13012_v41, %v16283_v14 }
 0x25d   : > { %v16374_v0 = vadd.f32 %v13015_v39, %v3587_v8  ;;  %v14539_v8 = vld [vmem:[#allocation4 + $0x40] sm:$0xff]  }
 0x25e   : > { %13254 = vmatprep.subr.bf16.mxu0 %v14539_v8 }
 0x265   : > { %v13016_v17 = vpop.f32.mrb[92].mxu0 }
 0x266   : > { %v13017_v54 = vpop.f32.mrb[93].mxu0 }
 0x267   : > { %v13018_v9 = vadd.f32 %v13017_v54, %v13016_v17  ;;  %v13019_v61 = vpop.f32.mrb[94].mxu0 }
 0x268   : > { %v13020_v42 = vpop.f32.mrb[95].mxu0 }
 0x269   : > { %v13021_v44 = vadd.f32 %v13020_v42, %v13019_v61  ;;  %v16377_v12 = vadd.f32 %v13018_v9, %v16280_v24 }
 0x26b   : > { %v16382_v14 = vadd.f32 %v13021_v44, %v16302_v27 }
 0x271   : > { %v13022_v60 = vpop.f32.mrb[96].mxu0 }
 0x272   : > { %v13023_v26 = vpop.f32.mrb[97].mxu0 }
 0x273   : > { %v13024_v50 = vadd.f32 %v13023_v26, %v13022_v60  ;;  %v13025_v36 = vpop.f32.mrb[98].mxu0 }
 0x274   : > { %v13026_v62 = vpop.f32.mrb[99].mxu0 }
 0x275   : > { %v13027_v37 = vadd.f32 %v13026_v62, %v13025_v36  ;;  %v16386_v13 = vadd.f32 %v13024_v50, %v16313_v58  ;;  %v16415_v36 = vld [vmem:[%s17967_s2] ss:$0 sm:$0xff] }
 0x277   : > { %v16389_v24 = vadd.f32 %v13027_v37, %v16330_v2  ;;  %v16424_v37 = vld [vmem:[%s17968_s3] ss:$0 sm:$0xff] }
 0x27e   : > { %v13028_v10 = vpop.f32.mrb[100].mxu0 }
 0x27f   : > { %v13029_v46 = vpop.f32.mrb[101].mxu0 }
 0x280   : > { %v13030_v27 = vadd.f32 %v13029_v46, %v13028_v10  ;;  %v13031_v23 = vpop.f32.mrb[102].mxu0 }
 0x281   : > { %v13032_v32 = vpop.f32.mrb[103].mxu0 }
 0x282   : > { %v13033_v1 = vadd.f32 %v13032_v32, %v13031_v23  ;;  %v16392_v51 = vadd.f32 %v13030_v27, %v16310_v3 }
 0x284   : > { %v16395_v55 = vadd.f32 %v13033_v1, %v16327_v63 }
 0x28b   : > { %v13034_v18 = vpop.f32.mrb[104].mxu0 }
 0x28c   : > { %v13035_v43 = vpop.f32.mrb[105].mxu0 }
 0x28d   : > { %v13036_v41 = vadd.f32 %v13035_v43, %v13034_v18  ;;  %v13037_v58 = vpop.f32.mrb[106].mxu0 }
 0x28e   : > { %v13038_v31 = vpop.f32.mrb[107].mxu0 }
 0x28f   : > { %v13039_v5 = vadd.f32 %v13038_v31, %v13037_v58  ;;  %v16398_v2 = vadd.f32 %v13036_v41, %v16349_v40  ;;  %v16436_v41 = vld [vmem:[#allocation3 + $0x24] ss:$0 sps:$4 sm:$0x11]  }
 0x291   : > { %v16401_v30 = vadd.f32 %v13039_v5, %v16358_v59  ;;  %v16439_v5 = vld [vmem:[#allocation3 + $0x38] ss:$0 sps:$4 sm:$0x11]  }
 0x298   : > { %v13040_v39 = vpop.f32.mrb[108].mxu0 }
 0x299   : > { %v13041_v15 = vpop.f32.mrb[109].mxu0 }
 0x29a   : > { %v13042_v17 = vadd.f32 %v13041_v15, %v13040_v39  ;;  %v13043_v3 = vpop.f32.mrb[110].mxu0  ;;  %v16441_v39 = vld [vmem:[#allocation3 + $0x4c] ss:$0 sps:$4 sm:$0x11]  }
 0x29b   : > { %v13044_v54 = vpop.f32.mrb[111].mxu0 }
 0x29c   : > { %v13045_v9 = vadd.f32 %v13044_v54, %v13043_v3  ;;  %v16404_v63 = vadd.f32 %v13042_v17, %v16346_v19  ;;  %v16443_v3 = vld [vmem:[#allocation3 + $0x60] ss:$0 sps:$4 sm:$0x11]   ;;  %v16445_v54 = vld [vmem:[#allocation3 + $0x74] ss:$0 sps:$4 sm:$0x11]  }
 0x29e   : > { %v16407_v61 = vadd.f32 %v13045_v9, %v16355_v49 }
 0x2a2   : > { %v13046_v42 = vpop.f32.mrb[112].mxu0 }
 0x2a3   : > { %v13047_v44 = vpop.f32.mrb[113].mxu0 }
 0x2a4   : > { %v13048_v8 = vadd.f32 %v13047_v44, %v13046_v42  ;;  %v13049_v40 = vpop.f32.mrb[114].mxu0 }
 0x2a5   : > { %v13050_v60 = vpop.f32.mrb[115].mxu0 }
 0x2a6   : > { %v13051_v26 = vadd.f32 %v13050_v60, %v13049_v40  ;;  %v16410_v59 = vadd.f32 %v16180_v48, %v13048_v8  ;;  %v13664_v50 = vpop.f32.mrb[80].mxu1  ;;  %v16447_v40 = vld [vmem:[#allocation3 + $0x88] ss:$0 sps:$4 sm:$0x11]  }
 0x2a7   : > { %v13905_v19 = vadd.f32 %v16366_v53, %v13664_v50  ;;  %v5412_v62 = vpop.f32.mrb[81].mxu1  ;;  %v16449_v60 = vld [vmem:[#allocation3 + $0x9c] ss:$0 sps:$4 sm:$0x11]  }
 0x2a8   : > { %v16419_v49 = vadd.f32 %v16191_v38, %v13051_v26  ;;  %v13909_v48 = vadd.f32 %v16361_v29, %v5412_v62  ;;  %v13665_v10 = vpop.f32.mrb[82].mxu1  ;;  %v16453_v62 = vld [vmem:[#allocation3 + $0xc4] ss:$0 sps:$4 sm:$0x11]  }
 0x2a9   : > { %v5580_v46 = vmul.f32 %v13905_v19, %v16415_v36  ;;  %v13913_v27 = vadd.f32 %v16369_v7, %v13665_v10  ;;  %v5415_v23 = vpop.f32.mrb[83].mxu1  ;;  %v16451_v19 = vld [vmem:[#allocation3 + $0xb0] ss:$0 sps:$4 sm:$0x11]   ;;  %18182 = vst [vmem:[#allocation44_spill] sm:$0xff] %v16453_v62 }
 0x2aa   : > { %v5578_v32 = vmul.f32 %v13909_v48, %v16415_v36  ;;  %v13917_v53 = vadd.f32 %v16363_v21, %v5415_v23  ;;  %18181 = vst [vmem:[#allocation41_spill] sm:$0xff] %v16451_v19  ;;  %v16458_v23 = vld [vmem:[#allocation3 + $0xd8] ss:$0 sps:$4 sm:$0x11]  }
 0x2ab   : > { %v5619_v38 = vadd.f32 %v16424_v37, %v5580_v46  ;;  %v5581_v1 = vmul.f32 %v13913_v27, %v16415_v36  ;;  %18183 = vst [vmem:[#allocation45_spill] sm:$0xff] %v16458_v23 }
 0x2ac   : > { %v5617_v18 = vadd.f32 %v16424_v37, %v5578_v32  ;;  %v5579_v43 = vmul.f32 %v13917_v53, %v16415_v36 }
 0x2ad   : > { %v5620_v29 = vadd.f32 %v16424_v37, %v5581_v1  ;;  %v5651_v21 = vmax.f32 %v5619_v38, 0.0  ;;  %v16462_v1 = vld [vmem:[#allocation3 + $0xec] ss:$0 sps:$4 sm:$0x11]  }
 0x2ae   : > { %v5649_v58 = vmax.f32 %v5617_v18, 0.0  ;;  %v5618_v7 = vadd.f32 %v16424_v37, %v5579_v43  ;;  %v13052_v31 = vpop.f32.mrb[116].mxu0  ;;  %18184 = vst [vmem:[#allocation46_spill] sm:$0xff] %v16462_v1 }
 0x2af   : > { %v5652_v15 = vmax.f32 %v5620_v29, 0.0  ;;  %v13053_v17 = vpop.f32.mrb[117].mxu0 }
 0x2b0   : > { %v12503_v9 = vpack.c.bf16 %v5649_v58, %v5649_v58  ;;  %v5650_v42 = vmax.f32 %v5618_v7, 0.0  ;;  %v13054_v44 = vadd.f32 %v13053_v17, %v13052_v31  ;;  %v13055_v8 = vpop.f32.mrb[118].mxu0  ;;  %v16470_v7 = vld [vmem:[#allocation3 + $0x100] ss:$0 sps:$4 sm:$0x11]  }
 0x2b1   : > { %v12570_v26 = vpack.c.bf16 %v5652_v15, %v5651_v21  ;;  %v13056_v50 = vpop.f32.mrb[119].mxu0  ;;  %18185 = vst [vmem:[#allocation49_spill] sm:$0xff] %v16470_v7 }
 0x2b2   : > { %5857 = vst [vmem:[#allocation3 + $0x1c] sm:$0xf] %v12503_v9  ;;  %v12504_v48 = vpack.c.bf16 %v5650_v42, %v5650_v42  ;;  %v13057_v46 = vadd.f32 %v13056_v50, %v13055_v8  ;;  %v16456_v27 = vadd.f32 %v16203_v34, %v13054_v44  ;;  %v7493_v34 = vrot.slane %v16439_v5, 5  ;;  %v7105_v5 = vld [vmem:[#allocation3 + $0x18] sm:$0x8] }
 0x2b3   : > { %v13668_v10 = vpop.f32.mrb[84].mxu1  ;;  %12687 = vst [vmem:[#allocation3 + $0x30] sm:$0xff] %v12570_v26  }
 0x2b4   : > { %v13921_v32 = vadd.f32 %v16377_v12, %v13668_v10  ;;  %v5428_v53 = vpop.f32.mrb[85].mxu1  ;;  %5858 = vst [vmem:[#allocation3 + $0x20] sm:$0xf] %v12504_v48  ;;  %v16466_v29 = vadd.f32 %v16205_v33, %v13057_v46  ;;  %v16486_v48 = vld [vmem:[#allocation3 + $0x128] ss:$0 sps:$4 sm:$0x11]  }
 0x2b5   : > { %v13925_v18 = vadd.f32 %v16372_v25, %v5428_v53  ;;  %v13669_v43 = vpop.f32.mrb[86].mxu1  ;;  %v16476_v25 = vld [vmem:[#allocation3 + $0x114] ss:$0 sps:$4 sm:$0x11]   ;;  %18187 = vst [vmem:[#allocation47_spill] sm:$0xff] %v16486_v48 }
 0x2b6   : > { %v5584_v12 = vmul.f32 %v13921_v32, %v16415_v36  ;;  %v13929_v31 = vadd.f32 %v16382_v14, %v13669_v43  ;;  %v5431_v21 = vpop.f32.mrb[87].mxu1  ;;  %18186 = vst [vmem:[#allocation50_spill] sm:$0xff] %v16476_v25 }
 0x2b7   : > { %v5582_v33 = vmul.f32 %v13925_v18, %v16415_v36  ;;  %v13933_v9 = vadd.f32 %v16374_v0, %v5431_v21  ;;  %v7108_v0 = vld [vmem:[#allocation3 + $0x2c] sm:$0x8] }
 0x2b8   : > { %v5623_v8 = vadd.f32 %v16424_v37, %v5584_v12  ;;  %v5585_v14 = vmul.f32 %v13929_v31, %v16415_v36 }
 0x2b9   : > { %v5621_v10 = vadd.f32 %v16424_v37, %v5582_v33  ;;  %v5583_v46 = vmul.f32 %v13933_v9, %v16415_v36  ;;  %v7106_v12 = vld [vmem:[#allocation3 + $0x1c] sm:$0xf] }
 0x2ba   : > { %v5655_v18 = vmax.f32 %v5623_v8, 0.0  ;;  %v5624_v43 = vadd.f32 %v16424_v37, %v5585_v14  ;;  %v7109_v44 = vld [vmem:[#allocation3 + $0x30] sm:$0xf]  ;;  %v7110_v33 = vld [vmem:[#allocation3 + $0x34] sm:$0xf]  ;;  %v16496_v42 = vcombine.low %v7105_v5, %v7106_v12 }
 0x2bb   : > { %v5653_v50 = vmax.f32 %v5621_v10, 0.0  ;;  %v5622_v26 = vadd.f32 %v16424_v37, %v5583_v46  ;;  %v7107_v53 = vld [vmem:[#allocation3 + $0x20] sm:$0xf]  ;;  %v16499_v8 = vcombine.low %v7109_v44, %v7110_v33  ;;  %v16501_v14 = vcombine.low %v7108_v0, %v7109_v44 }
 0x2bc   : > { %v5656_v32 = vmax.f32 %v5624_v43, 0.0  ;;  %v13058_v17 = vpop.f32.mrb[120].mxu0  ;;  %v16503_v15 = vcombine.low %v7110_v33, %v7110_v33  ;;  %v12271_v58 = vcombine.low %v7106_v12, %v7107_v53  ;;  %v16505_v46 = vcombine.low %v7107_v53, %v7107_v53 }
 0x2bd   : > { %v12507_v31 = vpack.c.bf16 %v5653_v50, %v5653_v50  ;;  %v5654_v21 = vmax.f32 %v5622_v26, 0.0  ;;  %v13059_v10 = vpop.f32.mrb[121].mxu0  ;;  %v7492_v43 = vrot.slane %v16499_v8, 5  ;;  %v7538_v9 = vshrl.u32 %v16496_v42, 16 }
 0x2be   : > { %v12575_v38 = vpack.c.bf16 %v5656_v32, %v5655_v18  ;;  %v16507_v5 = vadd.f32 %v13059_v10, %v13058_v17  ;;  %v13061_v25 = vpop.f32.mrb[122].mxu0  ;;  %v7489_v0 = vrot.slane %v12271_v58, 5  ;;  %v7314_v33 = vshrl.u32 %v12271_v58, 16 }
 0x2bf   : > { %5861 = vst [vmem:[#allocation3 + $0x44] sm:$0xf] %v12507_v31  ;;  %v12508_v48 = vpack.c.bf16 %v5654_v21, %v5654_v21  ;;  %v13062_v44 = vpop.f32.mrb[123].mxu0  ;;  %v7317_v7 = vshll.u32 %v12271_v58, 16  ;;  %v7494_v53 = vsel %vm872_vm0, %v7492_v43, %v7493_v34  ;;  %v7607_v32 = vshrl.u32 %v7492_v43, 16 }
 0x2c0   : > { %12688 = vst [vmem:[#allocation3 + $0x58] sm:$0xff] %v12575_v38   ;;  %v13672_v26 = vpop.f32.mrb[88].mxu1  ;;  %v16511_v50 = vadd.f32 %v13062_v44, %v13061_v25  ;;  %v7610_v17 = vshll.u32 %v7492_v43, 16  ;;  %v18188_v10 = vrot.slane %v16436_v41, 5  ;;  %v7564_v21 = vshrl.u32 %v7489_v0, 16 }
 0x2c1   : > { %5862 = vst [vmem:[#allocation3 + $0x48] sm:$0xf] %v12508_v48  ;;  %v13937_v18 = vadd.f32 %v16392_v51, %v13672_v26  ;;  %v5444_v12 = vpop.f32.mrb[89].mxu1  ;;  %v7567_v1 = vshll.u32 %v7489_v0, 16  ;;  %v7609_v44 = vrot.slane %v7607_v32, 3  ;;  %v7618_v4 = vshll.u32 %v7494_v53, 16 }
 0x2c2   : > { %v7491_v31 = vsel %vm872_vm0, %v7489_v0, %v18188_v10  ;;  %v13941_v58 = vadd.f32 %v16386_v13, %v5444_v12  ;;  %v13673_v38 = vpop.f32.mrb[90].mxu1  ;;  %v7566_v62 = vrot.slane %v7564_v21, 3 }
 0x2c3   : > { %v7572_v23 = vshrl.u32 %v7491_v31, 16  ;;  %v7575_v25 = vshll.u32 %v7491_v31, 16  ;;  %v5588_v34 = vmul.f32 %v13937_v18, %v16415_v36  ;;  %v13945_v43 = vadd.f32 %v16395_v55, %v13673_v38  ;;  %v5447_v48 = vpop.f32.mrb[91].mxu1 }
 0x2c4   : > { %v7569_v51 = vrot.slane %v7567_v1, 4  ;;  %v5586_v26 = vmul.f32 %v13941_v58, %v16415_v36  ;;  %v13949_v41 = vadd.f32 %v16389_v24, %v5447_v48  ;;  %v7612_v31 = vrot.slane %v7610_v17, 4 }
 0x2c5   : > { %v7574_v10 = vrot.slane %v7572_v23, 3  ;;  %v7577_v19 = vrot.slane %v7575_v25, 4  ;;  %v5627_v0 = vadd.f32 %v16424_v37, %v5588_v34  ;;  %v5589_v13 = vmul.f32 %v13945_v43, %v16415_v36 }
 0x2c6   : > { %v7570_v12 = vor.u32 %v7569_v51, %v7566_v62  ;;  %v5625_v32 = vadd.f32 %v16424_v37, %v5586_v26  ;;  %v5587_v18 = vmul.f32 %v13949_v41, %v16415_v36  ;;  %v7615_v38 = vshrl.u32 %v7494_v53, 16 }
 0x2c7   : > { %v7578_v55 = vor.u32 %v7577_v19, %v7574_v10  ;;  %v5659_v21 = vmax.f32 %v5627_v0, 0.0  ;;  %v5628_v1 = vadd.f32 %v16424_v37, %v5589_v13  ;;  %v7613_v58 = vor.u32 %v7612_v31, %v7609_v44 }
 0x2c8   : > { %v5657_v24 = vmax.f32 %v5625_v32, 0.0  ;;  %v5626_v23 = vadd.f32 %v16424_v37, %v5587_v18  ;;  %v7617_v34 = vrot.slane %v7615_v38, 3  ;;  %v7620_v62 = vrot.slane %v7618_v4, 4 }
 0x2c9   : > { %v7579_v25 = vsel %vm921_vm1, %v7570_v12, %v7578_v55  ;;  %v5660_v43 = vmax.f32 %v5628_v1, 0.0  ;;  %v7316_v17 = vrot.slane %v7314_v33, 4  ;;  %v7319_v48 = vrot.slane %v7317_v7, 5  ;;  %v14547_v7 = vld [vmem:[#allocation4 + $0x88] sm:$0xff]  }
 0x2ca   : > { %13710 = vmatprep.mubr.bf16.mxu1 %v7579_v25  ;;  %v12511_v51 = vpack.c.bf16 %v5657_v24, %v5657_v24  ;;  %v5658_v26 = vmax.f32 %v5626_v23, 0.0  ;;  %v13064_v19 = vpop.f32.mrb[124].mxu0  ;;  %v7540_v41 = vrot.slane %v7538_v9, 3  ;;  %v7541_v10 = vshll.u32 %v16496_v42, 16 }
 0x2cb   : > { %v12580_v0 = vpack.c.bf16 %v5660_v43, %v5659_v21  ;;  %v13065_v44 = vpop.f32.mrb[125].mxu0  ;;  %v7621_v53 = vor.u32 %v7620_v62, %v7617_v34  ;;  %v7320_v13 = vor.u32 %v7319_v48, %v7316_v17  ;;  %v7546_v31 = vshrl.u32 %v16505_v46, 16 }
 0x2cc   : > { %5865 = vst [vmem:[#allocation3 + $0x6c] sm:$0xf] %v12511_v51  ;;  %v12512_v12 = vpack.c.bf16 %v5658_v26, %v5658_v26  ;;  %v13066_v32 = vadd.f32 %v13065_v44, %v13064_v19  ;;  %v13067_v18 = vpop.f32.mrb[126].mxu0  ;;  %v7543_v55 = vrot.slane %v7541_v10, 4  ;;  %v7549_v4 = vshll.u32 %v16505_v46, 16 }
 0x2cd   : > { %12689 = vst [vmem:[#allocation3 + $0x80] sm:$0xff] %v12580_v0   ;;  %v13068_v33 = vpop.f32.mrb[127].mxu0  ;;  %v7622_v9 = vsel %vm921_vm1, %v7613_v58, %v7621_v53  ;;  %v7555_v38 = vshrl.u32 %v7320_v13, 16  ;;  %v7558_v42 = vshll.u32 %v7320_v13, 16  ;;  %v7548_v21 = vrot.slane %v7546_v31, 3  ;;  %v14540_v13 = vld [vmem:[#allocation4] sm:$0xff]  }
 0x2ce   : > { %5866 = vst [vmem:[#allocation3 + $0x70] sm:$0xf] %v12512_v12  ;;  %v13069_v24 = vadd.f32 %v13068_v33, %v13067_v18  ;;  %13711 = vmatmul.mubr.bf16.vlgmr.msra.gmra.mrb[96].mxu1 %v7622_v9  ;;  %v7544_v23 = vor.u32 %v7543_v55, %v7540_v41  ;;  %v7551_v25 = vrot.slane %v7549_v4, 4  ;;  %v7322_v34 = vshrl.u32 %v16499_v8, 16  ;;  %v14554_v12 = vld [vmem:[#allocation4 + $0x90] sm:$0xff]  }
 0x2cf   : > { %v13676_v1 = vpop.f32.mrb[92].mxu1  ;;  %v7557_v46 = vrot.slane %v7555_v38, 3  ;;  %v7560_v17 = vrot.slane %v7558_v42, 4  ;;  %v7325_v48 = vshll.u32 %v16499_v8, 16  ;;  %13743 = vmatpush3.bf16.msra.mxu1 %v16379_v16  ;;  %v16540_v10 = vadd.f32 %v16235_v22, %v13066_v32  ;;  %v16544_v8 = vld [vmem:[#allocation3 + $0x48] sm:$0xf] }
 0x2d0   : > { %v13953_v43 = vadd.f32 %v16404_v63, %v13676_v1  ;;  %v5460_v62 = vpop.f32.mrb[93].mxu1  ;;  %v7552_v26 = vor.u32 %v7551_v25, %v7548_v21  ;;  %v7324_v19 = vrot.slane %v7322_v34, 4  ;;  %13744 = vmatprep.subr.bf16.mxu1 %v14547_v7  ;;  %v16551_v22 = vadd.f32 %v16215_v56, %v16507_v5  ;;  %v14555_v32 = vld [vmem:[#allocation4 + $0x48] sm:$0xff]   ;;  %v16558_v33 = vld [vmem:[#allocation3 + $0x44] sm:$0xf] }
 0x2d1   : > { %v13957_v58 = vadd.f32 %v16398_v2, %v5460_v62  ;;  %v13677_v51 = vpop.f32.mrb[94].mxu1  ;;  %v7561_v44 = vor.u32 %v7560_v17, %v7557_v46  ;;  %v7327_v53 = vrot.slane %v7325_v48, 5  ;;  %v16556_v4 = vadd.f32 %v16237_v11, %v13069_v24  ;;  %v16562_v9 = vld [vmem:[#allocation3 + $0x5c] sm:$0xf] }
 0x2d2   : > { %v5592_v41 = vmul.f32 %v13953_v43, %v16415_v36  ;;  %v13961_v63 = vadd.f32 %v16407_v61, %v13677_v51  ;;  %v5463_v0 = vpop.f32.mrb[95].mxu1  ;;  %v7553_v31 = vsel %vm921_vm1, %v7544_v23, %v7552_v26  ;;  %v16568_v38 = vcombine.low %v16558_v33, %v16544_v8  ;;  %v14556_v23 = vld [vmem:[#allocation4 + $0x8] sm:$0xff]  }
 0x2d3   : > { %v5590_v16 = vmul.f32 %v13957_v58, %v16415_v36  ;;  %v13965_v2 = vadd.f32 %v16401_v30, %v5463_v0  ;;  %8498 = vmatprep.mubr.bf16.mxu0 %v7561_v44  ;;  %v7328_v55 = vor.u32 %v7327_v53, %v7324_v19  ;;  %v16560_v30 = vld [vmem:[#allocation3 + $0x58] sm:$0xf]  ;;  %v16572_v42 = vadd.f32 %v16227_v52, %v16511_v50  ;;  %v14563_v52 = vld [vmem:[#allocation4 + $0x98] sm:$0xff]  }
 0x2d4   : > { %v5631_v61 = vadd.f32 %v16424_v37, %v5592_v41  ;;  %v5593_v18 = vmul.f32 %v13961_v63, %v16415_v36  ;;  %8499 = vmatmul.mubr.bf16.vlgmr.msra.gmra.mrb[144].mxu0 %v7553_v31  ;;  %13745 = vmatpush3.bf16.msra.mxu1 %v14547_v7  ;;  %v7495_v43 = vrot.slane %v16568_v38, 5  ;;  %v16579_v62 = vcombine.low %v16560_v30, %v16562_v9  ;;  %v14571_v50 = vld [vmem:[#allocation4 + $0x50] sm:$0xff]  }
 0x2d5   : > { %v5629_v56 = vadd.f32 %v16424_v37, %v5590_v16  ;;  %v5591_v5 = vmul.f32 %v13965_v2, %v16415_v36  ;;  %v7598_v1 = vshrl.u32 %v7328_v55, 16  ;;  %v7601_v24 = vshll.u32 %v7328_v55, 16  ;;  %13255 = vmatpush3.bf16.msra.mxu0 %v14540_v13  ;;  %13746 = vmatprep.subr.bf16.mxu1 %v14554_v12  ;;  %v14572_v31 = vld [vmem:[#allocation4 + $0x10] sm:$0xff]  }
 0x2d6   : > { %v5663_v11 = vmax.f32 %v5631_v61, 0.0  ;;  %v5632_v21 = vadd.f32 %v16424_v37, %v5593_v18  ;;  %13256 = vmatprep.subr.bf16.mxu0 %v14555_v32  ;;  %v7581_v7 = vshrl.u32 %v16501_v14, 16  ;;  %v18189_v41 = vrot.slane %v16441_v39, 5  ;;  %v14570_v39 = vld [vmem:[#allocation4 + $0xa0] sm:$0xff]  }
 0x2d7   : > { %v5661_v25 = vmax.f32 %v5629_v56, 0.0  ;;  %v5630_v34 = vadd.f32 %v16424_v37, %v5591_v5  ;;  %v13070_v17 = vpop.f32.mrb[128].mxu0  ;;  %v7600_v48 = vrot.slane %v7598_v1, 3  ;;  %v7603_v58 = vrot.slane %v7601_v24, 4  ;;  %v14587_v5 = vld [vmem:[#allocation4 + $0x58] sm:$0xff]  }
 0x2d8   : > { %v5664_v46 = vmax.f32 %v5632_v21, 0.0  ;;  %v13071_v19 = vpop.f32.mrb[129].mxu0  ;;  %v7497_v63 = vsel %vm872_vm0, %v7495_v43, %v18189_v41  ;;  %v7650_v0 = vshrl.u32 %v7495_v43, 16  ;;  %v7653_v2 = vshll.u32 %v7495_v43, 16  ;;  %13747 = vmatpush3.bf16.msra.mxu1 %v14554_v12 }
 0x2d9   : > { %v12515_v51 = vpack.c.bf16 %v5661_v25, %v5661_v25  ;;  %v5662_v26 = vmax.f32 %v5630_v34, 0.0  ;;  %v16585_v53 = vadd.f32 %v13071_v19, %v13070_v17  ;;  %v13073_v13 = vpop.f32.mrb[130].mxu0  ;;  %v7604_v16 = vor.u32 %v7603_v58, %v7600_v48  ;;  %13257 = vmatpush3.bf16.msra.mxu0 %v14556_v23  ;;  %13748 = vmatprep.subr.bf16.mxu1 %v14563_v52 }
 0x2da   : > { %v12585_v44 = vpack.c.bf16 %v5664_v46, %v5663_v11  ;;  %v13074_v61 = vpop.f32.mrb[131].mxu0  ;;  %v7652_v18 = vrot.slane %v7650_v0, 3  ;;  %v7658_v55 = vshrl.u32 %v7497_v63, 16  ;;  %v7661_v56 = vshll.u32 %v7497_v63, 16  ;;  %13258 = vmatprep.subr.bf16.mxu0 %v14571_v50 }
 0x2db   : > { %5869 = vst [vmem:[#allocation3 + $0x94] sm:$0xf] %v12515_v51  ;;  %v12516_v32 = vpack.c.bf16 %v5662_v26, %v5662_v26  ;;  %v16587_v21 = vadd.f32 %v13074_v61, %v13073_v13  ;;  %8506 = vmatprep.mubr.bf16.mxu0 %v7604_v16  ;;  %v7655_v1 = vrot.slane %v7653_v2, 4  ;;  %v7498_v12 = vrot.slane %v16579_v62, 5  ;;  %v14606_v16 = vld [vmem:[#allocation4 + $0x60] sm:$0xff]  }
 0x2dc   : > { %12690 = vst [vmem:[#allocation3 + $0xa8] sm:$0xff] %v12585_v44   ;;  %v13680_v11 = vpop.f32.mrb[0].mxu1  ;;  %v16590_v24 = vrot.slane %v7581_v7, 3  ;;  %v7660_v34 = vrot.slane %v7658_v55, 3  ;;  %v7663_v43 = vrot.slane %v7661_v56, 4  ;;  %v7584_v46 = vshll.u32 %v16501_v14, 16  ;;  %13749 = vmatpush3.bf16.msra.mxu1 %v14563_v52 }
 0x2dd   : > { %5870 = vst [vmem:[#allocation3 + $0x98] sm:$0xf] %v12516_v32  ;;  %v13968_v23 = vadd.f32 %v16456_v27, %v13680_v11  ;;  %v5476_v25 = vpop.f32.mrb[1].mxu1  ;;  %v7656_v48 = vor.u32 %v7655_v1, %v7652_v18  ;;  %v18190_v58 = vrot.slane %v16443_v3, 5  ;;  %v7693_v26 = vshrl.u32 %v7498_v12, 16  ;;  %13259 = vmatpush3.bf16.msra.mxu0 %v14572_v31  ;;  %13750 = vmatprep.subr.bf16.mxu1 %v14570_v39  ;;  %v14579_v14 = vld [vmem:[#allocation4 + $0xa8] sm:$0xff]  }
 0x2de   : > { %v13971_v50 = vadd.f32 %v16410_v59, %v5476_v25  ;;  %v13681_v17 = vpop.f32.mrb[2].mxu1  ;;  %v7664_v41 = vor.u32 %v7663_v43, %v7660_v34  ;;  %v7696_v63 = vshll.u32 %v7498_v12, 16  ;;  %13260 = vmatprep.subr.bf16.mxu0 %v14587_v5  ;;  %v14588_v59 = vld [vmem:[#allocation4 + $0x18] sm:$0xff]   ;;  %v7586_v11 = vrot.slane %v7584_v46, 4  ;;  %v14586_v1 = vld [vmem:[#allocation4 + $0xb0] sm:$0xff]  }
 0x2df   : > { %v7500_v51 = vsel %vm872_vm0, %v7498_v12, %v18190_v58  ;;  %v5596_v7 = vmul.f32 %v13968_v23, %v16415_v36  ;;  %v13974_v27 = vadd.f32 %v16466_v29, %v13681_v17  ;;  %v5479_v19 = vpop.f32.mrb[3].mxu1  ;;  %v7695_v44 = vrot.slane %v7693_v26, 3  ;;  %v14607_v12 = vld [vmem:[#allocation4 + $0x20] sm:$0xff]   ;;  %v16613_v46 = vld [vmem:[#allocation3 + $0x80] sm:$0xf] }
 0x2e0   : > { %v5594_v0 = vmul.f32 %v13971_v50, %v16415_v36  ;;  %v13977_v3 = vadd.f32 %v16419_v49, %v5479_v19  ;;  %v7701_v13 = vshrl.u32 %v7500_v51, 16  ;;  %v7665_v29 = vsel %vm921_vm1, %v7656_v48, %v7664_v41  ;;  %13751 = vmatpush3.bf16.msra.mxu1 %v14570_v39 }
 0x2e1   : > { %v5635_v52 = vadd.f32 %v16424_v37, %v5596_v7  ;;  %v5597_v2 = vmul.f32 %v13974_v27, %v16415_v36  ;;  %v7698_v31 = vrot.slane %v7696_v63, 4  ;;  %13714 = vmatprep.mubr.bf16.mxu1 %v7665_v29  ;;  %v7704_v55 = vshll.u32 %v7500_v51, 16  ;;  %13752 = vmatprep.subr.bf16.mxu1 %v14579_v14  ;;  %v7111_v51 = vld [vmem:[#allocation3 + $0x40] sm:$0x8]  ;;  %v16615_v63 = vld [vmem:[#allocation3 + $0x70] sm:$0xf] }
 0x2e2   : > { %v5633_v32 = vadd.f32 %v16424_v37, %v5594_v0  ;;  %v5595_v61 = vmul.f32 %v13977_v3, %v16415_v36  ;;  %v7703_v18 = vrot.slane %v7701_v13, 3  ;;  %13261 = vmatpush3.bf16.msra.mxu0 %v14588_v59  ;;  %v7589_v43 = vshrl.u32 %v16503_v15, 16  ;;  %v16617_v13 = vld [vmem:[#allocation3 + $0x84] sm:$0xf] }
 0x2e3   : > { %v5667_v56 = vmax.f32 %v5635_v52, 0.0  ;;  %v5636_v49 = vadd.f32 %v16424_v37, %v5597_v2  ;;  %v7699_v5 = vor.u32 %v7698_v31, %v7695_v44  ;;  %v7706_v34 = vrot.slane %v7704_v55, 4  ;;  %13262 = vmatprep.subr.bf16.mxu0 %v14606_v16  ;;  %v16625_v31 = vld [vmem:[#allocation3 + $0x6c] sm:$0xf] }
 0x2e4   : > { %v5665_v23 = vmax.f32 %v5633_v32, 0.0  ;;  %v5634_v25 = vadd.f32 %v16424_v37, %v5595_v61  ;;  %v13076_v17 = vpop.f32.mrb[132].mxu0  ;;  %v7587_v39 = vor.u32 %v7586_v11, %v16590_v24  ;;  %v7592_v48 = vshll.u32 %v16503_v15, 16  ;;  %13753 = vmatpush3.bf16.msra.mxu1 %v14579_v14  ;;  %v14595_v15 = vld [vmem:[#allocation4 + $0xb8] sm:$0xff]  }
 0x2e5   : > { %v5668_v50 = vmax.f32 %v5636_v49, 0.0  ;;  %v7330_v58 = vshrl.u32 %v16568_v38, 16  ;;  %v13077_v27 = vpop.f32.mrb[133].mxu0  ;;  %v7707_v19 = vor.u32 %v7706_v34, %v7703_v18  ;;  %v7591_v41 = vrot.slane %v7589_v43, 3  ;;  %13754 = vmatprep.subr.bf16.mxu1 %v14586_v1 }
 0x2e6   : > { %v12519_v26 = vpack.c.bf16 %v5665_v23, %v5665_v23  ;;  %v5666_v7 = vmax.f32 %v5634_v25, 0.0  ;;  %v13078_v0 = vadd.f32 %v13077_v27, %v13076_v17  ;;  %v13079_v3 = vpop.f32.mrb[134].mxu0  ;;  %v7594_v44 = vrot.slane %v7592_v48, 4  ;;  %13263 = vmatpush3.bf16.msra.mxu0 %v14607_v12 }
 0x2e7   : > { %v12590_v59 = vpack.c.bf16 %v5668_v50, %v5667_v56  ;;  %v7332_v24 = vrot.slane %v7330_v58, 4  ;;  %v13080_v52 = vpop.f32.mrb[135].mxu0  ;;  %v7708_v2 = vsel %vm921_vm1, %v7699_v5, %v7707_v19  ;;  %v7333_v29 = vshll.u32 %v16568_v38, 16 }
 0x2e8   : > { %5873 = vst [vmem:[#allocation3 + $0xbc] sm:$0xf] %v12519_v26  ;;  %v12520_v16 = vpack.c.bf16 %v5666_v7, %v5666_v7  ;;  %v16623_v14 = vadd.f32 %v16245_v6, %v16585_v53  ;;  %v13081_v32 = vadd.f32 %v13080_v52, %v13079_v3  ;;  %13715 = vmatmul.mubr.bf16.gmra.mrb[100].mxu1 %v7708_v2  ;;  %v18191_v43 = vrot.slane %v16445_v54, 5 }
 0x2e9   : > { %12691 = vst [vmem:[#allocation3 + $0xd0] sm:$0xff] %v12590_v59   ;;  %v7595_v61 = vor.u32 %v7594_v44, %v7591_v41  ;;  %v16628_v18 = vadd.f32 %v16271_v28, %v13078_v0  ;;  %v16632_v55 = vcombine.low %v16625_v31, %v16615_v63  ;;  %v7335_v56 = vrot.slane %v7333_v29, 5  ;;  %13755 = vmatpush3.bf16.msra.mxu1 %v14586_v1 }
 0x2ea   : > { %5874 = vst [vmem:[#allocation3 + $0xc0] sm:$0xf] %v12520_v16  ;;  %v16636_v38 = vadd.f32 %v16261_v57, %v16587_v21  ;;  %v16640_v6 = vcombine.low %v16613_v46, %v16617_v13  ;;  %v16643_v53 = vcombine.low %v7111_v51, %v16558_v33  ;;  %v13684_v28 = vpop.f32.mrb[4].mxu1  ;;  %v16647_v5 = vadd.f32 %v16291_v35, %v13081_v32  ;;  %v14602_v21 = vld [vmem:[#allocation4 + $0x1c0] sm:$0xff]  }
 0x2eb   : > { %v7596_v49 = vsel %vm921_vm1, %v7587_v39, %v7595_v61  ;;  %v7501_v11 = vrot.slane %v16632_v55, 5  ;;  %v16652_v57 = vcombine.low %v16544_v8, %v16544_v8  ;;  %13756 = vmatprep.subr.bf16.mxu1 %v14595_v15  ;;  %v13980_v12 = vadd.f32 %v16540_v10, %v13684_v28  ;;  %v5492_v23 = vpop.f32.mrb[5].mxu1 }
 0x2ec   : > { %8507 = vmatmul.mubr.bf16.gmra.mrb[148].mxu0 %v7596_v49  ;;  %v7336_v33 = vor.u32 %v7335_v56, %v7332_v24  ;;  %v7504_v1 = vrot.slane %v16640_v6, 5  ;;  %v7624_v25 = vshrl.u32 %v16643_v53, 16  ;;  %v13983_v35 = vadd.f32 %v16551_v22, %v5492_v23  ;;  %v13685_v34 = vpop.f32.mrb[6].mxu1 }
 0x2ed   : > { %v7503_v50 = vsel %vm872_vm0, %v7501_v11, %v18191_v43  ;;  %v7736_v8 = vshrl.u32 %v7501_v11, 16  ;;  %v7739_v17 = vshll.u32 %v7501_v11, 16  ;;  %v5600_v39 = vmul.f32 %v13980_v12, %v16415_v36  ;;  %v5495_v48 = vpop.f32.mrb[7].mxu1  ;;  %13757 = vmatpush3.bf16.msra.mxu1 %v14595_v15 }
 0x2ee   : > { %v13986_v10 = vadd.f32 %v16556_v4, %v13685_v34  ;;  %v7641_v58 = vshrl.u32 %v7336_v33, 16  ;;  %v7644_v51 = vshll.u32 %v7336_v33, 16  ;;  %v5598_v26 = vmul.f32 %v13983_v35, %v16415_v36  ;;  %13390 = vmatprep.subr.bf16.mxu1 %v14602_v21 }
 0x2ef   : > { %v13989_v7 = vadd.f32 %v16572_v42, %v5495_v48  ;;  %v7738_v22 = vrot.slane %v7736_v8, 3  ;;  %v7741_v27 = vrot.slane %v7739_v17, 4  ;;  %v5639_v54 = vadd.f32 %v16424_v37, %v5600_v39 }
 0x2f0   : > { %v5601_v19 = vmul.f32 %v13986_v10, %v16415_v36  ;;  %v7643_v41 = vrot.slane %v7641_v58, 3  ;;  %v7646_v59 = vrot.slane %v7644_v51, 4  ;;  %v5637_v0 = vadd.f32 %v16424_v37, %v5598_v26 }
 0x2f1   : > { %v5599_v4 = vmul.f32 %v13989_v7, %v16415_v36  ;;  %v7742_v3 = vor.u32 %v7741_v27, %v7738_v22  ;;  %v7744_v44 = vshrl.u32 %v7503_v50, 16  ;;  %v5671_v24 = vmax.f32 %v5639_v54, 0.0 }
 0x2f2   : > { %v5640_v15 = vadd.f32 %v16424_v37, %v5601_v19  ;;  %v7647_v16 = vor.u32 %v7646_v59, %v7643_v41  ;;  %v7747_v42 = vshll.u32 %v7503_v50, 16  ;;  %v5669_v52 = vmax.f32 %v5637_v0, 0.0  ;;  %v13082_v29 = vpop.f32.mrb[136].mxu0 }
 0x2f3   : > { %v5638_v2 = vadd.f32 %v16424_v37, %v5599_v4  ;;  %v7746_v32 = vrot.slane %v7744_v44, 3  ;;  %v18192_v61 = vrot.slane %v16447_v40, 5  ;;  %v13083_v49 = vpop.f32.mrb[137].mxu0  ;;  %v7779_v21 = vshrl.u32 %v7504_v1, 16 }
 0x2f4   : > { %v5672_v28 = vmax.f32 %v5640_v15, 0.0  ;;  %8514 = vmatprep.mubr.bf16.mxu0 %v7647_v16  ;;  %v7749_v11 = vrot.slane %v7747_v42, 4  ;;  %v7782_v12 = vshll.u32 %v7504_v1, 16  ;;  %v12523_v23 = vpack.c.bf16 %v5669_v52, %v5669_v52  ;;  %v13085_v34 = vpop.f32.mrb[138].mxu0  ;;  %v14625_v16 = vld [vmem:[#allocation4 + $0x28] sm:$0xff]  }
 0x2f5   : > { %v7506_v56 = vsel %vm872_vm0, %v7504_v1, %v18192_v61  ;;  %v5670_v33 = vmax.f32 %v5638_v2, 0.0  ;;  %v13084_v35 = vadd.f32 %v13083_v49, %v13082_v29  ;;  %v13086_v17 = vpop.f32.mrb[139].mxu0  ;;  %v7781_v39 = vrot.slane %v7779_v21, 3  ;;  %v16690_v49 = vld [vmem:[#allocation3 + $0x98] sm:$0xf] }
 0x2f6   : > { %v7787_v43 = vshrl.u32 %v7506_v56, 16  ;;  %v12595_v50 = vpack.c.bf16 %v5672_v28, %v5671_v24  ;;  %v7750_v8 = vor.u32 %v7749_v11, %v7746_v32  ;;  %v7784_v10 = vrot.slane %v7782_v12, 4  ;;  %5877 = vst [vmem:[#allocation3 + $0xe4] sm:$0xf] %v12523_v23  ;;  %v16693_v23 = vld [vmem:[#allocation3 + $0xa8] sm:$0xf] }
 0x2f7   : > { %v12524_v40 = vpack.c.bf16 %v5670_v33, %v5670_v33  ;;  %v13688_v48 = vpop.f32.mrb[8].mxu1  ;;  %v13087_v58 = vadd.f32 %v13086_v17, %v13085_v34  ;;  %v7790_v26 = vshll.u32 %v7506_v56, 16  ;;  %v7626_v54 = vrot.slane %v7624_v25, 3  ;;  %v14624_v25 = vld [vmem:[#allocation4 + $0x68] sm:$0xff]   ;;  %v16695_v33 = vld [vmem:[#allocation3 + $0xac] sm:$0xf] }
 0x2f8   : > { %v7789_v51 = vrot.slane %v7787_v43, 3  ;;  %12692 = vst [vmem:[#allocation3 + $0xf8] sm:$0xff] %v12595_v50   ;;  %v13992_v7 = vadd.f32 %v16628_v18, %v13688_v48  ;;  %v5508_v1 = vpop.f32.mrb[9].mxu1  ;;  %v7751_v22 = vsel %vm921_vm1, %v7742_v3, %v7750_v8  ;;  %v7785_v27 = vor.u32 %v7784_v10, %v7781_v39  ;;  %13264 = vmatprep.subr.bf16.mxu0 %v14624_v25  ;;  %v16700_v8 = vld [vmem:[#allocation3 + $0x94] sm:$0xf] }
 0x2f9   : > { %5878 = vst [vmem:[#allocation3 + $0xe8] sm:$0xf] %v12524_v40  ;;  %v13995_v19 = vadd.f32 %v16623_v14, %v5508_v1  ;;  %v13689_v41 = vpop.f32.mrb[10].mxu1  ;;  %13718 = vmatprep.mubr.bf16.mxu1 %v7751_v22  ;;  %v7792_v59 = vrot.slane %v7790_v26, 4  ;;  %v7627_v0 = vshll.u32 %v16643_v53, 16  ;;  %v7632_v4 = vshrl.u32 %v16652_v57, 16  ;;  %13265 = vmatpush3.bf16.msra.mxu0 %v14625_v16 }
 0x2fa   : > { %v5604_v44 = vmul.f32 %v13992_v7, %v16415_v36  ;;  %v13998_v24 = vadd.f32 %v16647_v5, %v13689_v41  ;;  %v5511_v18 = vpop.f32.mrb[11].mxu1  ;;  %v7635_v15 = vshll.u32 %v16652_v57, 16  ;;  %v7338_v3 = vshrl.u32 %v16579_v62, 16  ;;  %v7114_v17 = vld [vmem:[#allocation3 + $0x54] sm:$0x8] }
 0x2fb   : > { %v5602_v14 = vmul.f32 %v13995_v19, %v16415_v36  ;;  %v14001_v42 = vadd.f32 %v16636_v38, %v5511_v18  ;;  %v7793_v52 = vor.u32 %v7792_v59, %v7789_v51  ;;  %v7629_v2 = vrot.slane %v7627_v0, 4 }
 0x2fc   : > { %v5643_v53 = vadd.f32 %v16424_v37, %v5604_v44  ;;  %v5605_v29 = vmul.f32 %v13998_v24, %v16415_v36  ;;  %v7634_v32 = vrot.slane %v7632_v4, 3  ;;  %v7637_v61 = vrot.slane %v7635_v15, 4 }
 0x2fd   : > { %v5641_v5 = vadd.f32 %v16424_v37, %v5602_v14  ;;  %v5603_v57 = vmul.f32 %v14001_v42, %v16415_v36  ;;  %v7794_v56 = vsel %vm921_vm1, %v7785_v27, %v7793_v52  ;;  %v7630_v28 = vor.u32 %v7629_v2, %v7626_v54 }
 0x2fe   : > { %v5675_v38 = vmax.f32 %v5643_v53, 0.0  ;;  %v5644_v11 = vadd.f32 %v16424_v37, %v5605_v29  ;;  %13719 = vmatmul.mubr.bf16.gmra.mrb[104].mxu1 %v7794_v56  ;;  %v7638_v21 = vor.u32 %v7637_v61, %v7634_v32  ;;  %v7340_v12 = vrot.slane %v7338_v3, 4 }
 0x2ff   : > { %v5673_v34 = vmax.f32 %v5641_v5, 0.0  ;;  %v5642_v43 = vadd.f32 %v16424_v37, %v5603_v57  ;;  %v7341_v36 = vshll.u32 %v16579_v62, 16  ;;  %v14006_v50 = vadd.f32 %v16305_v20, %v13084_v35 }
 0x300   : > { %v5676_v39 = vmax.f32 %v5644_v11, 0.0  ;;  %v7639_v10 = vsel %vm921_vm1, %v7630_v28, %v7638_v21  ;;  %v16705_v40 = vcombine.low %v16700_v8, %v16690_v49  ;;  %v14012_v48 = vadd.f32 %v16318_v47, %v13087_v58  ;;  %v18194_v28 = vld [vmem:[#allocation40_spill] sm:$0xff] }
 0x301   : > { %v12527_v51 = vpack.c.bf16 %v5673_v34, %v5673_v34  ;;  %v5674_v26 = vmax.f32 %v5642_v43, 0.0  ;;  %8515 = vmatmul.mubr.bf16.gmra.mrb[152].mxu0 %v7639_v10  ;;  %v7343_v37 = vrot.slane %v7341_v36, 5  ;;  %v16710_v62 = vcombine.low %v16693_v23, %v16695_v33  ;;  %v13088_v35 = vpop.f32.mrb[140].mxu0  ;;  %v18195_v43 = vld [vmem:[#allocation41_spill] sm:$0xff] }
 0x302   : > { %v12600_v20 = vpack.c.bf16 %v5676_v39, %v5675_v38  ;;  %v7507_v7 = vrot.slane %v16705_v40, 5  ;;  %v16714_v1 = vcombine.low %v7114_v17, %v16560_v30  ;;  %v16718_v22 = vcombine.low %v16562_v9, %v16562_v9  ;;  %v13089_v27 = vpop.f32.mrb[141].mxu0 }
 0x303   : > { %5881 = vst [vmem:[#allocation3 + $0x10c] sm:$0xf] %v12527_v51  ;;  %v12528_v47 = vpack.c.bf16 %v5674_v26, %v5674_v26  ;;  %v7344_v58 = vor.u32 %v7343_v37, %v7340_v12  ;;  %v7510_v54 = vrot.slane %v16710_v62, 5  ;;  %v7346_v19 = vshrl.u32 %v16632_v55, 16  ;;  %v13091_v59 = vpop.f32.mrb[142].mxu0 }
 0x304   : > { %12693 = vst [vmem:[#allocation3 + $0x120] sm:$0xff] %v12600_v20   ;;  %v13090_v41 = vadd.f32 %v13089_v27, %v13088_v35  ;;  %v18193_v0 = vrot.slane %v16449_v60, 5  ;;  %v7822_v4 = vshrl.u32 %v7507_v7, 16  ;;  %v7825_v44 = vshll.u32 %v7507_v7, 16  ;;  %v13692_v18 = vpop.f32.mrb[12].mxu1  ;;  %v13092_v25 = vpop.f32.mrb[143].mxu0 }
 0x305   : > { %5882 = vst [vmem:[#allocation3 + $0x110] sm:$0xf] %v12528_v47  ;;  %v7684_v9 = vshrl.u32 %v7344_v58, 16  ;;  %v7687_v24 = vshll.u32 %v7344_v58, 16  ;;  %v5524_v14 = vpop.f32.mrb[13].mxu1  ;;  %v13093_v2 = vadd.f32 %v13092_v25, %v13091_v59  ;;  %v18196_v36 = vrot.slane %v18195_v43, 5 }
 0x306   : > { %v7509_v30 = vsel %vm872_vm0, %v7507_v7, %v18193_v0  ;;  %v14003_v16 = vadd.f32 %v16339_v45, %v13090_v41  ;;  %v7824_v42 = vrot.slane %v7822_v4, 3  ;;  %v7827_v52 = vrot.slane %v7825_v44, 4  ;;  %v13693_v32 = vpop.f32.mrb[14].mxu1  ;;  %v14812_v45 = vld [vmem:[%s17967_s2] ss:$0 sm:$0xff] }
 0x307   : > { %v7830_v15 = vshrl.u32 %v7509_v30, 16  ;;  %v7833_v3 = vshll.u32 %v7509_v30, 16  ;;  %v7686_v53 = vrot.slane %v7684_v9, 3  ;;  %v7689_v29 = vrot.slane %v7687_v24, 4  ;;  %v5527_v11 = vpop.f32.mrb[15].mxu1  ;;  %v14642_v43 = vld [vmem:[#allocation4 + $0x70] sm:$0xff]  }
 0x308   : > { %v14007_v60 = vadd.f32 %v14006_v50, %v5524_v14  ;;  %v14004_v5 = vadd.f32 %v14003_v16, %v13692_v18  ;;  %v7828_v57 = vor.u32 %v7827_v52, %v7824_v42  ;;  %v14009_v38 = vadd.f32 %v18194_v28, %v13093_v2  ;;  %v14813_v26 = vld [vmem:[%s17968_s3] ss:$0 sm:$0xff]  ;;  %v16739_v25 = vld [vmem:[#allocation3 + $0xd0] sm:$0xf]  ;;  %v16741_v16 = vld [vmem:[#allocation3 + $0xd4] sm:$0xf]  ;;  %13266 = vmatprep.subr.bf16.mxu0 %v14642_v43 }
 0x309   : > { %v7832_v61 = vrot.slane %v7830_v15, 3  ;;  %v7835_v56 = vrot.slane %v7833_v3, 4  ;;  %v7690_v21 = vor.u32 %v7689_v29, %v7686_v53  ;;  %v14013_v34 = vadd.f32 %v14012_v48, %v5527_v11  ;;  %v16744_v53 = vld [vmem:[#allocation3 + $0xc0] sm:$0xf] }
 0x30a   : > { %v5606_v12 = vmul.f32 %v14812_v45, %v14007_v60  ;;  %v7512_v17 = vsel %vm872_vm0, %v7510_v54, %v18196_v36  ;;  %v5608_v50 = vmul.f32 %v14812_v45, %v14004_v5  ;;  %v14010_v10 = vadd.f32 %v14009_v38, %v13693_v32  ;;  %v16750_v38 = vld [vmem:[#allocation3 + $0xbc] sm:$0xf] }
 0x30b   : > { %v7836_v39 = vor.u32 %v7835_v56, %v7832_v61  ;;  %v7865_v51 = vshrl.u32 %v7510_v54, 16  ;;  %8522 = vmatprep.mubr.bf16.mxu0 %v7690_v21  ;;  %v5607_v20 = vmul.f32 %v14812_v45, %v14013_v34  ;;  %v7868_v35 = vshll.u32 %v7510_v54, 16  ;;  %v14643_v36 = vld [vmem:[#allocation4 + $0x30] sm:$0xff]  }
 0x30c   : > { %v5645_v37 = vadd.f32 %v14813_v26, %v5606_v12  ;;  %v7873_v7 = vshrl.u32 %v7512_v17, 16  ;;  %v5647_v47 = vadd.f32 %v14813_v26, %v5608_v50  ;;  %v5609_v58 = vmul.f32 %v14812_v45, %v14010_v10  ;;  %13267 = vmatpush3.bf16.msra.mxu0 %v14643_v36 }
 0x30d   : > { %v7837_v48 = vsel %vm921_vm1, %v7828_v57, %v7836_v39  ;;  %v7867_v27 = vrot.slane %v7865_v51, 3  ;;  %v5646_v59 = vadd.f32 %v14813_v26, %v5607_v20  ;;  %v7870_v0 = vrot.slane %v7868_v35, 4  ;;  %v18197_v35 = vld [vmem:[#allocation44_spill] sm:$0xff] }
 0x30e   : > { %v5677_v41 = vmax.f32 %v5645_v37, 0.0  ;;  %13722 = vmatprep.mubr.bf16.mxu1 %v7837_v48  ;;  %v7875_v30 = vrot.slane %v7873_v7, 3  ;;  %v5679_v4 = vmax.f32 %v5647_v47, 0.0  ;;  %v5648_v44 = vadd.f32 %v14813_v26, %v5609_v58 }
 0x30f   : > { %v7876_v9 = vshll.u32 %v7512_v17, 16  ;;  %v7667_v24 = vshrl.u32 %v16714_v1, 16  ;;  %v5678_v15 = vmax.f32 %v5646_v59, 0.0  ;;  %v7871_v3 = vor.u32 %v7870_v0, %v7867_v27 }
 0x310   : > { %v12531_v18 = vpack.c.bf16 %v5677_v41, %v5677_v41  ;;  %v7670_v54 = vshll.u32 %v16714_v1, 16  ;;  %v5680_v14 = vmax.f32 %v5648_v44, 0.0  ;;  %v7675_v2 = vshrl.u32 %v16718_v22, 16  ;;  %v7117_v1 = vld [vmem:[#allocation3 + $0x68] sm:$0x8] }
 0x311   : > { %v7878_v42 = vrot.slane %v7876_v9, 4  ;;  %v7669_v52 = vrot.slane %v7667_v24, 3  ;;  %v12532_v29 = vpack.c.bf16 %v5678_v15, %v5678_v15  ;;  %v7678_v32 = vshll.u32 %v16718_v22, 16 }
 0x312   : > { %5885 = vst [vmem:[#allocation3 + $0x134] sm:$0xf] %v12531_v18  ;;  %v7672_v60 = vrot.slane %v7670_v54, 4  ;;  %v7348_v61 = vrot.slane %v7346_v19, 4  ;;  %v12605_v5 = vpack.c.bf16 %v5680_v14, %v5679_v4  ;;  %v7677_v56 = vrot.slane %v7675_v2, 3  ;;  %v18199_v4 = vld [vmem:[#allocation45_spill] sm:$0xff] }
 0x313   : > { %v7879_v57 = vor.u32 %v7878_v42, %v7875_v30  ;;  %v7349_v28 = vshll.u32 %v16632_v55, 16  ;;  %5886 = vst [vmem:[#allocation3 + $0x138] sm:$0xf] %v12532_v29  ;;  %v7680_v21 = vrot.slane %v7678_v32, 4  ;;  %v16754_v45 = vcombine.low %v16750_v38, %v16744_v53  ;;  %v7120_v29 = vld [vmem:[#allocation3 + $0x7c] sm:$0x8] }
 0x314   : > { %v7673_v11 = vor.u32 %v7672_v60, %v7669_v52  ;;  %v16758_v22 = vcombine.low %v16739_v25, %v16741_v16  ;;  %12694 = vst [vmem:[#allocation3 + $0x148] sm:$0xff] %v12605_v5   ;;  %v12247_v34 = vcombine.low %v7117_v1, %v16625_v31  ;;  %v12248_v55 = vcombine.low %v16615_v63, %v16615_v63  ;;  %v16774_v5 = vld [vmem:[#allocation3 + $0xe8] sm:$0xf] }
 0x315   : > { %v7880_v19 = vsel %vm921_vm1, %v7871_v3, %v7879_v57  ;;  %v7351_v12 = vrot.slane %v7349_v28, 5  ;;  %v7681_v17 = vor.u32 %v7680_v21, %v7677_v56  ;;  %v7513_v50 = vrot.slane %v16754_v45, 5  ;;  %v16776_v57 = vld [vmem:[#allocation3 + $0xf8] sm:$0xf] }
 0x316   : > { %13723 = vmatmul.mubr.bf16.gmra.mrb[108].mxu1 %v7880_v19  ;;  %v7516_v39 = vrot.slane %v16758_v22, 5  ;;  %v7354_v10 = vshrl.u32 %v16640_v6, 16  ;;  %v7710_v26 = vshrl.u32 %v12247_v34, 16  ;;  %v7713_v37 = vshll.u32 %v12247_v34, 16  ;;  %v16778_v19 = vld [vmem:[#allocation3 + $0xfc] sm:$0xf] }
 0x317   : > { %v7352_v51 = vor.u32 %v7351_v12, %v7348_v61  ;;  %v7718_v20 = vshrl.u32 %v12248_v55, 16  ;;  %v7682_v31 = vsel %vm921_vm1, %v7673_v11, %v7681_v17  ;;  %v18198_v7 = vrot.slane %v18197_v35, 5  ;;  %v16781_v17 = vld [vmem:[#allocation3 + $0xe4] sm:$0xf] }
 0x318   : > { %v7908_v47 = vshrl.u32 %v7513_v50, 16  ;;  %v7911_v48 = vshll.u32 %v7513_v50, 16  ;;  %8523 = vmatmul.mubr.bf16.gmra.mrb[156].mxu0 %v7682_v31  ;;  %v18200_v44 = vrot.slane %v18199_v4, 5  ;;  %v7951_v24 = vshrl.u32 %v7516_v39, 16 }
 0x319   : > { %v7515_v63 = vsel %vm872_vm0, %v7513_v50, %v18198_v7  ;;  %v7727_v58 = vshrl.u32 %v7352_v51, 16  ;;  %v7730_v27 = vshll.u32 %v7352_v51, 16  ;;  %v7954_v52 = vshll.u32 %v7516_v39, 16 }
 0x31a   : > { %v7916_v41 = vshrl.u32 %v7515_v63, 16  ;;  %v7919_v59 = vshll.u32 %v7515_v63, 16  ;;  %v7910_v0 = vrot.slane %v7908_v47, 3  ;;  %v7913_v30 = vrot.slane %v7911_v48, 4 }
 0x31b   : > { %v7518_v9 = vsel %vm872_vm0, %v7516_v39, %v18200_v44  ;;  %v7729_v18 = vrot.slane %v7727_v58, 3  ;;  %v7732_v15 = vrot.slane %v7730_v27, 4  ;;  %v7953_v42 = vrot.slane %v7951_v24, 3 }
 0x31c   : > { %v7918_v3 = vrot.slane %v7916_v41, 3  ;;  %v7921_v54 = vrot.slane %v7919_v59, 4  ;;  %v7914_v14 = vor.u32 %v7913_v30, %v7910_v0  ;;  %v7959_v2 = vshrl.u32 %v7518_v9, 16  ;;  %v18201_v41 = vld [vmem:[#allocation46_spill] sm:$0xff] }
 0x31d   : > { %v7733_v60 = vor.u32 %v7732_v15, %v7729_v18  ;;  %v7962_v61 = vshll.u32 %v7518_v9, 16  ;;  %v7712_v1 = vrot.slane %v7710_v26, 3  ;;  %v7956_v56 = vrot.slane %v7954_v52, 4  ;;  %v18203_v9 = vld [vmem:[#allocation49_spill] sm:$0xff] }
 0x31e   : > { %v7922_v32 = vor.u32 %v7921_v54, %v7918_v3  ;;  %v7961_v28 = vrot.slane %v7959_v2, 3  ;;  %v7715_v11 = vrot.slane %v7713_v37, 4  ;;  %v7720_v21 = vrot.slane %v7718_v20, 3 }
 0x31f   : > { %8530 = vmatprep.mubr.bf16.mxu0 %v7733_v60  ;;  %v7964_v34 = vrot.slane %v7962_v61, 4  ;;  %v7721_v43 = vshll.u32 %v12248_v55, 16  ;;  %v7356_v36 = vrot.slane %v7354_v10, 4  ;;  %v7957_v50 = vor.u32 %v7956_v56, %v7953_v42  ;;  %v16806_v56 = vld [vmem:[#allocation3 + $0x120] sm:$0xf] }
 0x320   : > { %v7923_v12 = vsel %vm921_vm1, %v7914_v14, %v7922_v32  ;;  %v7716_v39 = vor.u32 %v7715_v11, %v7712_v1  ;;  %v7357_v51 = vshll.u32 %v16640_v6, 16  ;;  %v16786_v26 = vcombine.low %v16781_v17, %v16774_v5 }
 0x321   : > { %13726 = vmatprep.mubr.bf16.mxu1 %v7923_v12  ;;  %v7965_v37 = vor.u32 %v7964_v34, %v7961_v28  ;;  %v7723_v20 = vrot.slane %v7721_v43, 4  ;;  %v16790_v31 = vcombine.low %v16776_v57, %v16778_v19  ;;  %v12249_v55 = vcombine.low %v7120_v29, %v16613_v46  ;;  %v16808_v34 = vld [vmem:[#allocation3 + $0x124] sm:$0xf] }
 0x322   : > { %v7359_v10 = vrot.slane %v7357_v51, 5  ;;  %v7519_v35 = vrot.slane %v16786_v26, 5  ;;  %v12250_v7 = vcombine.low %v16617_v13, %v16617_v13  ;;  %v7362_v6 = vshrl.u32 %v16705_v40, 16  ;;  %v16810_v51 = vld [vmem:[#allocation3 + $0x110] sm:$0xf] }
 0x323   : > { %v7966_v63 = vsel %vm921_vm1, %v7957_v50, %v7965_v37  ;;  %v7724_v47 = vor.u32 %v7723_v20, %v7720_v21  ;;  %v7522_v48 = vrot.slane %v16790_v31, 5  ;;  %v7753_v58 = vshrl.u32 %v12249_v55, 16 }
 0x324   : > { %13727 = vmatmul.mubr.bf16.gmra.mrb[112].mxu1 %v7966_v63  ;;  %v7360_v27 = vor.u32 %v7359_v10, %v7356_v36  ;;  %v18202_v59 = vrot.slane %v18201_v41, 5  ;;  %v7994_v0 = vshrl.u32 %v7519_v35, 16  ;;  %v7997_v30 = vshll.u32 %v7519_v35, 16  ;;  %v7123_v63 = vld [vmem:[#allocation3 + $0x90] sm:$0x8] }
 0x325   : > { %v7725_v4 = vsel %vm921_vm1, %v7716_v39, %v7724_v47  ;;  %v18204_v24 = vrot.slane %v18203_v9, 5  ;;  %v8037_v2 = vshrl.u32 %v7522_v48, 16  ;;  %v8040_v29 = vshll.u32 %v7522_v48, 16 }
 0x326   : > { %v7521_v46 = vsel %vm872_vm0, %v7519_v35, %v18202_v59  ;;  %8531 = vmatmul.mubr.bf16.gmra.mrb[160].mxu0 %v7725_v4  ;;  %v7770_v15 = vshrl.u32 %v7360_v27, 16  ;;  %v7773_v3 = vshll.u32 %v7360_v27, 16  ;;  %v7996_v54 = vrot.slane %v7994_v0, 3  ;;  %v16814_v59 = vld [vmem:[#allocation3 + $0x10c] sm:$0xf] }
 0x327   : > { %v8002_v44 = vshrl.u32 %v7521_v46, 16  ;;  %v8005_v13 = vshll.u32 %v7521_v46, 16  ;;  %v7524_v18 = vsel %vm872_vm0, %v7522_v48, %v18204_v24  ;;  %v7999_v14 = vrot.slane %v7997_v30, 4 }
 0x328   : > { %v7772_v60 = vrot.slane %v7770_v15, 3  ;;  %v7775_v32 = vrot.slane %v7773_v3, 4  ;;  %v8045_v1 = vshrl.u32 %v7524_v18, 16  ;;  %v8039_v11 = vrot.slane %v8037_v2, 3  ;;  %v18207_v2 = vld [vmem:[#allocation47_spill] sm:$0xff] }
 0x329   : > { %v8004_v42 = vrot.slane %v8002_v44, 3  ;;  %v8007_v52 = vrot.slane %v8005_v13, 4  ;;  %v8000_v61 = vor.u32 %v7999_v14, %v7996_v54  ;;  %v8042_v21 = vrot.slane %v8040_v29, 4  ;;  %v18205_v54 = vld [vmem:[#allocation50_spill] sm:$0xff] }
 0x32a   : > { %v8048_v12 = vshll.u32 %v7524_v18, 16  ;;  %v7776_v43 = vor.u32 %v7775_v32, %v7772_v60  ;;  %v8047_v36 = vrot.slane %v8045_v1, 3  ;;  %v7755_v50 = vrot.slane %v7753_v58, 3  ;;  %v14666_v32 = vld [vmem:[#allocation4 + $0x78] sm:$0xff]  }
 0x32b   : > { %v8008_v28 = vor.u32 %v8007_v52, %v8004_v42  ;;  %v7756_v39 = vshll.u32 %v12249_v55, 16  ;;  %v8043_v20 = vor.u32 %v8042_v21, %v8039_v11  ;;  %v7761_v35 = vshrl.u32 %v12250_v7, 16  ;;  %13268 = vmatprep.subr.bf16.mxu0 %v14666_v32 }
 0x32c   : > { %v8050_v10 = vrot.slane %v8048_v12, 4  ;;  %8538 = vmatprep.mubr.bf16.mxu0 %v7776_v43  ;;  %v7764_v48 = vshll.u32 %v12250_v7, 16  ;;  %v7364_v27 = vrot.slane %v7362_v6, 4  ;;  %v7365_v41 = vshll.u32 %v16705_v40, 16 }
 0x32d   : > { %v8009_v37 = vsel %vm921_vm1, %v8000_v61, %v8008_v28  ;;  %v7758_v47 = vrot.slane %v7756_v39, 4  ;;  %v7763_v58 = vrot.slane %v7761_v35, 3  ;;  %v16818_v55 = vcombine.low %v16814_v59, %v16810_v51  ;;  %v14667_v61 = vld [vmem:[#allocation4 + $0x38] sm:$0xff]  }
 0x32e   : > { %13730 = vmatprep.mubr.bf16.mxu1 %v8009_v37  ;;  %v8051_v46 = vor.u32 %v8050_v10, %v8047_v36  ;;  %v16822_v0 = vcombine.low %v16806_v56, %v16808_v34  ;;  %v7766_v4 = vrot.slane %v7764_v48, 4  ;;  %v7367_v44 = vrot.slane %v7365_v41, 5  ;;  %13269 = vmatpush3.bf16.msra.mxu0 %v14667_v61 }
 0x32f   : > { %v7759_v30 = vor.u32 %v7758_v47, %v7755_v50  ;;  %v12251_v7 = vcombine.low %v7123_v63, %v16700_v8  ;;  %v7525_v40 = vrot.slane %v16818_v55, 5  ;;  %v12252_v9 = vcombine.low %v16690_v49, %v16690_v49 }
 0x330   : > { %v8052_v6 = vsel %vm921_vm1, %v8043_v20, %v8051_v46  ;;  %v7528_v13 = vrot.slane %v16822_v0, 5  ;;  %v7767_v24 = vor.u32 %v7766_v4, %v7763_v58  ;;  %v7368_v18 = vor.u32 %v7367_v44, %v7364_v27  ;;  %v14590_v58 = vld [vmem:[#allocation3 + $0x13c] ss:$0 sps:$4 sm:$0x11]  }
 0x331   : > { %13731 = vmatmul.mubr.bf16.gmra.mrb[116].mxu1 %v8052_v6  ;;  %v7796_v15 = vshrl.u32 %v12251_v7, 16  ;;  %v7799_v3 = vshll.u32 %v12251_v7, 16  ;;  %v18206_v14 = vrot.slane %v18205_v54, 5  ;;  %v8080_v52 = vshrl.u32 %v7525_v40, 16  ;;  %v16837_v6 = vld [vmem:[#allocation3 + $0x138] sm:$0xf] }
 0x332   : > { %v8083_v8 = vshll.u32 %v7525_v40, 16  ;;  %v18208_v29 = vrot.slane %v18207_v2, 5  ;;  %v7768_v1 = vsel %vm921_vm1, %v7759_v30, %v7767_v24  ;;  %v7813_v49 = vshrl.u32 %v7368_v18, 16  ;;  %v7126_v54 = vld [vmem:[#allocation3 + $0xa4] sm:$0x8] }
 0x333   : > { %v7527_v42 = vsel %vm872_vm0, %v7525_v40, %v18206_v14  ;;  %v7816_v28 = vshll.u32 %v7368_v18, 16  ;;  %8539 = vmatmul.mubr.bf16.gmra.mrb[164].mxu0 %v7768_v1  ;;  %v8082_v21 = vrot.slane %v8080_v52, 3  ;;  %v8123_v36 = vshrl.u32 %v7528_v13, 16 }
 0x334   : > { %v7530_v60 = vsel %vm872_vm0, %v7528_v13, %v18208_v29  ;;  %v8088_v11 = vshrl.u32 %v7527_v42, 16  ;;  %v8085_v12 = vrot.slane %v8083_v8, 4  ;;  %v8091_v43 = vshll.u32 %v7527_v42, 16  ;;  %v16842_v8 = vld [vmem:[#allocation3 + $0x134] sm:$0xf] }
 0x335   : > { %v7815_v50 = vrot.slane %v7813_v49, 3  ;;  %v7818_v39 = vrot.slane %v7816_v28, 4  ;;  %v8126_v20 = vshll.u32 %v7528_v13, 16  ;;  %v8125_v63 = vrot.slane %v8123_v36, 3 }
 0x336   : > { %v8090_v37 = vrot.slane %v8088_v11, 3  ;;  %v8086_v10 = vor.u32 %v8085_v12, %v8082_v21  ;;  %v8093_v35 = vrot.slane %v8091_v43, 4  ;;  %v8131_v47 = vshrl.u32 %v7530_v60, 16 }
 0x337   : > { %v7819_v48 = vor.u32 %v7818_v39, %v7815_v50  ;;  %v8128_v27 = vrot.slane %v8126_v20, 4  ;;  %v8134_v41 = vshll.u32 %v7530_v60, 16  ;;  %v7798_v46 = vrot.slane %v7796_v15, 3  ;;  %v14594_v20 = vld [vmem:[#allocation3 + $0x150] ss:$0 sps:$4 sm:$0x11]  }
 0x338   : > { %v8094_v30 = vor.u32 %v8093_v35, %v8090_v37  ;;  %v8133_v4 = vrot.slane %v8131_v47, 3  ;;  %v7801_v44 = vrot.slane %v7799_v3, 4  ;;  %v7804_v7 = vshrl.u32 %v12252_v9, 16  ;;  %v7129_v47 = vld [vmem:[#allocation3 + $0xb8] sm:$0x8] }
 0x339   : > { %8546 = vmatprep.mubr.bf16.mxu0 %v7819_v48  ;;  %v8129_v40 = vor.u32 %v8128_v27, %v8125_v63  ;;  %v8136_v24 = vrot.slane %v8134_v41, 4  ;;  %v7807_v13 = vshll.u32 %v12252_v9, 16  ;;  %v7370_v18 = vshrl.u32 %v16710_v62, 16 }
 0x33a   : > { %v8095_v14 = vsel %vm921_vm1, %v8086_v10, %v8094_v30  ;;  %v7802_v42 = vor.u32 %v7801_v44, %v7798_v46  ;;  %v7806_v52 = vrot.slane %v7804_v7, 3  ;;  %v7373_v15 = vshll.u32 %v16710_v62, 16 }
 0x33b   : > { %13734 = vmatprep.mubr.bf16.mxu1 %v8095_v14  ;;  %v8137_v3 = vor.u32 %v8136_v24, %v8133_v4  ;;  %v7809_v2 = vrot.slane %v7807_v13, 4  ;;  %v7372_v29 = vrot.slane %v7370_v18, 4  ;;  %v16846_v60 = vcombine.low %v16842_v8, %v16837_v6  ;;  %v5890_v14 = vld [vmem:[#allocation3 + $0x8] sm:$0xf] }
 0x33c   : > { %v7375_v9 = vrot.slane %v7373_v15, 5  ;;  %v7532_v32 = vrot.slane %v14590_v58, 5  ;;  %v12253_v61 = vcombine.low %v7126_v54, %v16693_v23  ;;  %v12254_v1 = vcombine.low %v16695_v33, %v16695_v33  ;;  %v7151_v58 = vld [vmem:[#allocation3 + $0x148] sm:$0xf] }
 0x33d   : > { %v8138_v49 = vsel %vm921_vm1, %v8129_v40, %v8137_v3  ;;  %v7810_v62 = vor.u32 %v7809_v2, %v7806_v52  ;;  %v7531_v28 = vrot.slane %v16846_v60, 5  ;;  %v7378_v11 = vshrl.u32 %v16754_v45, 16  ;;  %v7152_v40 = vld [vmem:[#allocation3 + $0x14c] sm:$0xf] }
 0x33e   : > { %13735 = vmatmul.mubr.bf16.gmra.mrb[120].mxu1 %v8138_v49  ;;  %v7376_v21 = vor.u32 %v7375_v9, %v7372_v29  ;;  %v7839_v12 = vshrl.u32 %v12253_v61, 16  ;;  %v7842_v43 = vshll.u32 %v12253_v61, 16  ;;  %v7847_v36 = vshrl.u32 %v12254_v1, 16 }
 0x33f   : > { %v7811_v50 = vsel %vm921_vm1, %v7802_v42, %v7810_v62  ;;  %v7533_v39 = vsel %vm872_vm0, %v7531_v28, %v7532_v32  ;;  %v8166_v23 = vshrl.u32 %v7531_v28, 16  ;;  %v8169_v37 = vshll.u32 %v7531_v28, 16  ;;  %v5891_v42 = vld [vmem:[#allocation3 + $0xc] sm:$0xf] }
 0x340   : > { %8547 = vmatmul.mubr.bf16.gmra.mrb[168].mxu0 %v7811_v50  ;;  %v7856_v33 = vshrl.u32 %v7376_v21, 16  ;;  %v7859_v10 = vshll.u32 %v7376_v21, 16  ;;  %v8174_v35 = vshrl.u32 %v7533_v39, 16  ;;  %v8177_v63 = vshll.u32 %v7533_v39, 16 }
 0x341   : > { %v8168_v48 = vrot.slane %v8166_v23, 3  ;;  %v8171_v27 = vrot.slane %v8169_v37, 4  ;;  %v7841_v41 = vrot.slane %v7839_v12, 3  ;;  %v7844_v46 = vrot.slane %v7842_v43, 4 }
 0x342   : > { %v7858_v30 = vrot.slane %v7856_v33, 3  ;;  %v7861_v4 = vrot.slane %v7859_v10, 4  ;;  %v8176_v44 = vrot.slane %v8174_v35, 3  ;;  %v8179_v7 = vrot.slane %v8177_v63, 4 }
 0x343   : > { %v8172_v24 = vor.u32 %v8171_v27, %v8168_v48  ;;  %v7845_v13 = vor.u32 %v7844_v46, %v7841_v41  ;;  %v7849_v18 = vrot.slane %v7847_v36, 3  ;;  %v7850_v54 = vshll.u32 %v12254_v1, 16 }
 0x344   : > { %v7862_v52 = vor.u32 %v7861_v4, %v7858_v30  ;;  %v8180_v15 = vor.u32 %v8179_v7, %v8176_v44  ;;  %v7380_v3 = vrot.slane %v7378_v11, 4  ;;  %v7381_v2 = vshll.u32 %v16754_v45, 16  ;;  %v14683_v44 = vld [vmem:[%s17972_s7] sm:$0xff]  }
 0x345   : > { %v7852_v29 = vrot.slane %v7850_v54, 4  ;;  %v16857_v9 = vcombine.low %v7151_v58, %v7152_v40  ;;  %v7535_v32 = vrot.slane %v14594_v20, 5  ;;  %v12255_v61 = vcombine.low %v7129_v47, %v16750_v38  ;;  %13838 = vmatprep.subr.bf16.mxu0 %v14683_v44 }
 0x346   : > { %8554 = vmatprep.mubr.bf16.mxu0 %v7862_v52  ;;  %v8181_v49 = vsel %vm921_vm1, %v8172_v24, %v8180_v15  ;;  %v7383_v62 = vrot.slane %v7381_v2, 5  ;;  %v12256_v1 = vcombine.low %v16744_v53, %v16744_v53  ;;  %v16863_v28 = vcombine.low %v5890_v14, %v5891_v42  ;;  %v14599_v53 = vld [vmem:[#allocation3 + $0x10] ss:$0 sps:$4 sm:$0x11]  }
 0x347   : > { %13738 = vmatprep.mubr.bf16.mxu1 %v8181_v49  ;;  %v7853_v21 = vor.u32 %v7852_v29, %v7849_v18  ;;  %v7534_v11 = vrot.slane %v16857_v9, 5  ;;  %v7882_v45 = vshrl.u32 %v12255_v61, 16  ;;  %v7885_v12 = vshll.u32 %v12255_v61, 16  ;;  %v5894_v18 = vld [vmem:[#allocation3 + $0x20] sm:$0xf] }
 0x348   : > { %v7384_v43 = vor.u32 %v7383_v62, %v7380_v3  ;;  %v7890_v36 = vshrl.u32 %v12256_v1, 16  ;;  %v7893_v50 = vshll.u32 %v12256_v1, 16  ;;  %v6273_v38 = vrot.slane %v16863_v28, 5  ;;  %v14601_v15 = vld [vmem:[#allocation3 + $0x24] ss:$0 sps:$4 sm:$0x11]  }
 0x349   : > { %v7854_v39 = vsel %vm921_vm1, %v7845_v13, %v7853_v21  ;;  %v7536_v23 = vsel %vm872_vm0, %v7534_v11, %v7535_v32  ;;  %v8209_v37 = vshrl.u32 %v7534_v11, 16  ;;  %v8212_v20 = vshll.u32 %v7534_v11, 16  ;;  %v5893_v61 = vld [vmem:[#allocation3 + $0x1c] sm:$0xf]  ;;  %v5896_v11 = vld [vmem:[#allocation3 + $0x30] sm:$0xf] }
 0x34a   : > { %8555 = vmatmul.mubr.bf16.gmra.mrb[172].mxu0 %v7854_v39  ;;  %v7899_v33 = vshrl.u32 %v7384_v43, 16  ;;  %v7902_v10 = vshll.u32 %v7384_v43, 16  ;;  %v8217_v35 = vshrl.u32 %v7536_v23, 16  ;;  %v8220_v63 = vshll.u32 %v7536_v23, 16 }
 0x34b   : > { %v8211_v47 = vrot.slane %v8209_v37, 3  ;;  %v8214_v48 = vrot.slane %v8212_v20, 4  ;;  %v7884_v27 = vrot.slane %v7882_v45, 3  ;;  %v7887_v41 = vrot.slane %v7885_v12, 4  ;;  %v5897_v45 = vld [vmem:[#allocation3 + $0x34] sm:$0xf] }
 0x34c   : > { %v7901_v46 = vrot.slane %v7899_v33, 3  ;;  %v7904_v58 = vrot.slane %v7902_v10, 4  ;;  %v8219_v30 = vrot.slane %v8217_v35, 3  ;;  %v8222_v4 = vrot.slane %v8220_v63, 4 }
 0x34d   : > { %v8215_v7 = vor.u32 %v8214_v48, %v8211_v47  ;;  %v7888_v40 = vor.u32 %v7887_v41, %v7884_v27  ;;  %v7892_v24 = vrot.slane %v7890_v36, 3  ;;  %v7895_v13 = vrot.slane %v7893_v50, 4  ;;  %v14604_v10 = vld [vmem:[#allocation3 + $0x38] ss:$0 sps:$4 sm:$0x11]  }
 0x34e   : > { %v7905_v54 = vor.u32 %v7904_v58, %v7901_v46  ;;  %v8223_v14 = vor.u32 %v8222_v4, %v8219_v30  ;;  %v6274_v42 = vrot.slane %v14599_v53, 5  ;;  %v6348_v52 = vshrl.u32 %v6273_v38, 16 }
 0x34f   : > { %v7896_v3 = vor.u32 %v7895_v13, %v7892_v24  ;;  %v6351_v2 = vshll.u32 %v6273_v38, 16  ;;  %v7386_v29 = vshrl.u32 %v16758_v22, 16  ;;  %v7389_v32 = vshll.u32 %v16758_v22, 16 }
 0x350   : > { %8562 = vmatprep.mubr.bf16.mxu0 %v7905_v54  ;;  %v8224_v49 = vsel %vm921_vm1, %v8215_v7, %v8223_v14  ;;  %v6275_v62 = vsel %vm872_vm0, %v6273_v38, %v6274_v42  ;;  %v6350_v1 = vrot.slane %v6348_v52, 3  ;;  %v16876_v21 = vcombine.low %v5893_v61, %v5894_v18 }
 0x351   : > { %13739 = vmatmul.mubr.bf16.gmra.mrb[124].mxu1 %v8224_v49  ;;  %v7897_v12 = vsel %vm921_vm1, %v7888_v40, %v7896_v3  ;;  %v6353_v43 = vrot.slane %v6351_v2, 4  ;;  %v6356_v36 = vshrl.u32 %v6275_v62, 16  ;;  %v6359_v50 = vshll.u32 %v6275_v62, 16  ;;  %v7132_v40 = vld [vmem:[#allocation3 + $0xcc] sm:$0x8] }
 0x352   : > { %8563 = vmatmul.mubr.bf16.gmra.mrb[176].mxu0 %v7897_v12  ;;  %v7388_v39 = vrot.slane %v7386_v29, 4  ;;  %v7391_v22 = vrot.slane %v7389_v32, 5  ;;  %v6276_v23 = vrot.slane %v16876_v21, 5  ;;  %v6277_v37 = vrot.slane %v14601_v15, 5  ;;  %v14605_v32 = vld [vmem:[#allocation4 + $0x180] sm:$0xff]  }
 0x353   : > { %v6354_v20 = vor.u32 %v6353_v43, %v6350_v1  ;;  %v6358_v53 = vrot.slane %v6356_v36, 3  ;;  %v6361_v38 = vrot.slane %v6359_v50, 4  ;;  %v16880_v33 = vcombine.low %v5896_v11, %v5897_v45  ;;  %v14611_v49 = vld [vmem:[#allocation3 + $0x4c] ss:$0 sps:$4 sm:$0x11]   ;;  %v14612_v43 = vld [vmem:[#allocation4 + $0x1c8] sm:$0xff]  }
 0x354   : > { %v7392_v35 = vor.u32 %v7391_v22, %v7388_v39  ;;  %v6278_v63 = vsel %vm872_vm0, %v6276_v23, %v6277_v37  ;;  %v6391_v47 = vshrl.u32 %v6276_v23, 16  ;;  %v6394_v48 = vshll.u32 %v6276_v23, 16  ;;  %v5900_v12 = vld [vmem:[#allocation3 + $0x48] sm:$0xf] }
 0x355   : > { %v6362_v27 = vor.u32 %v6361_v38, %v6358_v53  ;;  %v6399_v41 = vshrl.u32 %v6278_v63, 16  ;;  %v6402_v46 = vshll.u32 %v6278_v63, 16  ;;  %v6279_v58 = vrot.slane %v16880_v33, 5  ;;  %v14614_v23 = vld [vmem:[#allocation3 + $0x60] ss:$0 sps:$4 sm:$0x11]  }
 0x356   : > { %v7942_v30 = vshrl.u32 %v7392_v35, 16  ;;  %v7945_v4 = vshll.u32 %v7392_v35, 16  ;;  %v6393_v44 = vrot.slane %v6391_v47, 3  ;;  %v6396_v7 = vrot.slane %v6394_v48, 4  ;;  %v5899_v38 = vld [vmem:[#allocation3 + $0x44] sm:$0xf] }
 0x357   : > { %v6363_v24 = vsel %vm921_vm1, %v6354_v20, %v6362_v27  ;;  %v6401_v13 = vrot.slane %v6399_v41, 3  ;;  %v6404_v18 = vrot.slane %v6402_v46, 4  ;;  %v6280_v54 = vrot.slane %v14604_v10, 5  ;;  %v5902_v10 = vld [vmem:[#allocation3 + $0x58] sm:$0xf]  ;;  %v14615_v41 = vld [vmem:[#allocation4 + $0x188] sm:$0xff]  }
 0x358   : > { %13758 = vmatprep.mubr.bf16.mxu1 %v6363_v24  ;;  %v7944_v14 = vrot.slane %v7942_v30, 3  ;;  %v7947_v42 = vrot.slane %v7945_v4, 4  ;;  %v6397_v52 = vor.u32 %v6396_v7, %v6393_v44  ;;  %v6434_v15 = vshrl.u32 %v6279_v58, 16  ;;  %v5903_v27 = vld [vmem:[#allocation3 + $0x5c] sm:$0xf] }
 0x359   : > { %v6405_v3 = vor.u32 %v6404_v18, %v6401_v13  ;;  %v6281_v2 = vsel %vm872_vm0, %v6279_v58, %v6280_v54  ;;  %v6437_v29 = vshll.u32 %v6279_v58, 16  ;;  %v12257_v61 = vcombine.low %v7132_v40, %v16739_v25  ;;  %v7135_v4 = vld [vmem:[#allocation3 + $0xe0] sm:$0x8]  ;;  %v14620_v44 = vld [vmem:[#allocation4 + $0x1d0] sm:$0xff]  }
 0x35a   : > { %v7948_v62 = vor.u32 %v7947_v42, %v7944_v14  ;;  %v6436_v1 = vrot.slane %v6434_v15, 3  ;;  %v6442_v11 = vshrl.u32 %v6281_v2, 16  ;;  %v6445_v45 = vshll.u32 %v6281_v2, 16  ;;  %v14623_v2 = vld [vmem:[#allocation4 + $0x190] sm:$0xff]  }
 0x35b   : > { %v6406_v36 = vsel %vm921_vm1, %v6397_v52, %v6405_v3  ;;  %v6439_v50 = vrot.slane %v6437_v29, 4  ;;  %v12258_v39 = vcombine.low %v16741_v16, %v16741_v16  ;;  %v7925_v22 = vshrl.u32 %v12257_v61, 16 }
 0x35c   : > { %8570 = vmatprep.mubr.bf16.mxu0 %v7948_v62  ;;  %13759 = vmatmul.mubr.bf16.vlgmr.msra.gmra.mrb[96].mxu1 %v6406_v36  ;;  %v6444_v37 = vrot.slane %v6442_v11, 3  ;;  %v6447_v20 = vrot.slane %v6445_v45, 4  ;;  %v7928_v25 = vshll.u32 %v12257_v61, 16  ;;  %v7394_v53 = vshrl.u32 %v16786_v26, 16  ;;  %v14630_v62 = vld [vmem:[#allocation4 + $0x1d8] sm:$0xff]  }
 0x35d   : > { %v6440_v35 = vor.u32 %v6439_v50, %v6436_v1  ;;  %13391 = vmatpush3.bf16.msra.mxu1 %v14605_v32  ;;  %v7927_v63 = vrot.slane %v7925_v22, 3  ;;  %v7933_v47 = vshrl.u32 %v12258_v39, 16  ;;  %v7936_v48 = vshll.u32 %v12258_v39, 16 }
 0x35e   : > { %v6448_v46 = vor.u32 %v6447_v20, %v6444_v37  ;;  %v7930_v16 = vrot.slane %v7928_v25, 4  ;;  %v7396_v58 = vrot.slane %v7394_v53, 4  ;;  %v7397_v30 = vshll.u32 %v16786_v26, 16  ;;  %13392 = vmatprep.subr.bf16.mxu1 %v14612_v43  ;;  %v14633_v37 = vld [vmem:[#allocation4 + $0x198] sm:$0xff]  }
 0x35f   : > { %v7935_v7 = vrot.slane %v7933_v47, 3  ;;  %v7938_v40 = vrot.slane %v7936_v48, 4  ;;  %v16892_v24 = vcombine.low %v5899_v38, %v5900_v12  ;;  %v6283_v13 = vrot.slane %v14611_v49, 5 }
 0x360   : > { %v6449_v18 = vsel %vm921_vm1, %v6440_v35, %v6448_v46  ;;  %v7931_v54 = vor.u32 %v7930_v16, %v7927_v63  ;;  %v7399_v14 = vrot.slane %v7397_v30, 5  ;;  %v16895_v42 = vcombine.low %v5902_v10, %v5903_v27  ;;  %v14638_v10 = vld [vmem:[#allocation4 + $0x1e0] sm:$0xff]   ;;  %v5906_v27 = vld [vmem:[#allocation3 + $0x70] sm:$0xf] }
 0x361   : > { %13762 = vmatprep.mubr.bf16.mxu1 %v6449_v18  ;;  %v7939_v52 = vor.u32 %v7938_v40, %v7935_v7  ;;  %v6282_v15 = vrot.slane %v16892_v24, 5  ;;  %v6286_v3 = vrot.slane %v14614_v23, 5  ;;  %13393 = vmatpush3.bf16.msra.mxu1 %v14615_v41  ;;  %v12259_v26 = vcombine.low %v7135_v4, %v16781_v17  ;;  %v14619_v41 = vld [vmem:[#allocation3 + $0x74] ss:$0 sps:$4 sm:$0x11]  }
 0x362   : > { %v7400_v29 = vor.u32 %v7399_v14, %v7396_v58  ;;  %v6285_v32 = vrot.slane %v16895_v42, 5  ;;  %v12260_v61 = vcombine.low %v16774_v5, %v16774_v5  ;;  %v7402_v49 = vshrl.u32 %v16790_v31, 16  ;;  %13394 = vmatprep.subr.bf16.mxu1 %v14620_v44  ;;  %v5908_v4 = vld [vmem:[#allocation3 + $0x80] sm:$0xf] }
 0x363   : > { %v7940_v1 = vsel %vm921_vm1, %v7931_v54, %v7939_v52  ;;  %v6284_v11 = vsel %vm872_vm0, %v6282_v15, %v6283_v13  ;;  %v6477_v45 = vshrl.u32 %v6282_v15, 16  ;;  %v6480_v12 = vshll.u32 %v6282_v15, 16  ;;  %v14622_v44 = vld [vmem:[#allocation3 + $0x88] ss:$0 sps:$4 sm:$0x11]  }
 0x364   : > { %8571 = vmatmul.mubr.bf16.gmra.mrb[180].mxu0 %v7940_v1  ;;  %v7985_v43 = vshrl.u32 %v7400_v29, 16  ;;  %v7988_v17 = vshll.u32 %v7400_v29, 16  ;;  %v6485_v36 = vshrl.u32 %v6284_v11, 16  ;;  %v6488_v50 = vshll.u32 %v6284_v11, 16  ;;  %v14641_v54 = vld [vmem:[#allocation4 + $0x1a0] sm:$0xff]   ;;  %v14648_v29 = vld [vmem:[#allocation4 + $0x1e8] sm:$0xff]  }
 0x365   : > { %v6479_v39 = vrot.slane %v6477_v45, 3  ;;  %v6482_v22 = vrot.slane %v6480_v12, 4  ;;  %v6287_v23 = vsel %vm872_vm0, %v6285_v32, %v6286_v3  ;;  %v6520_v5 = vshrl.u32 %v6285_v32, 16  ;;  %13395 = vmatpush3.bf16.msra.mxu1 %v14623_v2  ;;  %v5909_v2 = vld [vmem:[#allocation3 + $0x84] sm:$0xf] }
 0x366   : > { %v7987_v20 = vrot.slane %v7985_v43, 3  ;;  %v7990_v25 = vrot.slane %v7988_v17, 4  ;;  %v6487_v53 = vrot.slane %v6485_v36, 3  ;;  %v6490_v38 = vrot.slane %v6488_v50, 4  ;;  %13396 = vmatprep.subr.bf16.mxu1 %v14630_v62  ;;  %v5905_v45 = vld [vmem:[#allocation3 + $0x6c] sm:$0xf] }
 0x367   : > { %v6483_v35 = vor.u32 %v6482_v22, %v6479_v39  ;;  %v6522_v63 = vrot.slane %v6520_v5, 3  ;;  %v6523_v47 = vshll.u32 %v6285_v32, 16  ;;  %v6528_v48 = vshrl.u32 %v6287_v23, 16  ;;  %v7138_v36 = vld [vmem:[#allocation3 + $0xf4] sm:$0x8] }
 0x368   : > { %v7991_v46 = vor.u32 %v7990_v25, %v7987_v20  ;;  %v6491_v16 = vor.u32 %v6490_v38, %v6487_v53  ;;  %v6531_v58 = vshll.u32 %v6287_v23, 16  ;;  %v7968_v30 = vshrl.u32 %v12259_v26, 16  ;;  %v14653_v23 = vld [vmem:[#allocation4 + $0x1a8] sm:$0xff]   ;;  %v14660_v25 = vld [vmem:[#allocation4 + $0x1f0] sm:$0xff]  }
 0x369   : > { %v6525_v7 = vrot.slane %v6523_v47, 4  ;;  %v6530_v40 = vrot.slane %v6528_v48, 3  ;;  %v7971_v13 = vshll.u32 %v12259_v26, 16  ;;  %v7976_v18 = vshrl.u32 %v12260_v61, 16  ;;  %13397 = vmatpush3.bf16.msra.mxu1 %v14633_v37 }
 0x36a   : > { %8578 = vmatprep.mubr.bf16.mxu0 %v7991_v46  ;;  %v6492_v14 = vsel %vm921_vm1, %v6483_v35, %v6491_v16  ;;  %v6533_v52 = vrot.slane %v6531_v58, 4  ;;  %v7970_v15 = vrot.slane %v7968_v30, 3  ;;  %v7979_v3 = vshll.u32 %v12260_v61, 16  ;;  %13398 = vmatprep.subr.bf16.mxu1 %v14638_v10  ;;  %v14665_v58 = vld [vmem:[#allocation4 + $0x1b0] sm:$0xff]  }
 0x36b   : > { %13763 = vmatmul.mubr.bf16.gmra.mrb[100].mxu1 %v6492_v14  ;;  %v6526_v32 = vor.u32 %v6525_v7, %v6522_v63  ;;  %v7973_v62 = vrot.slane %v7971_v13, 4  ;;  %v7978_v1 = vrot.slane %v7976_v18, 3  ;;  %v7404_v11 = vrot.slane %v7402_v49, 4 }
 0x36c   : > { %v6534_v12 = vor.u32 %v6533_v52, %v6530_v40  ;;  %v7981_v26 = vrot.slane %v7979_v3, 4  ;;  %v7405_v43 = vshll.u32 %v16790_v31, 16  ;;  %v16908_v17 = vcombine.low %v5905_v45, %v5906_v27  ;;  %v5912_v3 = vld [vmem:[#allocation3 + $0x98] sm:$0xf]  ;;  %v14675_v45 = vld [vmem:[#allocation4 + $0x1b8] sm:$0xff]  }
 0x36d   : > { %v7974_v50 = vor.u32 %v7973_v62, %v7970_v15  ;;  %v6289_v39 = vrot.slane %v14619_v41, 5  ;;  %v16910_v22 = vcombine.low %v5908_v4, %v5909_v2  ;;  %v6292_v61 = vrot.slane %v14622_v44, 5  ;;  %13399 = vmatpush3.bf16.msra.mxu1 %v14641_v54  ;;  %v14674_v44 = vld [vmem:[#allocation4 + $0x1f8] sm:$0xff]   ;;  %v14629_v2 = vld [vmem:[#allocation3 + $0x9c] ss:$0 sps:$4 sm:$0x11]  }
 0x36e   : > { %v6535_v5 = vsel %vm921_vm1, %v6526_v32, %v6534_v12  ;;  %v7982_v37 = vor.u32 %v7981_v26, %v7978_v1  ;;  %v7407_v20 = vrot.slane %v7405_v43, 5  ;;  %v6288_v49 = vrot.slane %v16908_v17, 5  ;;  %13400 = vmatprep.subr.bf16.mxu1 %v14648_v29 }
 0x36f   : > { %13766 = vmatprep.mubr.bf16.mxu1 %v6535_v5  ;;  %v6291_v31 = vrot.slane %v16910_v22, 5  ;;  %v12261_v53 = vcombine.low %v7138_v36, %v16776_v57  ;;  %v12262_v38 = vcombine.low %v16778_v19, %v16778_v19  ;;  %v7410_v10 = vshrl.u32 %v16818_v55, 16 }
 0x370   : > { %v7983_v35 = vsel %vm921_vm1, %v7974_v50, %v7982_v37  ;;  %v7408_v63 = vor.u32 %v7407_v20, %v7404_v11  ;;  %v6290_v47 = vsel %vm872_vm0, %v6288_v49, %v6289_v39  ;;  %v6563_v48 = vshrl.u32 %v6288_v49, 16  ;;  %v5914_v11 = vld [vmem:[#allocation3 + $0xa8] sm:$0xf]  ;;  %v5915_v50 = vld [vmem:[#allocation3 + $0xac] sm:$0xf] }
 0x371   : > { %8579 = vmatmul.mubr.bf16.gmra.mrb[184].mxu0 %v7983_v35  ;;  %v6566_v27 = vshll.u32 %v6288_v49, 16  ;;  %v6571_v41 = vshrl.u32 %v6290_v47, 16  ;;  %v6574_v46 = vshll.u32 %v6290_v47, 16  ;;  %v6293_v16 = vsel %vm872_vm0, %v6291_v31, %v6292_v61  ;;  %13401 = vmatpush3.bf16.msra.mxu1 %v14653_v23  ;;  %v16922_v39 = vld [vmem:[#allocation4 + $0x200] sm:$0xff]  }
 0x372   : > { %v8028_v57 = vshrl.u32 %v7408_v63, 16  ;;  %v8031_v30 = vshll.u32 %v7408_v63, 16  ;;  %v6565_v4 = vrot.slane %v6563_v48, 3  ;;  %v6606_v19 = vshrl.u32 %v6291_v31, 16  ;;  %13402 = vmatprep.subr.bf16.mxu1 %v14660_v25  ;;  %v5911_v63 = vld [vmem:[#allocation3 + $0x94] sm:$0xf] }
 0x373   : > { %v6568_v7 = vrot.slane %v6566_v27, 4  ;;  %v6573_v40 = vrot.slane %v6571_v41, 3  ;;  %v6576_v13 = vrot.slane %v6574_v46, 4  ;;  %v6609_v18 = vshll.u32 %v6291_v31, 16  ;;  %v7141_v41 = vld [vmem:[#allocation3 + $0x108] sm:$0x8] }
 0x374   : > { %v8030_v54 = vrot.slane %v8028_v57, 3  ;;  %v8033_v14 = vrot.slane %v8031_v30, 4  ;;  %v6608_v52 = vrot.slane %v6606_v19, 3  ;;  %v6614_v15 = vshrl.u32 %v6293_v16, 16 }
 0x375   : > { %v6569_v29 = vor.u32 %v6568_v7, %v6565_v4  ;;  %v6577_v32 = vor.u32 %v6576_v13, %v6573_v40  ;;  %v6611_v62 = vrot.slane %v6609_v18, 4  ;;  %v6617_v1 = vshll.u32 %v6293_v16, 16  ;;  %13403 = vmatpush3.bf16.msra.mxu1 %v14665_v58  ;;  %v14632_v20 = vld [vmem:[#allocation3 + $0xb0] ss:$0 sps:$4 sm:$0x11]  }
 0x376   : > { %v8034_v12 = vor.u32 %v8033_v14, %v8030_v54  ;;  %v6616_v26 = vrot.slane %v6614_v15, 3  ;;  %v8011_v43 = vshrl.u32 %v12261_v53, 16  ;;  %v8014_v36 = vshll.u32 %v12261_v53, 16  ;;  %13404 = vmatprep.subr.bf16.mxu1 %v14674_v44 }
 0x377   : > { %v6578_v61 = vsel %vm921_vm1, %v6569_v29, %v6577_v32  ;;  %v6612_v23 = vor.u32 %v6611_v62, %v6608_v52  ;;  %v6619_v5 = vrot.slane %v6617_v1, 4  ;;  %v8019_v37 = vshrl.u32 %v12262_v38, 16 }
 0x378   : > { %8586 = vmatprep.mubr.bf16.mxu0 %v8034_v12  ;;  %13767 = vmatmul.mubr.bf16.gmra.mrb[104].mxu1 %v6578_v61  ;;  %v8013_v49 = vrot.slane %v8011_v43, 3  ;;  %v8016_v25 = vrot.slane %v8014_v36, 4  ;;  %v8022_v31 = vshll.u32 %v12262_v38, 16  ;;  %v7412_v35 = vrot.slane %v7410_v10, 4 }
 0x379   : > { %v6620_v47 = vor.u32 %v6619_v5, %v6616_v26  ;;  %v8021_v48 = vrot.slane %v8019_v37, 3  ;;  %v7413_v53 = vshll.u32 %v16818_v55, 16  ;;  %v16926_v27 = vcombine.low %v5911_v63, %v5912_v3  ;;  %13405 = vmatpush3.bf16.msra.mxu1 %v14675_v45  ;;  %v5918_v5 = vld [vmem:[#allocation3 + $0xc0] sm:$0xf]  ;;  %v5920_v63 = vld [vmem:[#allocation3 + $0xd0] sm:$0xf] }
 0x37a   : > { %v8017_v46 = vor.u32 %v8016_v25, %v8013_v49  ;;  %v8024_v16 = vrot.slane %v8022_v31, 4  ;;  %v6295_v58 = vrot.slane %v14629_v2, 5  ;;  %v16928_v57 = vcombine.low %v5914_v11, %v5915_v50  ;;  %13790 = vmatprep.subr.bf16.mxu1 %v16922_v39  ;;  %v5917_v31 = vld [vmem:[#allocation3 + $0xbc] sm:$0xf] }
 0x37b   : > { %v6621_v30 = vsel %vm921_vm1, %v6612_v23, %v6620_v47  ;;  %v7415_v38 = vrot.slane %v7413_v53, 5  ;;  %v6294_v10 = vrot.slane %v16926_v27, 5  ;;  %v6298_v4 = vrot.slane %v14632_v20, 5 }
 0x37c   : > { %13770 = vmatprep.mubr.bf16.mxu1 %v6621_v30  ;;  %v8025_v19 = vor.u32 %v8024_v16, %v8021_v48  ;;  %v6297_v55 = vrot.slane %v16928_v57, 5  ;;  %v12263_v44 = vcombine.low %v7141_v41, %v16814_v59  ;;  %v12264_v7 = vcombine.low %v16810_v51, %v16810_v51 }
 0x37d   : > { %v7416_v40 = vor.u32 %v7415_v38, %v7412_v35  ;;  %v6296_v13 = vsel %vm872_vm0, %v6294_v10, %v6295_v58  ;;  %v6649_v18 = vshrl.u32 %v6294_v10, 16  ;;  %v6652_v54 = vshll.u32 %v6294_v10, 16  ;;  %v14637_v35 = vld [vmem:[#allocation3 + $0xc4] ss:$0 sps:$4 sm:$0x11]  }
 0x37e   : > { %v8026_v14 = vsel %vm921_vm1, %v8017_v46, %v8025_v19  ;;  %v6657_v52 = vshrl.u32 %v6296_v13, 16  ;;  %v6660_v15 = vshll.u32 %v6296_v13, 16  ;;  %v6299_v3 = vsel %vm872_vm0, %v6297_v55, %v6298_v4  ;;  %v14640_v46 = vld [vmem:[#allocation3 + $0xd8] ss:$0 sps:$4 sm:$0x11]  }
 0x37f   : > { %8587 = vmatmul.mubr.bf16.gmra.mrb[188].mxu0 %v8026_v14  ;;  %v8071_v2 = vshrl.u32 %v7416_v40, 16  ;;  %v8074_v29 = vshll.u32 %v7416_v40, 16  ;;  %v6651_v32 = vrot.slane %v6649_v18, 3  ;;  %v6654_v62 = vrot.slane %v6652_v54, 4  ;;  %v5921_v10 = vld [vmem:[#allocation3 + $0xd4] sm:$0xf] }
 0x380   : > { %v6659_v59 = vrot.slane %v6657_v52, 3  ;;  %v6662_v1 = vrot.slane %v6660_v15, 4  ;;  %v6692_v11 = vshrl.u32 %v6297_v55, 16  ;;  %v6695_v51 = vshll.u32 %v6297_v55, 16  ;;  %v7144_v40 = vld [vmem:[#allocation3 + $0x11c] sm:$0x8] }
 0x381   : > { %v8073_v45 = vrot.slane %v8071_v2, 3  ;;  %v8076_v12 = vrot.slane %v8074_v29, 4  ;;  %v6655_v26 = vor.u32 %v6654_v62, %v6651_v32  ;;  %v6700_v43 = vshrl.u32 %v6299_v3, 16 }
 0x382   : > { %v6663_v36 = vor.u32 %v6662_v1, %v6659_v59  ;;  %v6694_v50 = vrot.slane %v6692_v11, 3  ;;  %v6697_v61 = vrot.slane %v6695_v51, 4  ;;  %v6703_v23 = vshll.u32 %v6299_v3, 16 }
 0x383   : > { %v8077_v37 = vor.u32 %v8076_v12, %v8073_v45  ;;  %v6702_v20 = vrot.slane %v6700_v43, 3  ;;  %v8054_v49 = vshrl.u32 %v12263_v44, 16  ;;  %v8057_v25 = vshll.u32 %v12263_v44, 16 }
 0x384   : > { %v6664_v47 = vsel %vm921_vm1, %v6655_v26, %v6663_v36  ;;  %v6698_v48 = vor.u32 %v6697_v61, %v6694_v50  ;;  %v6705_v53 = vrot.slane %v6703_v23, 4  ;;  %v8062_v41 = vshrl.u32 %v12264_v7, 16 }
 0x385   : > { %8594 = vmatprep.mubr.bf16.mxu0 %v8077_v37  ;;  %13771 = vmatmul.mubr.bf16.gmra.mrb[108].mxu1 %v6664_v47  ;;  %v8056_v16 = vrot.slane %v8054_v49, 3  ;;  %v8059_v58 = vrot.slane %v8057_v25, 4  ;;  %v8065_v30 = vshll.u32 %v12264_v7, 16  ;;  %v7418_v38 = vshrl.u32 %v16822_v0, 16 }
 0x386   : > { %v6706_v4 = vor.u32 %v6705_v53, %v6702_v20  ;;  %v8064_v19 = vrot.slane %v8062_v41, 3  ;;  %v7421_v55 = vshll.u32 %v16822_v0, 16  ;;  %v16943_v44 = vcombine.low %v5917_v31, %v5918_v5  ;;  %v14647_v53 = vld [vmem:[#allocation3 + $0xec] ss:$0 sps:$4 sm:$0x11]  }
 0x387   : > { %v8060_v13 = vor.u32 %v8059_v58, %v8056_v16  ;;  %v8067_v18 = vrot.slane %v8065_v30, 4  ;;  %v7420_v54 = vrot.slane %v7418_v38, 4  ;;  %v6301_v14 = vrot.slane %v14637_v35, 5  ;;  %v5925_v30 = vld [vmem:[#allocation3 + $0xf4] sm:$0x8] }
 0x388   : > { %v6707_v52 = vsel %vm921_vm1, %v6698_v48, %v6706_v4  ;;  %v7423_v15 = vrot.slane %v7421_v55, 5  ;;  %v6300_v3 = vrot.slane %v16943_v44, 5  ;;  %v16947_v7 = vcombine.low %v5920_v63, %v5921_v10  ;;  %v5924_v48 = vld [vmem:[#allocation3 + $0xe8] sm:$0xf]  ;;  %v5923_v55 = vld [vmem:[#allocation3 + $0xe4] sm:$0xf] }
 0x389   : > { %13774 = vmatprep.mubr.bf16.mxu1 %v6707_v52  ;;  %v8068_v2 = vor.u32 %v8067_v18, %v8064_v19  ;;  %v6304_v29 = vrot.slane %v14640_v46, 5  ;;  %v12265_v32 = vcombine.low %v7144_v40, %v16806_v56  ;;  %v12266_v0 = vcombine.low %v16808_v34, %v16808_v34  ;;  %v5926_v40 = vld [vmem:[#allocation3 + $0xf8] sm:$0xf]  ;;  %v5927_v52 = vld [vmem:[#allocation3 + $0xfc] sm:$0xf] }
 0x38a   : > { %v7424_v62 = vor.u32 %v7423_v15, %v7420_v54  ;;  %v6302_v59 = vsel %vm872_vm0, %v6300_v3, %v6301_v14  ;;  %v6735_v1 = vshrl.u32 %v6300_v3, 16  ;;  %v6738_v11 = vshll.u32 %v6300_v3, 16 }
 0x38b   : > { %v8069_v51 = vsel %vm921_vm1, %v8060_v13, %v8068_v2  ;;  %v6743_v45 = vshrl.u32 %v6302_v59, 16  ;;  %v6746_v12 = vshll.u32 %v6302_v59, 16  ;;  %v6303_v26 = vrot.slane %v16947_v7, 5 }
 0x38c   : > { %8595 = vmatmul.mubr.bf16.gmra.mrb[192].mxu0 %v8069_v51  ;;  %v8114_v43 = vshrl.u32 %v7424_v62, 16  ;;  %v8117_v36 = vshll.u32 %v7424_v62, 16  ;;  %v6737_v50 = vrot.slane %v6735_v1, 3  ;;  %v6740_v61 = vrot.slane %v6738_v11, 4  ;;  %v7147_v51 = vld [vmem:[#allocation3 + $0x130] sm:$0x8] }
 0x38d   : > { %v6745_v56 = vrot.slane %v6743_v45, 3  ;;  %v6748_v23 = vrot.slane %v6746_v12, 4  ;;  %v6305_v34 = vsel %vm872_vm0, %v6303_v26, %v6304_v29  ;;  %v6778_v5 = vshrl.u32 %v6303_v26, 16 }
 0x38e   : > { %v8116_v37 = vrot.slane %v8114_v43, 3  ;;  %v8119_v20 = vrot.slane %v8117_v36, 4  ;;  %v6741_v49 = vor.u32 %v6740_v61, %v6737_v50  ;;  %v6781_v25 = vshll.u32 %v6303_v26, 16 }
 0x38f   : > { %v6749_v31 = vor.u32 %v6748_v23, %v6745_v56  ;;  %v6780_v35 = vrot.slane %v6778_v5, 3  ;;  %v6786_v63 = vshrl.u32 %v6305_v34, 16  ;;  %v6789_v47 = vshll.u32 %v6305_v34, 16 }
 0x390   : > { %v8120_v41 = vor.u32 %v8119_v20, %v8116_v37  ;;  %v6783_v46 = vrot.slane %v6781_v25, 4  ;;  %v8097_v16 = vshrl.u32 %v12265_v32, 16  ;;  %v8100_v58 = vshll.u32 %v12265_v32, 16  ;;  %v14652_v32 = vld [vmem:[#allocation3 + $0x100] ss:$0 sps:$4 sm:$0x11]  }
 0x391   : > { %v6750_v38 = vsel %vm921_vm1, %v6741_v49, %v6749_v31  ;;  %v6788_v10 = vrot.slane %v6786_v63, 3  ;;  %v6791_v4 = vrot.slane %v6789_v47, 4  ;;  %v8105_v19 = vshrl.u32 %v12266_v0, 16 }
 0x392   : > { %8602 = vmatprep.mubr.bf16.mxu0 %v8120_v41  ;;  %13775 = vmatmul.mubr.bf16.gmra.mrb[112].mxu1 %v6750_v38  ;;  %v6784_v13 = vor.u32 %v6783_v46, %v6780_v35  ;;  %v8099_v18 = vrot.slane %v8097_v16, 3  ;;  %v8102_v54 = vrot.slane %v8100_v58, 4  ;;  %v8108_v14 = vshll.u32 %v12266_v0, 16 }
 0x393   : > { %v6792_v15 = vor.u32 %v6791_v4, %v6788_v10  ;;  %v8107_v3 = vrot.slane %v8105_v19, 3  ;;  %v7426_v2 = vshrl.u32 %v16846_v60, 16  ;;  %v7429_v29 = vshll.u32 %v16846_v60, 16 }
 0x394   : > { %v8103_v62 = vor.u32 %v8102_v54, %v8099_v18  ;;  %v8110_v59 = vrot.slane %v8108_v14, 4  ;;  %v16959_v1 = vcombine.low %v5923_v55, %v5924_v48  ;;  %v6307_v11 = vrot.slane %v14647_v53, 5  ;;  %v5929_v18 = vld [vmem:[#allocation3 + $0x10c] sm:$0xf] }
 0x395   : > { %v6793_v45 = vsel %vm921_vm1, %v6784_v13, %v6792_v15  ;;  %v7428_v12 = vrot.slane %v7426_v2, 4  ;;  %v7431_v26 = vrot.slane %v7429_v29, 5  ;;  %v16962_v43 = vcombine.low %v5925_v30, %v5926_v40  ;;  %v5928_v13 = vld [vmem:[#allocation3 + $0x108] sm:$0x8] }
 0x396   : > { %13778 = vmatprep.mubr.bf16.mxu1 %v6793_v45  ;;  %v8111_v0 = vor.u32 %v8110_v59, %v8107_v3  ;;  %v6306_v36 = vrot.slane %v16959_v1, 5  ;;  %v16965_v50 = vcombine.low %v5927_v52, %v5927_v52  ;;  %v16967_v60 = vcombine.low %v5926_v40, %v5927_v52  ;;  %v5930_v3 = vld [vmem:[#allocation3 + $0x110] sm:$0xf]  ;;  %v14659_v59 = vld [vmem:[#allocation3 + $0x114] ss:$0 sps:$4 sm:$0x11]  }
 0x397   : > { %v7432_v61 = vor.u32 %v7431_v26, %v7428_v12  ;;  %v6310_v56 = vrot.slane %v14652_v32, 5  ;;  %v12267_v23 = vcombine.low %v7147_v51, %v16842_v8  ;;  %v12268_v34 = vcombine.low %v16837_v6, %v16837_v6  ;;  %v5932_v51 = vld [vmem:[#allocation3 + $0x120] sm:$0xf] }
 0x398   : > { %v8112_v5 = vsel %vm921_vm1, %v8103_v62, %v8111_v0  ;;  %v6308_v37 = vsel %vm872_vm0, %v6306_v36, %v6307_v11  ;;  %v6821_v20 = vshrl.u32 %v6306_v36, 16  ;;  %v6824_v49 = vshll.u32 %v6306_v36, 16  ;;  %v5931_v11 = vld [vmem:[#allocation3 + $0x11c] sm:$0x8]  ;;  %v5933_v36 = vld [vmem:[#allocation3 + $0x124] sm:$0xf] }
 0x399   : > { %8603 = vmatmul.mubr.bf16.gmra.mrb[196].mxu0 %v8112_v5  ;;  %v8157_v25 = vshrl.u32 %v7432_v61, 16  ;;  %v8160_v31 = vshll.u32 %v7432_v61, 16  ;;  %v6829_v35 = vshrl.u32 %v6308_v37, 16  ;;  %v6832_v63 = vshll.u32 %v6308_v37, 16 }
 0x39a   : > { %v6823_v47 = vrot.slane %v6821_v20, 3  ;;  %v6826_v48 = vrot.slane %v6824_v49, 4  ;;  %v6309_v53 = vrot.slane %v16967_v60, 5  ;;  %v8140_v41 = vshrl.u32 %v12267_v23, 16 }
 0x39b   : > { %v8159_v8 = vrot.slane %v8157_v25, 3  ;;  %v8162_v46 = vrot.slane %v8160_v31, 4  ;;  %v6831_v16 = vrot.slane %v6829_v35, 3  ;;  %v6834_v6 = vrot.slane %v6832_v63, 4  ;;  %v7150_v35 = vld [vmem:[#allocation3 + $0x144] sm:$0x8] }
 0x39c   : > { %v6827_v58 = vor.u32 %v6826_v48, %v6823_v47  ;;  %v6311_v30 = vsel %vm872_vm0, %v6309_v53, %v6310_v56  ;;  %v6864_v38 = vshrl.u32 %v6309_v53, 16  ;;  %v6867_v10 = vshll.u32 %v6309_v53, 16  ;;  %v14664_v37 = vld [vmem:[#allocation3 + $0x128] ss:$0 sps:$4 sm:$0x11]  }
 0x39d   : > { %v8163_v4 = vor.u32 %v8162_v46, %v8159_v8  ;;  %v6835_v19 = vor.u32 %v6834_v6, %v6831_v16  ;;  %v6872_v55 = vshrl.u32 %v6311_v30, 16  ;;  %v6875_v40 = vshll.u32 %v6311_v30, 16  ;;  %v5934_v53 = vld [vmem:[#allocation3 + $0x130] sm:$0x8] }
 0x39e   : > { %v6866_v54 = vrot.slane %v6864_v38, 3  ;;  %v6869_v14 = vrot.slane %v6867_v10, 4  ;;  %v8142_v52 = vrot.slane %v8140_v41, 3  ;;  %v8143_v15 = vshll.u32 %v12267_v23, 16  ;;  %v5935_v41 = vld [vmem:[#allocation3 + $0x134] sm:$0xf] }
 0x39f   : > { %8610 = vmatprep.mubr.bf16.mxu0 %v8163_v4  ;;  %v6836_v2 = vsel %vm921_vm1, %v6827_v58, %v6835_v19  ;;  %v6874_v29 = vrot.slane %v6872_v55, 3  ;;  %v6877_v32 = vrot.slane %v6875_v40, 4  ;;  %v8148_v62 = vshrl.u32 %v12268_v34, 16  ;;  %v14814_v38 = vld [vmem:[#allocation3 + $0x148] sm:$0xf] }
 0x3a0   : > { %13779 = vmatmul.mubr.bf16.gmra.mrb[116].mxu1 %v6836_v2  ;;  %v6870_v45 = vor.u32 %v6869_v14, %v6866_v54  ;;  %v8145_v12 = vrot.slane %v8143_v15, 4  ;;  %v8151_v26 = vshll.u32 %v12268_v34, 16  ;;  %v7434_v0 = vshrl.u32 %v16857_v9, 16  ;;  %v14815_v55 = vld [vmem:[#allocation3 + $0x14c] sm:$0xf] }
 0x3a1   : > { %v6878_v61 = vor.u32 %v6877_v32, %v6874_v29  ;;  %v8150_v56 = vrot.slane %v8148_v62, 3  ;;  %v7437_v23 = vshll.u32 %v16857_v9, 16  ;;  %v16979_v5 = vcombine.low %v5928_v13, %v5929_v18 }
 0x3a2   : > { %v8146_v20 = vor.u32 %v8145_v12, %v8142_v52  ;;  %v8153_v49 = vrot.slane %v8151_v26, 4  ;;  %v7436_v25 = vrot.slane %v7434_v0, 4  ;;  %v16981_v31 = vcombine.low %v5930_v3, %v5930_v3 }
 0x3a3   : > { %v6879_v63 = vsel %vm921_vm1, %v6870_v45, %v6878_v61  ;;  %v7439_v47 = vrot.slane %v7437_v23, 5  ;;  %v16984_v34 = vcombine.low %v5929_v18, %v5930_v3  ;;  %v6313_v48 = vrot.slane %v14659_v59, 5  ;;  %v5936_v23 = vld [vmem:[#allocation3 + $0x138] sm:$0xf] }
 0x3a4   : > { %13782 = vmatprep.mubr.bf16.mxu1 %v6879_v63  ;;  %v8154_v8 = vor.u32 %v8153_v49, %v8150_v56  ;;  %v16986_v9 = vcombine.low %v5931_v11, %v5932_v51  ;;  %v16988_v46 = vcombine.low %v5933_v36, %v5933_v36  ;;  %v16990_v16 = vcombine.low %v5932_v51, %v5933_v36  ;;  %v14673_v63 = vld [vmem:[#allocation3 + $0x13c] ss:$0 sps:$4 sm:$0x11]  }
 0x3a5   : > { %v7440_v6 = vor.u32 %v7439_v47, %v7436_v25  ;;  %v6312_v58 = vrot.slane %v16984_v34, 5  ;;  %v6316_v30 = vrot.slane %v14664_v37, 5  ;;  %v12269_v10 = vcombine.low %v7150_v35, %v14814_v38  ;;  %v16999_v37 = vld [vmem:[#allocation3 + $0x30] sm:$0xf] }
 0x3a6   : > { %v8155_v4 = vsel %vm921_vm1, %v8146_v20, %v8154_v8  ;;  %v6315_v19 = vrot.slane %v16990_v16, 5  ;;  %v12270_v40 = vcombine.low %v14815_v55, %v14815_v55  ;;  %v16995_v13 = vcombine.low %v5934_v53, %v5935_v41 }
 0x3a7   : > { %8611 = vmatmul.mubr.bf16.gmra.mrb[200].mxu0 %v8155_v4  ;;  %v8200_v18 = vshrl.u32 %v7440_v6, 16  ;;  %v8203_v54 = vshll.u32 %v7440_v6, 16  ;;  %v6314_v14 = vsel %vm872_vm0, %v6312_v58, %v6313_v48  ;;  %v6907_v52 = vshrl.u32 %v6312_v58, 16  ;;  %v17001_v6 = vld [vmem:[#allocation3 + $0x34] sm:$0xf] }
 0x3a8   : > { %v6910_v15 = vshll.u32 %v6312_v58, 16  ;;  %v6915_v3 = vshrl.u32 %v6314_v14, 16  ;;  %v6918_v2 = vshll.u32 %v6314_v14, 16  ;;  %v6317_v29 = vsel %vm872_vm0, %v6315_v19, %v6316_v30 }
 0x3a9   : > { %v8202_v32 = vrot.slane %v8200_v18, 3  ;;  %v8205_v62 = vrot.slane %v8203_v54, 4  ;;  %v6909_v59 = vrot.slane %v6907_v52, 3  ;;  %v6950_v11 = vshrl.u32 %v6315_v19, 16 }
 0x3aa   : > { %v6912_v51 = vrot.slane %v6910_v15, 4  ;;  %v6917_v45 = vrot.slane %v6915_v3, 3  ;;  %v6920_v12 = vrot.slane %v6918_v2, 4  ;;  %v6953_v26 = vshll.u32 %v6315_v19, 16  ;;  %v5889_v3 = vld [vmem:[#allocation3 + $0x4] sm:$0x8] }
 0x3ab   : > { %v8206_v0 = vor.u32 %v8205_v62, %v8202_v32  ;;  %v6952_v36 = vrot.slane %v6950_v11, 3  ;;  %v6958_v61 = vshrl.u32 %v6317_v29, 16  ;;  %v6961_v56 = vshll.u32 %v6317_v29, 16 }
 0x3ac   : > { %v6913_v20 = vor.u32 %v6912_v51, %v6909_v59  ;;  %v6921_v49 = vor.u32 %v6920_v12, %v6917_v45  ;;  %v6955_v25 = vrot.slane %v6953_v26, 4  ;;  %v8183_v35 = vshrl.u32 %v12269_v10, 16  ;;  %v14816_v12 = vld [vmem:[#allocation3 + $0x8] sm:$0xf] }
 0x3ad   : > { %8618 = vmatprep.mubr.bf16.mxu0 %v8206_v0  ;;  %v6960_v47 = vrot.slane %v6958_v61, 3  ;;  %v6963_v48 = vrot.slane %v6961_v56, 4  ;;  %v8186_v53 = vshll.u32 %v12269_v10, 16  ;;  %v8191_v8 = vshrl.u32 %v12270_v40, 16  ;;  %v14817_v0 = vld [vmem:[#allocation3 + $0xc] sm:$0xf] }
 0x3ae   : > { %v6922_v58 = vsel %vm921_vm1, %v6913_v20, %v6921_v49  ;;  %v6956_v30 = vor.u32 %v6955_v25, %v6952_v36  ;;  %v8185_v38 = vrot.slane %v8183_v35, 3  ;;  %v8194_v4 = vshll.u32 %v12270_v40, 16 }
 0x3af   : > { %13783 = vmatmul.mubr.bf16.gmra.mrb[120].mxu1 %v6922_v58  ;;  %v6964_v19 = vor.u32 %v6963_v48, %v6960_v47  ;;  %v8188_v55 = vrot.slane %v8186_v53, 4  ;;  %v8193_v18 = vrot.slane %v8191_v8, 3  ;;  %v17004_v54 = vcombine.low %v5936_v23, %v5936_v23 }
 0x3b0   : > { %v8196_v14 = vrot.slane %v8194_v4, 4  ;;  %v17006_v52 = vcombine.low %v5935_v41, %v5936_v23  ;;  %v6319_v15 = vrot.slane %v14673_v63, 5  ;;  %v17010_v10 = vcombine.low %v16999_v37, %v17001_v6 }
 0x3b1   : > { %18209 = vst [vmem:[#allocation48_spill] sm:$0xff] %v17004_v54  ;;  %v6965_v2 = vsel %vm921_vm1, %v6956_v30, %v6964_v19  ;;  %v8189_v29 = vor.u32 %v8188_v55, %v8185_v38  ;;  %v6098_v40 = vshrl.u32 %v16863_v28, 16  ;;  %v6101_v32 = vshll.u32 %v16863_v28, 16 }
 0x3b2   : > { %18210 = vst [vmem:[#allocation51_spill] sm:$0xff] %v17010_v10  ;;  %13786 = vmatprep.mubr.bf16.mxu1 %v6965_v2  ;;  %v8197_v62 = vor.u32 %v8196_v14, %v8193_v18  ;;  %v6318_v59 = vrot.slane %v17006_v52, 5  ;;  %v9464_v41 = vshrl.u32 %v17010_v10, 16  ;;  %v9467_v11 = vshll.u32 %v17010_v10, 16 }
 0x3b3   : > { %v6100_v51 = vrot.slane %v6098_v40, 4  ;;  %v6103_v45 = vrot.slane %v6101_v32, 5  ;;  %v12175_v26 = vcombine.low %v5889_v3, %v14816_v12  ;;  %v12176_v36 = vcombine.low %v14817_v0, %v14817_v0  ;;  %v17021_v12 = vld [vmem:[#allocation3 + $0x48] sm:$0xf] }
 0x3b4   : > { %v8198_v61 = vsel %vm921_vm1, %v8189_v29, %v8197_v62  ;;  %v6320_v56 = vsel %vm872_vm0, %v6318_v59, %v6319_v15  ;;  %v6993_v23 = vshrl.u32 %v6318_v59, 16  ;;  %v6996_v28 = vshll.u32 %v6318_v59, 16  ;;  %v9255_v59 = vld [vmem:[#allocation3 + $0x2c] sm:$0x8] }
 0x3b5   : > { %8619 = vmatmul.mubr.bf16.gmra.mrb[204].mxu0 %v8198_v61  ;;  %v7001_v20 = vshrl.u32 %v6320_v56, 16  ;;  %v7004_v49 = vshll.u32 %v6320_v56, 16  ;;  %v9466_v25 = vrot.slane %v9464_v41, 4  ;;  %v9469_v35 = vrot.slane %v9467_v11, 5 }
 0x3b6   : > { %v6995_v63 = vrot.slane %v6993_v23, 3  ;;  %v6998_v47 = vrot.slane %v6996_v28, 4  ;;  %v6104_v48 = vor.u32 %v6103_v45, %v6100_v51  ;;  %v6322_v53 = vshrl.u32 %v12175_v26, 16 }
 0x3b7   : > { %v7003_v8 = vrot.slane %v7001_v20, 3  ;;  %v7006_v58 = vrot.slane %v7004_v49, 4  ;;  %v9470_v30 = vor.u32 %v9469_v35, %v9466_v25  ;;  %v6325_v38 = vshll.u32 %v12175_v26, 16  ;;  %v5892_v26 = vld [vmem:[#allocation3 + $0x18] sm:$0x8] }
 0x3b8   : > { %v6999_v4 = vor.u32 %v6998_v47, %v6995_v63  ;;  %v6339_v19 = vshrl.u32 %v6104_v48, 16  ;;  %v6342_v55 = vshll.u32 %v6104_v48, 16  ;;  %v6324_v18 = vrot.slane %v6322_v53, 3  ;;  %v17028_v25 = vld [vmem:[#allocation3 + $0x44] sm:$0xf] }
 0x3b9   : > { %v7007_v14 = vor.u32 %v7006_v58, %v7003_v8  ;;  %v9705_v15 = vshrl.u32 %v9470_v30, 16  ;;  %v9708_v3 = vshll.u32 %v9470_v30, 16  ;;  %v6327_v2 = vrot.slane %v6325_v38, 4  ;;  %v14818_v48 = vld [vmem:[#allocation3 + $0x1c] sm:$0xf] }
 0x3ba   : > { %v6341_v29 = vrot.slane %v6339_v19, 3  ;;  %v6344_v40 = vrot.slane %v6342_v55, 4  ;;  %v6330_v32 = vshrl.u32 %v12176_v36, 16  ;;  %v6333_v62 = vshll.u32 %v12176_v36, 16 }
 0x3bb   : > { %v7008_v41 = vsel %vm921_vm1, %v6999_v4, %v7007_v14  ;;  %v9707_v11 = vrot.slane %v9705_v15, 3  ;;  %v9710_v51 = vrot.slane %v9708_v3, 4  ;;  %v6328_v45 = vor.u32 %v6327_v2, %v6324_v18 }
 0x3bc   : > { %13787 = vmatmul.mubr.bf16.gmra.mrb[124].mxu1 %v7008_v41  ;;  %v6345_v0 = vor.u32 %v6344_v40, %v6341_v29  ;;  %v6332_v61 = vrot.slane %v6330_v32, 3  ;;  %v6335_v56 = vrot.slane %v6333_v62, 4  ;;  %v6106_v23 = vshrl.u32 %v16876_v21, 16  ;;  %v14819_v40 = vld [vmem:[%s17972_s7] sm:$0xff]   ;;  %v14820_v32 = vld [vmem:[#allocation3 + $0x20] sm:$0xf] }
 0x3bd   : > { %v9711_v28 = vor.u32 %v9710_v51, %v9707_v11  ;;  %v6109_v20 = vshll.u32 %v16876_v21, 16  ;;  %v12351_v36 = vcombine.low %v9255_v59, %v16999_v37  ;;  %v12352_v49 = vcombine.low %v17001_v6, %v17001_v6  ;;  %v14695_v37 = vld [vmem:[%s17972_s7 + $0x8] sm:$0xff]  }
 0x3be   : > { %8964 = vmatprep.mubr.bf16.mxu0 %v6345_v0  ;;  %v6336_v35 = vor.u32 %v6335_v56, %v6332_v61  ;;  %v6108_v63 = vrot.slane %v6106_v23, 4  ;;  %v17032_v47 = vcombine.low %v17028_v25, %v17021_v12  ;;  %v12177_v53 = vcombine.low %v5892_v26, %v14818_v48  ;;  %v9258_v23 = vld [vmem:[#allocation3 + $0x40] sm:$0x8]  ;;  %v5895_v48 = vld [vmem:[#allocation3 + $0x2c] sm:$0x8] }
 0x3bf   : > { %10648 = vmatprep.mubr.bf16.mxu1 %v9711_v28  ;;  %v6111_v8 = vrot.slane %v6109_v20, 5  ;;  %v9688_v58 = vshrl.u32 %v12351_v36, 16  ;;  %v9691_v21 = vshll.u32 %v12351_v36, 16  ;;  %v9696_v30 = vshrl.u32 %v12352_v49, 16  ;;  %v17046_v28 = vpop.f32.mrb[144].mxu0 }
 0x3c0   : > { %18211 = vst [vmem:[#allocation52_spill] sm:$0xff] %v17032_v47  ;;  %v6337_v6 = vsel %vm921_vm1, %v6328_v45, %v6336_v35  ;;  %v9699_v38 = vshll.u32 %v12352_v49, 16  ;;  %v9472_v4 = vshrl.u32 %v17032_v47, 16  ;;  %v9475_v19 = vshll.u32 %v17032_v47, 16  ;;  %v14707_v45 = vld [vmem:[%s17972_s7 + $0x10] sm:$0xff]  }
 0x3c1   : > { %8965 = vmatmul.mubr.bf16.vlgmr.msra.gmra.mrb[208].mxu0 %v6337_v6  ;;  %v6112_v55 = vor.u32 %v6111_v8, %v6108_v63  ;;  %v9690_v18 = vrot.slane %v9688_v58, 3  ;;  %v9693_v14 = vrot.slane %v9691_v21, 4  ;;  %v9698_v15 = vrot.slane %v9696_v30, 3  ;;  %v17048_v63 = vld [vmem:[#allocation3 + $0x58] sm:$0xf]  ;;  %v14693_v8 = vld [vmem:[#allocation4 + $0x208] sm:$0xff]  }
 0x3c2   : > { %v9701_v3 = vrot.slane %v9699_v38, 4  ;;  %v9474_v2 = vrot.slane %v9472_v4, 4  ;;  %v9477_v29 = vrot.slane %v9475_v19, 5  ;;  %13839 = vmatpush3.bf16.msra.mxu0 %v14819_v40  ;;  %v12178_v62 = vcombine.low %v14820_v32, %v14820_v32  ;;  %v17050_v58 = vpop.f32.mrb[145].mxu0  ;;  %v9270_v47 = vld [vmem:[#allocation3 + $0x90] sm:$0x8] }
 0x3c3   : > { %v6382_v59 = vshrl.u32 %v6112_v55, 16  ;;  %v6385_v41 = vshll.u32 %v6112_v55, 16  ;;  %v9694_v11 = vor.u32 %v9693_v14, %v9690_v18  ;;  %v6365_v51 = vshrl.u32 %v12177_v53, 16  ;;  %13840 = vmatprep.subr.bf16.mxu0 %v14695_v37  ;;  %v17055_v4 = vpop.f32.mrb[146].mxu0 }
 0x3c4   : > { %v9702_v26 = vor.u32 %v9701_v3, %v9698_v15  ;;  %v9478_v0 = vor.u32 %v9477_v29, %v9474_v2  ;;  %v6368_v61 = vshll.u32 %v12177_v53, 16  ;;  %v6373_v56 = vshrl.u32 %v12178_v62, 16  ;;  %v17053_v53 = vld [vmem:[#allocation3 + $0x5c] sm:$0xf]  ;;  %v14719_v15 = vld [vmem:[%s17972_s7 + $0x18] sm:$0xff]   ;;  %v17061_v3 = vpop.f32.mrb[147].mxu0 }
 0x3c5   : > { %v6384_v20 = vrot.slane %v6382_v59, 3  ;;  %v6387_v36 = vrot.slane %v6385_v41, 4  ;;  %v6367_v49 = vrot.slane %v6365_v51, 3  ;;  %v6376_v35 = vshll.u32 %v12178_v62, 16 }
 0x3c6   : > { %v9703_v21 = vsel %vm921_vm1, %v9694_v11, %v9702_v26  ;;  %v9748_v30 = vshrl.u32 %v9478_v0, 16  ;;  %v9751_v6 = vshll.u32 %v9478_v0, 16  ;;  %v6370_v38 = vrot.slane %v6368_v61, 4  ;;  %13841 = vmatpush3.bf16.msra.mxu0 %v14695_v37  ;;  %v14821_v0 = vld [vmem:[#allocation3 + $0x30] sm:$0xf]  ;;  %v14705_v61 = vld [vmem:[#allocation4 + $0x210] sm:$0xff]  }
 0x3c7   : > { %v6388_v19 = vor.u32 %v6387_v36, %v6384_v20  ;;  %10649 = vmatmul.mubr.bf16.vlgmr.msra.gmra.mrb[128].mxu1 %v9703_v21  ;;  %v6375_v55 = vrot.slane %v6373_v56, 3  ;;  %v6378_v18 = vrot.slane %v6376_v35, 4  ;;  %v6114_v14 = vshrl.u32 %v16880_v33, 16  ;;  %13842 = vmatprep.subr.bf16.mxu0 %v14707_v45 }
 0x3c8   : > { %v9750_v2 = vrot.slane %v9748_v30, 3  ;;  %v9753_v29 = vrot.slane %v9751_v6, 4  ;;  %13791 = vmatpush3.bf16.msra.mxu1 %v16922_v39  ;;  %v6371_v37 = vor.u32 %v6370_v38, %v6367_v49  ;;  %v6117_v40 = vshll.u32 %v16880_v33, 16  ;;  %v14822_v30 = vld [vmem:[#allocation3 + $0x34] sm:$0xf] }
 0x3c9   : > { %8972 = vmatprep.mubr.bf16.mxu0 %v6388_v19  ;;  %v6379_v32 = vor.u32 %v6378_v18, %v6375_v55  ;;  %v6116_v62 = vrot.slane %v6114_v14, 4  ;;  %v12353_v59 = vcombine.low %v9258_v23, %v17028_v25  ;;  %v12354_v41 = vcombine.low %v17021_v12, %v17021_v12  ;;  %13792 = vmatprep.subr.bf16.mxu1 %v14693_v8  ;;  %v14731_v12 = vld [vmem:[%s17972_s7 + $0x20] sm:$0xff]   ;;  %v14717_v14 = vld [vmem:[#allocation4 + $0x218] sm:$0xff]  }
 0x3ca   : > { %v9754_v11 = vor.u32 %v9753_v29, %v9750_v2  ;;  %v6119_v51 = vrot.slane %v6117_v40, 5  ;;  %v17070_v26 = vcombine.low %v17048_v63, %v17053_v53  ;;  %v12179_v39 = vcombine.low %v5895_v48, %v14821_v0  ;;  %13843 = vmatpush3.bf16.msra.mxu0 %v14707_v45 }
 0x3cb   : > { %v6380_v33 = vsel %vm921_vm1, %v6371_v37, %v6379_v32  ;;  %v9731_v56 = vshrl.u32 %v12353_v59, 16  ;;  %v9734_v20 = vshll.u32 %v12353_v59, 16  ;;  %v9739_v36 = vshrl.u32 %v12354_v41, 16  ;;  %13844 = vmatprep.subr.bf16.mxu0 %v14719_v15  ;;  %v14743_v32 = vld [vmem:[%s17972_s7 + $0x28] sm:$0xff]  }
 0x3cc   : > { %18212 = vst [vmem:[#allocation55_spill] sm:$0xff] %v17070_v26  ;;  %10656 = vmatprep.mubr.bf16.mxu1 %v9754_v11  ;;  %8973 = vmatmul.mubr.bf16.gmra.mrb[212].mxu0 %v6380_v33  ;;  %v6120_v25 = vor.u32 %v6119_v51, %v6116_v62  ;;  %v9742_v23 = vshll.u32 %v12354_v41, 16  ;;  %v9480_v49 = vshrl.u32 %v17070_v26, 16  ;;  %v9483_v35 = vshll.u32 %v17070_v26, 16 }
 0x3cd   : > { %v9733_v48 = vrot.slane %v9731_v56, 3  ;;  %v9736_v45 = vrot.slane %v9734_v20, 4  ;;  %v9741_v21 = vrot.slane %v9739_v36, 3  ;;  %v12180_v6 = vcombine.low %v14822_v30, %v14822_v30  ;;  %13793 = vmatpush3.bf16.msra.mxu1 %v14693_v8  ;;  %v9261_v56 = vld [vmem:[#allocation3 + $0x54] sm:$0x8] }
 0x3ce   : > { %v6425_v38 = vshrl.u32 %v6120_v25, 16  ;;  %v6428_v19 = vshll.u32 %v6120_v25, 16  ;;  %v9744_v55 = vrot.slane %v9742_v23, 4  ;;  %v9482_v18 = vrot.slane %v9480_v49, 4  ;;  %13794 = vmatprep.subr.bf16.mxu1 %v14705_v61  ;;  %13845 = vmatpush3.bf16.msra.mxu0 %v14719_v15  ;;  %v17081_v15 = vpop.f32.mrb[148].mxu0  ;;  %v14729_v49 = vld [vmem:[#allocation4 + $0x220] sm:$0xff]  }
 0x3cf   : > { %v9737_v2 = vor.u32 %v9736_v45, %v9733_v48  ;;  %v9485_v29 = vrot.slane %v9483_v35, 5  ;;  %v6408_v37 = vshrl.u32 %v12179_v39, 16  ;;  %v6411_v40 = vshll.u32 %v12179_v39, 16  ;;  %13846 = vmatprep.subr.bf16.mxu0 %v14731_v12  ;;  %v17085_v23 = vld [vmem:[#allocation3 + $0x70] sm:$0xf]  ;;  %v17087_v35 = vpop.f32.mrb[149].mxu0 }
 0x3d0   : > { %v6427_v62 = vrot.slane %v6425_v38, 3  ;;  %v6430_v59 = vrot.slane %v6428_v19, 4  ;;  %v9745_v41 = vor.u32 %v9744_v55, %v9741_v21  ;;  %v6416_v8 = vshrl.u32 %v12180_v6, 16  ;;  %v17089_v30 = vpop.f32.mrb[150].mxu0 }
 0x3d1   : > { %v9486_v11 = vor.u32 %v9485_v29, %v9482_v18  ;;  %v6410_v51 = vrot.slane %v6408_v37, 3  ;;  %v6413_v0 = vrot.slane %v6411_v40, 4  ;;  %v6419_v33 = vshll.u32 %v12180_v6, 16  ;;  %13795 = vmatpush3.bf16.msra.mxu1 %v14705_v61  ;;  %v17097_v18 = vpop.f32.mrb[151].mxu0 }
 0x3d2   : > { %v6431_v20 = vor.u32 %v6430_v59, %v6427_v62  ;;  %v9746_v39 = vsel %vm921_vm1, %v9737_v2, %v9745_v41  ;;  %v6418_v36 = vrot.slane %v6416_v8, 3  ;;  %v6122_v25 = vshrl.u32 %v16892_v24, 16  ;;  %13796 = vmatprep.subr.bf16.mxu1 %v14717_v14  ;;  %13847 = vmatpush3.bf16.msra.mxu0 %v14731_v12  ;;  %v17095_v12 = vld [vmem:[#allocation3 + $0x6c] sm:$0xf]  ;;  %v5898_v62 = vld [vmem:[#allocation3 + $0x40] sm:$0x8] }
 0x3d3   : > { %10657 = vmatmul.mubr.bf16.gmra.mrb[132].mxu1 %v9746_v39  ;;  %v9791_v48 = vshrl.u32 %v9486_v11, 16  ;;  %v9794_v45 = vshll.u32 %v9486_v11, 16  ;;  %v6414_v21 = vor.u32 %v6413_v0, %v6410_v51  ;;  %v6421_v61 = vrot.slane %v6419_v33, 4  ;;  %13848 = vmatprep.subr.bf16.mxu0 %v14743_v32  ;;  %v14741_v8 = vld [vmem:[#allocation4 + $0x228] sm:$0xff]  }
 0x3d4   : > { %8980 = vmatprep.mubr.bf16.mxu0 %v6431_v20  ;;  %v6124_v6 = vrot.slane %v6122_v25, 4  ;;  %v6125_v38 = vshll.u32 %v16892_v24, 16  ;;  %v12355_v19 = vcombine.low %v9261_v56, %v17048_v63  ;;  %v12356_v55 = vcombine.low %v17053_v53, %v17053_v53 }
 0x3d5   : > { %v9793_v2 = vrot.slane %v9791_v48, 3  ;;  %v9796_v29 = vrot.slane %v9794_v45, 4  ;;  %v6422_v37 = vor.u32 %v6421_v61, %v6418_v36  ;;  %v17101_v40 = vcombine.low %v17095_v12, %v17085_v23  ;;  %13797 = vmatpush3.bf16.msra.mxu1 %v14717_v14  ;;  %v14823_v48 = vld [vmem:[#allocation3 + $0x44] sm:$0xf] }
 0x3d6   : > { %v6127_v59 = vrot.slane %v6125_v38, 5  ;;  %v9774_v24 = vshrl.u32 %v12355_v19, 16  ;;  %v9777_v41 = vshll.u32 %v12355_v19, 16  ;;  %v9782_v63 = vshrl.u32 %v12356_v55, 16  ;;  %13798 = vmatprep.subr.bf16.mxu1 %v14729_v49  ;;  %13849 = vmatpush3.bf16.msra.mxu0 %v14743_v32 }
 0x3d7   : > { %18213 = vst [vmem:[#allocation56_spill] sm:$0xff] %v17101_v40  ;;  %v9797_v53 = vor.u32 %v9796_v29, %v9793_v2  ;;  %v6423_v11 = vsel %vm921_vm1, %v6414_v21, %v6422_v37  ;;  %v9785_v51 = vshll.u32 %v12356_v55, 16  ;;  %v9488_v0 = vshrl.u32 %v17101_v40, 16  ;;  %v14824_v21 = vld [vmem:[#allocation3 + $0x48] sm:$0xf]  ;;  %v14751_v55 = vld [vmem:[#allocation4 + $0x230] sm:$0xff]  }
 0x3d8   : > { %8981 = vmatmul.mubr.bf16.gmra.mrb[216].mxu0 %v6423_v11  ;;  %v6128_v33 = vor.u32 %v6127_v59, %v6124_v6  ;;  %v9776_v56 = vrot.slane %v9774_v24, 3  ;;  %v9779_v20 = vrot.slane %v9777_v41, 4  ;;  %v9784_v39 = vrot.slane %v9782_v63, 3  ;;  %v9264_v59 = vld [vmem:[#allocation3 + $0x68] sm:$0x8]  ;;  %v17106_v24 = vpop.f32.mrb[152].mxu0 }
 0x3d9   : > { %10664 = vmatprep.mubr.bf16.mxu1 %v9797_v53  ;;  %v9787_v14 = vrot.slane %v9785_v51, 4  ;;  %v9490_v36 = vrot.slane %v9488_v0, 4  ;;  %v9491_v25 = vshll.u32 %v17101_v40, 16  ;;  %v12181_v45 = vcombine.low %v5898_v62, %v14823_v48  ;;  %13799 = vmatpush3.bf16.msra.mxu1 %v14729_v49  ;;  %v14753_v41 = vld [vmem:[%s17972_s7 + $0x30] sm:$0xff]   ;;  %v17111_v11 = vpop.f32.mrb[153].mxu0 }
 0x3da   : > { %v6468_v32 = vshrl.u32 %v6128_v33, 16  ;;  %v6471_v61 = vshll.u32 %v6128_v33, 16  ;;  %v9780_v38 = vor.u32 %v9779_v20, %v9776_v56  ;;  %v12182_v19 = vcombine.low %v14824_v21, %v14824_v21  ;;  %13800 = vmatprep.subr.bf16.mxu1 %v14741_v8  ;;  %v17114_v20 = vld [vmem:[#allocation3 + $0x80] sm:$0xf]  ;;  %13850 = vmatprep.subr.bf16.mxu0 %v14753_v41 }
 0x3db   : > { %v9788_v2 = vor.u32 %v9787_v14, %v9784_v39  ;;  %v9493_v6 = vrot.slane %v9491_v25, 5  ;;  %v6451_v29 = vshrl.u32 %v12181_v45, 16  ;;  %v6454_v37 = vshll.u32 %v12181_v45, 16  ;;  %v17116_v39 = vpop.f32.mrb[154].mxu0  ;;  %13851 = vmatpush3.bf16.msra.mxu0 %v14753_v41 }
 0x3dc   : > { %v6470_v62 = vrot.slane %v6468_v32, 3  ;;  %v6473_v49 = vrot.slane %v6471_v61, 4  ;;  %v6459_v63 = vshrl.u32 %v12182_v19, 16  ;;  %v6462_v53 = vshll.u32 %v12182_v19, 16  ;;  %v17119_v32 = vld [vmem:[#allocation3 + $0x84] sm:$0xf] }
 0x3dd   : > { %v9789_v51 = vsel %vm921_vm1, %v9780_v38, %v9788_v2  ;;  %v9494_v0 = vor.u32 %v9493_v6, %v9490_v36  ;;  %v6453_v33 = vrot.slane %v6451_v29, 3  ;;  %v6456_v56 = vrot.slane %v6454_v37, 4  ;;  %13801 = vmatpush3.bf16.msra.mxu1 %v14741_v8  ;;  %v17121_v61 = vpop.f32.mrb[155].mxu0 }
 0x3de   : > { %v6474_v14 = vor.u32 %v6473_v49, %v6470_v62  ;;  %10665 = vmatmul.mubr.bf16.gmra.mrb[136].mxu1 %v9789_v51  ;;  %v6461_v25 = vrot.slane %v6459_v63, 3  ;;  %v6464_v48 = vrot.slane %v6462_v53, 4  ;;  %v6130_v45 = vshrl.u32 %v16895_v42, 16  ;;  %13802 = vmatprep.subr.bf16.mxu1 %v14751_v55 }
 0x3df   : > { %v9834_v36 = vshrl.u32 %v9494_v0, 16  ;;  %v9837_v38 = vshll.u32 %v9494_v0, 16  ;;  %v6457_v21 = vor.u32 %v6456_v56, %v6453_v33  ;;  %v6133_v19 = vshll.u32 %v16895_v42, 16 }
 0x3e0   : > { %8988 = vmatprep.mubr.bf16.mxu0 %v6474_v14  ;;  %v6465_v8 = vor.u32 %v6464_v48, %v6461_v25  ;;  %v6132_v2 = vrot.slane %v6130_v45, 4  ;;  %v12357_v6 = vcombine.low %v9264_v59, %v17095_v12  ;;  %v12358_v29 = vcombine.low %v17085_v23, %v17085_v23  ;;  %v5901_v23 = vld [vmem:[#allocation3 + $0x54] sm:$0x8] }
 0x3e1   : > { %v9836_v37 = vrot.slane %v9834_v36, 3  ;;  %v9839_v62 = vrot.slane %v9837_v38, 4  ;;  %v6135_v49 = vrot.slane %v6133_v19, 5  ;;  %v17129_v63 = vcombine.low %v17114_v20, %v17119_v32  ;;  %13803 = vmatpush3.bf16.msra.mxu1 %v14751_v55 }
 0x3e2   : > { %v6466_v53 = vsel %vm921_vm1, %v6457_v21, %v6465_v8  ;;  %v9817_v42 = vshrl.u32 %v12357_v6, 16  ;;  %v9820_v41 = vshll.u32 %v12357_v6, 16  ;;  %v9825_v51 = vshrl.u32 %v12358_v29, 16  ;;  %v14825_v8 = vld [vmem:[#allocation3 + $0x58] sm:$0xf] }
 0x3e3   : > { %18214 = vst [vmem:[#allocation53_spill] sm:$0xff] %v17129_v63  ;;  %v9840_v0 = vor.u32 %v9839_v62, %v9836_v37  ;;  %8989 = vmatmul.mubr.bf16.gmra.mrb[220].mxu0 %v6466_v53  ;;  %v6136_v33 = vor.u32 %v6135_v49, %v6132_v2  ;;  %v9828_v12 = vshll.u32 %v12358_v29, 16  ;;  %v9496_v59 = vshrl.u32 %v17129_v63, 16  ;;  %v14826_v37 = vld [vmem:[#allocation3 + $0x5c] sm:$0xf] }
 0x3e4   : > { %v9819_v56 = vrot.slane %v9817_v42, 3  ;;  %v9822_v14 = vrot.slane %v9820_v41, 4  ;;  %v9827_v25 = vrot.slane %v9825_v51, 3  ;;  %v9499_v48 = vshll.u32 %v17129_v63, 16 }
 0x3e5   : > { %10672 = vmatprep.mubr.bf16.mxu1 %v9840_v0  ;;  %v6511_v45 = vshrl.u32 %v6136_v33, 16  ;;  %v6514_v55 = vshll.u32 %v6136_v33, 16  ;;  %v9830_v36 = vrot.slane %v9828_v12, 4  ;;  %v9498_v38 = vrot.slane %v9496_v59, 4  ;;  %v9267_v0 = vld [vmem:[#allocation3 + $0x7c] sm:$0x8] }
 0x3e6   : > { %v9823_v21 = vor.u32 %v9822_v14, %v9819_v56  ;;  %v9501_v19 = vrot.slane %v9499_v48, 5  ;;  %v12183_v6 = vcombine.low %v5901_v23, %v14825_v8  ;;  %v12184_v2 = vcombine.low %v14826_v37, %v14826_v37  ;;  %v14759_v37 = vld [vmem:[#allocation4 + $0x238] sm:$0xff]  }
 0x3e7   : > { %v6513_v29 = vrot.slane %v6511_v45, 3  ;;  %v6516_v62 = vrot.slane %v6514_v55, 4  ;;  %v9831_v49 = vor.u32 %v9830_v36, %v9827_v25  ;;  %v6138_v53 = vshrl.u32 %v16908_v17, 16  ;;  %13804 = vmatprep.subr.bf16.mxu1 %v14759_v37 }
 0x3e8   : > { %v9502_v42 = vor.u32 %v9501_v19, %v9498_v38  ;;  %v6494_v41 = vshrl.u32 %v12183_v6, 16  ;;  %v6497_v51 = vshll.u32 %v12183_v6, 16  ;;  %v6502_v63 = vshrl.u32 %v12184_v2, 16  ;;  %v17138_v38 = vld [vmem:[#allocation3 + $0x98] sm:$0xf]  ;;  %13805 = vmatpush3.bf16.msra.mxu1 %v14759_v37 }
 0x3e9   : > { %v6517_v40 = vor.u32 %v6516_v62, %v6513_v29  ;;  %v9832_v33 = vsel %vm921_vm1, %v9823_v21, %v9831_v49  ;;  %v6505_v12 = vshll.u32 %v12184_v2, 16  ;;  %v6140_v59 = vrot.slane %v6138_v53, 4  ;;  %v14760_v2 = vld [vmem:[%s17972_s7 + $0x38] sm:$0xff]  }
 0x3ea   : > { %10673 = vmatmul.mubr.bf16.gmra.mrb[140].mxu1 %v9832_v33  ;;  %v9877_v56 = vshrl.u32 %v9502_v42, 16  ;;  %v9880_v23 = vshll.u32 %v9502_v42, 16  ;;  %v6496_v14 = vrot.slane %v6494_v41, 3  ;;  %v6499_v48 = vrot.slane %v6497_v51, 4  ;;  %v5904_v51 = vld [vmem:[#allocation3 + $0x68] sm:$0x8]  ;;  %13852 = vmatprep.subr.bf16.mxu0 %v14760_v2 }
 0x3eb   : > { %8996 = vmatprep.mubr.bf16.mxu0 %v6517_v40  ;;  %v6504_v45 = vrot.slane %v6502_v63, 3  ;;  %v6507_v25 = vrot.slane %v6505_v12, 4  ;;  %v6141_v55 = vshll.u32 %v16908_v17, 16  ;;  %v12359_v36 = vcombine.low %v9267_v0, %v17114_v20  ;;  %v9271_v17 = vld [vmem:[#allocation3 + $0x94] sm:$0xf]  ;;  %v17145_v49 = vpop.f32.mrb[156].mxu0  ;;  %13853 = vmatpush3.bf16.msra.mxu0 %v14760_v2 }
 0x3ec   : > { %v9879_v19 = vrot.slane %v9877_v56, 3  ;;  %v9882_v8 = vrot.slane %v9880_v23, 4  ;;  %v6500_v6 = vor.u32 %v6499_v48, %v6496_v14  ;;  %v12360_v21 = vcombine.low %v17119_v32, %v17119_v32  ;;  %v17150_v32 = vpop.f32.mrb[157].mxu0  ;;  %v14828_v37 = vld [vmem:[#allocation3 + $0x70] sm:$0xf] }
 0x3ed   : > { %v6508_v40 = vor.u32 %v6507_v25, %v6504_v45  ;;  %v6143_v63 = vrot.slane %v6141_v55, 5  ;;  %v9860_v29 = vshrl.u32 %v12359_v36, 16  ;;  %v9863_v62 = vshll.u32 %v12359_v36, 16  ;;  %v17153_v23 = vpop.f32.mrb[158].mxu0 }
 0x3ee   : > { %v9883_v20 = vor.u32 %v9882_v8, %v9879_v19  ;;  %v9868_v53 = vshrl.u32 %v12360_v21, 16  ;;  %v9871_v42 = vshll.u32 %v12360_v21, 16  ;;  %v17148_v41 = vcombine.low %v9271_v17, %v17138_v38  ;;  %v17157_v55 = vpop.f32.mrb[159].mxu0 }
 0x3ef   : > { %v6509_v0 = vsel %vm921_vm1, %v6500_v6, %v6508_v40  ;;  %v6144_v33 = vor.u32 %v6143_v63, %v6140_v59  ;;  %v9862_v12 = vrot.slane %v9860_v29, 3  ;;  %v9865_v56 = vrot.slane %v9863_v62, 4  ;;  %v14827_v59 = vld [vmem:[#allocation3 + $0x6c] sm:$0xf] }
 0x3f0   : > { %18215 = vst [vmem:[#allocation54_spill] sm:$0xff] %v17148_v41  ;;  %10680 = vmatprep.mubr.bf16.mxu1 %v9883_v20  ;;  %8997 = vmatmul.mubr.bf16.gmra.mrb[224].mxu0 %v6509_v0  ;;  %v9870_v14 = vrot.slane %v9868_v53, 3  ;;  %v9873_v48 = vrot.slane %v9871_v42, 4  ;;  %v9504_v45 = vshrl.u32 %v17148_v41, 16  ;;  %v9507_v25 = vshll.u32 %v17148_v41, 16 }
 0x3f1   : > { %v6554_v36 = vshrl.u32 %v6144_v33, 16  ;;  %v6557_v19 = vshll.u32 %v6144_v33, 16  ;;  %v9866_v8 = vor.u32 %v9865_v56, %v9862_v12  ;;  %v12185_v6 = vcombine.low %v5904_v51, %v14827_v59  ;;  %v17161_v56 = vld [vmem:[#allocation3 + $0xa8] sm:$0xf] }
 0x3f2   : > { %v9874_v21 = vor.u32 %v9873_v48, %v9870_v14  ;;  %v9506_v40 = vrot.slane %v9504_v45, 4  ;;  %v9509_v63 = vrot.slane %v9507_v25, 5  ;;  %v12186_v2 = vcombine.low %v14828_v37, %v14828_v37 }
 0x3f3   : > { %v6556_v29 = vrot.slane %v6554_v36, 3  ;;  %v6559_v62 = vrot.slane %v6557_v19, 4  ;;  %v6537_v20 = vshrl.u32 %v12185_v6, 16  ;;  %v6540_v53 = vshll.u32 %v12185_v6, 16  ;;  %v17163_v36 = vld [vmem:[#allocation3 + $0xac] sm:$0xf] }
 0x3f4   : > { %v9875_v42 = vsel %vm921_vm1, %v9866_v8, %v9874_v21  ;;  %v9510_v0 = vor.u32 %v9509_v63, %v9506_v40  ;;  %v6545_v41 = vshrl.u32 %v12186_v2, 16  ;;  %v6548_v26 = vshll.u32 %v12186_v2, 16 }
 0x3f5   : > { %v6560_v10 = vor.u32 %v6559_v62, %v6556_v29  ;;  %10681 = vmatmul.mubr.bf16.gmra.mrb[144].mxu1 %v9875_v42  ;;  %v6539_v33 = vrot.slane %v6537_v20, 3  ;;  %v6542_v12 = vrot.slane %v6540_v53, 4  ;;  %v6146_v51 = vshrl.u32 %v16910_v22, 16 }
 0x3f6   : > { %v9920_v14 = vshrl.u32 %v9510_v0, 16  ;;  %v9923_v48 = vshll.u32 %v9510_v0, 16  ;;  %v6547_v45 = vrot.slane %v6545_v41, 3  ;;  %v6550_v25 = vrot.slane %v6548_v26, 4  ;;  %v5907_v41 = vld [vmem:[#allocation3 + $0x7c] sm:$0x8] }
 0x3f7   : > { %9004 = vmatprep.mubr.bf16.mxu0 %v6560_v10  ;;  %v6543_v19 = vor.u32 %v6542_v12, %v6539_v33  ;;  %v6148_v8 = vrot.slane %v6146_v51, 4  ;;  %v6149_v59 = vshll.u32 %v16910_v22, 16  ;;  %v12361_v6 = vcombine.low %v9270_v47, %v9271_v17 }
 0x3f8   : > { %v9922_v21 = vrot.slane %v9920_v14, 3  ;;  %v9925_v40 = vrot.slane %v9923_v48, 4  ;;  %v6551_v63 = vor.u32 %v6550_v25, %v6547_v45  ;;  %v12362_v37 = vcombine.low %v17138_v38, %v17138_v38  ;;  %v14829_v48 = vld [vmem:[#allocation3 + $0x80] sm:$0xf] }
 0x3f9   : > { %v6151_v2 = vrot.slane %v6149_v59, 5  ;;  %v9903_v29 = vshrl.u32 %v12361_v6, 16  ;;  %v9906_v62 = vshll.u32 %v12361_v6, 16  ;;  %v17170_v26 = vcombine.low %v17161_v56, %v17163_v36  ;;  %v17173_v47 = vpop.f32.mrb[160].mxu0 }
 0x3fa   : > { %v9926_v10 = vor.u32 %v9925_v40, %v9922_v21  ;;  %v6552_v20 = vsel %vm921_vm1, %v6543_v19, %v6551_v63  ;;  %v9911_v53 = vshrl.u32 %v12362_v37, 16  ;;  %v9914_v22 = vshll.u32 %v12362_v37, 16  ;;  %v17176_v33 = vpop.f32.mrb[161].mxu0  ;;  %v14830_v37 = vld [vmem:[#allocation3 + $0x84] sm:$0xf] }
 0x3fb   : > { %18216 = vst [vmem:[#allocation57_spill] sm:$0xff] %v17170_v26  ;;  %9005 = vmatmul.mubr.bf16.gmra.mrb[228].mxu0 %v6552_v20  ;;  %v6152_v17 = vor.u32 %v6151_v2, %v6148_v8  ;;  %v9905_v42 = vrot.slane %v9903_v29, 3  ;;  %v9908_v0 = vrot.slane %v9906_v62, 4  ;;  %v9512_v38 = vshrl.u32 %v17170_v26, 16  ;;  %v17179_v25 = vpop.f32.mrb[162].mxu0 }
 0x3fc   : > { %10688 = vmatprep.mubr.bf16.mxu1 %v9926_v10  ;;  %v9913_v12 = vrot.slane %v9911_v53, 3  ;;  %v9916_v51 = vrot.slane %v9914_v22, 4  ;;  %v9515_v14 = vshll.u32 %v17170_v26, 16  ;;  %v12187_v45 = vcombine.low %v5907_v41, %v14829_v48  ;;  %v17181_v8 = vpop.f32.mrb[163].mxu0 }
 0x3fd   : > { %v6597_v19 = vshrl.u32 %v6152_v17, 16  ;;  %v6600_v59 = vshll.u32 %v6152_v17, 16  ;;  %v9909_v6 = vor.u32 %v9908_v0, %v9905_v42  ;;  %v9514_v21 = vrot.slane %v9512_v38, 4  ;;  %v9273_v17 = vld [vmem:[#allocation3 + $0xa4] sm:$0x8] }
 0x3fe   : > { %v9917_v40 = vor.u32 %v9916_v51, %v9913_v12  ;;  %v9517_v63 = vrot.slane %v9515_v14, 5  ;;  %v12188_v2 = vcombine.low %v14830_v37, %v14830_v37  ;;  %v6580_v29 = vshrl.u32 %v12187_v45, 16  ;;  %v17185_v51 = vld [vmem:[#allocation3 + $0xc0] sm:$0xf] }
 0x3ff   : > { %v6599_v62 = vrot.slane %v6597_v19, 3  ;;  %v6602_v10 = vrot.slane %v6600_v59, 4  ;;  %v6583_v20 = vshll.u32 %v12187_v45, 16  ;;  %v6154_v53 = vshrl.u32 %v16926_v27, 16 }
 0x400   : > { %v9918_v41 = vsel %vm921_vm1, %v9909_v6, %v9917_v40  ;;  %v9518_v22 = vor.u32 %v9517_v63, %v9514_v21  ;;  %v6582_v48 = vrot.slane %v6580_v29, 3  ;;  %v6588_v26 = vshrl.u32 %v12188_v2, 16  ;;  %v9277_v40 = vld [vmem:[#allocation3 + $0xbc] sm:$0xf] }
 0x401   : > { %v6603_v42 = vor.u32 %v6602_v10, %v6599_v62  ;;  %10689 = vmatmul.mubr.bf16.gmra.mrb[148].mxu1 %v9918_v41  ;;  %v6585_v0 = vrot.slane %v6583_v20, 4  ;;  %v6591_v38 = vshll.u32 %v12188_v2, 16  ;;  %v6156_v12 = vrot.slane %v6154_v53, 4 }
 0x402   : > { %v9963_v14 = vshrl.u32 %v9518_v22, 16  ;;  %v9966_v37 = vshll.u32 %v9518_v22, 16  ;;  %v6590_v19 = vrot.slane %v6588_v26, 3  ;;  %v6157_v45 = vshll.u32 %v16926_v27, 16 }
 0x403   : > { %9012 = vmatprep.mubr.bf16.mxu0 %v6603_v42  ;;  %v6586_v59 = vor.u32 %v6585_v0, %v6582_v48  ;;  %v6593_v54 = vrot.slane %v6591_v38, 4  ;;  %v12363_v6 = vcombine.low %v9273_v17, %v17161_v56  ;;  %v12364_v21 = vcombine.low %v17163_v36, %v17163_v36  ;;  %v5910_v56 = vld [vmem:[#allocation3 + $0x90] sm:$0x8] }
 0x404   : > { %v9965_v63 = vrot.slane %v9963_v14, 3  ;;  %v9968_v29 = vrot.slane %v9966_v37, 4  ;;  %v6159_v2 = vrot.slane %v6157_v45, 5  ;;  %v17192_v62 = vcombine.low %v9277_v40, %v17185_v51 }
 0x405   : > { %v6594_v10 = vor.u32 %v6593_v54, %v6590_v19  ;;  %v9946_v20 = vshrl.u32 %v12363_v6, 16  ;;  %v9949_v26 = vshll.u32 %v12363_v6, 16  ;;  %v9954_v53 = vshrl.u32 %v12364_v21, 16 }
 0x406   : > { %18217 = vst [vmem:[#allocation58_spill] sm:$0xff] %v17192_v62  ;;  %v9969_v27 = vor.u32 %v9968_v29, %v9965_v63  ;;  %v6160_v41 = vor.u32 %v6159_v2, %v6156_v12  ;;  %v9957_v22 = vshll.u32 %v12364_v21, 16  ;;  %v9520_v48 = vshrl.u32 %v17192_v62, 16  ;;  %v17196_v38 = vpop.f32.mrb[164].mxu0  ;;  %v14831_v21 = vld [vmem:[#allocation3 + $0x94] sm:$0xf] }
 0x407   : > { %v6595_v17 = vsel %vm921_vm1, %v6586_v59, %v6594_v10  ;;  %v9948_v36 = vrot.slane %v9946_v20, 3  ;;  %v9951_v42 = vrot.slane %v9949_v26, 4  ;;  %v9956_v0 = vrot.slane %v9954_v53, 3  ;;  %v17198_v45 = vpop.f32.mrb[165].mxu0  ;;  %v14832_v29 = vld [vmem:[#allocation3 + $0x98] sm:$0xf] }
 0x408   : > { %10696 = vmatprep.mubr.bf16.mxu1 %v9969_v27  ;;  %9013 = vmatmul.mubr.bf16.gmra.mrb[232].mxu0 %v6595_v17  ;;  %v6640_v14 = vshrl.u32 %v6160_v41, 16  ;;  %v6643_v54 = vshll.u32 %v6160_v41, 16  ;;  %v9959_v37 = vrot.slane %v9957_v22, 4  ;;  %v9522_v19 = vrot.slane %v9520_v48, 4  ;;  %18218 = vst [vmem:[#allocation59_spill] sm:$0xff] %v17198_v45  ;;  %v17201_v2 = vpop.f32.mrb[166].mxu0 }
 0x409   : > { %v9952_v12 = vor.u32 %v9951_v42, %v9948_v36  ;;  %v9523_v6 = vshll.u32 %v17192_v62, 16  ;;  %v12189_v63 = vcombine.low %v5910_v56, %v14831_v21  ;;  %v12190_v59 = vcombine.low %v14832_v29, %v14832_v29  ;;  %18219 = vst [vmem:[#allocation62_spill] sm:$0xff] %v17201_v2  ;;  %v17204_v27 = vpop.f32.mrb[167].mxu0  ;;  %v9276_v36 = vld [vmem:[#allocation3 + $0xb8] sm:$0x8] }
 0x40a   : > { %v6642_v10 = vrot.slane %v6640_v14, 3  ;;  %v6645_v20 = vrot.slane %v6643_v54, 4  ;;  %v9960_v26 = vor.u32 %v9959_v37, %v9956_v0  ;;  %v6162_v53 = vshrl.u32 %v16928_v57, 16  ;;  %18220 = vst [vmem:[#allocation63_spill] sm:$0xff] %v17204_v27  ;;  %v17207_v29 = vld [vmem:[#allocation3 + $0xd0] sm:$0xf] }
 0x40b   : > { %v9525_v41 = vrot.slane %v9523_v6, 5  ;;  %v6623_v22 = vshrl.u32 %v12189_v63, 16  ;;  %v6626_v48 = vshll.u32 %v12189_v63, 16  ;;  %v6631_v17 = vshrl.u32 %v12190_v59, 16  ;;  %v17209_v2 = vld [vmem:[#allocation3 + $0xd4] sm:$0xf] }
 0x40c   : > { %v6646_v42 = vor.u32 %v6645_v20, %v6642_v10  ;;  %v9961_v62 = vsel %vm921_vm1, %v9952_v12, %v9960_v26  ;;  %v6634_v56 = vshll.u32 %v12190_v59, 16  ;;  %v6164_v21 = vrot.slane %v6162_v53, 4 }
 0x40d   : > { %10697 = vmatmul.mubr.bf16.gmra.mrb[152].mxu1 %v9961_v62  ;;  %v9526_v0 = vor.u32 %v9525_v41, %v9522_v19  ;;  %v6625_v14 = vrot.slane %v6623_v22, 3  ;;  %v6628_v54 = vrot.slane %v6626_v48, 4  ;;  %v6633_v37 = vrot.slane %v6631_v17, 3 }
 0x40e   : > { %9020 = vmatprep.mubr.bf16.mxu0 %v6646_v42  ;;  %v6636_v6 = vrot.slane %v6634_v56, 4  ;;  %v6165_v63 = vshll.u32 %v16928_v57, 16  ;;  %v12365_v27 = vcombine.low %v9276_v36, %v9277_v40  ;;  %v12366_v10 = vcombine.low %v17185_v51, %v17185_v51  ;;  %v5913_v56 = vld [vmem:[#allocation3 + $0xa4] sm:$0x8] }
 0x40f   : > { %v10006_v12 = vshrl.u32 %v9526_v0, 16  ;;  %v10009_v59 = vshll.u32 %v9526_v0, 16  ;;  %v6629_v20 = vor.u32 %v6628_v54, %v6625_v14  ;;  %v17216_v26 = vcombine.low %v17207_v29, %v17209_v2 }
 0x410   : > { %v6637_v62 = vor.u32 %v6636_v6, %v6633_v37  ;;  %v6167_v19 = vrot.slane %v6165_v63, 5  ;;  %v9989_v53 = vshrl.u32 %v12365_v27, 16  ;;  %v9992_v41 = vshll.u32 %v12365_v27, 16 }
 0x411   : > { %18221 = vst [vmem:[#allocation60_spill] sm:$0xff] %v17216_v26  ;;  %v10008_v22 = vrot.slane %v10006_v12, 3  ;;  %v10011_v48 = vrot.slane %v10009_v59, 4  ;;  %v9997_v17 = vshrl.u32 %v12366_v10, 16  ;;  %v10000_v42 = vshll.u32 %v12366_v10, 16 }
 0x412   : > { %v6638_v57 = vsel %vm921_vm1, %v6629_v20, %v6637_v62  ;;  %v6168_v40 = vor.u32 %v6167_v19, %v6164_v21  ;;  %v9991_v36 = vrot.slane %v9989_v53, 3  ;;  %v9994_v51 = vrot.slane %v9992_v41, 4  ;;  %v14833_v20 = vld [vmem:[#allocation3 + $0xa8] sm:$0xf]  ;;  %v14834_v19 = vld [vmem:[#allocation3 + $0xac] sm:$0xf] }
 0x413   : > { %v10012_v0 = vor.u32 %v10011_v48, %v10008_v22  ;;  %9021 = vmatmul.mubr.bf16.gmra.mrb[236].mxu0 %v6638_v57  ;;  %v9999_v14 = vrot.slane %v9997_v17, 3  ;;  %v10002_v54 = vrot.slane %v10000_v42, 4  ;;  %v9528_v45 = vshrl.u32 %v17216_v26, 16  ;;  %v17220_v37 = vpop.f32.mrb[168].mxu0 }
 0x414   : > { %v6683_v6 = vshrl.u32 %v6168_v40, 16  ;;  %v6686_v27 = vshll.u32 %v6168_v40, 16  ;;  %v9995_v63 = vor.u32 %v9994_v51, %v9991_v36  ;;  %v9531_v12 = vshll.u32 %v17216_v26, 16  ;;  %v17223_v10 = vpop.f32.mrb[169].mxu0 }
 0x415   : > { %18222 = vst [vmem:[#allocation61_spill] sm:$0xff] %v17223_v10  ;;  %10704 = vmatprep.mubr.bf16.mxu1 %v10012_v0  ;;  %v10003_v21 = vor.u32 %v10002_v54, %v9999_v14  ;;  %v9530_v59 = vrot.slane %v9528_v45, 4  ;;  %v12191_v62 = vcombine.low %v5913_v56, %v14833_v20  ;;  %v12192_v53 = vcombine.low %v14834_v19, %v14834_v19  ;;  %v17225_v41 = vpop.f32.mrb[170].mxu0  ;;  %v9279_v14 = vld [vmem:[#allocation3 + $0xcc] sm:$0x8] }
 0x416   : > { %18223 = vst [vmem:[#allocation64_spill] sm:$0xff] %v17225_v41  ;;  %v6685_v22 = vrot.slane %v6683_v6, 3  ;;  %v6688_v48 = vrot.slane %v6686_v27, 4  ;;  %v9533_v17 = vrot.slane %v9531_v12, 5  ;;  %v6170_v42 = vshrl.u32 %v16943_v44, 16  ;;  %v17228_v57 = vpop.f32.mrb[171].mxu0 }
 0x417   : > { %18224 = vst [vmem:[#allocation65_spill] sm:$0xff] %v17228_v57  ;;  %v10004_v40 = vsel %vm921_vm1, %v9995_v63, %v10003_v21  ;;  %v6666_v36 = vshrl.u32 %v12191_v62, 16  ;;  %v6669_v51 = vshll.u32 %v12191_v62, 16  ;;  %v6674_v0 = vshrl.u32 %v12192_v53, 16  ;;  %v17231_v19 = vld [vmem:[#allocation3 + $0xe8] sm:$0xf] }
 0x418   : > { %v6689_v45 = vor.u32 %v6688_v48, %v6685_v22  ;;  %10705 = vmatmul.mubr.bf16.gmra.mrb[156].mxu1 %v10004_v40  ;;  %v9534_v56 = vor.u32 %v9533_v17, %v9530_v59  ;;  %v6677_v54 = vshll.u32 %v12192_v53, 16  ;;  %v6172_v20 = vrot.slane %v6170_v42, 4  ;;  %v17235_v62 = vld [vmem:[#allocation3 + $0xe4] sm:$0xf] }
 0x419   : > { %v6668_v6 = vrot.slane %v6666_v36, 3  ;;  %v6671_v27 = vrot.slane %v6669_v51, 4  ;;  %v6676_v12 = vrot.slane %v6674_v0, 3  ;;  %v6173_v26 = vshll.u32 %v16943_v44, 16 }
 0x41a   : > { %9028 = vmatprep.mubr.bf16.mxu0 %v6689_v45  ;;  %v10049_v57 = vshrl.u32 %v9534_v56, 16  ;;  %v10052_v41 = vshll.u32 %v9534_v56, 16  ;;  %v6679_v63 = vrot.slane %v6677_v54, 4  ;;  %v12367_v21 = vcombine.low %v9279_v14, %v17207_v29  ;;  %v5916_v29 = vld [vmem:[#allocation3 + $0xb8] sm:$0x8] }
 0x41b   : > { %v6672_v22 = vor.u32 %v6671_v27, %v6668_v6  ;;  %v6175_v48 = vrot.slane %v6173_v26, 5  ;;  %v12368_v59 = vcombine.low %v17209_v2, %v17209_v2  ;;  %v17241_v53 = vcombine.low %v17235_v62, %v17231_v19 }
 0x41c   : > { %v10051_v17 = vrot.slane %v10049_v57, 3  ;;  %v10054_v42 = vrot.slane %v10052_v41, 4  ;;  %v6680_v44 = vor.u32 %v6679_v63, %v6676_v12  ;;  %v10032_v40 = vshrl.u32 %v12367_v21, 16 }
 0x41d   : > { %18225 = vst [vmem:[#allocation66_spill] sm:$0xff] %v17241_v53  ;;  %v6176_v36 = vor.u32 %v6175_v48, %v6172_v20  ;;  %v10035_v51 = vshll.u32 %v12367_v21, 16  ;;  %v10040_v0 = vshrl.u32 %v12368_v59, 16  ;;  %v10043_v45 = vshll.u32 %v12368_v59, 16  ;;  %v17243_v14 = vpop.f32.mrb[172].mxu0 }
 0x41e   : > { %18226 = vst [vmem:[#allocation69_spill] sm:$0xff] %v17243_v14  ;;  %v10055_v56 = vor.u32 %v10054_v42, %v10051_v17  ;;  %v6681_v26 = vsel %vm921_vm1, %v6672_v22, %v6680_v44  ;;  %v10034_v54 = vrot.slane %v10032_v40, 3  ;;  %v9536_v2 = vshrl.u32 %v17241_v53, 16  ;;  %v17247_v6 = vpop.f32.mrb[173].mxu0  ;;  %v14835_v59 = vld [vmem:[#allocation3 + $0xbc] sm:$0xf] }
 0x41f   : > { %18227 = vst [vmem:[#allocation70_spill] sm:$0xff] %v17247_v6  ;;  %9029 = vmatmul.mubr.bf16.gmra.mrb[240].mxu0 %v6681_v26  ;;  %v6726_v57 = vshrl.u32 %v6176_v36, 16  ;;  %v6729_v41 = vshll.u32 %v6176_v36, 16  ;;  %v10037_v27 = vrot.slane %v10035_v51, 4  ;;  %v10042_v12 = vrot.slane %v10040_v0, 3  ;;  %v17249_v20 = vpop.f32.mrb[174].mxu0 }
 0x420   : > { %18228 = vst [vmem:[#allocation71_spill] sm:$0xff] %v17249_v20  ;;  %10712 = vmatprep.mubr.bf16.mxu1 %v10055_v56  ;;  %v10045_v63 = vrot.slane %v10043_v45, 4  ;;  %v9538_v21 = vrot.slane %v9536_v2, 4  ;;  %v9539_v48 = vshll.u32 %v17241_v53, 16  ;;  %v12193_v17 = vcombine.low %v5916_v29, %v14835_v59  ;;  %v17252_v22 = vpop.f32.mrb[175].mxu0 }
 0x421   : > { %18229 = vst [vmem:[#allocation72_spill] sm:$0xff] %v17252_v22  ;;  %v6728_v42 = vrot.slane %v6726_v57, 3  ;;  %v6731_v44 = vrot.slane %v6729_v41, 4  ;;  %v10038_v40 = vor.u32 %v10037_v27, %v10034_v54  ;;  %v14836_v6 = vld [vmem:[#allocation3 + $0xc0] sm:$0xf]  ;;  %v6178_v45 = vshrl.u32 %v16947_v7, 16 }
 0x422   : > { %v12194_v26 = vcombine.low %v14836_v6, %v14836_v6  ;;  %v10046_v14 = vor.u32 %v10045_v63, %v10042_v12  ;;  %v9541_v36 = vrot.slane %v9539_v48, 5  ;;  %v6709_v51 = vshrl.u32 %v12193_v17, 16  ;;  %v9282_v2 = vld [vmem:[#allocation3 + $0xe0] sm:$0x8]  ;;  %v17256_v57 = vld [vmem:[#allocation3 + $0xf8] sm:$0xf] }
 0x423   : > { %v6712_v0 = vshll.u32 %v12193_v17, 16  ;;  %v6732_v10 = vor.u32 %v6731_v44, %v6728_v42  ;;  %v17258_v54 = vld [vmem:[#allocation3 + $0xfc] sm:$0xf]  ;;  %v6180_v27 = vrot.slane %v6178_v45, 4  ;;  %v6181_v12 = vshll.u32 %v16947_v7, 16 }
 0x424   : > { %v6717_v20 = vshrl.u32 %v12194_v26, 16  ;;  %v6720_v56 = vshll.u32 %v12194_v26, 16  ;;  %v10047_v53 = vsel %vm921_vm1, %v10038_v40, %v10046_v14  ;;  %v9542_v29 = vor.u32 %v9541_v36, %v9538_v21 }
 0x425   : > { %v6711_v59 = vrot.slane %v6709_v51, 3  ;;  %v6714_v22 = vrot.slane %v6712_v0, 4  ;;  %9036 = vmatprep.mubr.bf16.mxu0 %v6732_v10  ;;  %10713 = vmatmul.mubr.bf16.gmra.mrb[160].mxu1 %v10047_v53  ;;  %v17261_v63 = vpop.f32.mrb[176].mxu0  ;;  %v12369_v14 = vcombine.low %v9282_v2, %v17235_v62  ;;  %v6183_v40 = vrot.slane %v6181_v12, 5  ;;  %v5919_v2 = vld [vmem:[#allocation3 + $0xcc] sm:$0x8] }
 0x426   : > { %v6719_v6 = vrot.slane %v6717_v20, 3  ;;  %v6722_v41 = vrot.slane %v6720_v56, 4  ;;  %v10092_v48 = vshrl.u32 %v9542_v29, 16  ;;  %v10095_v17 = vshll.u32 %v9542_v29, 16  ;;  %v17264_v21 = vpop.f32.mrb[177].mxu0 }
 0x427   : > { %v6715_v42 = vor.u32 %v6714_v22, %v6711_v59  ;;  %18230 = vst [vmem:[#allocation75_spill] sm:$0xff] %v17264_v21  ;;  %v12370_v10 = vcombine.low %v17231_v19, %v17231_v19  ;;  %v17270_v53 = vcombine.low %v17256_v57, %v17258_v54  ;;  %v17272_v20 = vpop.f32.mrb[178].mxu0  ;;  %v10075_v36 = vshrl.u32 %v12369_v14, 16 }
 0x428   : > { %v6723_v44 = vor.u32 %v6722_v41, %v6719_v6  ;;  %18231 = vst [vmem:[#allocation76_spill] sm:$0xff] %v17272_v20  ;;  %v10094_v7 = vrot.slane %v10092_v48, 3  ;;  %v10097_v26 = vrot.slane %v10095_v17, 4  ;;  %v10078_v51 = vshll.u32 %v12369_v14, 16  ;;  %v17274_v22 = vpop.f32.mrb[179].mxu0 }
 0x429   : > { %18232 = vst [vmem:[#allocation77_spill] sm:$0xff] %v17274_v22  ;;  %v6184_v0 = vor.u32 %v6183_v40, %v6180_v27  ;;  %v10083_v56 = vshrl.u32 %v12370_v10, 16  ;;  %v10086_v45 = vshll.u32 %v12370_v10, 16  ;;  %v10077_v19 = vrot.slane %v10075_v36, 3 }
 0x42a   : > { %v6724_v62 = vsel %vm921_vm1, %v6715_v42, %v6723_v44  ;;  %v10098_v29 = vor.u32 %v10097_v26, %v10094_v7  ;;  %v10080_v59 = vrot.slane %v10078_v51, 4  ;;  %v9544_v6 = vshrl.u32 %v17270_v53, 16  ;;  %v14837_v42 = vld [vmem:[#allocation3 + $0xd0] sm:$0xf]  ;;  %v14838_v7 = vld [vmem:[#allocation3 + $0xd4] sm:$0xf] }
 0x42b   : > { %9037 = vmatmul.mubr.bf16.gmra.mrb[244].mxu0 %v6724_v62  ;;  %v6769_v41 = vshrl.u32 %v6184_v0, 16  ;;  %v6772_v12 = vshll.u32 %v6184_v0, 16  ;;  %v10085_v48 = vrot.slane %v10083_v56, 3  ;;  %v10088_v17 = vrot.slane %v10086_v45, 4  ;;  %v9285_v0 = vld [vmem:[#allocation3 + $0xf4] sm:$0x8] }
 0x42c   : > { %10720 = vmatprep.mubr.bf16.mxu1 %v10098_v29  ;;  %v10081_v14 = vor.u32 %v10080_v59, %v10077_v19  ;;  %v9546_v20 = vrot.slane %v9544_v6, 4  ;;  %v9547_v22 = vshll.u32 %v17270_v53, 16  ;;  %v12195_v27 = vcombine.low %v5919_v2, %v14837_v42 }
 0x42d   : > { %v6771_v44 = vrot.slane %v6769_v41, 3  ;;  %v6774_v40 = vrot.slane %v6772_v12, 4  ;;  %v10089_v10 = vor.u32 %v10088_v17, %v10085_v48  ;;  %v12196_v26 = vcombine.low %v14838_v7, %v14838_v7 }
 0x42e   : > { %v9549_v36 = vrot.slane %v9547_v22, 5  ;;  %v6752_v51 = vshrl.u32 %v12195_v27, 16  ;;  %v6755_v62 = vshll.u32 %v12195_v27, 16  ;;  %v6186_v21 = vshrl.u32 %v16959_v1, 16 }
 0x42f   : > { %v6775_v56 = vor.u32 %v6774_v40, %v6771_v44  ;;  %v10090_v45 = vsel %vm921_vm1, %v10081_v14, %v10089_v10  ;;  %v6760_v29 = vshrl.u32 %v12196_v26, 16  ;;  %v6763_v19 = vshll.u32 %v12196_v26, 16  ;;  %v9290_v26 = vld [vmem:[#allocation3 + $0x110] sm:$0xf] }
 0x430   : > { %10721 = vmatmul.mubr.bf16.gmra.mrb[164].mxu1 %v10090_v45  ;;  %v9550_v59 = vor.u32 %v9549_v36, %v9546_v20  ;;  %v6754_v6 = vrot.slane %v6752_v51, 3  ;;  %v6757_v2 = vrot.slane %v6755_v62, 4  ;;  %v6188_v41 = vrot.slane %v6186_v21, 4 }
 0x431   : > { %9044 = vmatprep.mubr.bf16.mxu0 %v6775_v56  ;;  %v6762_v12 = vrot.slane %v6760_v29, 3  ;;  %v6765_v48 = vrot.slane %v6763_v19, 4  ;;  %v6189_v22 = vshll.u32 %v16959_v1, 16  ;;  %v12371_v17 = vcombine.low %v9285_v0, %v17256_v57  ;;  %v9289_v0 = vld [vmem:[#allocation3 + $0x10c] sm:$0xf] }
 0x432   : > { %v10135_v42 = vshrl.u32 %v9550_v59, 16  ;;  %v10138_v27 = vshll.u32 %v9550_v59, 16  ;;  %v6758_v7 = vor.u32 %v6757_v2, %v6754_v6  ;;  %v12372_v14 = vcombine.low %v17258_v54, %v17258_v54  ;;  %v5922_v6 = vld [vmem:[#allocation3 + $0xe0] sm:$0x8] }
 0x433   : > { %v6766_v44 = vor.u32 %v6765_v48, %v6762_v12  ;;  %v6191_v40 = vrot.slane %v6189_v22, 5  ;;  %v10118_v10 = vshrl.u32 %v12371_v17, 16  ;;  %v10121_v20 = vshll.u32 %v12371_v17, 16 }
 0x434   : > { %v10137_v36 = vrot.slane %v10135_v42, 3  ;;  %v10140_v21 = vrot.slane %v10138_v27, 4  ;;  %v10126_v51 = vshrl.u32 %v12372_v14, 16  ;;  %v10129_v62 = vshll.u32 %v12372_v14, 16 }
 0x435   : > { %v6767_v56 = vsel %vm921_vm1, %v6758_v7, %v6766_v44  ;;  %v6192_v1 = vor.u32 %v6191_v40, %v6188_v41  ;;  %v10120_v45 = vrot.slane %v10118_v10, 3  ;;  %v10123_v57 = vrot.slane %v10121_v20, 4  ;;  %v14839_v10 = vld [vmem:[#allocation3 + $0xe4] sm:$0xf] }
 0x436   : > { %v10141_v29 = vor.u32 %v10140_v21, %v10137_v36  ;;  %9045 = vmatmul.mubr.bf16.gmra.mrb[248].mxu0 %v6767_v56  ;;  %v10128_v19 = vrot.slane %v10126_v51, 3  ;;  %v10131_v59 = vrot.slane %v10129_v62, 4  ;;  %v17286_v54 = vcombine.low %v9289_v0, %v9290_v26 }
 0x437   : > { %v6812_v2 = vshrl.u32 %v6192_v1, 16  ;;  %v6815_v12 = vshll.u32 %v6192_v1, 16  ;;  %v10124_v48 = vor.u32 %v10123_v57, %v10120_v45  ;;  %v17290_v22 = vadd.f32 %v17050_v58, %v17046_v28  ;;  %v17292_v17 = vpop.f32.mrb[180].mxu0  ;;  %v14840_v28 = vld [vmem:[#allocation3 + $0xe8] sm:$0xf] }
 0x438   : > { %18233 = vst [vmem:[#allocation11_spill] sm:$0xff] %v17286_v54  ;;  %10728 = vmatprep.mubr.bf16.mxu1 %v10141_v29  ;;  %v10132_v41 = vor.u32 %v10131_v59, %v10128_v19  ;;  %v9552_v42 = vshrl.u32 %v17286_v54, 16  ;;  %v9555_v27 = vshll.u32 %v17286_v54, 16  ;;  %v17298_v7 = vadd.f32 %v17061_v3, %v17055_v4  ;;  %v17300_v14 = vpop.f32.mrb[181].mxu0  ;;  %v9288_v1 = vld [vmem:[#allocation3 + $0x108] sm:$0x8] }
 0x439   : > { %18234 = vst [vmem:[#allocation12_spill] sm:$0xff] %v17290_v22  ;;  %v6814_v44 = vrot.slane %v6812_v2, 3  ;;  %v6817_v40 = vrot.slane %v6815_v12, 4  ;;  %v12197_v20 = vcombine.low %v5922_v6, %v14839_v10  ;;  %v12198_v58 = vcombine.low %v14840_v28, %v14840_v28  ;;  %v17302_v36 = vpop.f32.mrb[182].mxu0 }
 0x43a   : > { %18235 = vst [vmem:[#allocation7_spill] sm:$0xff] %v17298_v7  ;;  %v10133_v21 = vsel %vm921_vm1, %v10124_v48, %v10132_v41  ;;  %v9554_v51 = vrot.slane %v9552_v42, 4  ;;  %v9557_v62 = vrot.slane %v9555_v27, 5  ;;  %v6194_v56 = vshrl.u32 %v16967_v60, 16  ;;  %v17306_v45 = vpop.f32.mrb[183].mxu0 }
 0x43b   : > { %v6818_v4 = vor.u32 %v6817_v40, %v6814_v44  ;;  %10729 = vmatmul.mubr.bf16.gmra.mrb[168].mxu1 %v10133_v21  ;;  %v6795_v3 = vshrl.u32 %v12197_v20, 16  ;;  %v6798_v57 = vshll.u32 %v12197_v20, 16  ;;  %v6803_v29 = vshrl.u32 %v12198_v58, 16 }
 0x43c   : > { %v9558_v19 = vor.u32 %v9557_v62, %v9554_v51  ;;  %v6806_v59 = vshll.u32 %v12198_v58, 16  ;;  %v6196_v6 = vrot.slane %v6194_v56, 4  ;;  %v6197_v2 = vshll.u32 %v16967_v60, 16  ;;  %v9292_v62 = vld [vmem:[#allocation3 + $0x120] sm:$0xf] }
 0x43d   : > { %9052 = vmatprep.mubr.bf16.mxu0 %v6818_v4  ;;  %v6797_v12 = vrot.slane %v6795_v3, 3  ;;  %v6800_v48 = vrot.slane %v6798_v57, 4  ;;  %v6805_v41 = vrot.slane %v6803_v29, 3  ;;  %v12373_v42 = vcombine.low %v9288_v1, %v9289_v0  ;;  %v9293_v56 = vld [vmem:[#allocation3 + $0x124] sm:$0xf] }
 0x43e   : > { %v10178_v27 = vshrl.u32 %v9558_v19, 16  ;;  %v10181_v10 = vshll.u32 %v9558_v19, 16  ;;  %v6808_v28 = vrot.slane %v6806_v59, 4  ;;  %v6199_v7 = vrot.slane %v6197_v2, 5 }
 0x43f   : > { %v6801_v22 = vor.u32 %v6800_v48, %v6797_v12  ;;  %v12374_v44 = vcombine.low %v9290_v26, %v9290_v26  ;;  %v10161_v40 = vshrl.u32 %v12373_v42, 16  ;;  %v10164_v21 = vshll.u32 %v12373_v42, 16 }
 0x440   : > { %v10180_v20 = vrot.slane %v10178_v27, 3  ;;  %v10183_v54 = vrot.slane %v10181_v10, 4  ;;  %v6809_v51 = vor.u32 %v6808_v28, %v6805_v41  ;;  %v6200_v58 = vor.u32 %v6199_v7, %v6196_v6 }
 0x441   : > { %v10163_v60 = vrot.slane %v10161_v40, 3  ;;  %v10166_v4 = vrot.slane %v10164_v21, 4  ;;  %v10169_v3 = vshrl.u32 %v12374_v44, 16  ;;  %v10172_v57 = vshll.u32 %v12374_v44, 16 }
 0x442   : > { %v10184_v29 = vor.u32 %v10183_v54, %v10180_v20  ;;  %v6810_v0 = vsel %vm921_vm1, %v6801_v22, %v6809_v51  ;;  %v6855_v1 = vshrl.u32 %v6200_v58, 16  ;;  %v6858_v19 = vshll.u32 %v6200_v58, 16 }
 0x443   : > { %9053 = vmatmul.mubr.bf16.gmra.mrb[252].mxu0 %v6810_v0  ;;  %v10167_v59 = vor.u32 %v10166_v4, %v10163_v60  ;;  %v10171_v26 = vrot.slane %v10169_v3, 3  ;;  %v10174_v2 = vrot.slane %v10172_v57, 4  ;;  %v17310_v12 = vcombine.low %v9292_v62, %v9293_v56  ;;  %v17333_v60 = vld [vmem:[#allocation3 + $0x138] sm:$0xf] }
 0x444   : > { %10736 = vmatprep.mubr.bf16.mxu1 %v10184_v29  ;;  %v6857_v48 = vrot.slane %v6855_v1, 3  ;;  %v6860_v7 = vrot.slane %v6858_v19, 4  ;;  %v17314_v6 = vadd.f32 %v17087_v35, %v17081_v15  ;;  %v17318_v54 = vadd.f32 %v17097_v18, %v17089_v30  ;;  %v17320_v22 = vpop.f32.mrb[184].mxu0  ;;  %v9291_v30 = vld [vmem:[#allocation3 + $0x11c] sm:$0x8] }
 0x445   : > { %v10175_v41 = vor.u32 %v10174_v2, %v10171_v26  ;;  %v9560_v42 = vshrl.u32 %v17310_v12, 16  ;;  %v9563_v27 = vshll.u32 %v17310_v12, 16  ;;  %v6838_v10 = vshrl.u32 %v16962_v43, 16  ;;  %v17325_v28 = vpop.f32.mrb[185].mxu0 }
 0x446   : > { %v6861_v44 = vor.u32 %v6860_v7, %v6857_v48  ;;  %v6841_v40 = vshll.u32 %v16962_v43, 16  ;;  %v6846_v15 = vshrl.u32 %v16965_v50, 16  ;;  %v6849_v35 = vshll.u32 %v16965_v50, 16  ;;  %v17330_v18 = vpop.f32.mrb[186].mxu0 }
 0x447   : > { %v10176_v21 = vsel %vm921_vm1, %v10167_v59, %v10175_v41  ;;  %v9562_v20 = vrot.slane %v9560_v42, 4  ;;  %v9565_v51 = vrot.slane %v9563_v27, 5  ;;  %v6840_v58 = vrot.slane %v6838_v10, 3  ;;  %v17335_v4 = vpop.f32.mrb[187].mxu0  ;;  %v9295_v59 = vld [vmem:[#allocation3 + $0x134] sm:$0xf] }
 0x448   : > { %9060 = vmatprep.mubr.bf16.mxu0 %v6861_v44  ;;  %10737 = vmatmul.mubr.bf16.gmra.mrb[172].mxu1 %v10176_v21  ;;  %v6843_v3 = vrot.slane %v6841_v40, 4  ;;  %v6848_v43 = vrot.slane %v6846_v15, 3  ;;  %v6851_v57 = vrot.slane %v6849_v35, 4  ;;  %v6202_v29 = vshrl.u32 %v16984_v34, 16 }
 0x449   : > { %v9566_v50 = vor.u32 %v9565_v51, %v9562_v20  ;;  %v6205_v0 = vshll.u32 %v16984_v34, 16  ;;  %v12375_v1 = vcombine.low %v9291_v30, %v9292_v62  ;;  %v12376_v19 = vcombine.low %v9293_v56, %v9293_v56 }
 0x44a   : > { %v6844_v26 = vor.u32 %v6843_v3, %v6840_v58  ;;  %v6852_v2 = vor.u32 %v6851_v57, %v6848_v43  ;;  %v6204_v48 = vrot.slane %v6202_v29, 4  ;;  %v17340_v7 = vcombine.low %v9295_v59, %v17333_v60 }
 0x44b   : > { %v10221_v41 = vshrl.u32 %v9566_v50, 16  ;;  %v10224_v42 = vshll.u32 %v9566_v50, 16  ;;  %v6207_v27 = vrot.slane %v6205_v0, 5  ;;  %v10204_v10 = vshrl.u32 %v12375_v1, 16 }
 0x44c   : > { %v6853_v44 = vsel %vm921_vm1, %v6844_v26, %v6852_v2  ;;  %v10207_v40 = vshll.u32 %v12375_v1, 16  ;;  %v10212_v15 = vshrl.u32 %v12376_v19, 16  ;;  %v10215_v35 = vshll.u32 %v12376_v19, 16 }
 0x44d   : > { %v10223_v21 = vrot.slane %v10221_v41, 3  ;;  %v10226_v34 = vrot.slane %v10224_v42, 4  ;;  %9061 = vmatmul.mubr.bf16.gmra.mrb[0].mxu0 %v6853_v44  ;;  %v6208_v62 = vor.u32 %v6207_v27, %v6204_v48  ;;  %v10206_v56 = vrot.slane %v10204_v10, 3  ;;  %v9294_v42 = vld [vmem:[#allocation3 + $0x130] sm:$0x8] }
 0x44e   : > { %v10209_v30 = vrot.slane %v10207_v40, 4  ;;  %v10214_v20 = vrot.slane %v10212_v15, 3  ;;  %v10217_v51 = vrot.slane %v10215_v35, 4  ;;  %v9568_v58 = vshrl.u32 %v17340_v7, 16  ;;  %v17357_v15 = vld [vmem:[#allocation3 + $0x148] sm:$0xf] }
 0x44f   : > { %v10227_v3 = vor.u32 %v10226_v34, %v10223_v21  ;;  %v6898_v43 = vshrl.u32 %v6208_v62, 16  ;;  %v6901_v57 = vshll.u32 %v6208_v62, 16  ;;  %v9571_v29 = vshll.u32 %v17340_v7, 16 }
 0x450   : > { %v10210_v50 = vor.u32 %v10209_v30, %v10206_v56  ;;  %v10218_v0 = vor.u32 %v10217_v51, %v10214_v20  ;;  %v9570_v1 = vrot.slane %v9568_v58, 4  ;;  %v17347_v19 = vadd.f32 %v17111_v11, %v17106_v24 }
 0x451   : > { %10744 = vmatprep.mubr.bf16.mxu1 %v10227_v3  ;;  %v6900_v26 = vrot.slane %v6898_v43, 3  ;;  %v6903_v2 = vrot.slane %v6901_v57, 4  ;;  %v9573_v48 = vrot.slane %v9571_v29, 5  ;;  %v17351_v41 = vadd.f32 %v17121_v61, %v17116_v39  ;;  %v17363_v61 = vld [vmem:[#allocation3 + $0x14c] sm:$0xf] }
 0x452   : > { %v10219_v27 = vsel %vm921_vm1, %v10210_v50, %v10218_v0  ;;  %v6881_v10 = vshrl.u32 %v16979_v5, 16  ;;  %v6884_v44 = vshll.u32 %v16979_v5, 16  ;;  %v6889_v40 = vshrl.u32 %v16981_v31, 16  ;;  %v17359_v24 = vpop.f32.mrb[188].mxu0 }
 0x453   : > { %v6904_v11 = vor.u32 %v6903_v2, %v6900_v26  ;;  %10745 = vmatmul.mubr.bf16.gmra.mrb[176].mxu1 %v10219_v27  ;;  %v9574_v35 = vor.u32 %v9573_v48, %v9570_v1  ;;  %v6892_v21 = vshll.u32 %v16981_v31, 16  ;;  %v6210_v39 = vshrl.u32 %v16990_v16, 16  ;;  %v17365_v34 = vpop.f32.mrb[189].mxu0 }
 0x454   : > { %v6883_v62 = vrot.slane %v6881_v10, 3  ;;  %v6886_v56 = vrot.slane %v6884_v44, 4  ;;  %v6891_v5 = vrot.slane %v6889_v40, 3  ;;  %v6213_v30 = vshll.u32 %v16990_v16, 16  ;;  %v17368_v20 = vpop.f32.mrb[190].mxu0 }
 0x455   : > { %9068 = vmatprep.mubr.bf16.mxu0 %v6904_v11  ;;  %v10264_v51 = vshrl.u32 %v9574_v35, 16  ;;  %v10267_v58 = vshll.u32 %v9574_v35, 16  ;;  %v6894_v3 = vrot.slane %v6892_v21, 4  ;;  %v6212_v43 = vrot.slane %v6210_v39, 4  ;;  %v17370_v57 = vpop.f32.mrb[191].mxu0 }
 0x456   : > { %v6887_v31 = vor.u32 %v6886_v56, %v6883_v62  ;;  %v6215_v29 = vrot.slane %v6213_v30, 5  ;;  %v12377_v50 = vcombine.low %v9294_v42, %v9295_v59  ;;  %v12378_v0 = vcombine.low %v17333_v60, %v17333_v60 }
 0x457   : > { %v10266_v1 = vrot.slane %v10264_v51, 3  ;;  %v10269_v26 = vrot.slane %v10267_v58, 4  ;;  %v6895_v2 = vor.u32 %v6894_v3, %v6891_v5  ;;  %v17376_v16 = vcombine.low %v17357_v15, %v17363_v61 }
 0x458   : > { %v6216_v48 = vor.u32 %v6215_v29, %v6212_v43  ;;  %v10247_v27 = vshrl.u32 %v12377_v50, 16  ;;  %v10250_v10 = vshll.u32 %v12377_v50, 16  ;;  %v10255_v44 = vshrl.u32 %v12378_v0, 16 }
 0x459   : > { %v10270_v40 = vor.u32 %v10269_v26, %v10266_v1  ;;  %v6896_v11 = vsel %vm921_vm1, %v6887_v31, %v6895_v2  ;;  %v10258_v35 = vshll.u32 %v12378_v0, 16  ;;  %v9576_v59 = vshrl.u32 %v17376_v16, 16 }
 0x45a   : > { %9069 = vmatmul.mubr.bf16.gmra.mrb[4].mxu0 %v6896_v11  ;;  %v6941_v42 = vshrl.u32 %v6216_v48, 16  ;;  %v6944_v60 = vshll.u32 %v6216_v48, 16  ;;  %v10249_v21 = vrot.slane %v10247_v27, 3  ;;  %v10252_v39 = vrot.slane %v10250_v10, 4  ;;  %v9297_v27 = vld [vmem:[#allocation3 + $0x144] sm:$0x8] }
 0x45b   : > { %10752 = vmatprep.mubr.bf16.mxu1 %v10270_v40  ;;  %v10257_v62 = vrot.slane %v10255_v44, 3  ;;  %v10260_v56 = vrot.slane %v10258_v35, 4  ;;  %v9578_v5 = vrot.slane %v9576_v59, 4  ;;  %v9579_v30 = vshll.u32 %v17376_v16, 16 }
 0x45c   : > { %v6943_v51 = vrot.slane %v6941_v42, 3  ;;  %v6946_v58 = vrot.slane %v6944_v60, 4  ;;  %v10253_v3 = vor.u32 %v10252_v39, %v10249_v21  ;;  %v17383_v43 = vadd.f32 %v17150_v32, %v17145_v49 }
 0x45d   : > { %v10261_v31 = vor.u32 %v10260_v56, %v10257_v62  ;;  %v9581_v29 = vrot.slane %v9579_v30, 5  ;;  %v17387_v50 = vadd.f32 %v17157_v55, %v17153_v23  ;;  %v6924_v0 = vshrl.u32 %v16986_v9, 16 }
 0x45e   : > { %18236 = vst [vmem:[#allocation8_spill] sm:$0xff] %v17383_v43  ;;  %v6947_v1 = vor.u32 %v6946_v58, %v6943_v51  ;;  %v6927_v26 = vshll.u32 %v16986_v9, 16  ;;  %v6932_v2 = vshrl.u32 %v16988_v46, 16  ;;  %v6935_v48 = vshll.u32 %v16988_v46, 16 }
 0x45f   : > { %18237 = vst [vmem:[#allocation84_spill] sm:$0xff] %v17387_v50  ;;  %v10262_v10 = vsel %vm921_vm1, %v10253_v3, %v10261_v31  ;;  %v9582_v49 = vor.u32 %v9581_v29, %v9578_v5  ;;  %v6926_v32 = vrot.slane %v6924_v0, 3  ;;  %v6218_v44 = vshrl.u32 %v17006_v52, 16  ;;  %v17395_v40 = vpop.f32.mrb[192].mxu0  ;;  %v14777_v50 = vld [vmem:[%s15168_s20 + $0x30] sm:$0xff]  }
 0x460   : > { %9076 = vmatprep.mubr.bf16.mxu0 %v6947_v1  ;;  %10753 = vmatmul.mubr.bf16.gmra.mrb[180].mxu1 %v10262_v10  ;;  %v6929_v23 = vrot.slane %v6927_v26, 4  ;;  %v6934_v55 = vrot.slane %v6932_v2, 3  ;;  %v6937_v11 = vrot.slane %v6935_v48, 4  ;;  %v6221_v9 = vshll.u32 %v17006_v52, 16  ;;  %v17398_v35 = vpop.f32.mrb[193].mxu0 }
 0x461   : > { %v10307_v59 = vshrl.u32 %v9582_v49, 16  ;;  %v10310_v46 = vshll.u32 %v9582_v49, 16  ;;  %v6220_v42 = vrot.slane %v6218_v44, 4  ;;  %v12379_v60 = vcombine.low %v9297_v27, %v17357_v15  ;;  %v17401_v21 = vpop.f32.mrb[194].mxu0  ;;  %v9302_v44 = vld [vmem:[#allocation3 + $0x160] sm:$0xf] }
 0x462   : > { %v6930_v39 = vor.u32 %v6929_v23, %v6926_v32  ;;  %v6938_v62 = vor.u32 %v6937_v11, %v6934_v55  ;;  %v6223_v56 = vrot.slane %v6221_v9, 5  ;;  %v12380_v5 = vcombine.low %v17363_v61, %v17363_v61  ;;  %v17405_v30 = vpop.f32.mrb[195].mxu0  ;;  %v9301_v61 = vld [vmem:[#allocation3 + $0x15c] sm:$0xf] }
 0x463   : > { %v10309_v51 = vrot.slane %v10307_v59, 3  ;;  %v10312_v58 = vrot.slane %v10310_v46, 4  ;;  %v10290_v52 = vshrl.u32 %v12379_v60, 16  ;;  %v10293_v3 = vshll.u32 %v12379_v60, 16  ;;  %v9300_v59 = vld [vmem:[#allocation3 + $0x158] sm:$0x8] }
 0x464   : > { %v6939_v31 = vsel %vm921_vm1, %v6930_v39, %v6938_v62  ;;  %v6224_v29 = vor.u32 %v6223_v56, %v6220_v42  ;;  %v10298_v0 = vshrl.u32 %v12380_v5, 16  ;;  %v10301_v1 = vshll.u32 %v12380_v5, 16  ;;  %v18240_v42 = vld [vmem:[#allocation48_spill] sm:$0xff]  ;;  %v14784_v43 = vld [vmem:[#allocation3 + $0x100] ss:$0 sps:$4 sm:$0x11]  }
 0x465   : > { %v10313_v15 = vor.u32 %v10312_v58, %v10309_v51  ;;  %9077 = vmatmul.mubr.bf16.gmra.mrb[8].mxu0 %v6939_v31  ;;  %v10292_v26 = vrot.slane %v10290_v52, 3  ;;  %v10295_v2 = vrot.slane %v10293_v3, 4  ;;  %v17410_v48 = vadd.f32 %v17176_v33, %v17173_v47  ;;  %v14764_v51 = vld [vmem:[#allocation3 + $0x38] ss:$0 sps:$4 sm:$0x11]  }
 0x466   : > { %v6984_v27 = vshrl.u32 %v6224_v29, 16  ;;  %v6987_v10 = vshll.u32 %v6224_v29, 16  ;;  %v10300_v49 = vrot.slane %v10298_v0, 3  ;;  %v10303_v32 = vrot.slane %v10301_v1, 4 }
 0x467   : > { %18238 = vst [vmem:[#allocation13_spill] sm:$0xff] %v17410_v48  ;;  %10760 = vmatprep.mubr.bf16.mxu1 %v10313_v15  ;;  %v10296_v23 = vor.u32 %v10295_v2, %v10292_v26  ;;  %v17414_v55 = vadd.f32 %v17181_v8, %v17179_v25  ;;  %v6967_v11 = vshrl.u32 %v16995_v13, 16  ;;  %v6970_v9 = vshll.u32 %v16995_v13, 16  ;;  %v18241_v26 = vld [vmem:[#allocation51_spill] sm:$0xff] }
 0x468   : > { %v6986_v46 = vrot.slane %v6984_v27, 3  ;;  %v6989_v47 = vrot.slane %v6987_v10, 4  ;;  %v10304_v33 = vor.u32 %v10303_v32, %v10300_v49  ;;  %v6975_v60 = vshrl.u32 %v18240_v42, 16 }
 0x469   : > { %18239 = vst [vmem:[#allocation14_spill] sm:$0xff] %v17414_v55  ;;  %v6969_v39 = vrot.slane %v6967_v11, 3  ;;  %v6972_v62 = vrot.slane %v6970_v9, 4  ;;  %v6978_v56 = vshll.u32 %v18240_v42, 16  ;;  %v17420_v5 = vcombine.low %v9301_v61, %v9302_v44 }
 0x46a   : > { %v6990_v58 = vor.u32 %v6989_v47, %v6986_v46  ;;  %v10305_v25 = vsel %vm921_vm1, %v10296_v23, %v10304_v33  ;;  %v6977_v8 = vrot.slane %v6975_v60, 3  ;;  %v12381_v52 = vcombine.low %v9300_v59, %v9301_v61  ;;  %v14765_v23 = vld [vmem:[%s15168_s20] sm:$0xff]  }
 0x46b   : > { %10761 = vmatmul.mubr.bf16.gmra.mrb[184].mxu1 %v10305_v25  ;;  %v6973_v13 = vor.u32 %v6972_v62, %v6969_v39  ;;  %v6980_v3 = vrot.slane %v6978_v56, 4  ;;  %v9584_v31 = vshrl.u32 %v17420_v5, 16  ;;  %v9587_v29 = vshll.u32 %v17420_v5, 16  ;;  %v14768_v62 = vld [vmem:[#allocation3 + $0x60] ss:$0 sps:$4 sm:$0x11]  }
 0x46c   : > { %9084 = vmatprep.mubr.bf16.mxu0 %v6990_v58  ;;  %v12382_v0 = vcombine.low %v9302_v44, %v9302_v44  ;;  %v10333_v1 = vshrl.u32 %v12381_v52, 16  ;;  %v10336_v15 = vshll.u32 %v12381_v52, 16  ;;  %v9639_v2 = vrot.slane %v18241_v26, 5  ;;  %v17426_v27 = vpop.f32.mrb[196].mxu0  ;;  %v18242_v26 = vld [vmem:[#allocation59_spill] sm:$0xff] }
 0x46d   : > { %v6981_v10 = vor.u32 %v6980_v3, %v6977_v8  ;;  %v9586_v49 = vrot.slane %v9584_v31, 4  ;;  %v9589_v32 = vrot.slane %v9587_v29, 5  ;;  %v9640_v61 = vrot.slane %v14764_v51, 5  ;;  %v17429_v11 = vpop.f32.mrb[197].mxu0 }
 0x46e   : > { %v10335_v9 = vrot.slane %v10333_v1, 3  ;;  %v10338_v59 = vrot.slane %v10336_v15, 4  ;;  %v10341_v46 = vshrl.u32 %v12382_v0, 16  ;;  %v10344_v47 = vshll.u32 %v12382_v0, 16  ;;  %v17431_v33 = vpop.f32.mrb[198].mxu0 }
 0x46f   : > { %v6982_v44 = vsel %vm921_vm1, %v6973_v13, %v6981_v10  ;;  %v9590_v42 = vor.u32 %v9589_v32, %v9586_v49  ;;  %v9641_v60 = vsel %vm872_vm0, %v9639_v2, %v9640_v61  ;;  %v9714_v39 = vshrl.u32 %v9639_v2, 16  ;;  %v17435_v56 = vpop.f32.mrb[199].mxu0  ;;  %v14766_v52 = vld [vmem:[#allocation3 + $0x4c] ss:$0 sps:$4 sm:$0x11]  }
 0x470   : > { %9085 = vmatmul.mubr.bf16.gmra.mrb[12].mxu0 %v6982_v44  ;;  %v10339_v51 = vor.u32 %v10338_v59, %v10335_v9  ;;  %v10343_v58 = vrot.slane %v10341_v46, 3  ;;  %v10346_v25 = vrot.slane %v10344_v47, 4  ;;  %v9717_v8 = vshll.u32 %v9639_v2, 16  ;;  %v18244_v9 = vld [vmem:[#allocation62_spill] sm:$0xff]  ;;  %v18245_v2 = vld [vmem:[#allocation63_spill] sm:$0xff] }
 0x471   : > { %v10350_v3 = vshrl.u32 %v9590_v42, 16  ;;  %v10353_v31 = vshll.u32 %v9590_v42, 16  ;;  %v9716_v29 = vrot.slane %v9714_v39, 3  ;;  %v9722_v0 = vshrl.u32 %v9641_v60, 16  ;;  %13854 = vmatprep.mubr.bf16.mxu0 %v14765_v23  ;;  %v18247_v23 = vld [vmem:[#allocation52_spill] sm:$0xff]  ;;  %v14767_v39 = vld [vmem:[%s15168_s20 + $0x8] sm:$0xff]  }
 0x472   : > { %v10347_v13 = vor.u32 %v10346_v25, %v10343_v58  ;;  %v9719_v1 = vrot.slane %v9717_v8, 4  ;;  %v9725_v15 = vshll.u32 %v9641_v60, 16  ;;  %v17439_v10 = vadd.f32 %v18242_v26, %v17196_v38  ;;  %v18248_v25 = vld [vmem:[#allocation55_spill] sm:$0xff] }
 0x473   : > { %v10352_v49 = vrot.slane %v10350_v3, 3  ;;  %v10355_v32 = vrot.slane %v10353_v31, 4  ;;  %v9724_v61 = vrot.slane %v9722_v0, 3  ;;  %v17443_v59 = vadd.f32 %v18245_v2, %v18244_v9  ;;  %v14769_v26 = vld [vmem:[%s15168_s20 + $0x10] sm:$0xff]  }
 0x474   : > { %18243 = vst [vmem:[#allocation9_spill] sm:$0xff] %v17439_v10  ;;  %v10348_v46 = vsel %vm921_vm1, %v10339_v51, %v10347_v13  ;;  %v9720_v47 = vor.u32 %v9719_v1, %v9716_v29  ;;  %v9727_v44 = vrot.slane %v9725_v15, 4  ;;  %v9642_v42 = vrot.slane %v18247_v23, 5  ;;  %v18249_v10 = vld [vmem:[#allocation61_spill] sm:$0xff] }
 0x475   : > { %18246 = vst [vmem:[#allocation10_spill] sm:$0xff] %v17443_v59  ;;  %v10356_v58 = vor.u32 %v10355_v32, %v10352_v49  ;;  %v9643_v60 = vrot.slane %v14766_v52, 5  ;;  %v9645_v8 = vrot.slane %v18248_v25, 5  ;;  %v9646_v38 = vrot.slane %v14768_v62, 5  ;;  %v18252_v25 = vld [vmem:[#allocation65_spill] sm:$0xff] }
 0x476   : > { %v9728_v3 = vor.u32 %v9727_v44, %v9724_v61  ;;  %v9757_v31 = vshrl.u32 %v9642_v42, 16  ;;  %v9760_v0 = vshll.u32 %v9642_v42, 16  ;;  %v17452_v9 = vadd.f32 %v18249_v10, %v17220_v37  ;;  %v14770_v15 = vld [vmem:[#allocation3 + $0x74] ss:$0 sps:$4 sm:$0x11]  }
 0x477   : > { %10768 = vmatprep.mubr.bf16.mxu1 %v10356_v58  ;;  %v9644_v51 = vsel %vm872_vm0, %v9642_v42, %v9643_v60  ;;  %v9647_v29 = vsel %vm872_vm0, %v9645_v8, %v9646_v38  ;;  %v9800_v13 = vshrl.u32 %v9645_v8, 16  ;;  %v9803_v1 = vshll.u32 %v9645_v8, 16  ;;  %v14772_v61 = vld [vmem:[#allocation3 + $0x88] ss:$0 sps:$4 sm:$0x11]   ;;  %v18251_v60 = vld [vmem:[#allocation64_spill] sm:$0xff] }
 0x478   : > { %18250 = vst [vmem:[#allocation80_spill] sm:$0xff] %v17452_v9  ;;  %10769 = vmatmul.mubr.bf16.gmra.mrb[188].mxu1 %v10348_v46  ;;  %v9729_v52 = vsel %vm921_vm1, %v9720_v47, %v9728_v3  ;;  %v9759_v62 = vrot.slane %v9757_v31, 3  ;;  %v9762_v49 = vrot.slane %v9760_v0, 4  ;;  %v9765_v32 = vshrl.u32 %v9644_v51, 16  ;;  %13855 = vmatmul.mubr.bf16.vlgmr.msra.gmra.mrb[16].mxu0 %v14767_v39  ;;  %v18254_v3 = vld [vmem:[#allocation56_spill] sm:$0xff] }
 0x479   : > { %13806 = vmatprep.mubr.bf16.mxu1 %v9729_v52  ;;  %v9768_v2 = vshll.u32 %v9644_v51, 16  ;;  %v9802_v37 = vrot.slane %v9800_v13, 3  ;;  %v9805_v10 = vrot.slane %v9803_v1, 4  ;;  %v9808_v44 = vshrl.u32 %v9647_v29, 16  ;;  %13858 = vmatprep.mubr.bf16.mxu0 %v14769_v26  ;;  %v14771_v26 = vld [vmem:[%s15168_s20 + $0x18] sm:$0xff]   ;;  %v18255_v1 = vld [vmem:[#allocation53_spill] sm:$0xff] }
 0x47a   : > { %v9763_v23 = vor.u32 %v9762_v49, %v9759_v62  ;;  %v9767_v42 = vrot.slane %v9765_v32, 3  ;;  %v9811_v58 = vshll.u32 %v9647_v29, 16  ;;  %v17459_v46 = vadd.f32 %v18252_v25, %v18251_v60  ;;  %v17461_v47 = vpop.f32.mrb[200].mxu0  ;;  %v18256_v25 = vld [vmem:[#allocation69_spill] sm:$0xff] }
 0x47b   : > { %v9770_v8 = vrot.slane %v9768_v2, 4  ;;  %v9806_v39 = vor.u32 %v9805_v10, %v9802_v37  ;;  %v9810_v38 = vrot.slane %v9808_v44, 3  ;;  %v9648_v31 = vrot.slane %v18254_v3, 5  ;;  %v17464_v0 = vpop.f32.mrb[201].mxu0  ;;  %v14773_v37 = vld [vmem:[%s15168_s20 + $0x20] sm:$0xff]  }
 0x47c   : > { %18253 = vst [vmem:[#allocation81_spill] sm:$0xff] %v17459_v46  ;;  %v9813_v51 = vrot.slane %v9811_v58, 4  ;;  %v9649_v13 = vrot.slane %v14770_v15, 5  ;;  %v9651_v52 = vrot.slane %v18255_v1, 5  ;;  %v9652_v29 = vrot.slane %v14772_v61, 5  ;;  %v17468_v62 = vpop.f32.mrb[202].mxu0 }
 0x47d   : > { %v9771_v49 = vor.u32 %v9770_v8, %v9767_v42  ;;  %v9843_v32 = vshrl.u32 %v9648_v31, 16  ;;  %v9846_v60 = vshll.u32 %v9648_v31, 16  ;;  %v18257_v46 = vld [vmem:[#allocation70_spill] sm:$0xff]  ;;  %v17475_v10 = vpop.f32.mrb[203].mxu0 }
 0x47e   : > { %v17472_v2 = vadd.f32 %v18257_v46, %v18256_v25  ;;  %v9814_v44 = vor.u32 %v9813_v51, %v9810_v38  ;;  %v9650_v58 = vsel %vm872_vm0, %v9648_v31, %v9649_v13  ;;  %v9653_v15 = vsel %vm872_vm0, %v9651_v52, %v9652_v29  ;;  %v14774_v8 = vld [vmem:[#allocation3 + $0x9c] ss:$0 sps:$4 sm:$0x11]   ;;  %v14776_v29 = vld [vmem:[#allocation3 + $0xb0] ss:$0 sps:$4 sm:$0x11]  }
 0x47f   : > { %v9886_v3 = vshrl.u32 %v9651_v52, 16  ;;  %v9772_v61 = vsel %vm921_vm1, %v9763_v23, %v9771_v49  ;;  %v9845_v1 = vrot.slane %v9843_v32, 3  ;;  %v9848_v9 = vrot.slane %v9846_v60, 4  ;;  %v18259_v32 = vld [vmem:[#allocation71_spill] sm:$0xff]  ;;  %v18260_v60 = vld [vmem:[#allocation72_spill] sm:$0xff] }
 0x480   : > { %18258 = vst [vmem:[#allocation82_spill] sm:$0xff] %v17472_v2  ;;  %v9851_v42 = vshrl.u32 %v9650_v58, 16  ;;  %13807 = vmatmul.mubr.bf16.vlgmr.msra.gmra.mrb[96].mxu1 %v9772_v61  ;;  %v9815_v59 = vsel %vm921_vm1, %v9806_v39, %v9814_v44  ;;  %v9854_v46 = vshll.u32 %v9650_v58, 16  ;;  %13859 = vmatmul.mubr.bf16.gmra.mrb[20].mxu0 %v14771_v26  ;;  %v9889_v2 = vshll.u32 %v9651_v52, 16  ;;  %v18262_v39 = vld [vmem:[#allocation54_spill] sm:$0xff] }
 0x481   : > { %v9888_v25 = vrot.slane %v9886_v3, 3  ;;  %13810 = vmatprep.mubr.bf16.mxu1 %v9815_v59  ;;  %v9849_v38 = vor.u32 %v9848_v9, %v9845_v1  ;;  %v9894_v31 = vshrl.u32 %v9653_v15, 16  ;;  %v9897_v13 = vshll.u32 %v9653_v15, 16  ;;  %13862 = vmatprep.mubr.bf16.mxu0 %v14773_v37  ;;  %v18263_v59 = vld [vmem:[#allocation57_spill] sm:$0xff]  ;;  %v14775_v37 = vld [vmem:[%s15168_s20 + $0x28] sm:$0xff]  }
 0x482   : > { %v9853_v51 = vrot.slane %v9851_v42, 3  ;;  %v9856_v23 = vrot.slane %v9854_v46, 4  ;;  %v9891_v49 = vrot.slane %v9889_v2, 4  ;;  %v17483_v61 = vadd.f32 %v18260_v60, %v18259_v32 }
 0x483   : > { %v9654_v44 = vrot.slane %v18262_v39, 5  ;;  %v9896_v26 = vrot.slane %v9894_v31, 3  ;;  %v9899_v58 = vrot.slane %v9897_v13, 4  ;;  %v9655_v52 = vrot.slane %v14774_v8, 5 }
 0x484   : > { %18261 = vst [vmem:[#allocation83_spill] sm:$0xff] %v17483_v61  ;;  %v9657_v9 = vrot.slane %v18263_v59, 5  ;;  %v9857_v3 = vor.u32 %v9856_v23, %v9853_v51  ;;  %v9892_v1 = vor.u32 %v9891_v49, %v9888_v25  ;;  %v9658_v46 = vrot.slane %v14776_v29, 5  ;;  %v14778_v13 = vld [vmem:[#allocation3 + $0xc4] ss:$0 sps:$4 sm:$0x11]  }
 0x485   : > { %v9929_v42 = vshrl.u32 %v9654_v44, 16  ;;  %v9932_v15 = vshll.u32 %v9654_v44, 16  ;;  %v9900_v55 = vor.u32 %v9899_v58, %v9896_v26  ;;  %v9656_v2 = vsel %vm872_vm0, %v9654_v44, %v9655_v52  ;;  %v14780_v23 = vld [vmem:[#allocation3 + $0xd8] ss:$0 sps:$4 sm:$0x11]  }
 0x486   : > { %v9972_v48 = vshrl.u32 %v9657_v9, 16  ;;  %v9858_v32 = vsel %vm921_vm1, %v9849_v38, %v9857_v3  ;;  %v9937_v31 = vshrl.u32 %v9656_v2, 16  ;;  %v9940_v59 = vshll.u32 %v9656_v2, 16  ;;  %v18264_v3 = vld [vmem:[#allocation75_spill] sm:$0xff]  ;;  %v18269_v2 = vld [vmem:[#allocation58_spill] sm:$0xff] }
 0x487   : > { %v9931_v60 = vrot.slane %v9929_v42, 3  ;;  %v9934_v39 = vrot.slane %v9932_v15, 4  ;;  %v9901_v8 = vsel %vm921_vm1, %v9892_v1, %v9900_v55  ;;  %v9659_v25 = vsel %vm872_vm0, %v9657_v9, %v9658_v46  ;;  %v18266_v55 = vld [vmem:[#allocation76_spill] sm:$0xff]  ;;  %v18267_v1 = vld [vmem:[#allocation77_spill] sm:$0xff] }
 0x488   : > { %v9974_v51 = vrot.slane %v9972_v48, 3  ;;  %13811 = vmatmul.mubr.bf16.gmra.mrb[100].mxu1 %v9858_v32  ;;  %v9939_v26 = vrot.slane %v9937_v31, 3  ;;  %13863 = vmatmul.mubr.bf16.gmra.mrb[24].mxu0 %v14775_v37  ;;  %v9975_v29 = vshll.u32 %v9657_v9, 16  ;;  %v9980_v44 = vshrl.u32 %v9659_v25, 16  ;;  %v17493_v58 = vpop.f32.mrb[204].mxu0 }
 0x489   : > { %v9935_v49 = vor.u32 %v9934_v39, %v9931_v60  ;;  %13814 = vmatprep.mubr.bf16.mxu1 %v9901_v8  ;;  %v9942_v38 = vrot.slane %v9940_v59, 4  ;;  %v9983_v52 = vshll.u32 %v9659_v25, 16  ;;  %v17497_v42 = vadd.f32 %v18264_v3, %v17261_v63  ;;  %13866 = vmatprep.mubr.bf16.mxu0 %v14777_v50  ;;  %v17503_v48 = vpop.f32.mrb[205].mxu0  ;;  %v18270_v63 = vld [vmem:[#allocation60_spill] sm:$0xff] }
 0x48a   : > { %v17501_v15 = vadd.f32 %v18267_v1, %v18266_v55  ;;  %v9977_v37 = vrot.slane %v9975_v29, 4  ;;  %v9982_v9 = vrot.slane %v9980_v44, 3  ;;  %v9660_v46 = vrot.slane %v18269_v2, 5  ;;  %v17506_v60 = vpop.f32.mrb[206].mxu0  ;;  %v14779_v29 = vld [vmem:[%s15168_s20 + $0x38] sm:$0xff]  }
 0x48b   : > { %18265 = vst [vmem:[#allocation19_spill] sm:$0xff] %v17497_v42  ;;  %v9661_v32 = vrot.slane %v14778_v13, 5  ;;  %v9943_v39 = vor.u32 %v9942_v38, %v9939_v26  ;;  %v9985_v31 = vrot.slane %v9983_v52, 4  ;;  %v9663_v8 = vrot.slane %v18270_v63, 5  ;;  %v17509_v25 = vpop.f32.mrb[207].mxu0  ;;  %v14781_v42 = vld [vmem:[%s15168_s20 + $0x40] sm:$0xff]  }
 0x48c   : > { %18268 = vst [vmem:[#allocation20_spill] sm:$0xff] %v17501_v15  ;;  %v9664_v59 = vrot.slane %v14780_v23, 5  ;;  %v9978_v3 = vor.u32 %v9977_v37, %v9974_v51  ;;  %v10015_v55 = vshrl.u32 %v9660_v46, 16  ;;  %v10018_v1 = vshll.u32 %v9660_v46, 16 }
 0x48d   : > { %v9662_v50 = vsel %vm872_vm0, %v9660_v46, %v9661_v32  ;;  %v9944_v44 = vsel %vm921_vm1, %v9935_v49, %v9943_v39  ;;  %v9986_v2 = vor.u32 %v9985_v31, %v9982_v9  ;;  %v10058_v52 = vshrl.u32 %v9663_v8, 16  ;;  %v14782_v23 = vld [vmem:[#allocation3 + $0xec] ss:$0 sps:$4 sm:$0x11]  }
 0x48e   : > { %v10023_v13 = vshrl.u32 %v9662_v50, 16  ;;  %v10026_v15 = vshll.u32 %v9662_v50, 16  ;;  %v10017_v61 = vrot.slane %v10015_v55, 3  ;;  %v10020_v26 = vrot.slane %v10018_v1, 4 }
 0x48f   : > { %v9665_v38 = vsel %vm872_vm0, %v9663_v8, %v9664_v59  ;;  %v9987_v63 = vsel %vm921_vm1, %v9978_v3, %v9986_v2  ;;  %v10061_v32 = vshll.u32 %v9663_v8, 16  ;;  %v10060_v49 = vrot.slane %v10058_v52, 3 }
 0x490   : > { %v10025_v51 = vrot.slane %v10023_v13, 3  ;;  %v10028_v37 = vrot.slane %v10026_v15, 4  ;;  %13815 = vmatmul.mubr.bf16.gmra.mrb[104].mxu1 %v9944_v44  ;;  %v10021_v46 = vor.u32 %v10020_v26, %v10017_v61  ;;  %13867 = vmatmul.mubr.bf16.gmra.mrb[28].mxu0 %v14779_v29  ;;  %v10066_v9 = vshrl.u32 %v9665_v38, 16  ;;  %v18271_v61 = vld [vmem:[#allocation66_spill] sm:$0xff] }
 0x491   : > { %v10069_v39 = vshll.u32 %v9665_v38, 16  ;;  %13818 = vmatprep.mubr.bf16.mxu1 %v9987_v63  ;;  %v10063_v50 = vrot.slane %v10061_v32, 4  ;;  %v17519_v59 = vadd.f32 %v17300_v14, %v17292_v17  ;;  %v17523_v3 = vadd.f32 %v17306_v45, %v17302_v36  ;;  %13870 = vmatprep.mubr.bf16.mxu0 %v14781_v42  ;;  %v14783_v36 = vld [vmem:[%s15168_s20 + $0x48] sm:$0xff]   ;;  %v14786_v45 = vld [vmem:[#allocation3 + $0x114] ss:$0 sps:$4 sm:$0x11]  }
 0x492   : > { %v10029_v31 = vor.u32 %v10028_v37, %v10025_v51  ;;  %v10068_v15 = vrot.slane %v10066_v9, 3  ;;  %v9666_v55 = vrot.slane %v18271_v61, 5  ;;  %v9667_v1 = vrot.slane %v14782_v23, 5  ;;  %v14785_v37 = vld [vmem:[%s15168_s20 + $0x50] sm:$0xff]  }
 0x493   : > { %v10071_v8 = vrot.slane %v10069_v39, 4  ;;  %v10064_v44 = vor.u32 %v10063_v50, %v10060_v49  ;;  %v9669_v2 = vrot.slane %v17270_v53, 5  ;;  %v9670_v13 = vrot.slane %v14784_v43, 5  ;;  %v14788_v32 = vld [vmem:[#allocation3 + $0x128] ss:$0 sps:$4 sm:$0x11]  }
 0x494   : > { %v10030_v29 = vsel %vm921_vm1, %v10021_v46, %v10029_v31  ;;  %v9668_v17 = vsel %vm872_vm0, %v9666_v55, %v9667_v1  ;;  %v10101_v14 = vshrl.u32 %v9666_v55, 16  ;;  %v10104_v38 = vshll.u32 %v9666_v55, 16  ;;  %v17530_v42 = vpop.f32.mrb[208].mxu0 }
 0x495   : > { %v10072_v26 = vor.u32 %v10071_v8, %v10068_v15  ;;  %v10109_v52 = vshrl.u32 %v9668_v17, 16  ;;  %v10112_v63 = vshll.u32 %v9668_v17, 16  ;;  %v9671_v23 = vsel %vm872_vm0, %v9669_v2, %v9670_v13  ;;  %v17534_v46 = vpop.f32.mrb[209].mxu0 }
 0x496   : > { %v10144_v51 = vshrl.u32 %v9669_v2, 16  ;;  %v10103_v43 = vrot.slane %v10101_v14, 3  ;;  %v10106_v49 = vrot.slane %v10104_v38, 4  ;;  %v10147_v9 = vshll.u32 %v9669_v2, 16  ;;  %v17537_v39 = vpop.f32.mrb[210].mxu0  ;;  %v18274_v14 = vld [vmem:[#allocation11_spill] sm:$0xff] }
 0x497   : > { %v10073_v53 = vsel %vm921_vm1, %v10064_v44, %v10072_v26  ;;  %v10111_v31 = vrot.slane %v10109_v52, 3  ;;  %v10114_v50 = vrot.slane %v10112_v63, 4  ;;  %v10152_v8 = vshrl.u32 %v9671_v23, 16  ;;  %v17539_v61 = vpop.f32.mrb[211].mxu0 }
 0x498   : > { %v10146_v15 = vrot.slane %v10144_v51, 3  ;;  %13819 = vmatmul.mubr.bf16.gmra.mrb[108].mxu1 %v10030_v29  ;;  %v10107_v55 = vor.u32 %v10106_v49, %v10103_v43  ;;  %13871 = vmatmul.mubr.bf16.gmra.mrb[32].mxu0 %v14783_v36  ;;  %v10149_v1 = vrot.slane %v10147_v9, 4  ;;  %v10155_v13 = vshll.u32 %v9671_v23, 16  ;;  %v14790_v43 = vld [vmem:[#allocation3 + $0x13c] ss:$0 sps:$4 sm:$0x11]  }
 0x499   : > { %v17543_v17 = vadd.f32 %v17325_v28, %v17320_v22  ;;  %13822 = vmatprep.mubr.bf16.mxu1 %v10073_v53  ;;  %v10115_v44 = vor.u32 %v10114_v50, %v10111_v31  ;;  %v10154_v2 = vrot.slane %v10152_v8, 3  ;;  %v17547_v26 = vadd.f32 %v17335_v4, %v17330_v18  ;;  %13874 = vmatprep.mubr.bf16.mxu0 %v14785_v37  ;;  %v14787_v49 = vld [vmem:[%s15168_s20 + $0x58] sm:$0xff]  }
 0x49a   : > { %v9672_v38 = vrot.slane %v18274_v14, 5  ;;  %v10150_v29 = vor.u32 %v10149_v1, %v10146_v15  ;;  %v10157_v52 = vrot.slane %v10155_v13, 4  ;;  %v9673_v36 = vrot.slane %v14786_v45, 5  ;;  %v17551_v23 = vpop.f32.mrb[128].mxu1 }
 0x49b   : > { %18272 = vst [vmem:[#allocation15_spill] sm:$0xff] %v17543_v17  ;;  %18273 = vst [vmem:[#allocation16_spill] sm:$0xff] %v17547_v26  ;;  %v9675_v63 = vrot.slane %v17310_v12, 5  ;;  %v10116_v22 = vsel %vm921_vm1, %v10107_v55, %v10115_v44  ;;  %v9676_v53 = vrot.slane %v14788_v32, 5  ;;  %v17554_v18 = vpop.f32.mrb[129].mxu1  ;;  %v14789_v55 = vld [vmem:[%s15168_s20 + $0x60] sm:$0xff]  }
 0x49c   : > { %v10187_v28 = vshrl.u32 %v9672_v38, 16  ;;  %v10190_v51 = vshll.u32 %v9672_v38, 16  ;;  %v10158_v4 = vor.u32 %v10157_v52, %v10154_v2  ;;  %v9674_v37 = vsel %vm872_vm0, %v9672_v38, %v9673_v36  ;;  %v17558_v45 = vpop.f32.mrb[130].mxu1  ;;  %v14792_v14 = vld [vmem:[#allocation3 + $0x150] ss:$0 sps:$4 sm:$0x11]  }
 0x49d   : > { %v10230_v9 = vshrl.u32 %v9675_v63, 16  ;;  %v10233_v31 = vshll.u32 %v9675_v63, 16  ;;  %v10195_v15 = vshrl.u32 %v9674_v37, 16  ;;  %v10198_v8 = vshll.u32 %v9674_v37, 16  ;;  %v17561_v1 = vpop.f32.mrb[131].mxu1 }
 0x49e   : > { %v10189_v12 = vrot.slane %v10187_v28, 3  ;;  %v10192_v50 = vrot.slane %v10190_v51, 4  ;;  %v10159_v32 = vsel %vm921_vm1, %v10150_v29, %v10158_v4  ;;  %v9677_v13 = vsel %vm872_vm0, %v9675_v63, %v9676_v53 }
 0x49f   : > { %v10232_v44 = vrot.slane %v10230_v9, 3  ;;  %v10235_v2 = vrot.slane %v10233_v31, 4  ;;  %v10197_v52 = vrot.slane %v10195_v15, 3  ;;  %v10200_v36 = vrot.slane %v10198_v8, 4  ;;  %v17565_v17 = vpop.f32.mrb[212].mxu0 }
 0x4a0   : > { %v10193_v38 = vor.u32 %v10192_v50, %v10189_v12  ;;  %v10238_v26 = vshrl.u32 %v9677_v13, 16  ;;  %13823 = vmatmul.mubr.bf16.gmra.mrb[112].mxu1 %v10116_v22  ;;  %13875 = vmatmul.mubr.bf16.gmra.mrb[36].mxu0 %v14787_v49  ;;  %v10241_v51 = vshll.u32 %v9677_v13, 16  ;;  %v17569_v37 = vadd.f32 %v17365_v34, %v17359_v24  ;;  %v17575_v63 = vpop.f32.mrb[213].mxu0 }
 0x4a1   : > { %v10236_v28 = vor.u32 %v10235_v2, %v10232_v44  ;;  %v17573_v29 = vadd.f32 %v17370_v57, %v17368_v20  ;;  %13826 = vmatprep.mubr.bf16.mxu1 %v10159_v32  ;;  %v10201_v53 = vor.u32 %v10200_v36, %v10197_v52  ;;  %13878 = vmatprep.mubr.bf16.mxu0 %v14789_v55  ;;  %v9678_v22 = vrot.slane %v17340_v7, 5  ;;  %v17578_v9 = vpop.f32.mrb[214].mxu0  ;;  %v14791_v55 = vld [vmem:[%s15168_s20 + $0x68] sm:$0xff]   ;;  %v14793_v2 = vld [vmem:[%s15168_s20 + $0x70] sm:$0xff]  }
 0x4a2   : > { %v10240_v4 = vrot.slane %v10238_v26, 3  ;;  %v9679_v49 = vrot.slane %v14790_v43, 5  ;;  %v10243_v31 = vrot.slane %v10241_v51, 4  ;;  %v9681_v24 = vrot.slane %v17376_v16, 5  ;;  %v17585_v57 = vpop.f32.mrb[215].mxu0 }
 0x4a3   : > { %v9682_v34 = vrot.slane %v14792_v14, 5  ;;  %v17583_v20 = vadd.f32 %v17398_v35, %v17395_v40  ;;  %v10202_v26 = vsel %vm921_vm1, %v10193_v38, %v10201_v53  ;;  %v10273_v50 = vshrl.u32 %v9678_v22, 16  ;;  %v14794_v32 = vld [vmem:[#allocation3 + $0x164] ss:$0 sps:$4 sm:$0x11]  }
 0x4a4   : > { %v9680_v12 = vsel %vm872_vm0, %v9678_v22, %v9679_v49  ;;  %v10276_v7 = vshll.u32 %v9678_v22, 16  ;;  %v10244_v43 = vor.u32 %v10243_v31, %v10240_v4  ;;  %v10316_v40 = vshrl.u32 %v9681_v24, 16 }
 0x4a5   : > { %v10281_v15 = vshrl.u32 %v9680_v12, 16  ;;  %v10284_v8 = vshll.u32 %v9680_v12, 16  ;;  %v9683_v16 = vsel %vm872_vm0, %v9681_v24, %v9682_v34  ;;  %v10275_v13 = vrot.slane %v10273_v50, 3 }
 0x4a6   : > { %v10278_v44 = vrot.slane %v10276_v7, 4  ;;  %v10319_v35 = vshll.u32 %v9681_v24, 16  ;;  %v10245_v14 = vsel %vm921_vm1, %v10236_v28, %v10244_v43  ;;  %v10324_v36 = vshrl.u32 %v9683_v16, 16  ;;  %v13412_v51 = vpop.f32.mrb[132].mxu1 }
 0x4a7   : > { %v10283_v52 = vrot.slane %v10281_v15, 3  ;;  %v10286_v38 = vrot.slane %v10284_v8, 4  ;;  %v10318_v22 = vrot.slane %v10316_v40, 3  ;;  %v10327_v49 = vshll.u32 %v9683_v16, 16  ;;  %v13413_v31 = vpop.f32.mrb[133].mxu1 }
 0x4a8   : > { %v10279_v53 = vor.u32 %v10278_v44, %v10275_v13  ;;  %v10321_v4 = vrot.slane %v10319_v35, 4  ;;  %13827 = vmatmul.mubr.bf16.gmra.mrb[116].mxu1 %v10202_v26  ;;  %13879 = vmatmul.mubr.bf16.gmra.mrb[40].mxu0 %v14791_v55  ;;  %v10326_v34 = vrot.slane %v10324_v36, 3  ;;  %v17595_v50 = vadd.f32 %v17405_v30, %v17401_v21  ;;  %v13415_v28 = vpop.f32.mrb[134].mxu1 }
 0x4a9   : > { %v10287_v12 = vor.u32 %v10286_v38, %v10283_v52  ;;  %v9684_v24 = vrot.slane %v17420_v5, 5  ;;  %13830 = vmatprep.mubr.bf16.mxu1 %v10245_v14  ;;  %v10329_v43 = vrot.slane %v10327_v49, 4  ;;  %13882 = vmatprep.mubr.bf16.mxu0 %v14793_v2  ;;  %v9685_v15 = vrot.slane %v14794_v32, 5  ;;  %v13416_v26 = vpop.f32.mrb[135].mxu1  ;;  %v14795_v14 = vld [vmem:[%s15168_s20 + $0x78] sm:$0xff]  }
 0x4aa   : > { %v10322_v7 = vor.u32 %v10321_v4, %v10318_v22  ;;  %v17600_v8 = vadd.f32 %v17429_v11, %v17426_v27  ;;  %v17605_v21 = vadd.f32 %v17435_v56, %v17431_v33  ;;  %v17610_v32 = vadd.f32 %v17464_v0, %v17461_v47  ;;  %v18275_v4 = vld [vmem:[#allocation12_spill] sm:$0xff] }
 0x4ab   : > { %v10288_v55 = vsel %vm921_vm1, %v10279_v53, %v10287_v12  ;;  %v10359_v16 = vshrl.u32 %v9684_v24, 16  ;;  %v10362_v13 = vshll.u32 %v9684_v24, 16  ;;  %v10330_v30 = vor.u32 %v10329_v43, %v10326_v34  ;;  %v13282_v11 = vpop.f32.mrb[216].mxu0 }
 0x4ac   : > { %v9686_v5 = vsel %vm872_vm0, %v9684_v24, %v9685_v15  ;;  %v17614_v27 = vadd.f32 %v17475_v10, %v17468_v62  ;;  %v13283_v52 = vpop.f32.mrb[217].mxu0  ;;  %v17620_v56 = vadd.f32 %v17503_v48, %v17493_v58  ;;  %v17624_v47 = vadd.f32 %v17509_v25, %v17506_v60 }
 0x4ad   : > { %v10361_v44 = vrot.slane %v10359_v16, 3  ;;  %v10364_v40 = vrot.slane %v10362_v13, 4  ;;  %v10367_v35 = vshrl.u32 %v9686_v5, 16  ;;  %v10370_v2 = vshll.u32 %v9686_v5, 16  ;;  %v13285_v62 = vpop.f32.mrb[218].mxu0  ;;  %v18278_v16 = vld [vmem:[#allocation84_spill] sm:$0xff] }
 0x4ae   : > { %v10331_v33 = vsel %vm921_vm1, %v10322_v7, %v10330_v30  ;;  %v13272_v0 = vadd.f32 %v17534_v46, %v17530_v42  ;;  %v17630_v53 = vadd.f32 %v17554_v18, %v17551_v23  ;;  %v13286_v22 = vpop.f32.mrb[219].mxu0  ;;  %v13275_v58 = vadd.f32 %v17539_v61, %v17537_v39  ;;  %v18276_v23 = vld [vmem:[#allocation7_spill] sm:$0xff] }
 0x4af   : > { %v10365_v10 = vor.u32 %v10364_v40, %v10361_v44  ;;  %v10369_v38 = vrot.slane %v10367_v35, 3  ;;  %v10372_v36 = vrot.slane %v10370_v2, 4  ;;  %v17639_v48 = vadd.f32 %v17561_v1, %v17558_v45 }
 0x4b0   : > { %v17633_v49 = vadd.f32 %v13272_v0, %v18275_v4  ;;  %v13278_v60 = vadd.f32 %v17575_v63, %v17565_v17  ;;  %13831 = vmatmul.mubr.bf16.gmra.mrb[120].mxu1 %v10288_v55  ;;  %13883 = vmatmul.mubr.bf16.gmra.mrb[44].mxu0 %v14795_v14  ;;  %v13414_v42 = vadd.f32 %v13413_v31, %v13412_v51  ;;  %v18279_v0 = vld [vmem:[#allocation13_spill] sm:$0xff] }
 0x4b1   : > { %v10373_v25 = vor.u32 %v10372_v36, %v10369_v38  ;;  %v13281_v46 = vadd.f32 %v17585_v57, %v17578_v9  ;;  %13834 = vmatprep.mubr.bf16.mxu1 %v10331_v33  ;;  %v17646_v18 = vadd.f32 %v13275_v58, %v18276_v23  ;;  %v13417_v61 = vadd.f32 %v13416_v26, %v13415_v28  ;;  %v13418_v45 = vpop.f32.mrb[136].mxu1  ;;  %v18277_v26 = vld [vmem:[#allocation8_spill] sm:$0xff] }
 0x4b2   : > { %v14014_v39 = vadd.f32 %v13278_v60, %v17314_v6  ;;  %v13284_v12 = vadd.f32 %v13283_v52, %v13282_v11  ;;  %v13419_v34 = vpop.f32.mrb[137].mxu1  ;;  %v13287_v17 = vadd.f32 %v13286_v22, %v13285_v62  ;;  %v18280_v22 = vld [vmem:[#allocation14_spill] sm:$0xff] }
 0x4b3   : > { %v14020_v1 = vadd.f32 %v13281_v46, %v17318_v54  ;;  %v17653_v51 = vadd.f32 %v13419_v34, %v13418_v45  ;;  %v13421_v31 = vpop.f32.mrb[138].mxu1  ;;  %v10374_v24 = vsel %vm921_vm1, %v10365_v10, %v10373_v25 }
 0x4b4   : > { %v17651_v63 = vadd.f32 %v13284_v12, %v17347_v19  ;;  %v17656_v9 = vadd.f32 %v13287_v17, %v17351_v41  ;;  %v13422_v57 = vpop.f32.mrb[139].mxu1 }
 0x4b5   : > { %v17659_v6 = vadd.f32 %v13422_v57, %v13421_v31  ;;  %v18281_v31 = vld [vmem:[#allocation9_spill] sm:$0xff] }
 0x4b6   : > { %v13288_v28 = vpop.f32.mrb[220].mxu0 }
 0x4b7   : > { %v13289_v7 = vpop.f32.mrb[221].mxu0 }
 0x4b8   : > { %13835 = vmatmul.mubr.bf16.gmra.mrb[124].mxu1 %v10374_v24  ;;  %v13290_v54 = vadd.f32 %v13289_v7, %v13288_v28  ;;  %v13291_v43 = vpop.f32.mrb[222].mxu0  ;;  %v17666_v28 = vadd.f32 %v14014_v39, %v13414_v42  ;;  %v18283_v39 = vld [vmem:[#allocation80_spill] sm:$0xff] }
 0x4b9   : > { %v13292_v15 = vpop.f32.mrb[223].mxu0 }
 0x4ba   : > { %v14026_v19 = vadd.f32 %v13290_v54, %v18277_v26  ;;  %v13293_v55 = vadd.f32 %v13292_v15, %v13291_v43  ;;  %v18282_v54 = vld [vmem:[#allocation10_spill] sm:$0xff] }
 0x4bc   : > { %v14032_v13 = vadd.f32 %v13293_v55, %v18278_v16 }
 0x4bd   : > { %v13424_v30 = vpop.f32.mrb[140].mxu1 }
 0x4be   : > { %v13425_v5 = vpop.f32.mrb[141].mxu1 }
 0x4bf   : > { %v13426_v41 = vadd.f32 %v13425_v5, %v13424_v30  ;;  %v13427_v11 = vpop.f32.mrb[142].mxu1 }
 0x4c0   : > { %v13428_v44 = vpop.f32.mrb[143].mxu1 }
 0x4c1   : > { %v13429_v40 = vadd.f32 %v13428_v44, %v13427_v11  ;;  %v17671_v44 = vadd.f32 %v17633_v49, %v17630_v53  ;;  %v17681_v49 = vadd.f32 %v14026_v19, %v13426_v41 }
 0x4c3   : > { %v13294_v35 = vpop.f32.mrb[224].mxu0 }
 0x4c4   : > { %v13295_v2 = vpop.f32.mrb[225].mxu0 }
 0x4c5   : > { %v13296_v14 = vadd.f32 %v13295_v2, %v13294_v35  ;;  %v13297_v52 = vpop.f32.mrb[226].mxu0 }
 0x4c6   : > { %v13298_v33 = vpop.f32.mrb[227].mxu0 }
 0x4c7   : > { %v14041_v62 = vadd.f32 %v13296_v14, %v18279_v0  ;;  %v13299_v10 = vadd.f32 %v13298_v33, %v13297_v52  ;;  %v17673_v14 = vadd.f32 %v14020_v1, %v13417_v61  ;;  %v17685_v61 = vadd.f32 %v17651_v63, %v17653_v51  ;;  %v18286_v63 = vld [vmem:[#allocation83_spill] sm:$0xff] }
 0x4c8   : > { %v13430_v38 = vpop.f32.mrb[144].mxu1  ;;  %v17687_v1 = vadd.f32 %v14032_v13, %v13429_v40 }
 0x4c9   : > { %v13431_v36 = vpop.f32.mrb[145].mxu1  ;;  %v14047_v4 = vadd.f32 %v13299_v10, %v18280_v22 }
 0x4ca   : > { %v13432_v58 = vadd.f32 %v13431_v36, %v13430_v38  ;;  %v13433_v60 = vpop.f32.mrb[146].mxu1  ;;  %v18284_v38 = vld [vmem:[#allocation81_spill] sm:$0xff] }
 0x4cb   : > { %v13434_v25 = vpop.f32.mrb[147].mxu1 }
 0x4cc   : > { %v13435_v46 = vadd.f32 %v13434_v25, %v13433_v60  ;;  %v17679_v25 = vadd.f32 %v17646_v18, %v17639_v48  ;;  %v17692_v48 = vadd.f32 %v17656_v9, %v17659_v6  ;;  %v17697_v13 = vadd.f32 %v14041_v62, %v13432_v58  ;;  %v18287_v62 = vld [vmem:[#allocation19_spill] sm:$0xff] }
 0x4ce   : > { %v13300_v23 = vpop.f32.mrb[228].mxu0 }
 0x4cf   : > { %v13301_v12 = vpop.f32.mrb[229].mxu0 }
 0x4d0   : > { %v13302_v45 = vadd.f32 %v13301_v12, %v13300_v23  ;;  %v13303_v34 = vpop.f32.mrb[230].mxu0 }
 0x4d1   : > { %v13304_v17 = vpop.f32.mrb[231].mxu0 }
 0x4d2   : > { %v14038_v57 = vadd.f32 %v13302_v45, %v18281_v31  ;;  %v13305_v24 = vadd.f32 %v13304_v17, %v13303_v34 }
 0x4d4   : > { %v13436_v7 = vpop.f32.mrb[148].mxu1  ;;  %v14044_v43 = vadd.f32 %v13305_v24, %v18282_v54  ;;  %v18285_v24 = vld [vmem:[#allocation82_spill] sm:$0xff] }
 0x4d5   : > { %v13437_v15 = vpop.f32.mrb[149].mxu1 }
 0x4d6   : > { %v13438_v26 = vadd.f32 %v13437_v15, %v13436_v7  ;;  %v13439_v55 = vpop.f32.mrb[150].mxu1 }
 0x4d7   : > { %v13440_v16 = vpop.f32.mrb[151].mxu1 }
 0x4d8   : > { %v13441_v30 = vadd.f32 %v13440_v16, %v13439_v55  ;;  %v17694_v19 = vadd.f32 %v14038_v57, %v13438_v26 }
 0x4da   : > { %v17699_v55 = vadd.f32 %v14044_v43, %v13441_v30  ;;  %v18288_v30 = vld [vmem:[#allocation20_spill] sm:$0xff] }
 0x4db   : > { %v13306_v5 = vpop.f32.mrb[232].mxu0 }
 0x4dc   : > { %v13307_v11 = vpop.f32.mrb[233].mxu0 }
 0x4dd   : > { %v13308_v35 = vadd.f32 %v13307_v11, %v13306_v5  ;;  %v13309_v2 = vpop.f32.mrb[234].mxu0 }
 0x4de   : > { %v13310_v42 = vpop.f32.mrb[235].mxu0 }
 0x4df   : > { %v14053_v52 = vadd.f32 %v13308_v35, %v18283_v39  ;;  %v13311_v33 = vadd.f32 %v13310_v42, %v13309_v2  ;;  %v17701_v35 = vadd.f32 %v14047_v4, %v13435_v46 }
 0x4e0   : > { %v13442_v0 = vpop.f32.mrb[152].mxu1 }
 0x4e1   : > { %v13443_v10 = vpop.f32.mrb[153].mxu1  ;;  %v14059_v36 = vadd.f32 %v13311_v33, %v18284_v38 }
 0x4e2   : > { %v13444_v22 = vadd.f32 %v13443_v10, %v13442_v0  ;;  %v13445_v60 = vpop.f32.mrb[154].mxu1 }
 0x4e3   : > { %v13446_v53 = vpop.f32.mrb[155].mxu1 }
 0x4e4   : > { %v13447_v23 = vadd.f32 %v13446_v53, %v13445_v60  ;;  %v17705_v26 = vadd.f32 %v14053_v52, %v13444_v22 }
 0x4e6   : > { %v13312_v12 = vpop.f32.mrb[236].mxu0  ;;  %v17711_v46 = vadd.f32 %v14059_v36, %v13447_v23 }
 0x4e7   : > { %v13313_v45 = vpop.f32.mrb[237].mxu0 }
 0x4e8   : > { %v13314_v34 = vadd.f32 %v13313_v45, %v13312_v12  ;;  %v13315_v17 = vpop.f32.mrb[238].mxu0 }
 0x4e9   : > { %v13316_v31 = vpop.f32.mrb[239].mxu0 }
 0x4ea   : > { %v14050_v7 = vadd.f32 %v13314_v34, %v18285_v24  ;;  %v13317_v54 = vadd.f32 %v13316_v31, %v13315_v17 }
 0x4eb   : > { %v13448_v18 = vpop.f32.mrb[156].mxu1 }
 0x4ec   : > { %v13449_v41 = vpop.f32.mrb[157].mxu1  ;;  %v14056_v51 = vadd.f32 %v13317_v54, %v18286_v63 }
 0x4ed   : > { %v13450_v40 = vadd.f32 %v13449_v41, %v13448_v18  ;;  %v13451_v15 = vpop.f32.mrb[158].mxu1 }
 0x4ee   : > { %v13452_v16 = vpop.f32.mrb[159].mxu1 }
 0x4ef   : > { %v13453_v5 = vadd.f32 %v13452_v16, %v13451_v15  ;;  %v17703_v9 = vadd.f32 %v14050_v7, %v13450_v40 }
 0x4f1   : > { %v17707_v39 = vadd.f32 %v14056_v51, %v13453_v5 }
 0x4f2   : > { %v13318_v11 = vpop.f32.mrb[240].mxu0 }
 0x4f3   : > { %v13319_v2 = vpop.f32.mrb[241].mxu0 }
 0x4f4   : > { %v13320_v6 = vadd.f32 %v13319_v2, %v13318_v11  ;;  %v13321_v57 = vpop.f32.mrb[242].mxu0 }
 0x4f5   : > { %v13322_v42 = vpop.f32.mrb[243].mxu0 }
 0x4f6   : > { %v14065_v58 = vadd.f32 %v13320_v6, %v18287_v62  ;;  %v13323_v33 = vadd.f32 %v13322_v42, %v13321_v57  ;;  %v18289_v6 = vld [vmem:[#allocation15_spill] sm:$0xff] }
 0x4f8   : > { %v13454_v43 = vpop.f32.mrb[160].mxu1  ;;  %v14071_v0 = vadd.f32 %v13323_v33, %v18288_v30 }
 0x4f9   : > { %v13455_v10 = vpop.f32.mrb[161].mxu1 }
 0x4fa   : > { %v13456_v38 = vadd.f32 %v13455_v10, %v13454_v43  ;;  %v13457_v4 = vpop.f32.mrb[162].mxu1 }
 0x4fb   : > { %v13458_v60 = vpop.f32.mrb[163].mxu1 }
 0x4fc   : > { %v13459_v53 = vadd.f32 %v13458_v60, %v13457_v4  ;;  %v17713_v12 = vadd.f32 %v14065_v58, %v13456_v38 }
 0x4fe   : > { %v13324_v52 = vpop.f32.mrb[244].mxu0  ;;  %v17716_v7 = vadd.f32 %v14071_v0, %v13459_v53 }
 0x4ff   : > { %v13325_v22 = vpop.f32.mrb[245].mxu0 }
 0x500   : > { %v13326_v45 = vadd.f32 %v13325_v22, %v13324_v52  ;;  %v13327_v34 = vpop.f32.mrb[246].mxu0 }
 0x501   : > { %v13328_v17 = vpop.f32.mrb[247].mxu0 }
 0x502   : > { %v14062_v31 = vadd.f32 %v13326_v45, %v17519_v59  ;;  %v13329_v24 = vadd.f32 %v13328_v17, %v13327_v34 }
 0x503   : > { %v13460_v54 = vpop.f32.mrb[164].mxu1 }
 0x504   : > { %v14068_v18 = vadd.f32 %v13329_v24, %v17523_v3  ;;  %v13461_v41 = vpop.f32.mrb[165].mxu1  ;;  %v18290_v3 = vld [vmem:[#allocation16_spill] sm:$0xff] }
 0x505   : > { %v13462_v36 = vadd.f32 %v13461_v41, %v13460_v54  ;;  %v13463_v23 = vpop.f32.mrb[166].mxu1 }
 0x506   : > { %v13464_v63 = vpop.f32.mrb[167].mxu1 }
 0x507   : > { %v13465_v51 = vadd.f32 %v13464_v63, %v13463_v23  ;;  %v17719_v40 = vadd.f32 %v14062_v31, %v13462_v36 }
 0x509   : > { %v13330_v15 = vpop.f32.mrb[248].mxu0  ;;  %v17721_v16 = vadd.f32 %v14068_v18, %v13465_v51 }
 0x50a   : > { %v13331_v5 = vpop.f32.mrb[249].mxu0 }
 0x50b   : > { %v13332_v11 = vadd.f32 %v13331_v5, %v13330_v15  ;;  %v13333_v2 = vpop.f32.mrb[250].mxu0 }
 0x50c   : > { %v13334_v59 = vpop.f32.mrb[251].mxu0 }
 0x50d   : > { %v14077_v57 = vadd.f32 %v13332_v11, %v18289_v6  ;;  %v13335_v42 = vadd.f32 %v13334_v59, %v13333_v2 }
 0x50e   : > { %v13466_v62 = vpop.f32.mrb[168].mxu1 }
 0x50f   : > { %v13467_v58 = vpop.f32.mrb[169].mxu1  ;;  %v14083_v33 = vadd.f32 %v13335_v42, %v18290_v3 }
 0x510   : > { %v13468_v43 = vadd.f32 %v13467_v58, %v13466_v62  ;;  %v13469_v30 = vpop.f32.mrb[170].mxu1 }
 0x511   : > { %v13470_v0 = vpop.f32.mrb[171].mxu1 }
 0x512   : > { %v13471_v10 = vadd.f32 %v13470_v0, %v13469_v30  ;;  %v17725_v38 = vadd.f32 %v14077_v57, %v13468_v43 }
 0x514   : > { %v17727_v4 = vadd.f32 %v14083_v33, %v13471_v10 }
 0x516   : > { %v13336_v60 = vpop.f32.mrb[252].mxu0 }
 0x517   : > { %v13337_v53 = vpop.f32.mrb[253].mxu0 }
 0x518   : > { %v13338_v52 = vadd.f32 %v13337_v53, %v13336_v60  ;;  %v13339_v22 = vpop.f32.mrb[254].mxu0 }
 0x519   : > { %v13340_v45 = vpop.f32.mrb[255].mxu0 }
 0x51a   : > { %v14074_v34 = vadd.f32 %v13338_v52, %v17569_v37  ;;  %v13341_v17 = vadd.f32 %v13340_v45, %v13339_v22 }
 0x51b   : > { %v13472_v31 = vpop.f32.mrb[172].mxu1 }
 0x51c   : > { %v13473_v24 = vpop.f32.mrb[173].mxu1  ;;  %v14080_v54 = vadd.f32 %v13341_v17, %v17573_v29 }
 0x51d   : > { %v13474_v18 = vadd.f32 %v13473_v24, %v13472_v31  ;;  %v13475_v41 = vpop.f32.mrb[174].mxu1 }
 0x51e   : > { %v13476_v36 = vpop.f32.mrb[175].mxu1 }
 0x51f   : > { %v13477_v23 = vadd.f32 %v13476_v36, %v13475_v41  ;;  %v17731_v63 = vadd.f32 %v14074_v34, %v13474_v18 }
 0x520   : > { %v13342_v51 = vpop.f32.mrb[0].mxu0 }
 0x521   : > { %v13343_v15 = vpop.f32.mrb[1].mxu0  ;;  %v17733_v5 = vadd.f32 %v14080_v54, %v13477_v23 }
 0x522   : > { %v13344_v11 = vadd.f32 %v13343_v15, %v13342_v51  ;;  %v13345_v2 = vpop.f32.mrb[2].mxu0 }
 0x523   : > { %v13346_v59 = vpop.f32.mrb[3].mxu0 }
 0x524   : > { %v14089_v37 = vadd.f32 %v13344_v11, %v17583_v20  ;;  %v13347_v6 = vadd.f32 %v13346_v59, %v13345_v2 }
 0x526   : > { %v13478_v57 = vpop.f32.mrb[176].mxu1  ;;  %v14095_v42 = vadd.f32 %v13347_v6, %v17595_v50 }
 0x527   : > { %v13479_v29 = vpop.f32.mrb[177].mxu1 }
 0x528   : > { %v13480_v62 = vadd.f32 %v13479_v29, %v13478_v57  ;;  %v13481_v58 = vpop.f32.mrb[178].mxu1 }
 0x529   : > { %v13482_v3 = vpop.f32.mrb[179].mxu1 }
 0x52a   : > { %v13483_v33 = vadd.f32 %v13482_v3, %v13481_v58  ;;  %v17737_v43 = vadd.f32 %v14089_v37, %v13480_v62 }
 0x52c   : > { %v17739_v30 = vadd.f32 %v14095_v42, %v13483_v33 }
 0x52d   : > { %v13348_v0 = vpop.f32.mrb[4].mxu0 }
 0x52e   : > { %v13349_v10 = vpop.f32.mrb[5].mxu0 }
 0x52f   : > { %v13350_v60 = vadd.f32 %v13349_v10, %v13348_v0  ;;  %v13351_v53 = vpop.f32.mrb[6].mxu0 }
 0x530   : > { %v13352_v52 = vpop.f32.mrb[7].mxu0 }
 0x531   : > { %v14086_v20 = vadd.f32 %v13350_v60, %v17600_v8  ;;  %v13353_v22 = vadd.f32 %v13352_v52, %v13351_v53 }
 0x533   : > { %v13484_v45 = vpop.f32.mrb[180].mxu1  ;;  %v14092_v50 = vadd.f32 %v13353_v22, %v17605_v21 }
 0x534   : > { %v13485_v34 = vpop.f32.mrb[181].mxu1 }
 0x535   : > { %v13486_v17 = vadd.f32 %v13485_v34, %v13484_v45  ;;  %v13487_v31 = vpop.f32.mrb[182].mxu1 }
 0x536   : > { %v13488_v24 = vpop.f32.mrb[183].mxu1 }
 0x537   : > { %v13489_v54 = vadd.f32 %v13488_v24, %v13487_v31  ;;  %v17743_v18 = vadd.f32 %v14086_v20, %v13486_v17  ;;  %v17758_v24 = vld [vmem:[%s17973_s8] ss:$0 sm:$0xff] }
 0x538   : > { %v13354_v41 = vpop.f32.mrb[8].mxu0 }
 0x539   : > { %v13355_v36 = vpop.f32.mrb[9].mxu0  ;;  %v17745_v23 = vadd.f32 %v14092_v50, %v13489_v54 }
 0x53a   : > { %v13356_v51 = vadd.f32 %v13355_v36, %v13354_v41  ;;  %v13357_v15 = vpop.f32.mrb[10].mxu0 }
 0x53b   : > { %v13358_v11 = vpop.f32.mrb[11].mxu0 }
 0x53c   : > { %v14101_v8 = vadd.f32 %v13356_v51, %v17610_v32  ;;  %v13359_v2 = vadd.f32 %v13358_v11, %v13357_v15  ;;  %v17768_v51 = vld [vmem:[%s17974_s9] ss:$0 sm:$0xff] }
 0x53e   : > { %v13490_v59 = vpop.f32.mrb[184].mxu1  ;;  %v14107_v21 = vadd.f32 %v13359_v2, %v17614_v27 }
 0x53f   : > { %v13491_v37 = vpop.f32.mrb[185].mxu1 }
 0x540   : > { %v13492_v6 = vadd.f32 %v13491_v37, %v13490_v59  ;;  %v13493_v57 = vpop.f32.mrb[186].mxu1 }
 0x541   : > { %v13494_v42 = vpop.f32.mrb[187].mxu1 }
 0x542   : > { %v13495_v29 = vadd.f32 %v13494_v42, %v13493_v57  ;;  %v17749_v62 = vadd.f32 %v14101_v8, %v13492_v6  ;;  %v17774_v8 = vld [vmem:[%s17970_s5] ss:$0 sm:$0xff] }
 0x543   : > { %v13360_v58 = vpop.f32.mrb[12].mxu0  ;;  %v17780_v6 = vld [vmem:[%s17971_s6] ss:$0 sm:$0xff] }
 0x544   : > { %v13361_v3 = vpop.f32.mrb[13].mxu0  ;;  %v17751_v33 = vadd.f32 %v14107_v21, %v13495_v29 }
 0x545   : > { %v13362_v0 = vadd.f32 %v13361_v3, %v13360_v58  ;;  %v13363_v10 = vpop.f32.mrb[14].mxu0 }
 0x546   : > { %v13364_v60 = vpop.f32.mrb[15].mxu0 }
 0x547   : > { %v14098_v32 = vadd.f32 %v13362_v0, %v17620_v56  ;;  %v13365_v53 = vadd.f32 %v13364_v60, %v13363_v10 }
 0x549   : > { %v14104_v52 = vadd.f32 %v13365_v53, %v17624_v47 }
 0x54b   : > { %v13496_v27 = vpop.f32.mrb[188].mxu1  ;;  %v13856_v20 = vpop.f32.mrb[16].mxu0 }
 0x54c   : > { %v13497_v22 = vpop.f32.mrb[189].mxu1  ;;  %v11274_v45 = vpop.f32.mrb[17].mxu0  ;;  %v11410_v56 = vmul.f32 %v13856_v20, %v17758_v24 }
 0x54d   : > { %v13498_v50 = vadd.f32 %v13497_v22, %v13496_v27  ;;  %v13499_v34 = vpop.f32.mrb[190].mxu1  ;;  %v13857_v17 = vpop.f32.mrb[18].mxu0  ;;  %v11408_v15 = vmul.f32 %v17758_v24, %v11274_v45 }
 0x54e   : > { %v13500_v31 = vpop.f32.mrb[191].mxu1  ;;  %v11277_v54 = vpop.f32.mrb[19].mxu0  ;;  %v11449_v57 = vadd.f32 %v17768_v51, %v11410_v56 }
 0x54f   : > { %v13501_v41 = vadd.f32 %v13500_v31, %v13499_v34  ;;  %v17760_v36 = vadd.f32 %v14098_v32, %v13498_v50  ;;  %v11447_v0 = vadd.f32 %v17768_v51, %v11408_v15  ;;  %v11409_v27 = vmul.f32 %v17758_v24, %v11277_v54 }
 0x551   : > { %v17763_v47 = vadd.f32 %v14104_v52, %v13501_v41  ;;  %v11448_v41 = vadd.f32 %v17768_v51, %v11409_v27 }
 0x553   : > { %v13808_v11 = vpop.f32.mrb[96].mxu1  ;;  %v13860_v2 = vpop.f32.mrb[20].mxu0 }
 0x554   : > { %v14016_v59 = vadd.f32 %v17666_v28, %v13808_v11  ;;  %v10811_v21 = vpop.f32.mrb[97].mxu1  ;;  %v11290_v37 = vpop.f32.mrb[21].mxu0  ;;  %v11411_v28 = vmul.f32 %v13857_v17, %v17758_v24 }
 0x555   : > { %v14019_v42 = vadd.f32 %v17671_v44, %v10811_v21  ;;  %v13809_v29 = vpop.f32.mrb[98].mxu1  ;;  %v13861_v58 = vpop.f32.mrb[22].mxu0  ;;  %v11414_v44 = vmul.f32 %v13860_v2, %v17758_v24  ;;  %v11412_v45 = vmul.f32 %v17758_v24, %v11290_v37 }
 0x556   : > { %v10979_v3 = vmul.f32 %v14016_v59, %v17774_v8  ;;  %v14022_v10 = vadd.f32 %v17673_v14, %v13809_v29  ;;  %v10814_v60 = vpop.f32.mrb[99].mxu1  ;;  %v11293_v32 = vpop.f32.mrb[23].mxu0  ;;  %v11450_v31 = vadd.f32 %v17768_v51, %v11411_v28 }
 0x557   : > { %v10977_v53 = vmul.f32 %v14019_v42, %v17774_v8  ;;  %v14025_v52 = vadd.f32 %v17679_v25, %v10814_v60  ;;  %v11453_v15 = vadd.f32 %v17768_v51, %v11414_v44  ;;  %v11451_v37 = vadd.f32 %v17768_v51, %v11412_v45 }
 0x558   : > { %v11018_v20 = vadd.f32 %v17780_v6, %v10979_v3  ;;  %v10980_v22 = vmul.f32 %v14022_v10, %v17774_v8  ;;  %v11413_v28 = vmul.f32 %v17758_v24, %v11293_v32 }
 0x559   : > { %v11016_v14 = vadd.f32 %v17780_v6, %v10977_v53  ;;  %v10978_v50 = vmul.f32 %v14025_v52, %v17774_v8 }
 0x55a   : > { %v11481_v34 = vadd.f32 %v11449_v57, %v11018_v20  ;;  %v11019_v17 = vadd.f32 %v17780_v6, %v10980_v22  ;;  %v11415_v57 = vmul.f32 %v13861_v58, %v17758_v24 }
 0x55b   : > { %v11479_v25 = vadd.f32 %v11447_v0, %v11016_v14  ;;  %v11017_v54 = vadd.f32 %v17780_v6, %v10978_v50  ;;  %v13812_v56 = vpop.f32.mrb[100].mxu1  ;;  %v13864_v11 = vpop.f32.mrb[24].mxu0 }
 0x55c   : > { %v11482_v2 = vadd.f32 %v11450_v31, %v11019_v17  ;;  %v14028_v59 = vadd.f32 %v17681_v49, %v13812_v56  ;;  %v10827_v21 = vpop.f32.mrb[101].mxu1  ;;  %v11306_v42 = vpop.f32.mrb[25].mxu0  ;;  %v11513_v29 = vmax.f32 %v11481_v34, 0.0  ;;  %v11418_v44 = vmul.f32 %v13864_v11, %v17758_v24 }
 0x55d   : > { %v11480_v3 = vadd.f32 %v11448_v41, %v11017_v54  ;;  %v14031_v0 = vadd.f32 %v17685_v61, %v10827_v21  ;;  %v13813_v10 = vpop.f32.mrb[102].mxu1  ;;  %v13865_v60 = vpop.f32.mrb[26].mxu0  ;;  %v11511_v22 = vmax.f32 %v11479_v25, 0.0  ;;  %v11416_v50 = vmul.f32 %v17758_v24, %v11306_v42 }
 0x55e   : > { %v11514_v53 = vmax.f32 %v11482_v2, 0.0  ;;  %v10983_v52 = vmul.f32 %v14028_v59, %v17774_v8  ;;  %v14034_v49 = vadd.f32 %v17687_v1, %v13813_v10  ;;  %v10830_v27 = vpop.f32.mrb[103].mxu1  ;;  %v11309_v20 = vpop.f32.mrb[27].mxu0  ;;  %v11454_v41 = vadd.f32 %v17768_v51, %v11415_v57 }
 0x55f   : > { %v11512_v61 = vmax.f32 %v11480_v3, 0.0  ;;  %v10981_v58 = vmul.f32 %v14031_v0, %v17774_v8  ;;  %v14037_v32 = vadd.f32 %v17692_v48, %v10830_v27  ;;  %v11452_v11 = vadd.f32 %v17768_v51, %v11413_v28 }
 0x560   : > { %v12615_v45 = vpack.c.bf16 %v11514_v53, %v11513_v29  ;;  %v11022_v1 = vadd.f32 %v17780_v6, %v10983_v52  ;;  %v10984_v14 = vmul.f32 %v14034_v49, %v17774_v8  ;;  %v11457_v59 = vadd.f32 %v17768_v51, %v11418_v44 }
 0x561   : > { %v12610_v34 = vpack.c.bf16 %v11512_v61, %v11511_v22  ;;  %v11020_v17 = vadd.f32 %v17780_v6, %v10981_v58  ;;  %v10982_v31 = vmul.f32 %v14037_v32, %v17774_v8  ;;  %v11419_v0 = vmul.f32 %v13865_v60, %v17758_v24 }
 0x562   : > { %12695 = vst [vmem:[%s17815_s17 + $0x8] sm:$0xff] %v12615_v45   ;;  %v11485_v25 = vadd.f32 %v11453_v15, %v11022_v1  ;;  %v11023_v54 = vadd.f32 %v17780_v6, %v10984_v14  ;;  %v11455_v15 = vadd.f32 %v17768_v51, %v11416_v50  ;;  %v11417_v28 = vmul.f32 %v17758_v24, %v11309_v20 }
 0x563   : > { %12611 = vst [vmem:[%s17815_s17] sm:$0xff] %v12610_v34   ;;  %v11483_v48 = vadd.f32 %v11451_v37, %v11020_v17  ;;  %v11021_v56 = vadd.f32 %v17780_v6, %v10982_v31  ;;  %v13816_v2 = vpop.f32.mrb[104].mxu1  ;;  %v13868_v21 = vpop.f32.mrb[28].mxu0 }
 0x564   : > { %v11486_v42 = vadd.f32 %v11454_v41, %v11023_v54  ;;  %v14040_v29 = vadd.f32 %v17694_v19, %v13816_v2  ;;  %v10843_v3 = vpop.f32.mrb[105].mxu1  ;;  %v11322_v10 = vpop.f32.mrb[29].mxu0  ;;  %v11517_v57 = vmax.f32 %v11485_v25, 0.0  ;;  %v11422_v61 = vmul.f32 %v13868_v21, %v17758_v24 }
 0x565   : > { %v11484_v53 = vadd.f32 %v11452_v11, %v11021_v56  ;;  %v14043_v37 = vadd.f32 %v17697_v13, %v10843_v3  ;;  %v13817_v52 = vpop.f32.mrb[106].mxu1  ;;  %v13869_v49 = vpop.f32.mrb[30].mxu0  ;;  %v11515_v60 = vmax.f32 %v11483_v48, 0.0  ;;  %v11420_v50 = vmul.f32 %v17758_v24, %v11322_v10 }
 0x566   : > { %v11518_v27 = vmax.f32 %v11486_v42, 0.0  ;;  %v10987_v44 = vmul.f32 %v14040_v29, %v17774_v8  ;;  %v14046_v19 = vadd.f32 %v17699_v55, %v13817_v52  ;;  %v10846_v22 = vpop.f32.mrb[107].mxu1  ;;  %v11325_v58 = vpop.f32.mrb[31].mxu0  ;;  %v11458_v54 = vadd.f32 %v17768_v51, %v11419_v0 }
 0x567   : > { %v11516_v32 = vmax.f32 %v11484_v53, 0.0  ;;  %v10985_v45 = vmul.f32 %v14043_v37, %v17774_v8  ;;  %v14049_v13 = vadd.f32 %v17701_v35, %v10846_v22  ;;  %v11456_v48 = vadd.f32 %v17768_v51, %v11417_v28 }
 0x568   : > { %v12625_v1 = vpack.c.bf16 %v11518_v27, %v11517_v57  ;;  %v11026_v20 = vadd.f32 %v17780_v6, %v10987_v44  ;;  %v10988_v14 = vmul.f32 %v14046_v19, %v17774_v8  ;;  %v11461_v11 = vadd.f32 %v17768_v51, %v11422_v61 }
 0x569   : > { %v12620_v34 = vpack.c.bf16 %v11516_v32, %v11515_v60  ;;  %v11024_v55 = vadd.f32 %v17780_v6, %v10985_v45  ;;  %v10986_v17 = vmul.f32 %v14049_v13, %v17774_v8  ;;  %v11423_v3 = vmul.f32 %v13869_v49, %v17758_v24 }
 0x56a   : > { %12697 = vst [vmem:[%s17815_s17 + $0x18] sm:$0xff] %v12625_v1   ;;  %v11489_v31 = vadd.f32 %v11457_v59, %v11026_v20  ;;  %v11027_v25 = vadd.f32 %v17780_v6, %v10988_v14  ;;  %v11459_v59 = vadd.f32 %v17768_v51, %v11420_v50  ;;  %v11421_v37 = vmul.f32 %v17758_v24, %v11325_v58 }
 0x56b   : > { %12696 = vst [vmem:[%s17815_s17 + $0x10] sm:$0xff] %v12620_v34   ;;  %v11487_v35 = vadd.f32 %v11455_v15, %v11024_v55  ;;  %v11025_v41 = vadd.f32 %v17780_v6, %v10986_v17  ;;  %v13820_v56 = vpop.f32.mrb[108].mxu1  ;;  %v13872_v2 = vpop.f32.mrb[32].mxu0  ;;  %v11462_v34 = vadd.f32 %v17768_v51, %v11423_v3 }
 0x56c   : > { %v11490_v21 = vadd.f32 %v11458_v54, %v11027_v25  ;;  %v14052_v42 = vadd.f32 %v17703_v9, %v13820_v56  ;;  %v10859_v29 = vpop.f32.mrb[109].mxu1  ;;  %v11338_v10 = vpop.f32.mrb[33].mxu0  ;;  %v11521_v0 = vmax.f32 %v11489_v31, 0.0  ;;  %v11426_v19 = vmul.f32 %v13872_v2, %v17758_v24 }
 0x56d   : > { %v11488_v57 = vadd.f32 %v11456_v48, %v11025_v41  ;;  %v14055_v15 = vadd.f32 %v17705_v26, %v10859_v29  ;;  %v13821_v53 = vpop.f32.mrb[110].mxu1  ;;  %v13873_v52 = vpop.f32.mrb[34].mxu0  ;;  %v11519_v49 = vmax.f32 %v11487_v35, 0.0  ;;  %v11424_v13 = vmul.f32 %v17758_v24, %v11338_v10 }
 0x56e   : > { %v11522_v28 = vmax.f32 %v11490_v21, 0.0  ;;  %v10991_v27 = vmul.f32 %v14052_v42, %v17774_v8  ;;  %v14058_v9 = vadd.f32 %v17707_v39, %v13821_v53  ;;  %v10862_v44 = vpop.f32.mrb[111].mxu1  ;;  %v11341_v22 = vpop.f32.mrb[35].mxu0  ;;  %v11460_v17 = vadd.f32 %v17768_v51, %v11421_v37 }
 0x56f   : > { %v11520_v61 = vmax.f32 %v11488_v57, 0.0  ;;  %v10989_v60 = vmul.f32 %v14055_v15, %v17774_v8  ;;  %v14061_v26 = vadd.f32 %v17711_v46, %v10862_v44  ;;  %v11465_v25 = vadd.f32 %v17768_v51, %v11426_v19 }
 0x570   : > { %v12635_v32 = vpack.c.bf16 %v11522_v28, %v11521_v0  ;;  %v11030_v58 = vadd.f32 %v17780_v6, %v10991_v27  ;;  %v10992_v45 = vmul.f32 %v14058_v9, %v17774_v8  ;;  %v11463_v56 = vadd.f32 %v17768_v51, %v11424_v13 }
 0x571   : > { %v12630_v1 = vpack.c.bf16 %v11520_v61, %v11519_v49  ;;  %v11028_v39 = vadd.f32 %v17780_v6, %v10989_v60  ;;  %v10990_v20 = vmul.f32 %v14061_v26, %v17774_v8  ;;  %v11425_v3 = vmul.f32 %v17758_v24, %v11341_v22 }
 0x572   : > { %12699 = vst [vmem:[%s17815_s17 + $0x28] sm:$0xff] %v12635_v32   ;;  %v11493_v14 = vadd.f32 %v11461_v11, %v11030_v58  ;;  %v11031_v50 = vadd.f32 %v17780_v6, %v10992_v45  ;;  %v11427_v11 = vmul.f32 %v13873_v52, %v17758_v24 }
 0x573   : > { %12698 = vst [vmem:[%s17815_s17 + $0x20] sm:$0xff] %v12630_v1   ;;  %v11491_v46 = vadd.f32 %v11459_v59, %v11028_v39  ;;  %v11029_v55 = vadd.f32 %v17780_v6, %v10990_v20  ;;  %v13824_v31 = vpop.f32.mrb[112].mxu1  ;;  %v13876_v54 = vpop.f32.mrb[36].mxu0  ;;  %v11464_v45 = vadd.f32 %v17768_v51, %v11425_v3 }
 0x574   : > { %v11494_v35 = vadd.f32 %v11462_v34, %v11031_v50  ;;  %v14064_v41 = vadd.f32 %v17719_v40, %v13824_v31  ;;  %v10875_v48 = vpop.f32.mrb[113].mxu1  ;;  %v11354_v2 = vpop.f32.mrb[37].mxu0  ;;  %v11525_v21 = vmax.f32 %v11493_v14, 0.0  ;;  %v11430_v53 = vmul.f32 %v13876_v54, %v17758_v24 }
 0x575   : > { %v11492_v42 = vadd.f32 %v11460_v17, %v11029_v55  ;;  %v14067_v29 = vadd.f32 %v17713_v12, %v10875_v48  ;;  %v13825_v59 = vpop.f32.mrb[114].mxu1  ;;  %v13877_v10 = vpop.f32.mrb[38].mxu0  ;;  %v11523_v52 = vmax.f32 %v11491_v46, 0.0  ;;  %v11428_v22 = vmul.f32 %v17758_v24, %v11354_v2 }
 0x576   : > { %v11526_v0 = vmax.f32 %v11494_v35, 0.0  ;;  %v10995_v57 = vmul.f32 %v14064_v41, %v17774_v8  ;;  %v14070_v40 = vadd.f32 %v17721_v16, %v13825_v59  ;;  %v10878_v15 = vpop.f32.mrb[115].mxu1  ;;  %v11357_v37 = vpop.f32.mrb[39].mxu0  ;;  %v11466_v32 = vadd.f32 %v17768_v51, %v11427_v11 }
 0x577   : > { %v11524_v28 = vmax.f32 %v11492_v42, 0.0  ;;  %v10993_v27 = vmul.f32 %v14067_v29, %v17774_v8  ;;  %v14073_v12 = vadd.f32 %v17716_v7, %v10878_v15  ;;  %v11469_v1 = vadd.f32 %v17768_v51, %v11430_v53 }
 0x578   : > { %v12645_v9 = vpack.c.bf16 %v11526_v0, %v11525_v21  ;;  %v11034_v44 = vadd.f32 %v17780_v6, %v10995_v57  ;;  %v10996_v19 = vmul.f32 %v14070_v40, %v17774_v8  ;;  %v11467_v34 = vadd.f32 %v17768_v51, %v11428_v22 }
 0x579   : > { %v12640_v49 = vpack.c.bf16 %v11524_v28, %v11523_v52  ;;  %v11032_v16 = vadd.f32 %v17780_v6, %v10993_v27  ;;  %v10994_v61 = vmul.f32 %v14073_v12, %v17774_v8  ;;  %v11431_v46 = vmul.f32 %v13877_v10, %v17758_v24 }
 0x57a   : > { %12701 = vst [vmem:[%s17815_s17 + $0x38] sm:$0xff] %v12645_v9   ;;  %v11497_v60 = vadd.f32 %v11465_v25, %v11034_v44  ;;  %v11035_v26 = vadd.f32 %v17780_v6, %v10996_v19  ;;  %v11429_v35 = vmul.f32 %v17758_v24, %v11357_v37 }
 0x57b   : > { %12700 = vst [vmem:[%s17815_s17 + $0x30] sm:$0xff] %v12640_v49   ;;  %v11495_v7 = vadd.f32 %v11463_v56, %v11032_v16  ;;  %v11033_v58 = vadd.f32 %v17780_v6, %v10994_v61  ;;  %v13828_v13 = vpop.f32.mrb[116].mxu1  ;;  %v13880_v39 = vpop.f32.mrb[40].mxu0  ;;  %v11470_v52 = vadd.f32 %v17768_v51, %v11431_v46 }
 0x57c   : > { %v11498_v20 = vadd.f32 %v11466_v32, %v11035_v26  ;;  %v14076_v14 = vadd.f32 %v17731_v63, %v13828_v13  ;;  %v10891_v50 = vpop.f32.mrb[117].mxu1  ;;  %v11370_v55 = vpop.f32.mrb[41].mxu0  ;;  %v11529_v17 = vmax.f32 %v11497_v60, 0.0  ;;  %v11434_v2 = vmul.f32 %v13880_v39, %v17758_v24 }
 0x57d   : > { %v11496_v31 = vadd.f32 %v11464_v45, %v11033_v58  ;;  %v14079_v25 = vadd.f32 %v17725_v38, %v10891_v50  ;;  %v13829_v54 = vpop.f32.mrb[118].mxu1  ;;  %v13881_v41 = vpop.f32.mrb[42].mxu0  ;;  %v11527_v42 = vmax.f32 %v11495_v7, 0.0  ;;  %v11432_v57 = vmul.f32 %v17758_v24, %v11370_v55 }
 0x57e   : > { %v11530_v48 = vmax.f32 %v11498_v20, 0.0  ;;  %v10999_v56 = vmul.f32 %v14076_v14, %v17774_v8  ;;  %v14082_v63 = vadd.f32 %v17733_v5, %v13829_v54  ;;  %v10894_v11 = vpop.f32.mrb[119].mxu1  ;;  %v11373_v21 = vpop.f32.mrb[43].mxu0  ;;  %v11468_v27 = vadd.f32 %v17768_v51, %v11429_v35 }
 0x57f   : > { %v11528_v29 = vmax.f32 %v11496_v31, 0.0  ;;  %v10997_v59 = vmul.f32 %v14079_v25, %v17774_v8  ;;  %v14085_v38 = vadd.f32 %v17727_v4, %v10894_v11  ;;  %v11473_v9 = vadd.f32 %v17768_v51, %v11434_v2 }
 0x580   : > { %v12655_v3 = vpack.c.bf16 %v11530_v48, %v11529_v17  ;;  %v11038_v10 = vadd.f32 %v17780_v6, %v10999_v56  ;;  %v11000_v0 = vmul.f32 %v14082_v63, %v17774_v8  ;;  %v11471_v16 = vadd.f32 %v17768_v51, %v11432_v57 }
 0x581   : > { %v12650_v40 = vpack.c.bf16 %v11528_v29, %v11527_v42  ;;  %v11036_v5 = vadd.f32 %v17780_v6, %v10997_v59  ;;  %v10998_v15 = vmul.f32 %v14085_v38, %v17774_v8  ;;  %v11435_v61 = vmul.f32 %v13881_v41, %v17758_v24 }
 0x582   : > { %12703 = vst [vmem:[%s17815_s17 + $0x48] sm:$0xff] %v12655_v3   ;;  %v11501_v53 = vadd.f32 %v11469_v1, %v11038_v10  ;;  %v11039_v37 = vadd.f32 %v17780_v6, %v11000_v0  ;;  %v11433_v45 = vmul.f32 %v17758_v24, %v11373_v21 }
 0x583   : > { %12702 = vst [vmem:[%s17815_s17 + $0x40] sm:$0xff] %v12650_v40   ;;  %v11499_v4 = vadd.f32 %v11467_v34, %v11036_v5  ;;  %v11037_v28 = vadd.f32 %v17780_v6, %v10998_v15  ;;  %v13832_v12 = vpop.f32.mrb[120].mxu1  ;;  %v13884_v44 = vpop.f32.mrb[44].mxu0  ;;  %v11474_v63 = vadd.f32 %v17768_v51, %v11435_v61 }
 0x584   : > { %v11502_v19 = vadd.f32 %v11470_v52, %v11039_v37  ;;  %v14088_v22 = vadd.f32 %v17743_v18, %v13832_v12  ;;  %v10907_v49 = vpop.f32.mrb[121].mxu1  ;;  %v11386_v60 = vpop.f32.mrb[45].mxu0  ;;  %v11533_v26 = vmax.f32 %v11501_v53, 0.0  ;;  %v11438_v14 = vmul.f32 %v13884_v44, %v17758_v24 }
 0x585   : > { %v11500_v32 = vadd.f32 %v11468_v27, %v11037_v28  ;;  %v14091_v7 = vadd.f32 %v17737_v43, %v10907_v49  ;;  %v13833_v58 = vpop.f32.mrb[122].mxu1  ;;  %v13885_v13 = vpop.f32.mrb[46].mxu0  ;;  %v11531_v34 = vmax.f32 %v11499_v4, 0.0  ;;  %v11436_v54 = vmul.f32 %v17758_v24, %v11386_v60 }
 0x586   : > { %v11534_v1 = vmax.f32 %v11502_v19, 0.0  ;;  %v11003_v39 = vmul.f32 %v14088_v22, %v17774_v8  ;;  %v14094_v18 = vadd.f32 %v17745_v23, %v13833_v58  ;;  %v10910_v20 = vpop.f32.mrb[123].mxu1  ;;  %v11389_v50 = vpop.f32.mrb[47].mxu0  ;;  %v11472_v2 = vadd.f32 %v17768_v51, %v11433_v45 }
 0x587   : > { %v11532_v46 = vmax.f32 %v11500_v32, 0.0  ;;  %v11001_v55 = vmul.f32 %v14091_v7, %v17774_v8  ;;  %v14097_v43 = vadd.f32 %v17739_v30, %v10910_v20  ;;  %v11477_v59 = vadd.f32 %v17768_v51, %v11438_v14 }
 0x588   : > { %v12665_v17 = vpack.c.bf16 %v11534_v1, %v11533_v26  ;;  %v11042_v31 = vadd.f32 %v17780_v6, %v11003_v39  ;;  %v11004_v25 = vmul.f32 %v14094_v18, %v17774_v8  ;;  %v11475_v3 = vadd.f32 %v17768_v51, %v11436_v54 }
 0x589   : > { %v12660_v35 = vpack.c.bf16 %v11532_v46, %v11531_v34  ;;  %v11040_v23 = vadd.f32 %v17780_v6, %v11001_v55  ;;  %v11002_v41 = vmul.f32 %v14097_v43, %v17774_v8  ;;  %v11439_v40 = vmul.f32 %v13885_v13, %v17758_v24 }
 0x58a   : > { %12705 = vst [vmem:[%s17815_s17 + $0x58] sm:$0xff] %v12665_v17   ;;  %v11505_v48 = vadd.f32 %v11473_v9, %v11042_v31  ;;  %v11043_v56 = vadd.f32 %v17780_v6, %v11004_v25  ;;  %v11437_v5 = vmul.f32 %v17758_v24, %v11389_v50 }
 0x58b   : > { %12704 = vst [vmem:[%s17815_s17 + $0x50] sm:$0xff] %v12660_v35   ;;  %v11503_v30 = vadd.f32 %v11471_v16, %v11040_v23  ;;  %v11041_v11 = vadd.f32 %v17780_v6, %v11002_v41  ;;  %v13836_v21 = vpop.f32.mrb[124].mxu1  ;;  %v11478_v16 = vadd.f32 %v17768_v51, %v11439_v40 }
 0x58c   : > { %v11506_v42 = vadd.f32 %v11474_v63, %v11043_v56  ;;  %v14100_v29 = vadd.f32 %v17760_v36, %v13836_v21  ;;  %v10923_v38 = vpop.f32.mrb[125].mxu1  ;;  %v11537_v15 = vmax.f32 %v11505_v48, 0.0  ;;  %v11476_v60 = vadd.f32 %v17768_v51, %v11437_v5 }
 0x58d   : > { %v11504_v10 = vadd.f32 %v11472_v2, %v11041_v11  ;;  %v14103_v0 = vadd.f32 %v17749_v62, %v10923_v38  ;;  %v13837_v57 = vpop.f32.mrb[126].mxu1  ;;  %v11535_v4 = vmax.f32 %v11503_v30, 0.0 }
 0x58e   : > { %v11538_v53 = vmax.f32 %v11506_v42, 0.0  ;;  %v11007_v37 = vmul.f32 %v14100_v29, %v17774_v8  ;;  %v14106_v36 = vadd.f32 %v17763_v47, %v13837_v57  ;;  %v10926_v52 = vpop.f32.mrb[127].mxu1 }
 0x58f   : > { %v11536_v28 = vmax.f32 %v11504_v10, 0.0  ;;  %v11005_v27 = vmul.f32 %v14103_v0, %v17774_v8  ;;  %v14109_v62 = vadd.f32 %v17751_v33, %v10926_v52 }
 0x590   : > { %v12675_v12 = vpack.c.bf16 %v11538_v53, %v11537_v15  ;;  %v11046_v9 = vadd.f32 %v17780_v6, %v11007_v37  ;;  %v11008_v24 = vmul.f32 %v14106_v36, %v17774_v8 }
 0x591   : > { %v12670_v44 = vpack.c.bf16 %v11536_v28, %v11535_v4  ;;  %v11044_v19 = vadd.f32 %v17780_v6, %v11005_v27  ;;  %v11006_v22 = vmul.f32 %v14109_v62, %v17774_v8 }
 0x592   : > { %12707 = vst [vmem:[%s17815_s17 + $0x68] sm:$0xff] %v12675_v12   ;;  %v11509_v47 = vadd.f32 %v11477_v59, %v11046_v9  ;;  %v11047_v49 = vadd.f32 %v17780_v6, %v11008_v24 }
 0x593   : > { %12706 = vst [vmem:[%s17815_s17 + $0x60] sm:$0xff] %v12670_v44   ;;  %v11507_v33 = vadd.f32 %v11475_v3, %v11044_v19  ;;  %v11045_v61 = vadd.f32 %v17780_v6, %v11006_v22 }
 0x594   : > { %v11510_v26 = vadd.f32 %v11478_v16, %v11047_v49  ;;  %v11541_v7 = vmax.f32 %v11509_v47, 0.0 }
 0x595   : > { %v11508_v32 = vadd.f32 %v11476_v60, %v11045_v61  ;;  %v11539_v45 = vmax.f32 %v11507_v33, 0.0 }
 0x596   : > { %v11542_v58 = vmax.f32 %v11510_v26, 0.0 }
 0x597   : > { %v11540_v8 = vmax.f32 %v11508_v32, 0.0 }
 0x598   : > { %v12685_v13 = vpack.c.bf16 %v11542_v58, %v11541_v7 }
 0x599   : > { %v12680_v1 = vpack.c.bf16 %v11540_v8, %v11539_v45 }
 0x59a   : > { %12709 = vst [vmem:[%s17815_s17 + $0x78] sm:$0xff] %v12685_v13  }
 0x59b   : > { %12708 = vst [vmem:[%s17815_s17 + $0x70] sm:$0xff] %v12680_v1  }
 0x59c PF: > { %s21_s13 = sadd.s32 1, %s14879_s13  }
 0x59d   : > { %p18_p3 = scmp.ge.s32.totalorder %s21_s13, 4  }
 0x59f   :  { %20 = sbr.rel (!%p18_p3) target bundleno = 1 (0x1), region = 105 }
 0x5a6   :  { %11724 = vsyncpa [#allocation5], 1 }
 0x5a7   :  { %11726 = vsyncpa [#allocation5 + $0x1], 1 }

</bundles_post_ra>
